<compile_context>
chip_gen: v6e
topology: v6e:2x2x1
jax: 0.10.0
libtpu: 0.0.40
codegen_flags: <defaults>
</compile_context>

<pallas_src>
import numpy as np

import jax
import jax.numpy as jnp
from jax.experimental import pallas as pl
from jax.experimental.pallas import tpu as pltpu

# Flat-grid lane extents per stage (all multiples of 128).  The 32x32 image is
# flattened to lanes (p = 32*h + w); each stage keeps enough lanes to cover its
# valid outputs plus the largest shift used by the next stage.
E_X  = 1536   # padded input   (>= 1280 + 4*32 + 4)
E_C1 = 1280   # conv1 output   (>= 1152 + 33)
E_P1 = 1152   # pool1 output   (>= 768 + 4*64 + 2*4)
E_C2 = 768    # conv2 output   (>= 640 + 66)
E_P2 = 640    # pool2 output   (valid lanes reach 128*4 + 4*4 = 528)


# ------------------------------ Pallas kernel ------------------------------

def _lenet_kernel(x_ref, w1_ref, b1_ref, w2_ref, b2_ref, sel_ref,
                  fc1w_ref, fc1b_ref, fc2w_ref, fc2b_ref, fc3w_ref, fc3b_ref,
                  out_ref,
                  c1_ref, p1_ref, c2_ref, p2_ref, r_ref):
    f32 = jnp.float32

    # ---- conv1 (3->6, 5x5, valid): 25 tap-shifted MXU matmuls -------------
    acc1 = jnp.zeros((6, E_C1), f32)
    for i in range(5):
        for j in range(5):
            xs = x_ref[0, :, pl.ds(32 * i + j, E_C1)]            # (3, E_C1)
            acc1 = acc1 + jnp.dot(w1_ref[5 * i + j], xs,
                                  preferred_element_type=f32)
    c1_ref[...] = jnp.maximum(acc1 + b1_ref[...], 0.0)            # bias + ReLU

    # ---- pool1 (2x2/2) fused: max of 4 lane-shifted reads -----------------
    # valid pool1[a, b] lands at lane 64*a + 2*b
    p1_ref[...] = jnp.maximum(
        jnp.maximum(c1_ref[:, pl.ds(0, E_P1)], c1_ref[:, pl.ds(1, E_P1)]),
        jnp.maximum(c1_ref[:, pl.ds(32, E_P1)], c1_ref[:, pl.ds(33, E_P1)]))

    # ---- conv2 (6->16, 5x5) on the stride-2 flat grid ----------------------
    acc2 = jnp.zeros((16, E_C2), f32)
    for i in range(5):
        for j in range(5):
            ps = p1_ref[:, pl.ds(64 * i + 2 * j, E_C2)]          # (6, E_C2)
            acc2 = acc2 + jnp.dot(w2_ref[5 * i + j], ps,
                                  preferred_element_type=f32)
    c2_ref[...] = jnp.maximum(acc2 + b2_ref[...], 0.0)

    # ---- pool2: valid pool2[a, b] lands at lane 128*a + 4*b ----------------
    p2_ref[...] = jnp.maximum(
        jnp.maximum(c2_ref[:, pl.ds(0, E_P2)], c2_ref[:, pl.ds(2, E_P2)]),
        jnp.maximum(c2_ref[:, pl.ds(64, E_P2)], c2_ref[:, pl.ds(66, E_P2)]))

    # ---- gather the 16 x (5x5) valid window (PyTorch flatten order) --------
    # (16, E_P2) @ (E_P2, 25) one-hot gather on the MXU -> (16, 25)
    r_ref[...] = jnp.dot(p2_ref[...], sel_ref[...], preferred_element_type=f32)

    # ---- fc1 (400->120): 16 per-channel (1,25)@(25,120) dots ---------------
    h = fc1b_ref[...]                                             # (1, 120)
    for c in range(16):
        h = h + jnp.dot(r_ref[pl.ds(c, 1), :], fc1w_ref[c],
                        preferred_element_type=f32)
    h = jnp.maximum(h, 0.0)

    # ---- fc2 / fc3 ----------------------------------------------------------
    h = jnp.maximum(jnp.dot(h, fc2w_ref[...], preferred_element_type=f32)
                    + fc2b_ref[...], 0.0)                         # (1, 84)
    y = jnp.dot(h, fc3w_ref[...], preferred_element_type=f32) + fc3b_ref[...]
    out_ref[0] = y                                                # (1, 10)


# ------------------------------- wrapper ------------------------------------

def _full_spec(shape):
    nd = len(shape)
    return pl.BlockSpec(shape, lambda i: (0,) * nd)


def net_forward(kp, x):
    """Fused LeNet forward. x: (N, 3, 32, 32) float32 (NCHW, like PyTorch)."""
    n = x.shape[0]
    x_flat = jnp.pad(x.reshape(n, 3, 32 * 32),
                     ((0, 0), (0, 0), (0, E_X - 32 * 32)))

    out = pl.pallas_call(
        _lenet_kernel,
        out_shape=jax.ShapeDtypeStruct((n, 1, 10), jnp.float32),
        grid=(n,),
        in_specs=[
            pl.BlockSpec((1, 3, E_X), lambda i: (i, 0, 0)),   # per-image input
            _full_spec((25, 6, 3)),      # conv1 per-tap weights
            _full_spec((6, 1)),          # conv1 bias
            _full_spec((25, 16, 6)),     # conv2 per-tap weights
            _full_spec((16, 1)),         # conv2 bias
            _full_spec((E_P2, 25)),      # pool2 -> 5x5 one-hot gather
            _full_spec((16, 25, 120)),   # fc1 weight (per-channel slabs)
            _full_spec((1, 120)),        # fc1 bias
            _full_spec((120, 84)),       # fc2 weight (in, out)
            _full_spec((1, 84)),         # fc2 bias
            _full_spec((84, 10)),        # fc3 weight (in, out)
            _full_spec((1, 10)),         # fc3 bias
        ],
        out_specs=pl.BlockSpec((1, 1, 10), lambda i: (i, 0, 0)),
        scratch_shapes=[
            pltpu.VMEM((6, E_C1), jnp.float32),
            pltpu.VMEM((6, E_P1), jnp.float32),
            pltpu.VMEM((16, E_C2), jnp.float32),
            pltpu.VMEM((16, E_P2), jnp.float32),
            pltpu.VMEM((16, 25), jnp.float32),
        ],
        compiler_params=pltpu.CompilerParams(
            dimension_semantics=("parallel",)),   # one image per TC on v7x
    )(x_flat, kp["w1t"], kp["b1"], kp["w2t"], kp["b2"], kp["sel"],
      kp["fc1_w"], kp["fc1_b"], kp["fc2_w"], kp["fc2_b"],
      kp["fc3_w"], kp["fc3_b"])
    return out.reshape(n, 10)


# --------------------------- params / packing -------------------------------

def init_params(key):
    """PyTorch-default-style uniform(+-1/sqrt(fan_in)) init, deterministic."""
    def uni(k, shape, fan_in):
        bound = 1.0 / jnp.sqrt(jnp.float32(fan_in))
        return jax.random.uniform(k, shape, jnp.float32, -bound, bound)

    ks = jax.random.split(key, 10)
    p = {}
    p["conv1_w"] = uni(ks[0], (6, 3, 5, 5), 3 * 5 * 5)
    p["conv1_b"] = uni(ks[1], (6,), 3 * 5 * 5)
    p["conv2_w"] = uni(ks[2], (16, 6, 5, 5), 6 * 5 * 5)
    p["conv2_b"] = uni(ks[3], (16,), 6 * 5 * 5)
    p["fc1_w"] = uni(ks[4], (120, 400), 400)   # PyTorch Linear weight is (out, in)
    p["fc1_b"] = uni(ks[5], (120,), 400)
    p["fc2_w"] = uni(ks[6], (84, 120), 120)
    p["fc2_b"] = uni(ks[7], (84,), 120)
    p["fc3_w"] = uni(ks[8], (10, 84), 84)
    p["fc3_b"] = uni(ks[9], (10,), 84)
    return p


def pack_params(p):
    """One-time repack of PyTorch-layout params into the kernel layout."""
    sel = np.zeros((E_P2, 25), np.float32)      # pool2 flat-grid -> dense 5x5
    for a in range(5):
        for b in range(5):
            sel[128 * a + 4 * b, 5 * a + b] = 1.0
    return {
        "w1t": p["conv1_w"].transpose(2, 3, 0, 1).reshape(25, 6, 3),
        "b1": p["conv1_b"].reshape(6, 1),
        "w2t": p["conv2_w"].transpose(2, 3, 0, 1).reshape(25, 16, 6),
        "b2": p["conv2_b"].reshape(16, 1),
        "sel": jnp.asarray(sel),
        "fc1_w": p["fc1_w"].T.reshape(16, 25, 120),
        "fc1_b": p["fc1_b"].reshape(1, 120),
        "fc2_w": p["fc2_w"].T,
        "fc2_b": p["fc2_b"].reshape(1, 84),
        "fc3_w": p["fc3_w"].T,
        "fc3_b": p["fc3_b"].reshape(1, 10),
    }


# --------------------------- pure-JAX reference -----------------------------

def net_forward_ref(p, x):
    def conv(x, w, b):
        y = jax.lax.conv_general_dilated(
            x, w, window_strides=(1, 1), padding="VALID",
            dimension_numbers=("NCHW", "OIHW", "NCHW"))
        return jax.nn.relu(y + b[None, :, None, None])

    def pool(x):
        return jax.lax.reduce_window(
            x, -jnp.inf, jax.lax.max, (1, 1, 2, 2), (1, 1, 2, 2), "VALID")

    x = pool(conv(x, p["conv1_w"], p["conv1_b"]))
    x = pool(conv(x, p["conv2_w"], p["conv2_b"]))
    x = x.reshape(x.shape[0], -1)
    x = jax.nn.relu(x @ p["fc1_w"].T + p["fc1_b"])
    x = jax.nn.relu(x @ p["fc2_w"].T + p["fc2_b"])
    return x @ p["fc3_w"].T + p["fc3_b"]


if __name__ == "__main__":
    key = jax.random.PRNGKey(0)
    k_param, k_x = jax.random.split(key)
    params = init_params(k_param)        # PyTorch-layout (used by the reference)
    kparams = pack_params(params)        # kernel-layout, packed once
    # Net's fc1 (16*5*5 inputs) fixes the spatial size to 32x32; use batch=2.
    x = jax.random.normal(k_x, (2, 3, 32, 32), jnp.float32)

    out = jax.block_until_ready(jax.jit(net_forward)(kparams, x))
    assert out.shape == (2, 10) and out.dtype == jnp.float32

    ref = jax.block_until_ready(net_forward_ref(params, x))
    assert jnp.allclose(out, ref, atol=1e-3, rtol=1e-3), \
        "Pallas output mismatch vs reference"

    print("KERNEL_OK")
</pallas_src>

<mosaic_0001>
module attributes {stable_mosaic.version = 11 : i64} {
  func.func @_lenet_kernel(%arg0: i32, %arg1: memref<1x3x1536xf32, #tpu.memory_space<vmem>>, %arg2: memref<25x6x3xf32, #tpu.memory_space<vmem>>, %arg3: memref<6x1xf32, #tpu.memory_space<vmem>>, %arg4: memref<25x16x6xf32, #tpu.memory_space<vmem>>, %arg5: memref<16x1xf32, #tpu.memory_space<vmem>>, %arg6: memref<640x25xf32, #tpu.memory_space<vmem>>, %arg7: memref<16x25x120xf32, #tpu.memory_space<vmem>>, %arg8: memref<1x120xf32, #tpu.memory_space<vmem>>, %arg9: memref<120x84xf32, #tpu.memory_space<vmem>>, %arg10: memref<1x84xf32, #tpu.memory_space<vmem>>, %arg11: memref<84x10xf32, #tpu.memory_space<vmem>>, %arg12: memref<1x10xf32, #tpu.memory_space<vmem>>, %arg13: memref<1x1x10xf32, #tpu.memory_space<vmem>>, %arg14: memref<6x1280xf32, #tpu.memory_space<vmem>>, %arg15: memref<6x1152xf32, #tpu.memory_space<vmem>>, %arg16: memref<16x768xf32, #tpu.memory_space<vmem>>, %arg17: memref<16x640xf32, #tpu.memory_space<vmem>>, %arg18: memref<16x25xf32, #tpu.memory_space<vmem>>) attributes {dimension_semantics = [#tpu.dimension_semantics<parallel>], iteration_bounds = array<i64: 2>, scalar_prefetch = 0 : i64, scratch_operands = 5 : i64, tpu.core_type = #tpu.core_type<tc>, window_params = [{transform_indices = @transform_0, window_bounds = array<i64: 1, 3, 1536>}, {pipeline_mode = #tpu.pipeline_mode<synchronous>, transform_indices = @transform_1, window_bounds = array<i64: 25, 6, 3>}, {pipeline_mode = #tpu.pipeline_mode<synchronous>, transform_indices = @transform_2, window_bounds = array<i64: 6, 1>}, {pipeline_mode = #tpu.pipeline_mode<synchronous>, transform_indices = @transform_3, window_bounds = array<i64: 25, 16, 6>}, {pipeline_mode = #tpu.pipeline_mode<synchronous>, transform_indices = @transform_4, window_bounds = array<i64: 16, 1>}, {pipeline_mode = #tpu.pipeline_mode<synchronous>, transform_indices = @transform_5, window_bounds = array<i64: 640, 25>}, {pipeline_mode = #tpu.pipeline_mode<synchronous>, transform_indices = @transform_6, window_bounds = array<i64: 16, 25, 120>}, {pipeline_mode = #tpu.pipeline_mode<synchronous>, transform_indices = @transform_7, window_bounds = array<i64: 1, 120>}, {pipeline_mode = #tpu.pipeline_mode<synchronous>, transform_indices = @transform_8, window_bounds = array<i64: 120, 84>}, {pipeline_mode = #tpu.pipeline_mode<synchronous>, transform_indices = @transform_9, window_bounds = array<i64: 1, 84>}, {pipeline_mode = #tpu.pipeline_mode<synchronous>, transform_indices = @transform_10, window_bounds = array<i64: 84, 10>}, {pipeline_mode = #tpu.pipeline_mode<synchronous>, transform_indices = @transform_11, window_bounds = array<i64: 1, 10>}, {transform_indices = @transform_12, window_bounds = array<i64: 1, 1, 10>}]} {
    %cst = arith.constant 0.000000e+00 : f32
    %0 = vector.broadcast %cst : f32 to vector<6x1280xf32>
    %c0 = arith.constant 0 : index
    %c0_0 = arith.constant 0 : index
    %c0_1 = arith.constant 0 : index
    %1 = vector.load %arg1[%c0, %c0_0, %c0_1] : memref<1x3x1536xf32, #tpu.memory_space<vmem>>, vector<1x3x1280xf32>
    %2 = vector.shape_cast %1 : vector<1x3x1280xf32> to vector<3x1280xf32>
    %c0_2 = arith.constant 0 : index
    %c0_3 = arith.constant 0 : index
    %c0_4 = arith.constant 0 : index
    %3 = vector.load %arg2[%c0_2, %c0_3, %c0_4] : memref<25x6x3xf32, #tpu.memory_space<vmem>>, vector<1x6x3xf32>
    %4 = vector.shape_cast %3 : vector<1x6x3xf32> to vector<6x3xf32>
    %cst_5 = arith.constant dense<0.000000e+00> : vector<6x1280xf32>
    %5 = tpu.matmul %4, %2, %cst_5 {dimension_numbers = #tpu.dot_dimension_numbers<[1], [0], [0], [1], [0, 0, 1, 1], [], []>} : vector<6x3xf32>, vector<3x1280xf32>, vector<6x1280xf32> -> vector<6x1280xf32>
    %6 = arith.addf %0, %5 : vector<6x1280xf32>
    %c0_6 = arith.constant 0 : index
    %c0_7 = arith.constant 0 : index
    %c1 = arith.constant 1 : index
    %7 = vector.load %arg1[%c0_6, %c0_7, %c1] : memref<1x3x1536xf32, #tpu.memory_space<vmem>>, vector<1x3x1280xf32>
    %8 = vector.shape_cast %7 : vector<1x3x1280xf32> to vector<3x1280xf32>
    %c1_8 = arith.constant 1 : index
    %c0_9 = arith.constant 0 : index
    %c0_10 = arith.constant 0 : index
    %9 = vector.load %arg2[%c1_8, %c0_9, %c0_10] : memref<25x6x3xf32, #tpu.memory_space<vmem>>, vector<1x6x3xf32>
    %10 = vector.shape_cast %9 : vector<1x6x3xf32> to vector<6x3xf32>
    %cst_11 = arith.constant dense<0.000000e+00> : vector<6x1280xf32>
    %11 = tpu.matmul %10, %8, %cst_11 {dimension_numbers = #tpu.dot_dimension_numbers<[1], [0], [0], [1], [0, 0, 1, 1], [], []>} : vector<6x3xf32>, vector<3x1280xf32>, vector<6x1280xf32> -> vector<6x1280xf32>
    %12 = arith.addf %6, %11 : vector<6x1280xf32>
    %c0_12 = arith.constant 0 : index
    %c0_13 = arith.constant 0 : index
    %c2 = arith.constant 2 : index
    %13 = vector.load %arg1[%c0_12, %c0_13, %c2] : memref<1x3x1536xf32, #tpu.memory_space<vmem>>, vector<1x3x1280xf32>
    %14 = vector.shape_cast %13 : vector<1x3x1280xf32> to vector<3x1280xf32>
    %c2_14 = arith.constant 2 : index
    %c0_15 = arith.constant 0 : index
    %c0_16 = arith.constant 0 : index
    %15 = vector.load %arg2[%c2_14, %c0_15, %c0_16] : memref<25x6x3xf32, #tpu.memory_space<vmem>>, vector<1x6x3xf32>
    %16 = vector.shape_cast %15 : vector<1x6x3xf32> to vector<6x3xf32>
    %cst_17 = arith.constant dense<0.000000e+00> : vector<6x1280xf32>
    %17 = tpu.matmul %16, %14, %cst_17 {dimension_numbers = #tpu.dot_dimension_numbers<[1], [0], [0], [1], [0, 0, 1, 1], [], []>} : vector<6x3xf32>, vector<3x1280xf32>, vector<6x1280xf32> -> vector<6x1280xf32>
    %18 = arith.addf %12, %17 : vector<6x1280xf32>
    %c0_18 = arith.constant 0 : index
    %c0_19 = arith.constant 0 : index
    %c3 = arith.constant 3 : index
    %19 = vector.load %arg1[%c0_18, %c0_19, %c3] : memref<1x3x1536xf32, #tpu.memory_space<vmem>>, vector<1x3x1280xf32>
    %20 = vector.shape_cast %19 : vector<1x3x1280xf32> to vector<3x1280xf32>
    %c3_20 = arith.constant 3 : index
    %c0_21 = arith.constant 0 : index
    %c0_22 = arith.constant 0 : index
    %21 = vector.load %arg2[%c3_20, %c0_21, %c0_22] : memref<25x6x3xf32, #tpu.memory_space<vmem>>, vector<1x6x3xf32>
    %22 = vector.shape_cast %21 : vector<1x6x3xf32> to vector<6x3xf32>
    %cst_23 = arith.constant dense<0.000000e+00> : vector<6x1280xf32>
    %23 = tpu.matmul %22, %20, %cst_23 {dimension_numbers = #tpu.dot_dimension_numbers<[1], [0], [0], [1], [0, 0, 1, 1], [], []>} : vector<6x3xf32>, vector<3x1280xf32>, vector<6x1280xf32> -> vector<6x1280xf32>
    %24 = arith.addf %18, %23 : vector<6x1280xf32>
    %c0_24 = arith.constant 0 : index
    %c0_25 = arith.constant 0 : index
    %c4 = arith.constant 4 : index
    %25 = vector.load %arg1[%c0_24, %c0_25, %c4] : memref<1x3x1536xf32, #tpu.memory_space<vmem>>, vector<1x3x1280xf32>
    %26 = vector.shape_cast %25 : vector<1x3x1280xf32> to vector<3x1280xf32>
    %c4_26 = arith.constant 4 : index
    %c0_27 = arith.constant 0 : index
    %c0_28 = arith.constant 0 : index
    %27 = vector.load %arg2[%c4_26, %c0_27, %c0_28] : memref<25x6x3xf32, #tpu.memory_space<vmem>>, vector<1x6x3xf32>
    %28 = vector.shape_cast %27 : vector<1x6x3xf32> to vector<6x3xf32>
    %cst_29 = arith.constant dense<0.000000e+00> : vector<6x1280xf32>
    %29 = tpu.matmul %28, %26, %cst_29 {dimension_numbers = #tpu.dot_dimension_numbers<[1], [0], [0], [1], [0, 0, 1, 1], [], []>} : vector<6x3xf32>, vector<3x1280xf32>, vector<6x1280xf32> -> vector<6x1280xf32>
    %30 = arith.addf %24, %29 : vector<6x1280xf32>
    %c0_30 = arith.constant 0 : index
    %c0_31 = arith.constant 0 : index
    %c32 = arith.constant 32 : index
    %31 = vector.load %arg1[%c0_30, %c0_31, %c32] : memref<1x3x1536xf32, #tpu.memory_space<vmem>>, vector<1x3x1280xf32>
    %32 = vector.shape_cast %31 : vector<1x3x1280xf32> to vector<3x1280xf32>
    %c5 = arith.constant 5 : index
    %c0_32 = arith.constant 0 : index
    %c0_33 = arith.constant 0 : index
    %33 = vector.load %arg2[%c5, %c0_32, %c0_33] : memref<25x6x3xf32, #tpu.memory_space<vmem>>, vector<1x6x3xf32>
    %34 = vector.shape_cast %33 : vector<1x6x3xf32> to vector<6x3xf32>
    %cst_34 = arith.constant dense<0.000000e+00> : vector<6x1280xf32>
    %35 = tpu.matmul %34, %32, %cst_34 {dimension_numbers = #tpu.dot_dimension_numbers<[1], [0], [0], [1], [0, 0, 1, 1], [], []>} : vector<6x3xf32>, vector<3x1280xf32>, vector<6x1280xf32> -> vector<6x1280xf32>
    %36 = arith.addf %30, %35 : vector<6x1280xf32>
    %c0_35 = arith.constant 0 : index
    %c0_36 = arith.constant 0 : index
    %c33 = arith.constant 33 : index
    %37 = vector.load %arg1[%c0_35, %c0_36, %c33] : memref<1x3x1536xf32, #tpu.memory_space<vmem>>, vector<1x3x1280xf32>
    %38 = vector.shape_cast %37 : vector<1x3x1280xf32> to vector<3x1280xf32>
    %c6 = arith.constant 6 : index
    %c0_37 = arith.constant 0 : index
    %c0_38 = arith.constant 0 : index
    %39 = vector.load %arg2[%c6, %c0_37, %c0_38] : memref<25x6x3xf32, #tpu.memory_space<vmem>>, vector<1x6x3xf32>
    %40 = vector.shape_cast %39 : vector<1x6x3xf32> to vector<6x3xf32>
    %cst_39 = arith.constant dense<0.000000e+00> : vector<6x1280xf32>
    %41 = tpu.matmul %40, %38, %cst_39 {dimension_numbers = #tpu.dot_dimension_numbers<[1], [0], [0], [1], [0, 0, 1, 1], [], []>} : vector<6x3xf32>, vector<3x1280xf32>, vector<6x1280xf32> -> vector<6x1280xf32>
    %42 = arith.addf %36, %41 : vector<6x1280xf32>
    %c0_40 = arith.constant 0 : index
    %c0_41 = arith.constant 0 : index
    %c34 = arith.constant 34 : index
    %43 = vector.load %arg1[%c0_40, %c0_41, %c34] : memref<1x3x1536xf32, #tpu.memory_space<vmem>>, vector<1x3x1280xf32>
    %44 = vector.shape_cast %43 : vector<1x3x1280xf32> to vector<3x1280xf32>
    %c7 = arith.constant 7 : index
    %c0_42 = arith.constant 0 : index
    %c0_43 = arith.constant 0 : index
    %45 = vector.load %arg2[%c7, %c0_42, %c0_43] : memref<25x6x3xf32, #tpu.memory_space<vmem>>, vector<1x6x3xf32>
    %46 = vector.shape_cast %45 : vector<1x6x3xf32> to vector<6x3xf32>
    %cst_44 = arith.constant dense<0.000000e+00> : vector<6x1280xf32>
    %47 = tpu.matmul %46, %44, %cst_44 {dimension_numbers = #tpu.dot_dimension_numbers<[1], [0], [0], [1], [0, 0, 1, 1], [], []>} : vector<6x3xf32>, vector<3x1280xf32>, vector<6x1280xf32> -> vector<6x1280xf32>
    %48 = arith.addf %42, %47 : vector<6x1280xf32>
    %c0_45 = arith.constant 0 : index
    %c0_46 = arith.constant 0 : index
    %c35 = arith.constant 35 : index
    %49 = vector.load %arg1[%c0_45, %c0_46, %c35] : memref<1x3x1536xf32, #tpu.memory_space<vmem>>, vector<1x3x1280xf32>
    %50 = vector.shape_cast %49 : vector<1x3x1280xf32> to vector<3x1280xf32>
    %c8 = arith.constant 8 : index
    %c0_47 = arith.constant 0 : index
    %c0_48 = arith.constant 0 : index
    %51 = vector.load %arg2[%c8, %c0_47, %c0_48] : memref<25x6x3xf32, #tpu.memory_space<vmem>>, vector<1x6x3xf32>
    %52 = vector.shape_cast %51 : vector<1x6x3xf32> to vector<6x3xf32>
    %cst_49 = arith.constant dense<0.000000e+00> : vector<6x1280xf32>
    %53 = tpu.matmul %52, %50, %cst_49 {dimension_numbers = #tpu.dot_dimension_numbers<[1], [0], [0], [1], [0, 0, 1, 1], [], []>} : vector<6x3xf32>, vector<3x1280xf32>, vector<6x1280xf32> -> vector<6x1280xf32>
    %54 = arith.addf %48, %53 : vector<6x1280xf32>
    %c0_50 = arith.constant 0 : index
    %c0_51 = arith.constant 0 : index
    %c36 = arith.constant 36 : index
    %55 = vector.load %arg1[%c0_50, %c0_51, %c36] : memref<1x3x1536xf32, #tpu.memory_space<vmem>>, vector<1x3x1280xf32>
    %56 = vector.shape_cast %55 : vector<1x3x1280xf32> to vector<3x1280xf32>
    %c9 = arith.constant 9 : index
    %c0_52 = arith.constant 0 : index
    %c0_53 = arith.constant 0 : index
    %57 = vector.load %arg2[%c9, %c0_52, %c0_53] : memref<25x6x3xf32, #tpu.memory_space<vmem>>, vector<1x6x3xf32>
    %58 = vector.shape_cast %57 : vector<1x6x3xf32> to vector<6x3xf32>
    %cst_54 = arith.constant dense<0.000000e+00> : vector<6x1280xf32>
    %59 = tpu.matmul %58, %56, %cst_54 {dimension_numbers = #tpu.dot_dimension_numbers<[1], [0], [0], [1], [0, 0, 1, 1], [], []>} : vector<6x3xf32>, vector<3x1280xf32>, vector<6x1280xf32> -> vector<6x1280xf32>
    %60 = arith.addf %54, %59 : vector<6x1280xf32>
    %c0_55 = arith.constant 0 : index
    %c0_56 = arith.constant 0 : index
    %c64 = arith.constant 64 : index
    %61 = vector.load %arg1[%c0_55, %c0_56, %c64] : memref<1x3x1536xf32, #tpu.memory_space<vmem>>, vector<1x3x1280xf32>
    %62 = vector.shape_cast %61 : vector<1x3x1280xf32> to vector<3x1280xf32>
    %c10 = arith.constant 10 : index
    %c0_57 = arith.constant 0 : index
    %c0_58 = arith.constant 0 : index
    %63 = vector.load %arg2[%c10, %c0_57, %c0_58] : memref<25x6x3xf32, #tpu.memory_space<vmem>>, vector<1x6x3xf32>
    %64 = vector.shape_cast %63 : vector<1x6x3xf32> to vector<6x3xf32>
    %cst_59 = arith.constant dense<0.000000e+00> : vector<6x1280xf32>
    %65 = tpu.matmul %64, %62, %cst_59 {dimension_numbers = #tpu.dot_dimension_numbers<[1], [0], [0], [1], [0, 0, 1, 1], [], []>} : vector<6x3xf32>, vector<3x1280xf32>, vector<6x1280xf32> -> vector<6x1280xf32>
    %66 = arith.addf %60, %65 : vector<6x1280xf32>
    %c0_60 = arith.constant 0 : index
    %c0_61 = arith.constant 0 : index
    %c65 = arith.constant 65 : index
    %67 = vector.load %arg1[%c0_60, %c0_61, %c65] : memref<1x3x1536xf32, #tpu.memory_space<vmem>>, vector<1x3x1280xf32>
    %68 = vector.shape_cast %67 : vector<1x3x1280xf32> to vector<3x1280xf32>
    %c11 = arith.constant 11 : index
    %c0_62 = arith.constant 0 : index
    %c0_63 = arith.constant 0 : index
    %69 = vector.load %arg2[%c11, %c0_62, %c0_63] : memref<25x6x3xf32, #tpu.memory_space<vmem>>, vector<1x6x3xf32>
    %70 = vector.shape_cast %69 : vector<1x6x3xf32> to vector<6x3xf32>
    %cst_64 = arith.constant dense<0.000000e+00> : vector<6x1280xf32>
    %71 = tpu.matmul %70, %68, %cst_64 {dimension_numbers = #tpu.dot_dimension_numbers<[1], [0], [0], [1], [0, 0, 1, 1], [], []>} : vector<6x3xf32>, vector<3x1280xf32>, vector<6x1280xf32> -> vector<6x1280xf32>
    %72 = arith.addf %66, %71 : vector<6x1280xf32>
    %c0_65 = arith.constant 0 : index
    %c0_66 = arith.constant 0 : index
    %c66 = arith.constant 66 : index
    %73 = vector.load %arg1[%c0_65, %c0_66, %c66] : memref<1x3x1536xf32, #tpu.memory_space<vmem>>, vector<1x3x1280xf32>
    %74 = vector.shape_cast %73 : vector<1x3x1280xf32> to vector<3x1280xf32>
    %c12 = arith.constant 12 : index
    %c0_67 = arith.constant 0 : index
    %c0_68 = arith.constant 0 : index
    %75 = vector.load %arg2[%c12, %c0_67, %c0_68] : memref<25x6x3xf32, #tpu.memory_space<vmem>>, vector<1x6x3xf32>
    %76 = vector.shape_cast %75 : vector<1x6x3xf32> to vector<6x3xf32>
    %cst_69 = arith.constant dense<0.000000e+00> : vector<6x1280xf32>
    %77 = tpu.matmul %76, %74, %cst_69 {dimension_numbers = #tpu.dot_dimension_numbers<[1], [0], [0], [1], [0, 0, 1, 1], [], []>} : vector<6x3xf32>, vector<3x1280xf32>, vector<6x1280xf32> -> vector<6x1280xf32>
    %78 = arith.addf %72, %77 : vector<6x1280xf32>
    %c0_70 = arith.constant 0 : index
    %c0_71 = arith.constant 0 : index
    %c67 = arith.constant 67 : index
    %79 = vector.load %arg1[%c0_70, %c0_71, %c67] : memref<1x3x1536xf32, #tpu.memory_space<vmem>>, vector<1x3x1280xf32>
    %80 = vector.shape_cast %79 : vector<1x3x1280xf32> to vector<3x1280xf32>
    %c13 = arith.constant 13 : index
    %c0_72 = arith.constant 0 : index
    %c0_73 = arith.constant 0 : index
    %81 = vector.load %arg2[%c13, %c0_72, %c0_73] : memref<25x6x3xf32, #tpu.memory_space<vmem>>, vector<1x6x3xf32>
    %82 = vector.shape_cast %81 : vector<1x6x3xf32> to vector<6x3xf32>
    %cst_74 = arith.constant dense<0.000000e+00> : vector<6x1280xf32>
    %83 = tpu.matmul %82, %80, %cst_74 {dimension_numbers = #tpu.dot_dimension_numbers<[1], [0], [0], [1], [0, 0, 1, 1], [], []>} : vector<6x3xf32>, vector<3x1280xf32>, vector<6x1280xf32> -> vector<6x1280xf32>
    %84 = arith.addf %78, %83 : vector<6x1280xf32>
    %c0_75 = arith.constant 0 : index
    %c0_76 = arith.constant 0 : index
    %c68 = arith.constant 68 : index
    %85 = vector.load %arg1[%c0_75, %c0_76, %c68] : memref<1x3x1536xf32, #tpu.memory_space<vmem>>, vector<1x3x1280xf32>
    %86 = vector.shape_cast %85 : vector<1x3x1280xf32> to vector<3x1280xf32>
    %c14 = arith.constant 14 : index
    %c0_77 = arith.constant 0 : index
    %c0_78 = arith.constant 0 : index
    %87 = vector.load %arg2[%c14, %c0_77, %c0_78] : memref<25x6x3xf32, #tpu.memory_space<vmem>>, vector<1x6x3xf32>
    %88 = vector.shape_cast %87 : vector<1x6x3xf32> to vector<6x3xf32>
    %cst_79 = arith.constant dense<0.000000e+00> : vector<6x1280xf32>
    %89 = tpu.matmul %88, %86, %cst_79 {dimension_numbers = #tpu.dot_dimension_numbers<[1], [0], [0], [1], [0, 0, 1, 1], [], []>} : vector<6x3xf32>, vector<3x1280xf32>, vector<6x1280xf32> -> vector<6x1280xf32>
    %90 = arith.addf %84, %89 : vector<6x1280xf32>
    %c0_80 = arith.constant 0 : index
    %c0_81 = arith.constant 0 : index
    %c96 = arith.constant 96 : index
    %91 = vector.load %arg1[%c0_80, %c0_81, %c96] : memref<1x3x1536xf32, #tpu.memory_space<vmem>>, vector<1x3x1280xf32>
    %92 = vector.shape_cast %91 : vector<1x3x1280xf32> to vector<3x1280xf32>
    %c15 = arith.constant 15 : index
    %c0_82 = arith.constant 0 : index
    %c0_83 = arith.constant 0 : index
    %93 = vector.load %arg2[%c15, %c0_82, %c0_83] : memref<25x6x3xf32, #tpu.memory_space<vmem>>, vector<1x6x3xf32>
    %94 = vector.shape_cast %93 : vector<1x6x3xf32> to vector<6x3xf32>
    %cst_84 = arith.constant dense<0.000000e+00> : vector<6x1280xf32>
    %95 = tpu.matmul %94, %92, %cst_84 {dimension_numbers = #tpu.dot_dimension_numbers<[1], [0], [0], [1], [0, 0, 1, 1], [], []>} : vector<6x3xf32>, vector<3x1280xf32>, vector<6x1280xf32> -> vector<6x1280xf32>
    %96 = arith.addf %90, %95 : vector<6x1280xf32>
    %c0_85 = arith.constant 0 : index
    %c0_86 = arith.constant 0 : index
    %c97 = arith.constant 97 : index
    %97 = vector.load %arg1[%c0_85, %c0_86, %c97] : memref<1x3x1536xf32, #tpu.memory_space<vmem>>, vector<1x3x1280xf32>
    %98 = vector.shape_cast %97 : vector<1x3x1280xf32> to vector<3x1280xf32>
    %c16 = arith.constant 16 : index
    %c0_87 = arith.constant 0 : index
    %c0_88 = arith.constant 0 : index
    %99 = vector.load %arg2[%c16, %c0_87, %c0_88] : memref<25x6x3xf32, #tpu.memory_space<vmem>>, vector<1x6x3xf32>
    %100 = vector.shape_cast %99 : vector<1x6x3xf32> to vector<6x3xf32>
    %cst_89 = arith.constant dense<0.000000e+00> : vector<6x1280xf32>
    %101 = tpu.matmul %100, %98, %cst_89 {dimension_numbers = #tpu.dot_dimension_numbers<[1], [0], [0], [1], [0, 0, 1, 1], [], []>} : vector<6x3xf32>, vector<3x1280xf32>, vector<6x1280xf32> -> vector<6x1280xf32>
    %102 = arith.addf %96, %101 : vector<6x1280xf32>
    %c0_90 = arith.constant 0 : index
    %c0_91 = arith.constant 0 : index
    %c98 = arith.constant 98 : index
    %103 = vector.load %arg1[%c0_90, %c0_91, %c98] : memref<1x3x1536xf32, #tpu.memory_space<vmem>>, vector<1x3x1280xf32>
    %104 = vector.shape_cast %103 : vector<1x3x1280xf32> to vector<3x1280xf32>
    %c17 = arith.constant 17 : index
    %c0_92 = arith.constant 0 : index
    %c0_93 = arith.constant 0 : index
    %105 = vector.load %arg2[%c17, %c0_92, %c0_93] : memref<25x6x3xf32, #tpu.memory_space<vmem>>, vector<1x6x3xf32>
    %106 = vector.shape_cast %105 : vector<1x6x3xf32> to vector<6x3xf32>
    %cst_94 = arith.constant dense<0.000000e+00> : vector<6x1280xf32>
    %107 = tpu.matmul %106, %104, %cst_94 {dimension_numbers = #tpu.dot_dimension_numbers<[1], [0], [0], [1], [0, 0, 1, 1], [], []>} : vector<6x3xf32>, vector<3x1280xf32>, vector<6x1280xf32> -> vector<6x1280xf32>
    %108 = arith.addf %102, %107 : vector<6x1280xf32>
    %c0_95 = arith.constant 0 : index
    %c0_96 = arith.constant 0 : index
    %c99 = arith.constant 99 : index
    %109 = vector.load %arg1[%c0_95, %c0_96, %c99] : memref<1x3x1536xf32, #tpu.memory_space<vmem>>, vector<1x3x1280xf32>
    %110 = vector.shape_cast %109 : vector<1x3x1280xf32> to vector<3x1280xf32>
    %c18 = arith.constant 18 : index
    %c0_97 = arith.constant 0 : index
    %c0_98 = arith.constant 0 : index
    %111 = vector.load %arg2[%c18, %c0_97, %c0_98] : memref<25x6x3xf32, #tpu.memory_space<vmem>>, vector<1x6x3xf32>
    %112 = vector.shape_cast %111 : vector<1x6x3xf32> to vector<6x3xf32>
    %cst_99 = arith.constant dense<0.000000e+00> : vector<6x1280xf32>
    %113 = tpu.matmul %112, %110, %cst_99 {dimension_numbers = #tpu.dot_dimension_numbers<[1], [0], [0], [1], [0, 0, 1, 1], [], []>} : vector<6x3xf32>, vector<3x1280xf32>, vector<6x1280xf32> -> vector<6x1280xf32>
    %114 = arith.addf %108, %113 : vector<6x1280xf32>
    %c0_100 = arith.constant 0 : index
    %c0_101 = arith.constant 0 : index
    %c100 = arith.constant 100 : index
    %115 = vector.load %arg1[%c0_100, %c0_101, %c100] : memref<1x3x1536xf32, #tpu.memory_space<vmem>>, vector<1x3x1280xf32>
    %116 = vector.shape_cast %115 : vector<1x3x1280xf32> to vector<3x1280xf32>
    %c19 = arith.constant 19 : index
    %c0_102 = arith.constant 0 : index
    %c0_103 = arith.constant 0 : index
    %117 = vector.load %arg2[%c19, %c0_102, %c0_103] : memref<25x6x3xf32, #tpu.memory_space<vmem>>, vector<1x6x3xf32>
    %118 = vector.shape_cast %117 : vector<1x6x3xf32> to vector<6x3xf32>
    %cst_104 = arith.constant dense<0.000000e+00> : vector<6x1280xf32>
    %119 = tpu.matmul %118, %116, %cst_104 {dimension_numbers = #tpu.dot_dimension_numbers<[1], [0], [0], [1], [0, 0, 1, 1], [], []>} : vector<6x3xf32>, vector<3x1280xf32>, vector<6x1280xf32> -> vector<6x1280xf32>
    %120 = arith.addf %114, %119 : vector<6x1280xf32>
    %c0_105 = arith.constant 0 : index
    %c0_106 = arith.constant 0 : index
    %c128 = arith.constant 128 : index
    %121 = vector.load %arg1[%c0_105, %c0_106, %c128] : memref<1x3x1536xf32, #tpu.memory_space<vmem>>, vector<1x3x1280xf32>
    %122 = vector.shape_cast %121 : vector<1x3x1280xf32> to vector<3x1280xf32>
    %c20 = arith.constant 20 : index
    %c0_107 = arith.constant 0 : index
    %c0_108 = arith.constant 0 : index
    %123 = vector.load %arg2[%c20, %c0_107, %c0_108] : memref<25x6x3xf32, #tpu.memory_space<vmem>>, vector<1x6x3xf32>
    %124 = vector.shape_cast %123 : vector<1x6x3xf32> to vector<6x3xf32>
    %cst_109 = arith.constant dense<0.000000e+00> : vector<6x1280xf32>
    %125 = tpu.matmul %124, %122, %cst_109 {dimension_numbers = #tpu.dot_dimension_numbers<[1], [0], [0], [1], [0, 0, 1, 1], [], []>} : vector<6x3xf32>, vector<3x1280xf32>, vector<6x1280xf32> -> vector<6x1280xf32>
    %126 = arith.addf %120, %125 : vector<6x1280xf32>
    %c0_110 = arith.constant 0 : index
    %c0_111 = arith.constant 0 : index
    %c129 = arith.constant 129 : index
    %127 = vector.load %arg1[%c0_110, %c0_111, %c129] : memref<1x3x1536xf32, #tpu.memory_space<vmem>>, vector<1x3x1280xf32>
    %128 = vector.shape_cast %127 : vector<1x3x1280xf32> to vector<3x1280xf32>
    %c21 = arith.constant 21 : index
    %c0_112 = arith.constant 0 : index
    %c0_113 = arith.constant 0 : index
    %129 = vector.load %arg2[%c21, %c0_112, %c0_113] : memref<25x6x3xf32, #tpu.memory_space<vmem>>, vector<1x6x3xf32>
    %130 = vector.shape_cast %129 : vector<1x6x3xf32> to vector<6x3xf32>
    %cst_114 = arith.constant dense<0.000000e+00> : vector<6x1280xf32>
    %131 = tpu.matmul %130, %128, %cst_114 {dimension_numbers = #tpu.dot_dimension_numbers<[1], [0], [0], [1], [0, 0, 1, 1], [], []>} : vector<6x3xf32>, vector<3x1280xf32>, vector<6x1280xf32> -> vector<6x1280xf32>
    %132 = arith.addf %126, %131 : vector<6x1280xf32>
    %c0_115 = arith.constant 0 : index
    %c0_116 = arith.constant 0 : index
    %c130 = arith.constant 130 : index
    %133 = vector.load %arg1[%c0_115, %c0_116, %c130] : memref<1x3x1536xf32, #tpu.memory_space<vmem>>, vector<1x3x1280xf32>
    %134 = vector.shape_cast %133 : vector<1x3x1280xf32> to vector<3x1280xf32>
    %c22 = arith.constant 22 : index
    %c0_117 = arith.constant 0 : index
    %c0_118 = arith.constant 0 : index
    %135 = vector.load %arg2[%c22, %c0_117, %c0_118] : memref<25x6x3xf32, #tpu.memory_space<vmem>>, vector<1x6x3xf32>
    %136 = vector.shape_cast %135 : vector<1x6x3xf32> to vector<6x3xf32>
    %cst_119 = arith.constant dense<0.000000e+00> : vector<6x1280xf32>
    %137 = tpu.matmul %136, %134, %cst_119 {dimension_numbers = #tpu.dot_dimension_numbers<[1], [0], [0], [1], [0, 0, 1, 1], [], []>} : vector<6x3xf32>, vector<3x1280xf32>, vector<6x1280xf32> -> vector<6x1280xf32>
    %138 = arith.addf %132, %137 : vector<6x1280xf32>
    %c0_120 = arith.constant 0 : index
    %c0_121 = arith.constant 0 : index
    %c131 = arith.constant 131 : index
    %139 = vector.load %arg1[%c0_120, %c0_121, %c131] : memref<1x3x1536xf32, #tpu.memory_space<vmem>>, vector<1x3x1280xf32>
    %140 = vector.shape_cast %139 : vector<1x3x1280xf32> to vector<3x1280xf32>
    %c23 = arith.constant 23 : index
    %c0_122 = arith.constant 0 : index
    %c0_123 = arith.constant 0 : index
    %141 = vector.load %arg2[%c23, %c0_122, %c0_123] : memref<25x6x3xf32, #tpu.memory_space<vmem>>, vector<1x6x3xf32>
    %142 = vector.shape_cast %141 : vector<1x6x3xf32> to vector<6x3xf32>
    %cst_124 = arith.constant dense<0.000000e+00> : vector<6x1280xf32>
    %143 = tpu.matmul %142, %140, %cst_124 {dimension_numbers = #tpu.dot_dimension_numbers<[1], [0], [0], [1], [0, 0, 1, 1], [], []>} : vector<6x3xf32>, vector<3x1280xf32>, vector<6x1280xf32> -> vector<6x1280xf32>
    %144 = arith.addf %138, %143 : vector<6x1280xf32>
    %c0_125 = arith.constant 0 : index
    %c0_126 = arith.constant 0 : index
    %c132 = arith.constant 132 : index
    %145 = vector.load %arg1[%c0_125, %c0_126, %c132] : memref<1x3x1536xf32, #tpu.memory_space<vmem>>, vector<1x3x1280xf32>
    %146 = vector.shape_cast %145 : vector<1x3x1280xf32> to vector<3x1280xf32>
    %c24 = arith.constant 24 : index
    %c0_127 = arith.constant 0 : index
    %c0_128 = arith.constant 0 : index
    %147 = vector.load %arg2[%c24, %c0_127, %c0_128] : memref<25x6x3xf32, #tpu.memory_space<vmem>>, vector<1x6x3xf32>
    %148 = vector.shape_cast %147 : vector<1x6x3xf32> to vector<6x3xf32>
    %cst_129 = arith.constant dense<0.000000e+00> : vector<6x1280xf32>
    %149 = tpu.matmul %148, %146, %cst_129 {dimension_numbers = #tpu.dot_dimension_numbers<[1], [0], [0], [1], [0, 0, 1, 1], [], []>} : vector<6x3xf32>, vector<3x1280xf32>, vector<6x1280xf32> -> vector<6x1280xf32>
    %150 = arith.addf %144, %149 : vector<6x1280xf32>
    %c0_130 = arith.constant 0 : index
    %c0_131 = arith.constant 0 : index
    %151 = vector.load %arg3[%c0_130, %c0_131] : memref<6x1xf32, #tpu.memory_space<vmem>>, vector<6x1xf32>
    %152 = vector.broadcast %151 : vector<6x1xf32> to vector<6x1280xf32>
    %153 = arith.addf %150, %152 : vector<6x1280xf32>
    %cst_132 = arith.constant 0.000000e+00 : f32
    %154 = vector.broadcast %cst_132 : f32 to vector<6x1280xf32>
    %155 = arith.maximumf %153, %154 : vector<6x1280xf32>
    %c0_133 = arith.constant 0 : index
    %c0_134 = arith.constant 0 : index
    %156 = vector.load %arg14[%c0_133, %c0_134] : memref<6x1280xf32, #tpu.memory_space<vmem>>, vector<6x1280xf32>
    tpu.vector_store %arg14[%c0_133, %c0_134], %155 {strides = array<i32>} : memref<6x1280xf32, #tpu.memory_space<vmem>>, vector<6x1280xf32>,
    %c0_135 = arith.constant 0 : index
    %c0_136 = arith.constant 0 : index
    %157 = vector.load %arg14[%c0_135, %c0_136] : memref<6x1280xf32, #tpu.memory_space<vmem>>, vector<6x1152xf32>
    %c0_137 = arith.constant 0 : index
    %c1_138 = arith.constant 1 : index
    %158 = vector.load %arg14[%c0_137, %c1_138] : memref<6x1280xf32, #tpu.memory_space<vmem>>, vector<6x1152xf32>
    %159 = arith.maximumf %157, %158 : vector<6x1152xf32>
    %c0_139 = arith.constant 0 : index
    %c32_140 = arith.constant 32 : index
    %160 = vector.load %arg14[%c0_139, %c32_140] : memref<6x1280xf32, #tpu.memory_space<vmem>>, vector<6x1152xf32>
    %c0_141 = arith.constant 0 : index
    %c33_142 = arith.constant 33 : index
    %161 = vector.load %arg14[%c0_141, %c33_142] : memref<6x1280xf32, #tpu.memory_space<vmem>>, vector<6x1152xf32>
    %162 = arith.maximumf %160, %161 : vector<6x1152xf32>
    %163 = arith.maximumf %159, %162 : vector<6x1152xf32>
    %c0_143 = arith.constant 0 : index
    %c0_144 = arith.constant 0 : index
    %164 = vector.load %arg15[%c0_143, %c0_144] : memref<6x1152xf32, #tpu.memory_space<vmem>>, vector<6x1152xf32>
    tpu.vector_store %arg15[%c0_143, %c0_144], %163 {strides = array<i32>} : memref<6x1152xf32, #tpu.memory_space<vmem>>, vector<6x1152xf32>,
    %cst_145 = arith.constant 0.000000e+00 : f32
    %165 = vector.broadcast %cst_145 : f32 to vector<16x768xf32>
    %c0_146 = arith.constant 0 : index
    %c0_147 = arith.constant 0 : index
    %166 = vector.load %arg15[%c0_146, %c0_147] : memref<6x1152xf32, #tpu.memory_space<vmem>>, vector<6x768xf32>
    %c0_148 = arith.constant 0 : index
    %c0_149 = arith.constant 0 : index
    %c0_150 = arith.constant 0 : index
    %167 = vector.load %arg4[%c0_148, %c0_149, %c0_150] : memref<25x16x6xf32, #tpu.memory_space<vmem>>, vector<1x16x6xf32>
    %168 = vector.shape_cast %167 : vector<1x16x6xf32> to vector<16x6xf32>
    %cst_151 = arith.constant dense<0.000000e+00> : vector<16x768xf32>
    %169 = tpu.matmul %168, %166, %cst_151 {dimension_numbers = #tpu.dot_dimension_numbers<[1], [0], [0], [1], [0, 0, 1, 1], [], []>} : vector<16x6xf32>, vector<6x768xf32>, vector<16x768xf32> -> vector<16x768xf32>
    %170 = arith.addf %165, %169 : vector<16x768xf32>
    %c0_152 = arith.constant 0 : index
    %c2_153 = arith.constant 2 : index
    %171 = vector.load %arg15[%c0_152, %c2_153] : memref<6x1152xf32, #tpu.memory_space<vmem>>, vector<6x768xf32>
    %c1_154 = arith.constant 1 : index
    %c0_155 = arith.constant 0 : index
    %c0_156 = arith.constant 0 : index
    %172 = vector.load %arg4[%c1_154, %c0_155, %c0_156] : memref<25x16x6xf32, #tpu.memory_space<vmem>>, vector<1x16x6xf32>
    %173 = vector.shape_cast %172 : vector<1x16x6xf32> to vector<16x6xf32>
    %cst_157 = arith.constant dense<0.000000e+00> : vector<16x768xf32>
    %174 = tpu.matmul %173, %171, %cst_157 {dimension_numbers = #tpu.dot_dimension_numbers<[1], [0], [0], [1], [0, 0, 1, 1], [], []>} : vector<16x6xf32>, vector<6x768xf32>, vector<16x768xf32> -> vector<16x768xf32>
    %175 = arith.addf %170, %174 : vector<16x768xf32>
    %c0_158 = arith.constant 0 : index
    %c4_159 = arith.constant 4 : index
    %176 = vector.load %arg15[%c0_158, %c4_159] : memref<6x1152xf32, #tpu.memory_space<vmem>>, vector<6x768xf32>
    %c2_160 = arith.constant 2 : index
    %c0_161 = arith.constant 0 : index
    %c0_162 = arith.constant 0 : index
    %177 = vector.load %arg4[%c2_160, %c0_161, %c0_162] : memref<25x16x6xf32, #tpu.memory_space<vmem>>, vector<1x16x6xf32>
    %178 = vector.shape_cast %177 : vector<1x16x6xf32> to vector<16x6xf32>
    %cst_163 = arith.constant dense<0.000000e+00> : vector<16x768xf32>
    %179 = tpu.matmul %178, %176, %cst_163 {dimension_numbers = #tpu.dot_dimension_numbers<[1], [0], [0], [1], [0, 0, 1, 1], [], []>} : vector<16x6xf32>, vector<6x768xf32>, vector<16x768xf32> -> vector<16x768xf32>
    %180 = arith.addf %175, %179 : vector<16x768xf32>
    %c0_164 = arith.constant 0 : index
    %c6_165 = arith.constant 6 : index
    %181 = vector.load %arg15[%c0_164, %c6_165] : memref<6x1152xf32, #tpu.memory_space<vmem>>, vector<6x768xf32>
    %c3_166 = arith.constant 3 : index
    %c0_167 = arith.constant 0 : index
    %c0_168 = arith.constant 0 : index
    %182 = vector.load %arg4[%c3_166, %c0_167, %c0_168] : memref<25x16x6xf32, #tpu.memory_space<vmem>>, vector<1x16x6xf32>
    %183 = vector.shape_cast %182 : vector<1x16x6xf32> to vector<16x6xf32>
    %cst_169 = arith.constant dense<0.000000e+00> : vector<16x768xf32>
    %184 = tpu.matmul %183, %181, %cst_169 {dimension_numbers = #tpu.dot_dimension_numbers<[1], [0], [0], [1], [0, 0, 1, 1], [], []>} : vector<16x6xf32>, vector<6x768xf32>, vector<16x768xf32> -> vector<16x768xf32>
    %185 = arith.addf %180, %184 : vector<16x768xf32>
    %c0_170 = arith.constant 0 : index
    %c8_171 = arith.constant 8 : index
    %186 = vector.load %arg15[%c0_170, %c8_171] : memref<6x1152xf32, #tpu.memory_space<vmem>>, vector<6x768xf32>
    %c4_172 = arith.constant 4 : index
    %c0_173 = arith.constant 0 : index
    %c0_174 = arith.constant 0 : index
    %187 = vector.load %arg4[%c4_172, %c0_173, %c0_174] : memref<25x16x6xf32, #tpu.memory_space<vmem>>, vector<1x16x6xf32>
    %188 = vector.shape_cast %187 : vector<1x16x6xf32> to vector<16x6xf32>
    %cst_175 = arith.constant dense<0.000000e+00> : vector<16x768xf32>
    %189 = tpu.matmul %188, %186, %cst_175 {dimension_numbers = #tpu.dot_dimension_numbers<[1], [0], [0], [1], [0, 0, 1, 1], [], []>} : vector<16x6xf32>, vector<6x768xf32>, vector<16x768xf32> -> vector<16x768xf32>
    %190 = arith.addf %185, %189 : vector<16x768xf32>
    %c0_176 = arith.constant 0 : index
    %c64_177 = arith.constant 64 : index
    %191 = vector.load %arg15[%c0_176, %c64_177] : memref<6x1152xf32, #tpu.memory_space<vmem>>, vector<6x768xf32>
    %c5_178 = arith.constant 5 : index
    %c0_179 = arith.constant 0 : index
    %c0_180 = arith.constant 0 : index
    %192 = vector.load %arg4[%c5_178, %c0_179, %c0_180] : memref<25x16x6xf32, #tpu.memory_space<vmem>>, vector<1x16x6xf32>
    %193 = vector.shape_cast %192 : vector<1x16x6xf32> to vector<16x6xf32>
    %cst_181 = arith.constant dense<0.000000e+00> : vector<16x768xf32>
    %194 = tpu.matmul %193, %191, %cst_181 {dimension_numbers = #tpu.dot_dimension_numbers<[1], [0], [0], [1], [0, 0, 1, 1], [], []>} : vector<16x6xf32>, vector<6x768xf32>, vector<16x768xf32> -> vector<16x768xf32>
    %195 = arith.addf %190, %194 : vector<16x768xf32>
    %c0_182 = arith.constant 0 : index
    %c66_183 = arith.constant 66 : index
    %196 = vector.load %arg15[%c0_182, %c66_183] : memref<6x1152xf32, #tpu.memory_space<vmem>>, vector<6x768xf32>
    %c6_184 = arith.constant 6 : index
    %c0_185 = arith.constant 0 : index
    %c0_186 = arith.constant 0 : index
    %197 = vector.load %arg4[%c6_184, %c0_185, %c0_186] : memref<25x16x6xf32, #tpu.memory_space<vmem>>, vector<1x16x6xf32>
    %198 = vector.shape_cast %197 : vector<1x16x6xf32> to vector<16x6xf32>
    %cst_187 = arith.constant dense<0.000000e+00> : vector<16x768xf32>
    %199 = tpu.matmul %198, %196, %cst_187 {dimension_numbers = #tpu.dot_dimension_numbers<[1], [0], [0], [1], [0, 0, 1, 1], [], []>} : vector<16x6xf32>, vector<6x768xf32>, vector<16x768xf32> -> vector<16x768xf32>
    %200 = arith.addf %195, %199 : vector<16x768xf32>
    %c0_188 = arith.constant 0 : index
    %c68_189 = arith.constant 68 : index
    %201 = vector.load %arg15[%c0_188, %c68_189] : memref<6x1152xf32, #tpu.memory_space<vmem>>, vector<6x768xf32>
    %c7_190 = arith.constant 7 : index
    %c0_191 = arith.constant 0 : index
    %c0_192 = arith.constant 0 : index
    %202 = vector.load %arg4[%c7_190, %c0_191, %c0_192] : memref<25x16x6xf32, #tpu.memory_space<vmem>>, vector<1x16x6xf32>
    %203 = vector.shape_cast %202 : vector<1x16x6xf32> to vector<16x6xf32>
    %cst_193 = arith.constant dense<0.000000e+00> : vector<16x768xf32>
    %204 = tpu.matmul %203, %201, %cst_193 {dimension_numbers = #tpu.dot_dimension_numbers<[1], [0], [0], [1], [0, 0, 1, 1], [], []>} : vector<16x6xf32>, vector<6x768xf32>, vector<16x768xf32> -> vector<16x768xf32>
    %205 = arith.addf %200, %204 : vector<16x768xf32>
    %c0_194 = arith.constant 0 : index
    %c70 = arith.constant 70 : index
    %206 = vector.load %arg15[%c0_194, %c70] : memref<6x1152xf32, #tpu.memory_space<vmem>>, vector<6x768xf32>
    %c8_195 = arith.constant 8 : index
    %c0_196 = arith.constant 0 : index
    %c0_197 = arith.constant 0 : index
    %207 = vector.load %arg4[%c8_195, %c0_196, %c0_197] : memref<25x16x6xf32, #tpu.memory_space<vmem>>, vector<1x16x6xf32>
    %208 = vector.shape_cast %207 : vector<1x16x6xf32> to vector<16x6xf32>
    %cst_198 = arith.constant dense<0.000000e+00> : vector<16x768xf32>
    %209 = tpu.matmul %208, %206, %cst_198 {dimension_numbers = #tpu.dot_dimension_numbers<[1], [0], [0], [1], [0, 0, 1, 1], [], []>} : vector<16x6xf32>, vector<6x768xf32>, vector<16x768xf32> -> vector<16x768xf32>
    %210 = arith.addf %205, %209 : vector<16x768xf32>
    %c0_199 = arith.constant 0 : index
    %c72 = arith.constant 72 : index
    %211 = vector.load %arg15[%c0_199, %c72] : memref<6x1152xf32, #tpu.memory_space<vmem>>, vector<6x768xf32>
    %c9_200 = arith.constant 9 : index
    %c0_201 = arith.constant 0 : index
    %c0_202 = arith.constant 0 : index
    %212 = vector.load %arg4[%c9_200, %c0_201, %c0_202] : memref<25x16x6xf32, #tpu.memory_space<vmem>>, vector<1x16x6xf32>
    %213 = vector.shape_cast %212 : vector<1x16x6xf32> to vector<16x6xf32>
    %cst_203 = arith.constant dense<0.000000e+00> : vector<16x768xf32>
    %214 = tpu.matmul %213, %211, %cst_203 {dimension_numbers = #tpu.dot_dimension_numbers<[1], [0], [0], [1], [0, 0, 1, 1], [], []>} : vector<16x6xf32>, vector<6x768xf32>, vector<16x768xf32> -> vector<16x768xf32>
    %215 = arith.addf %210, %214 : vector<16x768xf32>
    %c0_204 = arith.constant 0 : index
    %c128_205 = arith.constant 128 : index
    %216 = vector.load %arg15[%c0_204, %c128_205] : memref<6x1152xf32, #tpu.memory_space<vmem>>, vector<6x768xf32>
    %c10_206 = arith.constant 10 : index
    %c0_207 = arith.constant 0 : index
    %c0_208 = arith.constant 0 : index
    %217 = vector.load %arg4[%c10_206, %c0_207, %c0_208] : memref<25x16x6xf32, #tpu.memory_space<vmem>>, vector<1x16x6xf32>
    %218 = vector.shape_cast %217 : vector<1x16x6xf32> to vector<16x6xf32>
    %cst_209 = arith.constant dense<0.000000e+00> : vector<16x768xf32>
    %219 = tpu.matmul %218, %216, %cst_209 {dimension_numbers = #tpu.dot_dimension_numbers<[1], [0], [0], [1], [0, 0, 1, 1], [], []>} : vector<16x6xf32>, vector<6x768xf32>, vector<16x768xf32> -> vector<16x768xf32>
    %220 = arith.addf %215, %219 : vector<16x768xf32>
    %c0_210 = arith.constant 0 : index
    %c130_211 = arith.constant 130 : index
    %221 = vector.load %arg15[%c0_210, %c130_211] : memref<6x1152xf32, #tpu.memory_space<vmem>>, vector<6x768xf32>
    %c11_212 = arith.constant 11 : index
    %c0_213 = arith.constant 0 : index
    %c0_214 = arith.constant 0 : index
    %222 = vector.load %arg4[%c11_212, %c0_213, %c0_214] : memref<25x16x6xf32, #tpu.memory_space<vmem>>, vector<1x16x6xf32>
    %223 = vector.shape_cast %222 : vector<1x16x6xf32> to vector<16x6xf32>
    %cst_215 = arith.constant dense<0.000000e+00> : vector<16x768xf32>
    %224 = tpu.matmul %223, %221, %cst_215 {dimension_numbers = #tpu.dot_dimension_numbers<[1], [0], [0], [1], [0, 0, 1, 1], [], []>} : vector<16x6xf32>, vector<6x768xf32>, vector<16x768xf32> -> vector<16x768xf32>
    %225 = arith.addf %220, %224 : vector<16x768xf32>
    %c0_216 = arith.constant 0 : index
    %c132_217 = arith.constant 132 : index
    %226 = vector.load %arg15[%c0_216, %c132_217] : memref<6x1152xf32, #tpu.memory_space<vmem>>, vector<6x768xf32>
    %c12_218 = arith.constant 12 : index
    %c0_219 = arith.constant 0 : index
    %c0_220 = arith.constant 0 : index
    %227 = vector.load %arg4[%c12_218, %c0_219, %c0_220] : memref<25x16x6xf32, #tpu.memory_space<vmem>>, vector<1x16x6xf32>
    %228 = vector.shape_cast %227 : vector<1x16x6xf32> to vector<16x6xf32>
    %cst_221 = arith.constant dense<0.000000e+00> : vector<16x768xf32>
    %229 = tpu.matmul %228, %226, %cst_221 {dimension_numbers = #tpu.dot_dimension_numbers<[1], [0], [0], [1], [0, 0, 1, 1], [], []>} : vector<16x6xf32>, vector<6x768xf32>, vector<16x768xf32> -> vector<16x768xf32>
    %230 = arith.addf %225, %229 : vector<16x768xf32>
    %c0_222 = arith.constant 0 : index
    %c134 = arith.constant 134 : index
    %231 = vector.load %arg15[%c0_222, %c134] : memref<6x1152xf32, #tpu.memory_space<vmem>>, vector<6x768xf32>
    %c13_223 = arith.constant 13 : index
    %c0_224 = arith.constant 0 : index
    %c0_225 = arith.constant 0 : index
    %232 = vector.load %arg4[%c13_223, %c0_224, %c0_225] : memref<25x16x6xf32, #tpu.memory_space<vmem>>, vector<1x16x6xf32>
    %233 = vector.shape_cast %232 : vector<1x16x6xf32> to vector<16x6xf32>
    %cst_226 = arith.constant dense<0.000000e+00> : vector<16x768xf32>
    %234 = tpu.matmul %233, %231, %cst_226 {dimension_numbers = #tpu.dot_dimension_numbers<[1], [0], [0], [1], [0, 0, 1, 1], [], []>} : vector<16x6xf32>, vector<6x768xf32>, vector<16x768xf32> -> vector<16x768xf32>
    %235 = arith.addf %230, %234 : vector<16x768xf32>
    %c0_227 = arith.constant 0 : index
    %c136 = arith.constant 136 : index
    %236 = vector.load %arg15[%c0_227, %c136] : memref<6x1152xf32, #tpu.memory_space<vmem>>, vector<6x768xf32>
    %c14_228 = arith.constant 14 : index
    %c0_229 = arith.constant 0 : index
    %c0_230 = arith.constant 0 : index
    %237 = vector.load %arg4[%c14_228, %c0_229, %c0_230] : memref<25x16x6xf32, #tpu.memory_space<vmem>>, vector<1x16x6xf32>
    %238 = vector.shape_cast %237 : vector<1x16x6xf32> to vector<16x6xf32>
    %cst_231 = arith.constant dense<0.000000e+00> : vector<16x768xf32>
    %239 = tpu.matmul %238, %236, %cst_231 {dimension_numbers = #tpu.dot_dimension_numbers<[1], [0], [0], [1], [0, 0, 1, 1], [], []>} : vector<16x6xf32>, vector<6x768xf32>, vector<16x768xf32> -> vector<16x768xf32>
    %240 = arith.addf %235, %239 : vector<16x768xf32>
    %c0_232 = arith.constant 0 : index
    %c192 = arith.constant 192 : index
    %241 = vector.load %arg15[%c0_232, %c192] : memref<6x1152xf32, #tpu.memory_space<vmem>>, vector<6x768xf32>
    %c15_233 = arith.constant 15 : index
    %c0_234 = arith.constant 0 : index
    %c0_235 = arith.constant 0 : index
    %242 = vector.load %arg4[%c15_233, %c0_234, %c0_235] : memref<25x16x6xf32, #tpu.memory_space<vmem>>, vector<1x16x6xf32>
    %243 = vector.shape_cast %242 : vector<1x16x6xf32> to vector<16x6xf32>
    %cst_236 = arith.constant dense<0.000000e+00> : vector<16x768xf32>
    %244 = tpu.matmul %243, %241, %cst_236 {dimension_numbers = #tpu.dot_dimension_numbers<[1], [0], [0], [1], [0, 0, 1, 1], [], []>} : vector<16x6xf32>, vector<6x768xf32>, vector<16x768xf32> -> vector<16x768xf32>
    %245 = arith.addf %240, %244 : vector<16x768xf32>
    %c0_237 = arith.constant 0 : index
    %c194 = arith.constant 194 : index
    %246 = vector.load %arg15[%c0_237, %c194] : memref<6x1152xf32, #tpu.memory_space<vmem>>, vector<6x768xf32>
    %c16_238 = arith.constant 16 : index
    %c0_239 = arith.constant 0 : index
    %c0_240 = arith.constant 0 : index
    %247 = vector.load %arg4[%c16_238, %c0_239, %c0_240] : memref<25x16x6xf32, #tpu.memory_space<vmem>>, vector<1x16x6xf32>
    %248 = vector.shape_cast %247 : vector<1x16x6xf32> to vector<16x6xf32>
    %cst_241 = arith.constant dense<0.000000e+00> : vector<16x768xf32>
    %249 = tpu.matmul %248, %246, %cst_241 {dimension_numbers = #tpu.dot_dimension_numbers<[1], [0], [0], [1], [0, 0, 1, 1], [], []>} : vector<16x6xf32>, vector<6x768xf32>, vector<16x768xf32> -> vector<16x768xf32>
    %250 = arith.addf %245, %249 : vector<16x768xf32>
    %c0_242 = arith.constant 0 : index
    %c196 = arith.constant 196 : index
    %251 = vector.load %arg15[%c0_242, %c196] : memref<6x1152xf32, #tpu.memory_space<vmem>>, vector<6x768xf32>
    %c17_243 = arith.constant 17 : index
    %c0_244 = arith.constant 0 : index
    %c0_245 = arith.constant 0 : index
    %252 = vector.load %arg4[%c17_243, %c0_244, %c0_245] : memref<25x16x6xf32, #tpu.memory_space<vmem>>, vector<1x16x6xf32>
    %253 = vector.shape_cast %252 : vector<1x16x6xf32> to vector<16x6xf32>
    %cst_246 = arith.constant dense<0.000000e+00> : vector<16x768xf32>
    %254 = tpu.matmul %253, %251, %cst_246 {dimension_numbers = #tpu.dot_dimension_numbers<[1], [0], [0], [1], [0, 0, 1, 1], [], []>} : vector<16x6xf32>, vector<6x768xf32>, vector<16x768xf32> -> vector<16x768xf32>
    %255 = arith.addf %250, %254 : vector<16x768xf32>
    %c0_247 = arith.constant 0 : index
    %c198 = arith.constant 198 : index
    %256 = vector.load %arg15[%c0_247, %c198] : memref<6x1152xf32, #tpu.memory_space<vmem>>, vector<6x768xf32>
    %c18_248 = arith.constant 18 : index
    %c0_249 = arith.constant 0 : index
    %c0_250 = arith.constant 0 : index
    %257 = vector.load %arg4[%c18_248, %c0_249, %c0_250] : memref<25x16x6xf32, #tpu.memory_space<vmem>>, vector<1x16x6xf32>
    %258 = vector.shape_cast %257 : vector<1x16x6xf32> to vector<16x6xf32>
    %cst_251 = arith.constant dense<0.000000e+00> : vector<16x768xf32>
    %259 = tpu.matmul %258, %256, %cst_251 {dimension_numbers = #tpu.dot_dimension_numbers<[1], [0], [0], [1], [0, 0, 1, 1], [], []>} : vector<16x6xf32>, vector<6x768xf32>, vector<16x768xf32> -> vector<16x768xf32>
    %260 = arith.addf %255, %259 : vector<16x768xf32>
    %c0_252 = arith.constant 0 : index
    %c200 = arith.constant 200 : index
    %261 = vector.load %arg15[%c0_252, %c200] : memref<6x1152xf32, #tpu.memory_space<vmem>>, vector<6x768xf32>
    %c19_253 = arith.constant 19 : index
    %c0_254 = arith.constant 0 : index
    %c0_255 = arith.constant 0 : index
    %262 = vector.load %arg4[%c19_253, %c0_254, %c0_255] : memref<25x16x6xf32, #tpu.memory_space<vmem>>, vector<1x16x6xf32>
    %263 = vector.shape_cast %262 : vector<1x16x6xf32> to vector<16x6xf32>
    %cst_256 = arith.constant dense<0.000000e+00> : vector<16x768xf32>
    %264 = tpu.matmul %263, %261, %cst_256 {dimension_numbers = #tpu.dot_dimension_numbers<[1], [0], [0], [1], [0, 0, 1, 1], [], []>} : vector<16x6xf32>, vector<6x768xf32>, vector<16x768xf32> -> vector<16x768xf32>
    %265 = arith.addf %260, %264 : vector<16x768xf32>
    %c0_257 = arith.constant 0 : index
    %c256 = arith.constant 256 : index
    %266 = vector.load %arg15[%c0_257, %c256] : memref<6x1152xf32, #tpu.memory_space<vmem>>, vector<6x768xf32>
    %c20_258 = arith.constant 20 : index
    %c0_259 = arith.constant 0 : index
    %c0_260 = arith.constant 0 : index
    %267 = vector.load %arg4[%c20_258, %c0_259, %c0_260] : memref<25x16x6xf32, #tpu.memory_space<vmem>>, vector<1x16x6xf32>
    %268 = vector.shape_cast %267 : vector<1x16x6xf32> to vector<16x6xf32>
    %cst_261 = arith.constant dense<0.000000e+00> : vector<16x768xf32>
    %269 = tpu.matmul %268, %266, %cst_261 {dimension_numbers = #tpu.dot_dimension_numbers<[1], [0], [0], [1], [0, 0, 1, 1], [], []>} : vector<16x6xf32>, vector<6x768xf32>, vector<16x768xf32> -> vector<16x768xf32>
    %270 = arith.addf %265, %269 : vector<16x768xf32>
    %c0_262 = arith.constant 0 : index
    %c258 = arith.constant 258 : index
    %271 = vector.load %arg15[%c0_262, %c258] : memref<6x1152xf32, #tpu.memory_space<vmem>>, vector<6x768xf32>
    %c21_263 = arith.constant 21 : index
    %c0_264 = arith.constant 0 : index
    %c0_265 = arith.constant 0 : index
    %272 = vector.load %arg4[%c21_263, %c0_264, %c0_265] : memref<25x16x6xf32, #tpu.memory_space<vmem>>, vector<1x16x6xf32>
    %273 = vector.shape_cast %272 : vector<1x16x6xf32> to vector<16x6xf32>
    %cst_266 = arith.constant dense<0.000000e+00> : vector<16x768xf32>
    %274 = tpu.matmul %273, %271, %cst_266 {dimension_numbers = #tpu.dot_dimension_numbers<[1], [0], [0], [1], [0, 0, 1, 1], [], []>} : vector<16x6xf32>, vector<6x768xf32>, vector<16x768xf32> -> vector<16x768xf32>
    %275 = arith.addf %270, %274 : vector<16x768xf32>
    %c0_267 = arith.constant 0 : index
    %c260 = arith.constant 260 : index
    %276 = vector.load %arg15[%c0_267, %c260] : memref<6x1152xf32, #tpu.memory_space<vmem>>, vector<6x768xf32>
    %c22_268 = arith.constant 22 : index
    %c0_269 = arith.constant 0 : index
    %c0_270 = arith.constant 0 : index
    %277 = vector.load %arg4[%c22_268, %c0_269, %c0_270] : memref<25x16x6xf32, #tpu.memory_space<vmem>>, vector<1x16x6xf32>
    %278 = vector.shape_cast %277 : vector<1x16x6xf32> to vector<16x6xf32>
    %cst_271 = arith.constant dense<0.000000e+00> : vector<16x768xf32>
    %279 = tpu.matmul %278, %276, %cst_271 {dimension_numbers = #tpu.dot_dimension_numbers<[1], [0], [0], [1], [0, 0, 1, 1], [], []>} : vector<16x6xf32>, vector<6x768xf32>, vector<16x768xf32> -> vector<16x768xf32>
    %280 = arith.addf %275, %279 : vector<16x768xf32>
    %c0_272 = arith.constant 0 : index
    %c262 = arith.constant 262 : index
    %281 = vector.load %arg15[%c0_272, %c262] : memref<6x1152xf32, #tpu.memory_space<vmem>>, vector<6x768xf32>
    %c23_273 = arith.constant 23 : index
    %c0_274 = arith.constant 0 : index
    %c0_275 = arith.constant 0 : index
    %282 = vector.load %arg4[%c23_273, %c0_274, %c0_275] : memref<25x16x6xf32, #tpu.memory_space<vmem>>, vector<1x16x6xf32>
    %283 = vector.shape_cast %282 : vector<1x16x6xf32> to vector<16x6xf32>
    %cst_276 = arith.constant dense<0.000000e+00> : vector<16x768xf32>
    %284 = tpu.matmul %283, %281, %cst_276 {dimension_numbers = #tpu.dot_dimension_numbers<[1], [0], [0], [1], [0, 0, 1, 1], [], []>} : vector<16x6xf32>, vector<6x768xf32>, vector<16x768xf32> -> vector<16x768xf32>
    %285 = arith.addf %280, %284 : vector<16x768xf32>
    %c0_277 = arith.constant 0 : index
    %c264 = arith.constant 264 : index
    %286 = vector.load %arg15[%c0_277, %c264] : memref<6x1152xf32, #tpu.memory_space<vmem>>, vector<6x768xf32>
    %c24_278 = arith.constant 24 : index
    %c0_279 = arith.constant 0 : index
    %c0_280 = arith.constant 0 : index
    %287 = vector.load %arg4[%c24_278, %c0_279, %c0_280] : memref<25x16x6xf32, #tpu.memory_space<vmem>>, vector<1x16x6xf32>
    %288 = vector.shape_cast %287 : vector<1x16x6xf32> to vector<16x6xf32>
    %cst_281 = arith.constant dense<0.000000e+00> : vector<16x768xf32>
    %289 = tpu.matmul %288, %286, %cst_281 {dimension_numbers = #tpu.dot_dimension_numbers<[1], [0], [0], [1], [0, 0, 1, 1], [], []>} : vector<16x6xf32>, vector<6x768xf32>, vector<16x768xf32> -> vector<16x768xf32>
    %290 = arith.addf %285, %289 : vector<16x768xf32>
    %c0_282 = arith.constant 0 : index
    %c0_283 = arith.constant 0 : index
    %291 = vector.load %arg5[%c0_282, %c0_283] : memref<16x1xf32, #tpu.memory_space<vmem>>, vector<16x1xf32>
    %292 = vector.broadcast %291 : vector<16x1xf32> to vector<16x768xf32>
    %293 = arith.addf %290, %292 : vector<16x768xf32>
    %cst_284 = arith.constant 0.000000e+00 : f32
    %294 = vector.broadcast %cst_284 : f32 to vector<16x768xf32>
    %295 = arith.maximumf %293, %294 : vector<16x768xf32>
    %c0_285 = arith.constant 0 : index
    %c0_286 = arith.constant 0 : index
    %296 = vector.load %arg16[%c0_285, %c0_286] : memref<16x768xf32, #tpu.memory_space<vmem>>, vector<16x768xf32>
    tpu.vector_store %arg16[%c0_285, %c0_286], %295 {strides = array<i32>} : memref<16x768xf32, #tpu.memory_space<vmem>>, vector<16x768xf32>,
    %c0_287 = arith.constant 0 : index
    %c0_288 = arith.constant 0 : index
    %297 = vector.load %arg16[%c0_287, %c0_288] : memref<16x768xf32, #tpu.memory_space<vmem>>, vector<16x640xf32>
    %c0_289 = arith.constant 0 : index
    %c2_290 = arith.constant 2 : index
    %298 = vector.load %arg16[%c0_289, %c2_290] : memref<16x768xf32, #tpu.memory_space<vmem>>, vector<16x640xf32>
    %299 = arith.maximumf %297, %298 : vector<16x640xf32>
    %c0_291 = arith.constant 0 : index
    %c64_292 = arith.constant 64 : index
    %300 = vector.load %arg16[%c0_291, %c64_292] : memref<16x768xf32, #tpu.memory_space<vmem>>, vector<16x640xf32>
    %c0_293 = arith.constant 0 : index
    %c66_294 = arith.constant 66 : index
    %301 = vector.load %arg16[%c0_293, %c66_294] : memref<16x768xf32, #tpu.memory_space<vmem>>, vector<16x640xf32>
    %302 = arith.maximumf %300, %301 : vector<16x640xf32>
    %303 = arith.maximumf %299, %302 : vector<16x640xf32>
    %c0_295 = arith.constant 0 : index
    %c0_296 = arith.constant 0 : index
    %304 = vector.load %arg17[%c0_295, %c0_296] : memref<16x640xf32, #tpu.memory_space<vmem>>, vector<16x640xf32>
    tpu.vector_store %arg17[%c0_295, %c0_296], %303 {strides = array<i32>} : memref<16x640xf32, #tpu.memory_space<vmem>>, vector<16x640xf32>,
    %c0_297 = arith.constant 0 : index
    %c0_298 = arith.constant 0 : index
    %305 = vector.load %arg17[%c0_297, %c0_298] : memref<16x640xf32, #tpu.memory_space<vmem>>, vector<16x640xf32>
    %c0_299 = arith.constant 0 : index
    %c0_300 = arith.constant 0 : index
    %306 = vector.load %arg6[%c0_299, %c0_300] : memref<640x25xf32, #tpu.memory_space<vmem>>, vector<640x25xf32>
    %cst_301 = arith.constant dense<0.000000e+00> : vector<16x25xf32>
    %307 = tpu.matmul %305, %306, %cst_301 {dimension_numbers = #tpu.dot_dimension_numbers<[1], [0], [0], [1], [0, 0, 1, 1], [], []>} : vector<16x640xf32>, vector<640x25xf32>, vector<16x25xf32> -> vector<16x25xf32>
    %c0_302 = arith.constant 0 : index
    %c0_303 = arith.constant 0 : index
    %308 = vector.load %arg18[%c0_302, %c0_303] : memref<16x25xf32, #tpu.memory_space<vmem>>, vector<16x25xf32>
    tpu.vector_store %arg18[%c0_302, %c0_303], %307 {strides = array<i32>} : memref<16x25xf32, #tpu.memory_space<vmem>>, vector<16x25xf32>,
    %c0_304 = arith.constant 0 : index
    %c0_305 = arith.constant 0 : index
    %309 = vector.load %arg8[%c0_304, %c0_305] : memref<1x120xf32, #tpu.memory_space<vmem>>, vector<1x120xf32>
    %c0_306 = arith.constant 0 : index
    %c0_307 = arith.constant 0 : index
    %310 = vector.load %arg18[%c0_306, %c0_307] : memref<16x25xf32, #tpu.memory_space<vmem>>, vector<1x25xf32>
    %c0_308 = arith.constant 0 : index
    %c0_309 = arith.constant 0 : index
    %c0_310 = arith.constant 0 : index
    %311 = vector.load %arg7[%c0_308, %c0_309, %c0_310] : memref<16x25x120xf32, #tpu.memory_space<vmem>>, vector<1x25x120xf32>
    %312 = vector.shape_cast %311 : vector<1x25x120xf32> to vector<25x120xf32>
    %cst_311 = arith.constant dense<0.000000e+00> : vector<1x120xf32>
    %313 = tpu.matmul %310, %312, %cst_311 {dimension_numbers = #tpu.dot_dimension_numbers<[1], [0], [0], [1], [0, 0, 1, 1], [], []>} : vector<1x25xf32>, vector<25x120xf32>, vector<1x120xf32> -> vector<1x120xf32>
    %314 = arith.addf %309, %313 : vector<1x120xf32>
    %c1_312 = arith.constant 1 : index
    %c0_313 = arith.constant 0 : index
    %315 = vector.load %arg18[%c1_312, %c0_313] : memref<16x25xf32, #tpu.memory_space<vmem>>, vector<1x25xf32>
    %c1_314 = arith.constant 1 : index
    %c0_315 = arith.constant 0 : index
    %c0_316 = arith.constant 0 : index
    %316 = vector.load %arg7[%c1_314, %c0_315, %c0_316] : memref<16x25x120xf32, #tpu.memory_space<vmem>>, vector<1x25x120xf32>
    %317 = vector.shape_cast %316 : vector<1x25x120xf32> to vector<25x120xf32>
    %cst_317 = arith.constant dense<0.000000e+00> : vector<1x120xf32>
    %318 = tpu.matmul %315, %317, %cst_317 {dimension_numbers = #tpu.dot_dimension_numbers<[1], [0], [0], [1], [0, 0, 1, 1], [], []>} : vector<1x25xf32>, vector<25x120xf32>, vector<1x120xf32> -> vector<1x120xf32>
    %319 = arith.addf %314, %318 : vector<1x120xf32>
    %c2_318 = arith.constant 2 : index
    %c0_319 = arith.constant 0 : index
    %320 = vector.load %arg18[%c2_318, %c0_319] : memref<16x25xf32, #tpu.memory_space<vmem>>, vector<1x25xf32>
    %c2_320 = arith.constant 2 : index
    %c0_321 = arith.constant 0 : index
    %c0_322 = arith.constant 0 : index
    %321 = vector.load %arg7[%c2_320, %c0_321, %c0_322] : memref<16x25x120xf32, #tpu.memory_space<vmem>>, vector<1x25x120xf32>
    %322 = vector.shape_cast %321 : vector<1x25x120xf32> to vector<25x120xf32>
    %cst_323 = arith.constant dense<0.000000e+00> : vector<1x120xf32>
    %323 = tpu.matmul %320, %322, %cst_323 {dimension_numbers = #tpu.dot_dimension_numbers<[1], [0], [0], [1], [0, 0, 1, 1], [], []>} : vector<1x25xf32>, vector<25x120xf32>, vector<1x120xf32> -> vector<1x120xf32>
    %324 = arith.addf %319, %323 : vector<1x120xf32>
    %c3_324 = arith.constant 3 : index
    %c0_325 = arith.constant 0 : index
    %325 = vector.load %arg18[%c3_324, %c0_325] : memref<16x25xf32, #tpu.memory_space<vmem>>, vector<1x25xf32>
    %c3_326 = arith.constant 3 : index
    %c0_327 = arith.constant 0 : index
    %c0_328 = arith.constant 0 : index
    %326 = vector.load %arg7[%c3_326, %c0_327, %c0_328] : memref<16x25x120xf32, #tpu.memory_space<vmem>>, vector<1x25x120xf32>
    %327 = vector.shape_cast %326 : vector<1x25x120xf32> to vector<25x120xf32>
    %cst_329 = arith.constant dense<0.000000e+00> : vector<1x120xf32>
    %328 = tpu.matmul %325, %327, %cst_329 {dimension_numbers = #tpu.dot_dimension_numbers<[1], [0], [0], [1], [0, 0, 1, 1], [], []>} : vector<1x25xf32>, vector<25x120xf32>, vector<1x120xf32> -> vector<1x120xf32>
    %329 = arith.addf %324, %328 : vector<1x120xf32>
    %c4_330 = arith.constant 4 : index
    %c0_331 = arith.constant 0 : index
    %330 = vector.load %arg18[%c4_330, %c0_331] : memref<16x25xf32, #tpu.memory_space<vmem>>, vector<1x25xf32>
    %c4_332 = arith.constant 4 : index
    %c0_333 = arith.constant 0 : index
    %c0_334 = arith.constant 0 : index
    %331 = vector.load %arg7[%c4_332, %c0_333, %c0_334] : memref<16x25x120xf32, #tpu.memory_space<vmem>>, vector<1x25x120xf32>
    %332 = vector.shape_cast %331 : vector<1x25x120xf32> to vector<25x120xf32>
    %cst_335 = arith.constant dense<0.000000e+00> : vector<1x120xf32>
    %333 = tpu.matmul %330, %332, %cst_335 {dimension_numbers = #tpu.dot_dimension_numbers<[1], [0], [0], [1], [0, 0, 1, 1], [], []>} : vector<1x25xf32>, vector<25x120xf32>, vector<1x120xf32> -> vector<1x120xf32>
    %334 = arith.addf %329, %333 : vector<1x120xf32>
    %c5_336 = arith.constant 5 : index
    %c0_337 = arith.constant 0 : index
    %335 = vector.load %arg18[%c5_336, %c0_337] : memref<16x25xf32, #tpu.memory_space<vmem>>, vector<1x25xf32>
    %c5_338 = arith.constant 5 : index
    %c0_339 = arith.constant 0 : index
    %c0_340 = arith.constant 0 : index
    %336 = vector.load %arg7[%c5_338, %c0_339, %c0_340] : memref<16x25x120xf32, #tpu.memory_space<vmem>>, vector<1x25x120xf32>
    %337 = vector.shape_cast %336 : vector<1x25x120xf32> to vector<25x120xf32>
    %cst_341 = arith.constant dense<0.000000e+00> : vector<1x120xf32>
    %338 = tpu.matmul %335, %337, %cst_341 {dimension_numbers = #tpu.dot_dimension_numbers<[1], [0], [0], [1], [0, 0, 1, 1], [], []>} : vector<1x25xf32>, vector<25x120xf32>, vector<1x120xf32> -> vector<1x120xf32>
    %339 = arith.addf %334, %338 : vector<1x120xf32>
    %c6_342 = arith.constant 6 : index
    %c0_343 = arith.constant 0 : index
    %340 = vector.load %arg18[%c6_342, %c0_343] : memref<16x25xf32, #tpu.memory_space<vmem>>, vector<1x25xf32>
    %c6_344 = arith.constant 6 : index
    %c0_345 = arith.constant 0 : index
    %c0_346 = arith.constant 0 : index
    %341 = vector.load %arg7[%c6_344, %c0_345, %c0_346] : memref<16x25x120xf32, #tpu.memory_space<vmem>>, vector<1x25x120xf32>
    %342 = vector.shape_cast %341 : vector<1x25x120xf32> to vector<25x120xf32>
    %cst_347 = arith.constant dense<0.000000e+00> : vector<1x120xf32>
    %343 = tpu.matmul %340, %342, %cst_347 {dimension_numbers = #tpu.dot_dimension_numbers<[1], [0], [0], [1], [0, 0, 1, 1], [], []>} : vector<1x25xf32>, vector<25x120xf32>, vector<1x120xf32> -> vector<1x120xf32>
    %344 = arith.addf %339, %343 : vector<1x120xf32>
    %c7_348 = arith.constant 7 : index
    %c0_349 = arith.constant 0 : index
    %345 = vector.load %arg18[%c7_348, %c0_349] : memref<16x25xf32, #tpu.memory_space<vmem>>, vector<1x25xf32>
    %c7_350 = arith.constant 7 : index
    %c0_351 = arith.constant 0 : index
    %c0_352 = arith.constant 0 : index
    %346 = vector.load %arg7[%c7_350, %c0_351, %c0_352] : memref<16x25x120xf32, #tpu.memory_space<vmem>>, vector<1x25x120xf32>
    %347 = vector.shape_cast %346 : vector<1x25x120xf32> to vector<25x120xf32>
    %cst_353 = arith.constant dense<0.000000e+00> : vector<1x120xf32>
    %348 = tpu.matmul %345, %347, %cst_353 {dimension_numbers = #tpu.dot_dimension_numbers<[1], [0], [0], [1], [0, 0, 1, 1], [], []>} : vector<1x25xf32>, vector<25x120xf32>, vector<1x120xf32> -> vector<1x120xf32>
    %349 = arith.addf %344, %348 : vector<1x120xf32>
    %c8_354 = arith.constant 8 : index
    %c0_355 = arith.constant 0 : index
    %350 = vector.load %arg18[%c8_354, %c0_355] : memref<16x25xf32, #tpu.memory_space<vmem>>, vector<1x25xf32>
    %c8_356 = arith.constant 8 : index
    %c0_357 = arith.constant 0 : index
    %c0_358 = arith.constant 0 : index
    %351 = vector.load %arg7[%c8_356, %c0_357, %c0_358] : memref<16x25x120xf32, #tpu.memory_space<vmem>>, vector<1x25x120xf32>
    %352 = vector.shape_cast %351 : vector<1x25x120xf32> to vector<25x120xf32>
    %cst_359 = arith.constant dense<0.000000e+00> : vector<1x120xf32>
    %353 = tpu.matmul %350, %352, %cst_359 {dimension_numbers = #tpu.dot_dimension_numbers<[1], [0], [0], [1], [0, 0, 1, 1], [], []>} : vector<1x25xf32>, vector<25x120xf32>, vector<1x120xf32> -> vector<1x120xf32>
    %354 = arith.addf %349, %353 : vector<1x120xf32>
    %c9_360 = arith.constant 9 : index
    %c0_361 = arith.constant 0 : index
    %355 = vector.load %arg18[%c9_360, %c0_361] : memref<16x25xf32, #tpu.memory_space<vmem>>, vector<1x25xf32>
    %c9_362 = arith.constant 9 : index
    %c0_363 = arith.constant 0 : index
    %c0_364 = arith.constant 0 : index
    %356 = vector.load %arg7[%c9_362, %c0_363, %c0_364] : memref<16x25x120xf32, #tpu.memory_space<vmem>>, vector<1x25x120xf32>
    %357 = vector.shape_cast %356 : vector<1x25x120xf32> to vector<25x120xf32>
    %cst_365 = arith.constant dense<0.000000e+00> : vector<1x120xf32>
    %358 = tpu.matmul %355, %357, %cst_365 {dimension_numbers = #tpu.dot_dimension_numbers<[1], [0], [0], [1], [0, 0, 1, 1], [], []>} : vector<1x25xf32>, vector<25x120xf32>, vector<1x120xf32> -> vector<1x120xf32>
    %359 = arith.addf %354, %358 : vector<1x120xf32>
    %c10_366 = arith.constant 10 : index
    %c0_367 = arith.constant 0 : index
    %360 = vector.load %arg18[%c10_366, %c0_367] : memref<16x25xf32, #tpu.memory_space<vmem>>, vector<1x25xf32>
    %c10_368 = arith.constant 10 : index
    %c0_369 = arith.constant 0 : index
    %c0_370 = arith.constant 0 : index
    %361 = vector.load %arg7[%c10_368, %c0_369, %c0_370] : memref<16x25x120xf32, #tpu.memory_space<vmem>>, vector<1x25x120xf32>
    %362 = vector.shape_cast %361 : vector<1x25x120xf32> to vector<25x120xf32>
    %cst_371 = arith.constant dense<0.000000e+00> : vector<1x120xf32>
    %363 = tpu.matmul %360, %362, %cst_371 {dimension_numbers = #tpu.dot_dimension_numbers<[1], [0], [0], [1], [0, 0, 1, 1], [], []>} : vector<1x25xf32>, vector<25x120xf32>, vector<1x120xf32> -> vector<1x120xf32>
    %364 = arith.addf %359, %363 : vector<1x120xf32>
    %c11_372 = arith.constant 11 : index
    %c0_373 = arith.constant 0 : index
    %365 = vector.load %arg18[%c11_372, %c0_373] : memref<16x25xf32, #tpu.memory_space<vmem>>, vector<1x25xf32>
    %c11_374 = arith.constant 11 : index
    %c0_375 = arith.constant 0 : index
    %c0_376 = arith.constant 0 : index
    %366 = vector.load %arg7[%c11_374, %c0_375, %c0_376] : memref<16x25x120xf32, #tpu.memory_space<vmem>>, vector<1x25x120xf32>
    %367 = vector.shape_cast %366 : vector<1x25x120xf32> to vector<25x120xf32>
    %cst_377 = arith.constant dense<0.000000e+00> : vector<1x120xf32>
    %368 = tpu.matmul %365, %367, %cst_377 {dimension_numbers = #tpu.dot_dimension_numbers<[1], [0], [0], [1], [0, 0, 1, 1], [], []>} : vector<1x25xf32>, vector<25x120xf32>, vector<1x120xf32> -> vector<1x120xf32>
    %369 = arith.addf %364, %368 : vector<1x120xf32>
    %c12_378 = arith.constant 12 : index
    %c0_379 = arith.constant 0 : index
    %370 = vector.load %arg18[%c12_378, %c0_379] : memref<16x25xf32, #tpu.memory_space<vmem>>, vector<1x25xf32>
    %c12_380 = arith.constant 12 : index
    %c0_381 = arith.constant 0 : index
    %c0_382 = arith.constant 0 : index
    %371 = vector.load %arg7[%c12_380, %c0_381, %c0_382] : memref<16x25x120xf32, #tpu.memory_space<vmem>>, vector<1x25x120xf32>
    %372 = vector.shape_cast %371 : vector<1x25x120xf32> to vector<25x120xf32>
    %cst_383 = arith.constant dense<0.000000e+00> : vector<1x120xf32>
    %373 = tpu.matmul %370, %372, %cst_383 {dimension_numbers = #tpu.dot_dimension_numbers<[1], [0], [0], [1], [0, 0, 1, 1], [], []>} : vector<1x25xf32>, vector<25x120xf32>, vector<1x120xf32> -> vector<1x120xf32>
    %374 = arith.addf %369, %373 : vector<1x120xf32>
    %c13_384 = arith.constant 13 : index
    %c0_385 = arith.constant 0 : index
    %375 = vector.load %arg18[%c13_384, %c0_385] : memref<16x25xf32, #tpu.memory_space<vmem>>, vector<1x25xf32>
    %c13_386 = arith.constant 13 : index
    %c0_387 = arith.constant 0 : index
    %c0_388 = arith.constant 0 : index
    %376 = vector.load %arg7[%c13_386, %c0_387, %c0_388] : memref<16x25x120xf32, #tpu.memory_space<vmem>>, vector<1x25x120xf32>
    %377 = vector.shape_cast %376 : vector<1x25x120xf32> to vector<25x120xf32>
    %cst_389 = arith.constant dense<0.000000e+00> : vector<1x120xf32>
    %378 = tpu.matmul %375, %377, %cst_389 {dimension_numbers = #tpu.dot_dimension_numbers<[1], [0], [0], [1], [0, 0, 1, 1], [], []>} : vector<1x25xf32>, vector<25x120xf32>, vector<1x120xf32> -> vector<1x120xf32>
    %379 = arith.addf %374, %378 : vector<1x120xf32>
    %c14_390 = arith.constant 14 : index
    %c0_391 = arith.constant 0 : index
    %380 = vector.load %arg18[%c14_390, %c0_391] : memref<16x25xf32, #tpu.memory_space<vmem>>, vector<1x25xf32>
    %c14_392 = arith.constant 14 : index
    %c0_393 = arith.constant 0 : index
    %c0_394 = arith.constant 0 : index
    %381 = vector.load %arg7[%c14_392, %c0_393, %c0_394] : memref<16x25x120xf32, #tpu.memory_space<vmem>>, vector<1x25x120xf32>
    %382 = vector.shape_cast %381 : vector<1x25x120xf32> to vector<25x120xf32>
    %cst_395 = arith.constant dense<0.000000e+00> : vector<1x120xf32>
    %383 = tpu.matmul %380, %382, %cst_395 {dimension_numbers = #tpu.dot_dimension_numbers<[1], [0], [0], [1], [0, 0, 1, 1], [], []>} : vector<1x25xf32>, vector<25x120xf32>, vector<1x120xf32> -> vector<1x120xf32>
    %384 = arith.addf %379, %383 : vector<1x120xf32>
    %c15_396 = arith.constant 15 : index
    %c0_397 = arith.constant 0 : index
    %385 = vector.load %arg18[%c15_396, %c0_397] : memref<16x25xf32, #tpu.memory_space<vmem>>, vector<1x25xf32>
    %c15_398 = arith.constant 15 : index
    %c0_399 = arith.constant 0 : index
    %c0_400 = arith.constant 0 : index
    %386 = vector.load %arg7[%c15_398, %c0_399, %c0_400] : memref<16x25x120xf32, #tpu.memory_space<vmem>>, vector<1x25x120xf32>
    %387 = vector.shape_cast %386 : vector<1x25x120xf32> to vector<25x120xf32>
    %cst_401 = arith.constant dense<0.000000e+00> : vector<1x120xf32>
    %388 = tpu.matmul %385, %387, %cst_401 {dimension_numbers = #tpu.dot_dimension_numbers<[1], [0], [0], [1], [0, 0, 1, 1], [], []>} : vector<1x25xf32>, vector<25x120xf32>, vector<1x120xf32> -> vector<1x120xf32>
    %389 = arith.addf %384, %388 : vector<1x120xf32>
    %cst_402 = arith.constant 0.000000e+00 : f32
    %390 = vector.broadcast %cst_402 : f32 to vector<1x120xf32>
    %391 = arith.maximumf %389, %390 : vector<1x120xf32>
    %c0_403 = arith.constant 0 : index
    %c0_404 = arith.constant 0 : index
    %392 = vector.load %arg9[%c0_403, %c0_404] : memref<120x84xf32, #tpu.memory_space<vmem>>, vector<120x84xf32>
    %cst_405 = arith.constant dense<0.000000e+00> : vector<1x84xf32>
    %393 = tpu.matmul %391, %392, %cst_405 {dimension_numbers = #tpu.dot_dimension_numbers<[1], [0], [0], [1], [0, 0, 1, 1], [], []>} : vector<1x120xf32>, vector<120x84xf32>, vector<1x84xf32> -> vector<1x84xf32>
    %c0_406 = arith.constant 0 : index
    %c0_407 = arith.constant 0 : index
    %394 = vector.load %arg10[%c0_406, %c0_407] : memref<1x84xf32, #tpu.memory_space<vmem>>, vector<1x84xf32>
    %395 = arith.addf %393, %394 : vector<1x84xf32>
    %cst_408 = arith.constant 0.000000e+00 : f32
    %396 = vector.broadcast %cst_408 : f32 to vector<1x84xf32>
    %397 = arith.maximumf %395, %396 : vector<1x84xf32>
    %c0_409 = arith.constant 0 : index
    %c0_410 = arith.constant 0 : index
    %398 = vector.load %arg11[%c0_409, %c0_410] : memref<84x10xf32, #tpu.memory_space<vmem>>, vector<84x10xf32>
    %cst_411 = arith.constant dense<0.000000e+00> : vector<1x10xf32>
    %399 = tpu.matmul %397, %398, %cst_411 {dimension_numbers = #tpu.dot_dimension_numbers<[1], [0], [0], [1], [0, 0, 1, 1], [], []>} : vector<1x84xf32>, vector<84x10xf32>, vector<1x10xf32> -> vector<1x10xf32>
    %c0_412 = arith.constant 0 : index
    %c0_413 = arith.constant 0 : index
    %400 = vector.load %arg12[%c0_412, %c0_413] : memref<1x10xf32, #tpu.memory_space<vmem>>, vector<1x10xf32>
    %401 = arith.addf %399, %400 : vector<1x10xf32>
    %c0_414 = arith.constant 0 : index
    %c0_415 = arith.constant 0 : index
    %c0_416 = arith.constant 0 : index
    %402 = vector.load %arg13[%c0_414, %c0_415, %c0_416] : memref<1x1x10xf32, #tpu.memory_space<vmem>>, vector<1x1x10xf32>
    %403 = vector.shape_cast %402 : vector<1x1x10xf32> to vector<1x10xf32>
    %404 = vector.shape_cast %401 : vector<1x10xf32> to vector<1x1x10xf32>
    tpu.vector_store %arg13[%c0_414, %c0_415, %c0_416], %404 {strides = array<i32>} : memref<1x1x10xf32, #tpu.memory_space<vmem>>, vector<1x1x10xf32>,
    return
  }
  func.func @transform_0(%arg0: i32) -> (i32, i32, i32) {
    %c0_i32 = arith.constant 0 : i32
    %c0_i32_0 = arith.constant 0 : i32
    %c0_i32_1 = arith.constant 0 : i32
    return %arg0, %c0_i32, %c0_i32_0 : i32, i32, i32
  }
  func.func @transform_1(%arg0: i32) -> (i32, i32, i32) {
    %c0_i32 = arith.constant 0 : i32
    %c0_i32_0 = arith.constant 0 : i32
    %c0_i32_1 = arith.constant 0 : i32
    %c0_i32_2 = arith.constant 0 : i32
    return %c0_i32, %c0_i32_0, %c0_i32_1 : i32, i32, i32
  }
  func.func @transform_2(%arg0: i32) -> (i32, i32) {
    %c0_i32 = arith.constant 0 : i32
    %c0_i32_0 = arith.constant 0 : i32
    %c0_i32_1 = arith.constant 0 : i32
    return %c0_i32, %c0_i32_0 : i32, i32
  }
  func.func @transform_3(%arg0: i32) -> (i32, i32, i32) {
    %c0_i32 = arith.constant 0 : i32
    %c0_i32_0 = arith.constant 0 : i32
    %c0_i32_1 = arith.constant 0 : i32
    %c0_i32_2 = arith.constant 0 : i32
    return %c0_i32, %c0_i32_0, %c0_i32_1 : i32, i32, i32
  }
  func.func @transform_4(%arg0: i32) -> (i32, i32) {
    %c0_i32 = arith.constant 0 : i32
    %c0_i32_0 = arith.constant 0 : i32
    %c0_i32_1 = arith.constant 0 : i32
    return %c0_i32, %c0_i32_0 : i32, i32
  }
  func.func @transform_5(%arg0: i32) -> (i32, i32) {
    %c0_i32 = arith.constant 0 : i32
    %c0_i32_0 = arith.constant 0 : i32
    %c0_i32_1 = arith.constant 0 : i32
    return %c0_i32, %c0_i32_0 : i32, i32
  }
  func.func @transform_6(%arg0: i32) -> (i32, i32, i32) {
    %c0_i32 = arith.constant 0 : i32
    %c0_i32_0 = arith.constant 0 : i32
    %c0_i32_1 = arith.constant 0 : i32
    %c0_i32_2 = arith.constant 0 : i32
    return %c0_i32, %c0_i32_0, %c0_i32_1 : i32, i32, i32
  }
  func.func @transform_7(%arg0: i32) -> (i32, i32) {
    %c0_i32 = arith.constant 0 : i32
    %c0_i32_0 = arith.constant 0 : i32
    %c0_i32_1 = arith.constant 0 : i32
    return %c0_i32, %c0_i32_0 : i32, i32
  }
  func.func @transform_8(%arg0: i32) -> (i32, i32) {
    %c0_i32 = arith.constant 0 : i32
    %c0_i32_0 = arith.constant 0 : i32
    %c0_i32_1 = arith.constant 0 : i32
    return %c0_i32, %c0_i32_0 : i32, i32
  }
  func.func @transform_9(%arg0: i32) -> (i32, i32) {
    %c0_i32 = arith.constant 0 : i32
    %c0_i32_0 = arith.constant 0 : i32
    %c0_i32_1 = arith.constant 0 : i32
    return %c0_i32, %c0_i32_0 : i32, i32
  }
  func.func @transform_10(%arg0: i32) -> (i32, i32) {
    %c0_i32 = arith.constant 0 : i32
    %c0_i32_0 = arith.constant 0 : i32
    %c0_i32_1 = arith.constant 0 : i32
    return %c0_i32, %c0_i32_0 : i32, i32
  }
  func.func @transform_11(%arg0: i32) -> (i32, i32) {
    %c0_i32 = arith.constant 0 : i32
    %c0_i32_0 = arith.constant 0 : i32
    %c0_i32_1 = arith.constant 0 : i32
    return %c0_i32, %c0_i32_0 : i32, i32
  }
  func.func @transform_12(%arg0: i32) -> (i32, i32, i32) {
    %c0_i32 = arith.constant 0 : i32
    %c0_i32_0 = arith.constant 0 : i32
    %c0_i32_1 = arith.constant 0 : i32
    return %arg0, %c0_i32, %c0_i32_0 : i32, i32, i32
  }
}

</mosaic_0001>

<bundles_post_ra>
// kernel: net_forward.1
= control target key start
LH: loop header
LB: loop body
LE: loop exit
PB: predicated region body
PF: predicated region fallthrough
CT: control target
= control target key end

     0   :  { %s27153_s0 = inlined_call_operand.vmem [shape: f32[2,3,1536], index: 0, kind: input, shape index: {}]   ;;  %s27154_s1 = inlined_call_operand.vmem [shape: f32[25,6,3], index: 1, kind: input, shape index: {}]   ;;  %s27155_s2 = inlined_call_operand.vmem [shape: f32[6,1], index: 2, kind: input, shape index: {}]   ;;  %s27156_s3 = inlined_call_operand.vmem [shape: f32[25,16,6], index: 3, kind: input, shape index: {}]   ;;  %s27157_s4 = inlined_call_operand.vmem [shape: f32[16,1], index: 4, kind: input, shape index: {}]   ;;  %s27158_s5 = inlined_call_operand.vmem [shape: f32[640,25], index: 5, kind: input, shape index: {}]   ;;  %s27159_s6 = inlined_call_operand.vmem [shape: f32[16,25,120], index: 6, kind: input, shape index: {}]   ;;  %s27160_s7 = inlined_call_operand.vmem [shape: f32[1,120], index: 7, kind: input, shape index: {}]   ;;  %s27161_s8 = inlined_call_operand.vmem [shape: f32[120,84], index: 8, kind: input, shape index: {}]   ;;  %s27162_s9 = inlined_call_operand.vmem [shape: f32[1,84], index: 9, kind: input, shape index: {}]   ;;  %s27163_s10 = inlined_call_operand.vmem [shape: f32[84,10], index: 10, kind: input, shape index: {}]   ;;  %s27164_s11 = inlined_call_operand.vmem [shape: f32[1,10], index: 11, kind: input, shape index: {}]   ;;  %s27165_s12 = inlined_call_operand.hbm [shape: f32[2,1,10], index: 12, kind: output, shape index: {}]  }
   0x1   :  { %27189 = sst [smem:[#allocation76_spill]] %s27153_s0 }
   0x2   :  { %27190 = sst [smem:[#allocation77_spill]] %s27154_s1 }
   0x3   :  { %17 = vsyncpa [#allocation8], 0 }
   0x4   :  { %19 = vsyncpa [#allocation8 + $0x1], 0  ;;  %s22375_s21 = smov 0   ;;  %s22377_s22 = smov 0  }
   0x5   :  { %s22379_s23 = smov 0   ;;  %s22381_s24 = smov 0  }
   0x6 LB: > { %s22396_s25 = sadd.s32 4294967295, %s22281_s24   ;;  %s20651_s26 = sadd.s32 4294967294, %s22281_s24   ;;  %s22281_s24 = sphi %s22381_s24, %s27409_s24   ;;  %s22277_s23 = sphi %s22379_s23, %s27408_s23   ;;  %s22273_s22 = sphi %s22377_s22, %s27407_s22   ;;  %s22269_s21 = sphi %s22375_s21, %s27406_s21  }
   0x7   : > { %s22400_s27 = sadd.s32 1, %s22281_s24   ;;  %s289_s28 = sadd.s32 1, %s22277_s23 }
   0x8   : > { %s286_s29 = ssub.s32 %s22281_s24, %s22400_s27  ;;  %p299_p0 = scmp.ne.s32.totalorder %s22277_s23, %s22273_s22 }
   0x9   : > { %p287_p1 = scmp.eq.s32.totalorder %s286_s29, 0  ;;  %p300_p2 = scmp.eq.s32.totalorder %s22396_s25, 1 }
   0xa   : > { %p305_p3 = scmp.ne.s32.totalorder %s22273_s22, %s22269_s21  ;;  %p306_p4 = scmp.eq.s32.totalorder %s20651_s26, 1 }
   0xb   : > { %s22411_s30 = scalar_select %p287_p1, %s22277_s23, %s289_s28  }
   0xc   : > { %p22413_p5 = por %p300_p2, %p299_p0  ;;  %p22417_p6 = por %p306_p4, %p305_p3 }
   0xd   : > { %p20654_p7 = scmp.ge.s32.totalorder %s22281_s24, 1  ;;  %p365_p8 = scmp.lt.s32.totalorder %s22281_s24, 3 }
   0xf   : > { %p366_p9 = pnand %p20654_p7, %p365_p8 }
  0x11   : > { %369 = sbr.rel (%p366_p9) target bundleno = 2960 (0xb90), region = 68 }
  0x16   : > { %p406_p10 = scmp.lt.s32.totalorder %s22396_s25, 1  ;;  %s27193_s0 = sld [smem:[#allocation76_spill]]  ;;  %v27172_v4 = vmov 0.0   ;;  %vm453_vm0 = vcmask 1039360   ;;  %vm468_vm1 = vcmask 1042432   ;;  %vm464_vm2 = vcmask 23552  }
  0x17   : > { %s22283_s20 = smov 127   ;;  %553 = vmatprep.mubr.f32.mxu0 %v27172_v4  ;;  %624 = vmatprep.mubr.f32.mxu1 %v27172_v4  ;;  %s27184_s26 = smov 126   ;;  %vm1263_vm3 = vcmask 1031168   ;;  %vm1703_vm4 = vcmask 1022976   ;;  %vm2143_vm5 = vcmask 1014784   ;;  %vm2583_vm6 = vcmask 785408  }
  0x18   : > { %s407_s15 = scalar_select %p406_p10, %s22396_s25, 1  ;;  %vm3023_vm7 = vcmask 777216   ;;  %vm3463_vm8 = vcmask 769024   ;;  %vm3903_vm9 = vcmask 760832   ;;  %vm4343_vm10 = vcmask 752640  }
  0x19   : > { %s22286_s28 = smov 125   ;;  %s27186_s29 = smov 124   ;;  %vm4783_vm11 = vcmask 523264   ;;  %vm5223_vm12 = vcmask 515072   ;;  %vm5663_vm13 = vcmask 506880   ;;  %vm6103_vm14 = vcmask 498688  }
  0x1a   : > { %s21972_s16 = smul.u32 48, %s407_s15  ;;  %s27175_s15 = smov 96   ;;  %vm6543_vm15 = vcmask 490496  }
  0x1b   : > { %s27194_s1 = sld [smem:[#allocation77_spill]]  ;;  %s22290_s17 = smov 94  }
  0x1c   : > { %s22428_s19 = scalar_lea.vmem %s27193_s0, %s21972_s16  ;;  %s22289_s16 = smov 95  }
  0x1d   : > { %v22431_v0 = vld [vmem:[%s22428_s19 + $0x8] sm:$0x77]  ;;  %v22434_v1 = vld [vmem:[%s22428_s19] sm:$0x77]  ;;  %v22445_v3 = vld [vmem:[%s22428_s19 + $0x10] sm:$0x77] }
  0x1e   : > { %435 = vrot.lane.b32.xlu0 %v22431_v0, %s22283_s20  ;;  %431 = vrot.lane.b32.xlu1 %v22434_v1, %s22283_s20  ;;  %v22442_v2 = vcombine.high %v22431_v0, %v22431_v0  ;;  %v22455_v5 = vcombine.high %v22445_v3, %v22445_v3  ;;  %v22459_v6 = vcombine.high %v22434_v1, %v22434_v1  ;;  %v22462_v7 = vld [vmem:[%s22428_s19 + $0x18] sm:$0x77]  ;;  %v22473_v9 = vld [vmem:[%s22428_s19 + $0x20] sm:$0x77]  ;;  %s27329_s18 = smov 62   ;;  %s27337_s0 = smov 56  }
  0x1f   : > { %v22470_v8 = vcombine.high %v22462_v7, %v22462_v7  ;;  %v22481_v10 = vcombine.high %v22473_v9, %v22473_v9  ;;  %v1222_v11 = vld [vmem:[%s22428_s19] sm:$0x77]  ;;  %v417_v13 = vld [vmem:[%s22428_s19 + $0x28] sm:$0x7]  ;;  %v1224_v16 = vld [vmem:[%s22428_s19 + $0x10] sm:$0x77] }
  0x20   : > { %v1236_v12 = vcombine.high %v1222_v11, %v1222_v11  ;;  %v1223_v14 = vld [vmem:[%s22428_s19 + $0x8] sm:$0x77]  ;;  %v1238_v17 = vcombine.high %v1224_v16, %v1224_v16  ;;  %v1225_v18 = vld [vmem:[%s22428_s19 + $0x18] sm:$0x77]  ;;  %v1226_v20 = vld [vmem:[%s22428_s19 + $0x20] sm:$0x77] }
  0x21   : > { %v1237_v15 = vcombine.high %v1223_v14, %v1223_v14  ;;  %v1239_v19 = vcombine.high %v1225_v18, %v1225_v18  ;;  %v1240_v21 = vcombine.high %v1226_v20, %v1226_v20  ;;  %v1227_v22 = vld [vmem:[%s22428_s19 + $0x28] sm:$0x7]  ;;  %v1662_v23 = vld [vmem:[%s22428_s19] sm:$0x77]  ;;  %v1664_v27 = vld [vmem:[%s22428_s19 + $0x10] sm:$0x77] }
  0x22   : > { %439 = vrot.lane.b32.xlu0 %v22445_v3, %s22283_s20  ;;  %437 = vrot.lane.b32.xlu1 %v22442_v2, %s22283_s20  ;;  %v1676_v24 = vcombine.high %v1662_v23, %v1662_v23  ;;  %v1663_v25 = vld [vmem:[%s22428_s19 + $0x8] sm:$0x77]  ;;  %v1678_v28 = vcombine.high %v1664_v27, %v1664_v27  ;;  %v1665_v29 = vld [vmem:[%s22428_s19 + $0x18] sm:$0x77] }
  0x23   : > { %v1677_v26 = vcombine.high %v1663_v25, %v1663_v25  ;;  %v1679_v30 = vcombine.high %v1665_v29, %v1665_v29  ;;  %v1666_v31 = vld [vmem:[%s22428_s19 + $0x20] sm:$0x77]  ;;  %v1667_v35 = vld [vmem:[%s22428_s19 + $0x28] sm:$0x7]  ;;  %v2104_v38 = vld [vmem:[%s22428_s19 + $0x10] sm:$0x77] }
  0x24   : > { %v1680_v32 = vcombine.high %v1666_v31, %v1666_v31  ;;  %v2102_v33 = vld [vmem:[%s22428_s19] sm:$0x77]  ;;  %v2103_v36 = vld [vmem:[%s22428_s19 + $0x8] sm:$0x77]  ;;  %v2118_v39 = vcombine.high %v2104_v38, %v2104_v38  ;;  %v2105_v40 = vld [vmem:[%s22428_s19 + $0x18] sm:$0x77] }
  0x25   : > { %v2116_v34 = vcombine.high %v2102_v33, %v2102_v33  ;;  %v2117_v37 = vcombine.high %v2103_v36, %v2103_v36  ;;  %v2119_v41 = vcombine.high %v2105_v40, %v2105_v40  ;;  %v2106_v42 = vld [vmem:[%s22428_s19 + $0x20] sm:$0x77]  ;;  %v2107_v44 = vld [vmem:[%s22428_s19 + $0x28] sm:$0x7]  ;;  %v2544_v49 = vld [vmem:[%s22428_s19 + $0x10] sm:$0x77] }
  0x26   : > { %441 = vrot.lane.b32.xlu1 %v22455_v5, %s22283_s20  ;;  %433 = vrot.lane.b32.xlu0 %v22459_v6, %s22283_s20  ;;  %v2120_v43 = vcombine.high %v2106_v42, %v2106_v42  ;;  %v2542_v45 = vld [vmem:[%s22428_s19] sm:$0x77]  ;;  %v2543_v47 = vld [vmem:[%s22428_s19 + $0x8] sm:$0x77]  ;;  %v2558_v50 = vcombine.high %v2544_v49, %v2544_v49 }
  0x27   : > { %v2556_v46 = vcombine.high %v2542_v45, %v2542_v45  ;;  %v2557_v48 = vcombine.high %v2543_v47, %v2543_v47  ;;  %v2545_v51 = vld [vmem:[%s22428_s19 + $0x18] sm:$0x77]  ;;  %v2546_v53 = vld [vmem:[%s22428_s19 + $0x20] sm:$0x77]  ;;  %v2547_v57 = vld [vmem:[%s22428_s19 + $0x28] sm:$0x7] }
  0x28   : > { %v2559_v52 = vcombine.high %v2545_v51, %v2545_v51  ;;  %v2560_v54 = vcombine.high %v2546_v53, %v2546_v53  ;;  %v2982_v55 = vld [vmem:[%s22428_s19] sm:$0x77]  ;;  %v2983_v58 = vld [vmem:[%s22428_s19 + $0x8] sm:$0x77]  ;;  %v2984_v60 = vld [vmem:[%s22428_s19 + $0x10] sm:$0x77] }
  0x29   : > { %v2996_v56 = vcombine.high %v2982_v55, %v2982_v55  ;;  %v2997_v59 = vcombine.high %v2983_v58, %v2983_v58  ;;  %v2998_v63 = vcombine.high %v2984_v60, %v2984_v60 }
  0x2a   : > { %445 = vrot.lane.b32.xlu1 %v22470_v8, %s22283_s20  ;;  %443 = vrot.lane.b32.xlu0 %v22462_v7, %s22283_s20 }
  0x2e   : > { %449 = vrot.lane.b32.xlu1 %v22481_v10, %s22283_s20  ;;  %447 = vrot.lane.b32.xlu0 %v22473_v9, %s22283_s20 }
  0x32   : > { %1243 = vrot.lane.b32.xlu1 %v1236_v12, %s27184_s26  ;;  %451 = vrot.lane.b32.xlu0 %v417_v13, %s22283_s20 }
  0x36   : > { %1241 = vrot.lane.b32.xlu1 %v1222_v11, %s27184_s26  ;;  %1245 = vrot.lane.b32.xlu0 %v1223_v14, %s27184_s26  ;;  %v2985_v11 = vld [vmem:[%s22428_s19 + $0x18] sm:$0x77] }
  0x3a   : > { %1249 = vrot.lane.b32.xlu1 %v1224_v16, %s27184_s26  ;;  %1247 = vrot.lane.b32.xlu0 %v1237_v15, %s27184_s26  ;;  %v20656_v16 = vld [vmem:[%s27194_s1 + $0x8] sm:$0x3f] }
  0x3e   : > { %1253 = vrot.lane.b32.xlu1 %v1225_v18, %s27184_s26  ;;  %1251 = vrot.lane.b32.xlu0 %v1238_v17, %s27184_s26  ;;  %v2999_v17 = vcombine.high %v2985_v11, %v2985_v11  ;;  %v2986_v18 = vld [vmem:[%s22428_s19 + $0x20] sm:$0x77] }
  0x42   : > { %1257 = vrot.lane.b32.xlu1 %v1226_v20, %s27184_s26  ;;  %1255 = vrot.lane.b32.xlu0 %v1239_v19, %s27184_s26 }
  0x46   : > { %1261 = vrot.lane.b32.xlu1 %v1227_v22, %s27184_s26  ;;  %1259 = vrot.lane.b32.xlu0 %v1240_v21, %s27184_s26 }
  0x4a   : > { %1685 = vrot.lane.b32.xlu1 %v1663_v25, %s22286_s28  ;;  %1683 = vrot.lane.b32.xlu0 %v1676_v24, %s22286_s28  ;;  %v2987_v24 = vld [vmem:[%s22428_s19 + $0x28] sm:$0x7] }
  0x4e   : > { %1687 = vrot.lane.b32.xlu1 %v1677_v26, %s22286_s28  ;;  %1681 = vrot.lane.b32.xlu0 %v1662_v23, %s22286_s28  ;;  %v3000_v23 = vcombine.high %v2986_v18, %v2986_v18 }
  0x52   : > { %1691 = vrot.lane.b32.xlu1 %v1678_v28, %s22286_s28  ;;  %1689 = vrot.lane.b32.xlu0 %v1664_v27, %s22286_s28  ;;  %v3422_v27 = vld [vmem:[%s22428_s19] sm:$0x77] }
  0x56   : > { %1695 = vrot.lane.b32.xlu1 %v1679_v30, %s22286_s28  ;;  %1693 = vrot.lane.b32.xlu0 %v1665_v29, %s22286_s28  ;;  %v3423_v30 = vld [vmem:[%s22428_s19 + $0x8] sm:$0x77] }
  0x5a   : > { %1699 = vrot.lane.b32.xlu1 %v1680_v32, %s22286_s28  ;;  %1697 = vrot.lane.b32.xlu0 %v1666_v31, %s22286_s28  ;;  %v3436_v31 = vcombine.high %v3422_v27, %v3422_v27 }
  0x5e   : > { %2123 = vrot.lane.b32.xlu1 %v2116_v34, %s27186_s29  ;;  %1701 = vrot.lane.b32.xlu0 %v1667_v35, %s22286_s28 }
  0x62   : > { %2121 = vrot.lane.b32.xlu1 %v2102_v33, %s27186_s29  ;;  %2125 = vrot.lane.b32.xlu0 %v2103_v36, %s27186_s29  ;;  %v3437_v36 = vcombine.high %v3423_v30, %v3423_v30 }
  0x66   : > { %2129 = vrot.lane.b32.xlu1 %v2104_v38, %s27186_s29  ;;  %2127 = vrot.lane.b32.xlu0 %v2117_v37, %s27186_s29  ;;  %v3424_v37 = vld [vmem:[%s22428_s19 + $0x10] sm:$0x77] }
  0x6a   : > { %2133 = vrot.lane.b32.xlu1 %v2105_v40, %s27186_s29  ;;  %2131 = vrot.lane.b32.xlu0 %v2118_v39, %s27186_s29 }
  0x6e   : > { %2137 = vrot.lane.b32.xlu1 %v2106_v42, %s27186_s29  ;;  %2135 = vrot.lane.b32.xlu0 %v2119_v41, %s27186_s29  ;;  %v416_v41 = vld [vmem:[%s27194_s1] sm:$0x3f] }
  0x72   : > { %2141 = vrot.lane.b32.xlu1 %v2107_v44, %s27186_s29  ;;  %2139 = vrot.lane.b32.xlu0 %v2120_v43, %s27186_s29  ;;  %v3438_v43 = vcombine.high %v3424_v37, %v3424_v37  ;;  %v3425_v44 = vld [vmem:[%s22428_s19 + $0x18] sm:$0x77] }
  0x76   : > { %2565 = vrot.lane.b32.xlu1 %v2543_v47, %s27175_s15  ;;  %2563 = vrot.lane.b32.xlu0 %v2556_v46, %s27175_s15  ;;  %v3426_v46 = vld [vmem:[%s22428_s19 + $0x20] sm:$0x77] }
  0x7a   : > { %2567 = vrot.lane.b32.xlu1 %v2557_v48, %s27175_s15  ;;  %2561 = vrot.lane.b32.xlu0 %v2542_v45, %s27175_s15  ;;  %v3862_v48 = vld [vmem:[%s22428_s19] sm:$0x77] }
  0x7e   : > { %2571 = vrot.lane.b32.xlu1 %v2558_v50, %s27175_s15  ;;  %2569 = vrot.lane.b32.xlu0 %v2544_v49, %s27175_s15 }
  0x82   : > { %2575 = vrot.lane.b32.xlu1 %v2559_v52, %s27175_s15  ;;  %2573 = vrot.lane.b32.xlu0 %v2545_v51, %s27175_s15  ;;  %v20687_v51 = vld [vmem:[%s27194_s1 + $0x10] sm:$0x3f] }
  0x86   : > { %2579 = vrot.lane.b32.xlu1 %v2560_v54, %s27175_s15  ;;  %2577 = vrot.lane.b32.xlu0 %v2546_v53, %s27175_s15  ;;  %v3876_v53 = vcombine.high %v3862_v48, %v3862_v48 }
  0x8a   : > { %3003 = vrot.lane.b32.xlu1 %v2996_v56, %s22289_s16  ;;  %2581 = vrot.lane.b32.xlu0 %v2547_v57, %s27175_s15 }
  0x8e   : > { %3001 = vrot.lane.b32.xlu1 %v2982_v55, %s22289_s16  ;;  %3005 = vrot.lane.b32.xlu0 %v2983_v58, %s22289_s16  ;;  %v3427_v55 = vld [vmem:[%s22428_s19 + $0x28] sm:$0x7] }
  0x90   : > { %v436_v61 = vpop.permute.xlu0 %435  ;;  %v432_v62 = vpop.permute.xlu1 %431 }
  0x92   : > { %3009 = vrot.lane.b32.xlu1 %v2984_v60, %s22289_s16  ;;  %3007 = vrot.lane.b32.xlu0 %v2997_v59, %s22289_s16 }
  0x94   : > { %v440_v12 = vpop.permute.xlu0 %439  ;;  %v438_v13 = vpop.permute.xlu1 %437 }
  0x95   : > { %v457_v14 = vsel %vm453_vm0, %v438_v13, %v440_v12  ;;  %v456_v15 = vsel %vm453_vm0, %v436_v61, %v438_v13 }
  0x96   : > { %3013 = vrot.lane.b32.xlu1 %v2985_v11, %s22289_s16  ;;  %20660 = vmatprep.subr.msk.mxu1 %vm468_vm1, %v457_v14  ;;  %v3864_v14 = vld [vmem:[%s22428_s19 + $0x10] sm:$0x77] }
  0x97   : > { %3011 = vrot.lane.b32.xlu0 %v2998_v63, %s22289_s16  ;;  %20661 = vmatpush1.msk.msra.mxu1 %vm468_vm1, %v456_v15 }
  0x98   : > { %v442_v19 = vpop.permute.xlu1 %441  ;;  %v434_v20 = vpop.permute.xlu0 %433  ;;  %20662 = vmatmul.mubr.msk.f32.vlgmr.msra.gmra.mxu1 %vm464_vm2, %v20656_v16 }
  0x99   : > { %v455_v21 = vsel %vm453_vm0, %v434_v20, %v436_v61  ;;  %v454_v22 = vsel %vm453_vm0, %v432_v62, %v434_v20  ;;  %766 = vmatprep.mubr.f32.mxu1 %v27172_v4  ;;  %v458_v29 = vsel %vm453_vm0, %v440_v12, %v442_v19  ;;  %v3863_v61 = vld [vmem:[%s22428_s19 + $0x8] sm:$0x77]  ;;  %v3865_v20 = vld [vmem:[%s22428_s19 + $0x18] sm:$0x77] }
  0x9a   : > { %3017 = vrot.lane.b32.xlu1 %v2986_v18, %s22289_s16  ;;  %20657 = vmatprep.subr.msk.mxu0 %vm468_vm1, %v455_v21  ;;  %v3877_v12 = vcombine.high %v3863_v61, %v3863_v61  ;;  %v3878_v18 = vcombine.high %v3864_v14, %v3864_v14 }
  0x9b   : > { %3015 = vrot.lane.b32.xlu0 %v2999_v17, %s22289_s16  ;;  %20658 = vmatpush1.msk.msra.mxu0 %vm468_vm1, %v454_v22  ;;  %v20703_v17 = vld [vmem:[%s27194_s1 + $0x18] sm:$0x3f] }
  0x9c   : > { %v446_v25 = vpop.permute.xlu1 %445  ;;  %v444_v26 = vpop.permute.xlu0 %443  ;;  %20659 = vmatmul.mubr.msk.f32.vlgmr.msra.gmra.mxu0 %vm464_vm2, %v20656_v16 }
  0x9d   : > { %v459_v28 = vsel %vm453_vm0, %v442_v19, %v444_v26  ;;  %695 = vmatprep.mubr.f32.mxu0 %v27172_v4  ;;  %v460_v35 = vsel %vm453_vm0, %v444_v26, %v446_v25  ;;  %v3866_v26 = vld [vmem:[%s22428_s19 + $0x20] sm:$0x77] }
  0x9e   : > { %3021 = vrot.lane.b32.xlu1 %v2987_v24, %s22289_s16  ;;  %20663 = vmatprep.subr.msk.mxu0 %vm468_vm1, %v459_v28 }
  0x9f   : > { %3019 = vrot.lane.b32.xlu0 %v3000_v23, %s22289_s16  ;;  %20664 = vmatpush1.msk.msra.mxu0 %vm468_vm1, %v458_v29  ;;  %s22291_s16 = smov 93   ;;  %v3879_v23 = vcombine.high %v3865_v20, %v3865_v20  ;;  %v3880_v29 = vcombine.high %v3866_v26, %v3866_v26 }
  0xa0   : > { %v450_v32 = vpop.permute.xlu1 %449  ;;  %v448_v33 = vpop.permute.xlu0 %447  ;;  %20665 = vmatmul.mubr.msk.f32.vlgmr.msra.gmra.mxu0 %vm464_vm2, %v20656_v16 }
  0xa1   : > { %v461_v34 = vsel %vm453_vm0, %v446_v25, %v448_v33  ;;  %837 = vmatprep.mubr.f32.mxu0 %v27172_v4  ;;  %v462_v42 = vsel %vm453_vm0, %v448_v33, %v450_v32  ;;  %v4302_v33 = vld [vmem:[%s22428_s19] sm:$0x77] }
  0xa2   : > { %3445 = vrot.lane.b32.xlu1 %v3423_v30, %s22290_s17  ;;  %20666 = vmatprep.subr.msk.mxu1 %vm468_vm1, %v461_v34 }
  0xa3   : > { %3443 = vrot.lane.b32.xlu0 %v3436_v31, %s22290_s17  ;;  %20667 = vmatpush1.msk.msra.mxu1 %vm468_vm1, %v460_v35 }
  0xa4   : > { %v1244_v38 = vpop.permute.xlu1 %1243  ;;  %20668 = vmatmul.mubr.msk.f32.vlgmr.msra.gmra.mxu1 %vm464_vm2, %v20656_v16  ;;  %v452_v39 = vpop.permute.xlu0 %451  ;;  %20672 = vmatprep.subr.msk.mxu1 %vm468_vm1, %v22459_v6 }
  0xa5   : > { %v463_v40 = vsel %vm453_vm0, %v450_v32, %v452_v39  ;;  %20673 = vmatpush1.msk.msra.mxu1 %vm468_vm1, %v22434_v1  ;;  %931 = vmatprep.mubr.f32.mxu1 %v27172_v4  ;;  %v3867_v32 = vld [vmem:[%s22428_s19 + $0x28] sm:$0x7] }
  0xa6   : > { %3447 = vrot.lane.b32.xlu1 %v3437_v36, %s22290_s17  ;;  %20669 = vmatprep.subr.msk.mxu0 %vm468_vm1, %v463_v40  ;;  %v4316_v36 = vcombine.high %v4302_v33, %v4302_v33  ;;  %v4303_v39 = vld [vmem:[%s22428_s19 + $0x8] sm:$0x77] }
  0xa7   : > { %3441 = vrot.lane.b32.xlu0 %v3422_v27, %s22290_s17  ;;  %20670 = vmatpush1.msk.msra.mxu0 %vm468_vm1, %v462_v42  ;;  %v4317_v42 = vcombine.high %v4303_v39, %v4303_v39 }
  0xa8   : > { %v1242_v6 = vpop.permute.xlu1 %1241  ;;  %20671 = vmatmul.mubr.msk.f32.vlgmr.msra.gmra.mxu0 %vm464_vm2, %v20656_v16  ;;  %20674 = vmatmul.mubr.msk.f32.vlgmr.msra.gmra.mxu1 %vm464_vm2, %v416_v41  ;;  %v1246_v1 = vpop.permute.xlu0 %1245 }
  0xa9   : > { %20675 = vmatprep.subr.msk.mxu0 %vm468_vm1, %v22442_v2  ;;  %20678 = vmatprep.subr.msk.mxu1 %vm468_vm1, %v22455_v5  ;;  %v3439_v5 = vcombine.high %v3425_v44, %v3425_v44 }
  0xaa   : > { %3451 = vrot.lane.b32.xlu1 %v3438_v43, %s22290_s17  ;;  %20676 = vmatpush1.msk.msra.mxu0 %vm468_vm1, %v22431_v0  ;;  %v1265_v0 = vsel %vm1263_vm3, %v1244_v38, %v1246_v1 }
  0xab   : > { %3449 = vrot.lane.b32.xlu0 %v3424_v37, %s22290_s17  ;;  %1002 = vmatprep.mubr.f32.mxu0 %v27172_v4 }
  0xac   : > { %20679 = vmatpush1.msk.msra.mxu1 %vm468_vm1, %v22445_v3  ;;  %1073 = vmatprep.mubr.f32.mxu1 %v27172_v4  ;;  %v1250_v2 = vpop.permute.xlu1 %1249  ;;  %v1248_v45 = vpop.permute.xlu0 %1247 }
  0xad   : > { %20681 = vmatprep.subr.msk.mxu0 %vm468_vm1, %v22470_v8  ;;  %20677 = vmatmul.mubr.msk.f32.vlgmr.msra.gmra.mxu0 %vm464_vm2, %v416_v41  ;;  %v1267_v3 = vsel %vm1263_vm3, %v1248_v45, %v1250_v2  ;;  %v1266_v49 = vsel %vm1263_vm3, %v1246_v1, %v1248_v45  ;;  %v4304_v1 = vld [vmem:[%s22428_s19 + $0x10] sm:$0x77] }
  0xae   : > { %20680 = vmatmul.mubr.msk.f32.vlgmr.msra.gmra.mxu1 %vm464_vm2, %v416_v41  ;;  %20682 = vmatpush1.msk.msra.mxu0 %vm468_vm1, %v22462_v7  ;;  %v3440_v7 = vcombine.high %v3426_v46, %v3426_v46 }
  0xaf   : > { %20684 = vmatprep.subr.msk.mxu1 %vm468_vm1, %v22481_v10  ;;  %20688 = vmatprep.subr.msk.mxu0 %vm468_vm1, %v1265_v0  ;;  %v1264_v10 = vsel %vm1263_vm3, %v1242_v6, %v1244_v38 }
  0xb0   : > { %20685 = vmatpush1.msk.msra.mxu1 %vm468_vm1, %v22473_v9  ;;  %3455 = vrot.lane.b32.xlu1 %v3439_v5, %s22290_s17  ;;  %v1254_v8 = vpop.permute.xlu1 %1253  ;;  %v1252_v47 = vpop.permute.xlu0 %1251  ;;  %v4318_v5 = vcombine.high %v4304_v1, %v4304_v1 }
  0xb1   : > { %3453 = vrot.lane.b32.xlu0 %v3425_v44, %s22290_s17  ;;  %20691 = vmatprep.subr.msk.mxu1 %vm468_vm1, %v1267_v3  ;;  %v1269_v9 = vsel %vm1263_vm3, %v1252_v47, %v1254_v8  ;;  %v1268_v56 = vsel %vm1263_vm3, %v1250_v2, %v1252_v47  ;;  %v20719_v3 = vld [vmem:[%s27194_s1 + $0x20] sm:$0x3f] }
  0xb2   : > { %1144 = vmatprep.mubr.f32.mxu0 %v27172_v4  ;;  %1215 = vmatprep.mubr.f32.mxu1 %v27172_v4 }
  0xb3   : > { %20683 = vmatmul.mubr.msk.f32.vlgmr.msra.gmra.mxu0 %vm464_vm2, %v416_v41  ;;  %20686 = vmatmul.mubr.msk.f32.vlgmr.msra.gmra.mxu1 %vm464_vm2, %v416_v41 }
  0xb4   : > { %20689 = vmatpush1.msk.msra.mxu0 %vm468_vm1, %v1264_v10  ;;  %20692 = vmatpush1.msk.msra.mxu1 %vm468_vm1, %v1266_v49  ;;  %v1258_v50 = vpop.permute.xlu1 %1257  ;;  %v1256_v52 = vpop.permute.xlu0 %1255  ;;  %v4306_v49 = vld [vmem:[%s22428_s19 + $0x20] sm:$0x77] }
  0xb5   : > { %3459 = vrot.lane.b32.xlu1 %v3440_v7, %s22290_s17  ;;  %3457 = vrot.lane.b32.xlu0 %v3426_v46, %s22290_s17  ;;  %v1271_v54 = vsel %vm1263_vm3, %v1256_v52, %v1258_v50  ;;  %v1270_v57 = vsel %vm1263_vm3, %v1254_v8, %v1256_v52  ;;  %v4305_v46 = vld [vmem:[%s22428_s19 + $0x18] sm:$0x77]  ;;  %v4320_v52 = vcombine.high %v4306_v49, %v4306_v49 }
  0xb6   : > { %20694 = vmatprep.subr.msk.mxu0 %vm468_vm1, %v1269_v9  ;;  %1361 = vmatprep.mubr.f32.mxu0 %v27172_v4 }
  0xb7   : > { %20690 = vmatmul.mubr.msk.f32.vlgmr.msra.gmra.mxu0 %vm464_vm2, %v20687_v51  ;;  %1432 = vmatprep.mubr.f32.mxu1 %v27172_v4 }
  0xb8   : > { %20695 = vmatpush1.msk.msra.mxu0 %vm468_vm1, %v1268_v56  ;;  %20697 = vmatprep.subr.msk.mxu1 %vm468_vm1, %v1271_v54  ;;  %v1262_v58 = vpop.permute.xlu1 %1261  ;;  %v1260_v59 = vpop.permute.xlu0 %1259  ;;  %v4742_v54 = vld [vmem:[%s22428_s19] sm:$0x77] }
  0xb9   : > { %3883 = vrot.lane.b32.xlu1 %v3876_v53, %s22291_s16  ;;  %3461 = vrot.lane.b32.xlu0 %v3427_v55, %s22290_s17  ;;  %v1273_v60 = vsel %vm1263_vm3, %v1260_v59, %v1262_v58  ;;  %v1272_v62 = vsel %vm1263_vm3, %v1258_v50, %v1260_v59  ;;  %s22292_s17 = smov 92   ;;  %v4756_v58 = vcombine.high %v4742_v54, %v4742_v54 }
  0xba   : > { %20693 = vmatmul.mubr.msk.f32.vlgmr.msra.gmra.mxu1 %vm464_vm2, %v20687_v51  ;;  %1503 = vmatprep.mubr.f32.mxu0 %v27172_v4 }
  0xbb   : > { %20698 = vmatpush1.msk.msra.mxu1 %vm468_vm1, %v1270_v57  ;;  %20700 = vmatprep.subr.msk.mxu0 %vm468_vm1, %v1273_v60  ;;  %v4307_v60 = vld [vmem:[%s22428_s19 + $0x28] sm:$0x7] }
  0xbc   : > { %20696 = vmatmul.mubr.msk.f32.vlgmr.msra.gmra.mxu0 %vm464_vm2, %v20687_v51  ;;  %v1686_v63 = vpop.permute.xlu1 %1685  ;;  %v1684_v11 = vpop.permute.xlu0 %1683  ;;  %1574 = vmatprep.mubr.f32.mxu1 %v27172_v4 }
  0xbd   : > { %3881 = vrot.lane.b32.xlu1 %v3862_v48, %s22291_s16  ;;  %3885 = vrot.lane.b32.xlu0 %v3863_v61, %s22291_s16  ;;  %v1705_v13 = vsel %vm1703_vm4, %v1684_v11, %v1686_v63  ;;  %v4319_v48 = vcombine.high %v4305_v46, %v4305_v46 }
  0xbe   : > { %20701 = vmatpush1.msk.msra.mxu0 %vm468_vm1, %v1272_v62  ;;  %20704 = vmatprep.subr.msk.mxu1 %vm468_vm1, %v1705_v13 }
  0xbf   : > { %20699 = vmatmul.mubr.msk.f32.vlgmr.msra.gmra.mxu1 %vm464_vm2, %v20687_v51  ;;  %1645 = vmatprep.mubr.f32.mxu0 %v27172_v4 }
  0xc0   : > { %v1688_v15 = vpop.permute.xlu1 %1687  ;;  %v1682_v16 = vpop.permute.xlu0 %1681  ;;  %20702 = vmatmul.mubr.msk.f32.vlgmr.msra.gmra.mxu0 %vm464_vm2, %v20687_v51  ;;  %1801 = vmatprep.mubr.f32.mxu1 %v27172_v4 }
  0xc1   : > { %3889 = vrot.lane.b32.xlu1 %v3864_v14, %s22291_s16  ;;  %3887 = vrot.lane.b32.xlu0 %v3877_v12, %s22291_s16  ;;  %v1704_v19 = vsel %vm1703_vm4, %v1682_v16, %v1684_v11  ;;  %v1706_v25 = vsel %vm1703_vm4, %v1686_v63, %v1688_v15  ;;  %v4743_v12 = vld [vmem:[%s22428_s19 + $0x8] sm:$0x77] }
  0xc2   : > { %20705 = vmatpush1.msk.msra.mxu1 %vm468_vm1, %v1704_v19  ;;  %1872 = vmatprep.mubr.f32.mxu0 %v27172_v4 }
  0xc3   : > { %20706 = vmatmul.mubr.msk.f32.vlgmr.msra.gmra.mxu1 %vm464_vm2, %v20703_v17 }
  0xc4   : > { %v1692_v21 = vpop.permute.xlu1 %1691  ;;  %v1690_v22 = vpop.permute.xlu0 %1689  ;;  %1943 = vmatprep.mubr.f32.mxu1 %v27172_v4 }
  0xc5   : > { %3893 = vrot.lane.b32.xlu1 %v3865_v20, %s22291_s16  ;;  %3891 = vrot.lane.b32.xlu0 %v3878_v18, %s22291_s16  ;;  %v1707_v24 = vsel %vm1703_vm4, %v1688_v15, %v1690_v22  ;;  %v1708_v31 = vsel %vm1703_vm4, %v1690_v22, %v1692_v21  ;;  %v4757_v15 = vcombine.high %v4743_v12, %v4743_v12  ;;  %v20735_v20 = vld [vmem:[%s27194_s1 + $0x28] sm:$0x3f] }
  0xc6   : > { %20707 = vmatprep.subr.msk.mxu0 %vm468_vm1, %v1707_v24 }
  0xc7   : > { %20708 = vmatpush1.msk.msra.mxu0 %vm468_vm1, %v1706_v25 }
  0xc8   : > { %v1696_v27 = vpop.permute.xlu1 %1695  ;;  %v1694_v28 = vpop.permute.xlu0 %1693  ;;  %20709 = vmatmul.mubr.msk.f32.vlgmr.msra.gmra.mxu0 %vm464_vm2, %v20703_v17 }
  0xc9   : > { %3897 = vrot.lane.b32.xlu1 %v3866_v26, %s22291_s16  ;;  %3895 = vrot.lane.b32.xlu0 %v3879_v23, %s22291_s16  ;;  %v1709_v30 = vsel %vm1703_vm4, %v1692_v21, %v1694_v28  ;;  %v1710_v38 = vsel %vm1703_vm4, %v1694_v28, %v1696_v27  ;;  %v4745_v23 = vld [vmem:[%s22428_s19 + $0x18] sm:$0x77] }
  0xca   : > { %20710 = vmatprep.subr.msk.mxu1 %vm468_vm1, %v1709_v30  ;;  %2014 = vmatprep.mubr.f32.mxu0 %v27172_v4  ;;  %v4759_v26 = vcombine.high %v4745_v23, %v4745_v23 }
  0xcb   : > { %20711 = vmatpush1.msk.msra.mxu1 %vm468_vm1, %v1708_v31 }
  0xcc   : > { %v1700_v34 = vpop.permute.xlu1 %1699  ;;  %v1698_v35 = vpop.permute.xlu0 %1697  ;;  %20712 = vmatmul.mubr.msk.f32.vlgmr.msra.gmra.mxu1 %vm464_vm2, %v20703_v17 }
  0xcd   : > { %3901 = vrot.lane.b32.xlu1 %v3867_v32, %s22291_s16  ;;  %3899 = vrot.lane.b32.xlu0 %v3880_v29, %s22291_s16  ;;  %v1711_v37 = vsel %vm1703_vm4, %v1696_v27, %v1698_v35  ;;  %v1712_v6 = vsel %vm1703_vm4, %v1698_v35, %v1700_v34  ;;  %s27166_s16 = smov 64   ;;  %v4746_v29 = vld [vmem:[%s22428_s19 + $0x20] sm:$0x77]  ;;  %v4747_v35 = vld [vmem:[%s22428_s19 + $0x28] sm:$0x7] }
  0xce   : > { %20713 = vmatprep.subr.msk.mxu0 %vm468_vm1, %v1711_v37  ;;  %2085 = vmatprep.mubr.f32.mxu1 %v27172_v4  ;;  %v4760_v32 = vcombine.high %v4746_v29, %v4746_v29 }
  0xcf   : > { %20714 = vmatpush1.msk.msra.mxu0 %vm468_vm1, %v1710_v38 }
  0xd0   : > { %v2124_v40 = vpop.permute.xlu1 %2123  ;;  %v1702_v41 = vpop.permute.xlu0 %1701  ;;  %20715 = vmatmul.mubr.msk.f32.vlgmr.msra.gmra.mxu0 %vm464_vm2, %v20703_v17 }
  0xd1   : > { %4325 = vrot.lane.b32.xlu1 %v4303_v39, %s22292_s17  ;;  %4323 = vrot.lane.b32.xlu0 %v4316_v36, %s22292_s17  ;;  %v1713_v43 = vsel %vm1703_vm4, %v1700_v34, %v1702_v41  ;;  %v5182_v36 = vld [vmem:[%s22428_s19] sm:$0x77] }
  0xd2   : > { %20716 = vmatprep.subr.msk.mxu1 %vm468_vm1, %v1713_v43  ;;  %2241 = vmatprep.mubr.f32.mxu0 %v27172_v4  ;;  %v5196_v39 = vcombine.high %v5182_v36, %v5182_v36 }
  0xd3   : > { %20717 = vmatpush1.msk.msra.mxu1 %vm468_vm1, %v1712_v6 }
  0xd4   : > { %v2122_v44 = vpop.permute.xlu1 %2121  ;;  %v2126_v2 = vpop.permute.xlu0 %2125  ;;  %20718 = vmatmul.mubr.msk.f32.vlgmr.msra.gmra.mxu1 %vm464_vm2, %v20703_v17  ;;  %v4744_v17 = vld [vmem:[%s22428_s19 + $0x10] sm:$0x77] }
  0xd5   : > { %4327 = vrot.lane.b32.xlu1 %v4317_v42, %s22292_s17  ;;  %4321 = vrot.lane.b32.xlu0 %v4302_v33, %s22292_s17  ;;  %v2144_v45 = vsel %vm2143_vm5, %v2122_v44, %v2124_v40  ;;  %v2145_v0 = vsel %vm2143_vm5, %v2124_v40, %v2126_v2  ;;  %v4758_v21 = vcombine.high %v4744_v17, %v4744_v17  ;;  %v5183_v42 = vld [vmem:[%s22428_s19 + $0x8] sm:$0x77] }
  0xd6   : > { %20720 = vmatprep.subr.msk.mxu0 %vm468_vm1, %v2145_v0  ;;  %2312 = vmatprep.mubr.f32.mxu1 %v27172_v4 }
  0xd7   : > { %20721 = vmatpush1.msk.msra.mxu0 %vm468_vm1, %v2144_v45  ;;  %v5184_v45 = vld [vmem:[%s22428_s19 + $0x10] sm:$0x77] }
  0xd8   : > { %v2130_v8 = vpop.permute.xlu1 %2129  ;;  %v2128_v47 = vpop.permute.xlu0 %2127  ;;  %20722 = vmatmul.mubr.msk.f32.vlgmr.msra.gmra.mxu0 %vm464_vm2, %v20719_v3 }
  0xd9   : > { %4331 = vrot.lane.b32.xlu1 %v4318_v5, %s22292_s17  ;;  %4329 = vrot.lane.b32.xlu0 %v4304_v1, %s22292_s17  ;;  %v2146_v7 = vsel %vm2143_vm5, %v2126_v2, %v2128_v47  ;;  %v2147_v10 = vsel %vm2143_vm5, %v2128_v47, %v2130_v8  ;;  %v5197_v1 = vcombine.high %v5183_v42, %v5183_v42  ;;  %v20751_v47 = vld [vmem:[%s27194_s1 + $0x30] sm:$0x3f] }
  0xda   : > { %20723 = vmatprep.subr.msk.mxu1 %vm468_vm1, %v2147_v10  ;;  %2383 = vmatprep.mubr.f32.mxu0 %v27172_v4 }
  0xdb   : > { %20724 = vmatpush1.msk.msra.mxu1 %vm468_vm1, %v2146_v7  ;;  %v5185_v7 = vld [vmem:[%s22428_s19 + $0x18] sm:$0x77] }
  0xdc   : > { %v2134_v9 = vpop.permute.xlu1 %2133  ;;  %v2132_v50 = vpop.permute.xlu0 %2131  ;;  %20725 = vmatmul.mubr.msk.f32.vlgmr.msra.gmra.mxu1 %vm464_vm2, %v20719_v3 }
  0xdd   : > { %4335 = vrot.lane.b32.xlu1 %v4319_v48, %s22292_s17  ;;  %4333 = vrot.lane.b32.xlu0 %v4305_v46, %s22292_s17  ;;  %v2148_v51 = vsel %vm2143_vm5, %v2130_v8, %v2132_v50  ;;  %v2149_v53 = vsel %vm2143_vm5, %v2132_v50, %v2134_v9  ;;  %v5198_v46 = vcombine.high %v5184_v45, %v5184_v45 }
  0xde   : > { %20726 = vmatprep.subr.msk.mxu0 %vm468_vm1, %v2149_v53  ;;  %2454 = vmatprep.mubr.f32.mxu1 %v27172_v4 }
  0xdf   : > { %20727 = vmatpush1.msk.msra.mxu0 %vm468_vm1, %v2148_v51  ;;  %v5186_v51 = vld [vmem:[%s22428_s19 + $0x20] sm:$0x77] }
  0xe0   : > { %v2138_v55 = vpop.permute.xlu1 %2137  ;;  %v2136_v56 = vpop.permute.xlu0 %2135  ;;  %20728 = vmatmul.mubr.msk.f32.vlgmr.msra.gmra.mxu0 %vm464_vm2, %v20719_v3 }
  0xe1   : > { %4339 = vrot.lane.b32.xlu1 %v4320_v52, %s22292_s17  ;;  %4337 = vrot.lane.b32.xlu0 %v4306_v49, %s22292_s17  ;;  %v2150_v57 = vsel %vm2143_vm5, %v2134_v9, %v2136_v56  ;;  %v2151_v59 = vsel %vm2143_vm5, %v2136_v56, %v2138_v55  ;;  %v5199_v9 = vcombine.high %v5185_v7, %v5185_v7 }
  0xe2   : > { %20729 = vmatprep.subr.msk.mxu1 %vm468_vm1, %v2151_v59  ;;  %2525 = vmatprep.mubr.f32.mxu0 %v27172_v4 }
  0xe3   : > { %20730 = vmatpush1.msk.msra.mxu1 %vm468_vm1, %v2150_v57  ;;  %v5622_v57 = vld [vmem:[%s22428_s19] sm:$0x77] }
  0xe4   : > { %v2142_v61 = vpop.permute.xlu1 %2141  ;;  %v2140_v62 = vpop.permute.xlu0 %2139  ;;  %20731 = vmatmul.mubr.msk.f32.vlgmr.msra.gmra.mxu1 %vm464_vm2, %v20719_v3 }
  0xe5   : > { %4763 = vrot.lane.b32.xlu1 %v4756_v58, %s27166_s16  ;;  %4341 = vrot.lane.b32.xlu0 %v4307_v60, %s22292_s17  ;;  %v2152_v63 = vsel %vm2143_vm5, %v2138_v55, %v2140_v62  ;;  %v2153_v11 = vsel %vm2143_vm5, %v2140_v62, %v2142_v61  ;;  %s22294_s17 = smov 63   ;;  %v5636_v60 = vcombine.high %v5622_v57, %v5622_v57  ;;  %v5187_v62 = vld [vmem:[%s22428_s19 + $0x28] sm:$0x7] }
  0xe6   : > { %20732 = vmatprep.subr.msk.mxu0 %vm468_vm1, %v2153_v11  ;;  %2681 = vmatprep.mubr.f32.mxu1 %v27172_v4 }
  0xe7   : > { %20733 = vmatpush1.msk.msra.mxu0 %vm468_vm1, %v2152_v63 }
  0xe8   : > { %v2566_v13 = vpop.permute.xlu1 %2565  ;;  %v2564_v14 = vpop.permute.xlu0 %2563  ;;  %20734 = vmatmul.mubr.msk.f32.vlgmr.msra.gmra.mxu0 %vm464_vm2, %v20719_v3 }
  0xe9   : > { %4761 = vrot.lane.b32.xlu1 %v4742_v54, %s27166_s16  ;;  %4765 = vrot.lane.b32.xlu0 %v4743_v12, %s27166_s16  ;;  %v2585_v16 = vsel %vm2583_vm6, %v2564_v14, %v2566_v13  ;;  %v5200_v54 = vcombine.high %v5186_v51, %v5186_v51 }
  0xea   : > { %20736 = vmatprep.subr.msk.mxu1 %vm468_vm1, %v2585_v16  ;;  %2752 = vmatprep.mubr.f32.mxu0 %v27172_v4 }
  0xec   : > { %v2568_v18 = vpop.permute.xlu1 %2567  ;;  %v2562_v19 = vpop.permute.xlu0 %2561 }
  0xed   : > { %4769 = vrot.lane.b32.xlu1 %v4744_v17, %s27166_s16  ;;  %4767 = vrot.lane.b32.xlu0 %v4757_v15, %s27166_s16  ;;  %v2584_v22 = vsel %vm2583_vm6, %v2562_v19, %v2564_v14  ;;  %v2586_v28 = vsel %vm2583_vm6, %v2566_v13, %v2568_v18  ;;  %v5623_v14 = vld [vmem:[%s22428_s19 + $0x8] sm:$0x77]  ;;  %v5624_v19 = vld [vmem:[%s22428_s19 + $0x10] sm:$0x77] }
  0xee   : > { %20737 = vmatpush1.msk.msra.mxu1 %vm468_vm1, %v2584_v22  ;;  %v5637_v17 = vcombine.high %v5623_v14, %v5623_v14  ;;  %v5638_v22 = vcombine.high %v5624_v19, %v5624_v19 }
  0xef   : > { %20738 = vmatmul.mubr.msk.f32.vlgmr.msra.gmra.mxu1 %vm464_vm2, %v20735_v20 }
  0xf0   : > { %v2572_v24 = vpop.permute.xlu1 %2571  ;;  %v2570_v25 = vpop.permute.xlu0 %2569  ;;  %2823 = vmatprep.mubr.f32.mxu1 %v27172_v4 }
  0xf1   : > { %4773 = vrot.lane.b32.xlu1 %v4745_v23, %s27166_s16  ;;  %4771 = vrot.lane.b32.xlu0 %v4758_v21, %s27166_s16  ;;  %v2587_v27 = vsel %vm2583_vm6, %v2568_v18, %v2570_v25  ;;  %v2588_v34 = vsel %vm2583_vm6, %v2570_v25, %v2572_v24 }
  0xf2   : > { %20739 = vmatprep.subr.msk.mxu0 %vm468_vm1, %v2587_v27 }
  0xf3   : > { %20740 = vmatpush1.msk.msra.mxu0 %vm468_vm1, %v2586_v28 }
  0xf4   : > { %v2576_v30 = vpop.permute.xlu1 %2575  ;;  %v2574_v31 = vpop.permute.xlu0 %2573  ;;  %20741 = vmatmul.mubr.msk.f32.vlgmr.msra.gmra.mxu0 %vm464_vm2, %v20735_v20 }
  0xf5   : > { %4777 = vrot.lane.b32.xlu1 %v4746_v29, %s27166_s16  ;;  %4775 = vrot.lane.b32.xlu0 %v4759_v26, %s27166_s16  ;;  %v2589_v33 = vsel %vm2583_vm6, %v2572_v24, %v2574_v31  ;;  %v2590_v41 = vsel %vm2583_vm6, %v2574_v31, %v2576_v30  ;;  %v22903_v24 = vld [vmem:[%s27194_s1 + $0x38] sm:$0x3f] }
  0xf6   : > { %20742 = vmatprep.subr.msk.mxu1 %vm468_vm1, %v2589_v33  ;;  %2894 = vmatprep.mubr.f32.mxu0 %v27172_v4  ;;  %v5625_v26 = vld [vmem:[%s22428_s19 + $0x18] sm:$0x77] }
  0xf7   : > { %20743 = vmatpush1.msk.msra.mxu1 %vm468_vm1, %v2588_v34  ;;  %v5639_v28 = vcombine.high %v5625_v26, %v5625_v26 }
  0xf8   : > { %v2580_v37 = vpop.permute.xlu1 %2579  ;;  %v2578_v38 = vpop.permute.xlu0 %2577  ;;  %20744 = vmatmul.mubr.msk.f32.vlgmr.msra.gmra.mxu1 %vm464_vm2, %v20735_v20 }
  0xf9   : > { %4781 = vrot.lane.b32.xlu1 %v4747_v35, %s27166_s16  ;;  %4779 = vrot.lane.b32.xlu0 %v4760_v32, %s27166_s16  ;;  %v2591_v40 = vsel %vm2583_vm6, %v2576_v30, %v2578_v38  ;;  %v2592_v2 = vsel %vm2583_vm6, %v2578_v38, %v2580_v37  ;;  %s27168_s16 = smov 62   ;;  %v5626_v30 = vld [vmem:[%s22428_s19 + $0x20] sm:$0x77]  ;;  %v5627_v35 = vld [vmem:[%s22428_s19 + $0x28] sm:$0x7] }
  0xfa   : > { %20745 = vmatprep.subr.msk.mxu0 %vm468_vm1, %v2591_v40  ;;  %2965 = vmatprep.mubr.f32.mxu1 %v27172_v4  ;;  %v5640_v33 = vcombine.high %v5626_v30, %v5626_v30 }
  0xfb   : > { %20746 = vmatpush1.msk.msra.mxu0 %vm468_vm1, %v2590_v41  ;;  %v6063_v41 = vld [vmem:[%s22428_s19 + $0x8] sm:$0x77] }
  0xfc   : > { %v3004_v43 = vpop.permute.xlu1 %3003  ;;  %v2582_v6 = vpop.permute.xlu0 %2581  ;;  %20747 = vmatmul.mubr.msk.f32.vlgmr.msra.gmra.mxu0 %vm464_vm2, %v20735_v20 }
  0xfd   : > { %5205 = vrot.lane.b32.xlu1 %v5183_v42, %s22294_s17  ;;  %5203 = vrot.lane.b32.xlu0 %v5196_v39, %s22294_s17  ;;  %v2593_v44 = vsel %vm2583_vm6, %v2580_v37, %v2582_v6 }
  0xfe   : > { %20748 = vmatprep.subr.msk.mxu1 %vm468_vm1, %v2593_v44  ;;  %3121 = vmatprep.mubr.f32.mxu0 %v27172_v4 }
  0xff   : > { %20749 = vmatpush1.msk.msra.mxu1 %vm468_vm1, %v2592_v2  ;;  %v6064_v2 = vld [vmem:[%s22428_s19 + $0x10] sm:$0x77] }
 0x100   : > { %v3002_v5 = vpop.permute.xlu1 %3001  ;;  %v3006_v0 = vpop.permute.xlu0 %3005  ;;  %20750 = vmatmul.mubr.msk.f32.vlgmr.msra.gmra.mxu1 %vm464_vm2, %v20735_v20 }
 0x101   : > { %5207 = vrot.lane.b32.xlu1 %v5197_v1, %s22294_s17  ;;  %5201 = vrot.lane.b32.xlu0 %v5182_v36, %s22294_s17  ;;  %v3024_v3 = vsel %vm3023_vm7, %v3002_v5, %v3004_v43  ;;  %v3025_v8 = vsel %vm3023_vm7, %v3004_v43, %v3006_v0  ;;  %v6062_v36 = vld [vmem:[%s22428_s19] sm:$0x77]  ;;  %v6077_v1 = vcombine.high %v6063_v41, %v6063_v41 }
 0x102   : > { %20752 = vmatprep.subr.msk.mxu0 %vm468_vm1, %v3025_v8  ;;  %3192 = vmatprep.mubr.f32.mxu1 %v27172_v4  ;;  %v6076_v39 = vcombine.high %v6062_v36, %v6062_v36  ;;  %v6065_v8 = vld [vmem:[%s22428_s19 + $0x18] sm:$0x77] }
 0x103   : > { %20753 = vmatpush1.msk.msra.mxu0 %vm468_vm1, %v3024_v3  ;;  %v6078_v3 = vcombine.high %v6064_v2, %v6064_v2 }
 0x104   : > { %v3010_v48 = vpop.permute.xlu1 %3009  ;;  %v3008_v10 = vpop.permute.xlu0 %3007  ;;  %20754 = vmatmul.mubr.msk.f32.vlgmr.msra.gmra.mxu0 %vm464_vm2, %v20751_v47 }
 0x105   : > { %5211 = vrot.lane.b32.xlu1 %v5198_v46, %s22294_s17  ;;  %5209 = vrot.lane.b32.xlu0 %v5184_v45, %s22294_s17  ;;  %v3026_v49 = vsel %vm3023_vm7, %v3006_v0, %v3008_v10  ;;  %v3027_v50 = vsel %vm3023_vm7, %v3008_v10, %v3010_v48 }
 0x106   : > { %20755 = vmatprep.subr.msk.mxu1 %vm468_vm1, %v3027_v50  ;;  %3263 = vmatprep.mubr.f32.mxu0 %v27172_v4  ;;  %v6066_v50 = vld [vmem:[%s22428_s19 + $0x20] sm:$0x77] }
 0x107   : > { %20756 = vmatpush1.msk.msra.mxu1 %vm468_vm1, %v3026_v49  ;;  %v6079_v49 = vcombine.high %v6065_v8, %v6065_v8 }
 0x108   : > { %v3014_v52 = vpop.permute.xlu1 %3013  ;;  %20757 = vmatmul.mubr.msk.f32.vlgmr.msra.gmra.mxu1 %vm464_vm2, %v20751_v47 }
 0x109   : > { %5215 = vrot.lane.b32.xlu1 %v5199_v9, %s22294_s17  ;;  %5213 = vrot.lane.b32.xlu0 %v5185_v7, %s22294_s17  ;;  %v3012_v53 = vpop.permute.xlu0 %3011  ;;  %v20783_v9 = vld [vmem:[%s27194_s1 + $0x40] sm:$0x3f] }
 0x10a   : > { %v3028_v55 = vsel %vm3023_vm7, %v3010_v48, %v3012_v53  ;;  %v3029_v56 = vsel %vm3023_vm7, %v3012_v53, %v3014_v52  ;;  %3334 = vmatprep.mubr.f32.mxu1 %v27172_v4 }
 0x10b   : > { %20758 = vmatprep.subr.msk.mxu0 %vm468_vm1, %v3029_v56  ;;  %v6502_v56 = vld [vmem:[%s22428_s19] sm:$0x77] }
 0x10c   : > { %20759 = vmatpush1.msk.msra.mxu0 %vm468_vm1, %v3028_v55  ;;  %v3018_v58 = vpop.permute.xlu1 %3017  ;;  %v6080_v55 = vcombine.high %v6066_v50, %v6066_v50 }
 0x10d   : > { %5219 = vrot.lane.b32.xlu1 %v5200_v54, %s22294_s17  ;;  %5217 = vrot.lane.b32.xlu0 %v5186_v51, %s22294_s17  ;;  %v3016_v59 = vpop.permute.xlu0 %3015 }
 0x10e   : > { %v3030_v61 = vsel %vm3023_vm7, %v3014_v52, %v3016_v59  ;;  %v3031_v63 = vsel %vm3023_vm7, %v3016_v59, %v3018_v58  ;;  %20760 = vmatmul.mubr.msk.f32.vlgmr.msra.gmra.mxu0 %vm464_vm2, %v20751_v47 }
 0x10f   : > { %20761 = vmatprep.subr.msk.mxu1 %vm468_vm1, %v3031_v63  ;;  %3405 = vmatprep.mubr.f32.mxu0 %v27172_v4 }
 0x110   : > { %20762 = vmatpush1.msk.msra.mxu1 %vm468_vm1, %v3030_v61  ;;  %v3022_v11 = vpop.permute.xlu1 %3021  ;;  %v6516_v61 = vcombine.high %v6502_v56, %v6502_v56 }
 0x111   : > { %5643 = vrot.lane.b32.xlu1 %v5636_v60, %s27168_s16  ;;  %5221 = vrot.lane.b32.xlu0 %v5187_v62, %s22294_s17  ;;  %v3020_v12 = vpop.permute.xlu0 %3019  ;;  %s22296_s17 = smov 61   ;;  %v6067_v62 = vld [vmem:[%s22428_s19 + $0x28] sm:$0x7] }
 0x112   : > { %v3032_v13 = vsel %vm3023_vm7, %v3018_v58, %v3020_v12  ;;  %v3033_v15 = vsel %vm3023_vm7, %v3020_v12, %v3022_v11  ;;  %20763 = vmatmul.mubr.msk.f32.vlgmr.msra.gmra.mxu1 %vm464_vm2, %v20751_v47  ;;  %vm6983_vm7 = vcmask 261120  }
 0x113   : > { %20764 = vmatprep.subr.msk.mxu0 %vm468_vm1, %v3033_v15  ;;  %3561 = vmatprep.mubr.f32.mxu1 %v27172_v4 }
 0x114   : > { %20765 = vmatpush1.msk.msra.mxu0 %vm468_vm1, %v3032_v13  ;;  %v3446_v16 = vpop.permute.xlu1 %3445 }
 0x115   : > { %5641 = vrot.lane.b32.xlu1 %v5622_v57, %s27168_s16  ;;  %5645 = vrot.lane.b32.xlu0 %v5623_v14, %s27168_s16  ;;  %v3444_v18 = vpop.permute.xlu0 %3443  ;;  %v6503_v14 = vld [vmem:[%s22428_s19 + $0x8] sm:$0x77] }
 0x116   : > { %v3465_v20 = vsel %vm3463_vm8, %v3444_v18, %v3446_v16  ;;  %20766 = vmatmul.mubr.msk.f32.vlgmr.msra.gmra.mxu0 %vm464_vm2, %v20751_v47 }
 0x117   : > { %20768 = vmatprep.subr.msk.mxu1 %vm468_vm1, %v3465_v20  ;;  %3632 = vmatprep.mubr.f32.mxu0 %v27172_v4  ;;  %v6504_v20 = vld [vmem:[%s22428_s19 + $0x10] sm:$0x77] }
 0x118   : > { %v3448_v21 = vpop.permute.xlu1 %3447 }
 0x119   : > { %5649 = vrot.lane.b32.xlu1 %v5624_v19, %s27168_s16  ;;  %5647 = vrot.lane.b32.xlu0 %v5637_v17, %s27168_s16  ;;  %v3442_v23 = vpop.permute.xlu0 %3441  ;;  %v3466_v32 = vsel %vm3463_vm8, %v3446_v16, %v3448_v21  ;;  %v6517_v19 = vcombine.high %v6503_v14, %v6503_v14 }
 0x11a   : > { %v3464_v25 = vsel %vm3463_vm8, %v3442_v23, %v3444_v18 }
 0x11b   : > { %20769 = vmatpush1.msk.msra.mxu1 %vm468_vm1, %v3464_v25  ;;  %v6505_v25 = vld [vmem:[%s22428_s19 + $0x18] sm:$0x77] }
 0x11c   : > { %v3452_v27 = vpop.permute.xlu1 %3451  ;;  %20770 = vmatmul.mubr.msk.f32.vlgmr.msra.gmra.mxu1 %vm464_vm2, %v22903_v24 }
 0x11d   : > { %5653 = vrot.lane.b32.xlu1 %v5625_v26, %s27168_s16  ;;  %5651 = vrot.lane.b32.xlu0 %v5638_v22, %s27168_s16  ;;  %v3450_v29 = vpop.permute.xlu0 %3449 }
 0x11e   : > { %v3467_v31 = vsel %vm3463_vm8, %v3448_v21, %v3450_v29  ;;  %3703 = vmatprep.mubr.f32.mxu1 %v27172_v4  ;;  %v3468_v40 = vsel %vm3463_vm8, %v3450_v29, %v3452_v27  ;;  %v20799_v29 = vld [vmem:[%s27194_s1 + $0x48] sm:$0x3f] }
 0x11f   : > { %20771 = vmatprep.subr.msk.mxu0 %vm468_vm1, %v3467_v31  ;;  %v6506_v31 = vld [vmem:[%s22428_s19 + $0x20] sm:$0x77] }
 0x120   : > { %20772 = vmatpush1.msk.msra.mxu0 %vm468_vm1, %v3466_v32 }
 0x121   : > { %5657 = vrot.lane.b32.xlu1 %v5626_v30, %s27168_s16  ;;  %5655 = vrot.lane.b32.xlu0 %v5639_v28, %s27168_s16  ;;  %v6519_v30 = vcombine.high %v6505_v25, %v6505_v25 }
 0x122   : > { %v3456_v34 = vpop.permute.xlu1 %3455  ;;  %20773 = vmatmul.mubr.msk.f32.vlgmr.msra.gmra.mxu0 %vm464_vm2, %v22903_v24 }
 0x123   : > { %v3454_v37 = vpop.permute.xlu0 %3453  ;;  %3774 = vmatprep.mubr.f32.mxu0 %v27172_v4 }
 0x124   : > { %v3469_v38 = vsel %vm3463_vm8, %v3452_v27, %v3454_v37  ;;  %v3470_v44 = vsel %vm3463_vm8, %v3454_v37, %v3456_v34  ;;  %v6507_v37 = vld [vmem:[%s22428_s19 + $0x28] sm:$0x7] }
 0x125   : > { %5661 = vrot.lane.b32.xlu1 %v5627_v35, %s27168_s16  ;;  %5659 = vrot.lane.b32.xlu0 %v5640_v33, %s27168_s16  ;;  %s27170_s16 = smov 60   ;;  %v6520_v35 = vcombine.high %v6506_v31, %v6506_v31 }
 0x126   : > { %20774 = vmatprep.subr.msk.mxu1 %vm468_vm1, %v3469_v38  ;;  %v6942_v38 = vld [vmem:[%s22428_s19] sm:$0x77] }
 0x127   : > { %20775 = vmatpush1.msk.msra.mxu1 %vm468_vm1, %v3468_v40  ;;  %v3460_v42 = vpop.permute.xlu1 %3459  ;;  %v3458_v43 = vpop.permute.xlu0 %3457 }
 0x128   : > { %v3471_v6 = vsel %vm3463_vm8, %v3456_v34, %v3458_v43  ;;  %20776 = vmatmul.mubr.msk.f32.vlgmr.msra.gmra.mxu1 %vm464_vm2, %v22903_v24  ;;  %v3472_v46 = vsel %vm3463_vm8, %v3458_v43, %v3460_v42 }
 0x129   : > { %6085 = vrot.lane.b32.xlu1 %v6063_v41, %s22296_s17  ;;  %6083 = vrot.lane.b32.xlu0 %v6076_v39, %s22296_s17 }
 0x12a   : > { %20777 = vmatprep.subr.msk.mxu0 %vm468_vm1, %v3471_v6  ;;  %3845 = vmatprep.mubr.f32.mxu1 %v27172_v4  ;;  %v6943_v6 = vld [vmem:[%s22428_s19 + $0x8] sm:$0x77] }
 0x12b   : > { %20778 = vmatpush1.msk.msra.mxu0 %vm468_vm1, %v3470_v44  ;;  %v3884_v45 = vpop.permute.xlu1 %3883  ;;  %v3462_v5 = vpop.permute.xlu0 %3461 }
 0x12c   : > { %v3473_v0 = vsel %vm3463_vm8, %v3460_v42, %v3462_v5  ;;  %20779 = vmatmul.mubr.msk.f32.vlgmr.msra.gmra.mxu0 %vm464_vm2, %v22903_v24  ;;  %v6956_v42 = vcombine.high %v6942_v38, %v6942_v38  ;;  %vm7423_vm8 = vcmask 252928  }
 0x12d   : > { %6087 = vrot.lane.b32.xlu1 %v6077_v1, %s22296_s17  ;;  %6081 = vrot.lane.b32.xlu0 %v6062_v36, %s22296_s17 }
 0x12e   : > { %20780 = vmatprep.subr.msk.mxu1 %vm468_vm1, %v3473_v0  ;;  %4001 = vmatprep.mubr.f32.mxu0 %v27172_v4  ;;  %v6944_v0 = vld [vmem:[%s22428_s19 + $0x10] sm:$0x77] }
 0x12f   : > { %20781 = vmatpush1.msk.msra.mxu1 %vm468_vm1, %v3472_v46  ;;  %v3882_v47 = vpop.permute.xlu1 %3881  ;;  %v3886_v7 = vpop.permute.xlu0 %3885 }
 0x130   : > { %v3904_v48 = vsel %vm3903_vm9, %v3882_v47, %v3884_v45  ;;  %v3905_v10 = vsel %vm3903_vm9, %v3884_v45, %v3886_v7  ;;  %20782 = vmatmul.mubr.msk.f32.vlgmr.msra.gmra.mxu1 %vm464_vm2, %v22903_v24  ;;  %v6518_v24 = vcombine.high %v6504_v20, %v6504_v20  ;;  %v6957_v45 = vcombine.high %v6943_v6, %v6943_v6 }
 0x131   : > { %6091 = vrot.lane.b32.xlu1 %v6078_v3, %s22296_s17  ;;  %6089 = vrot.lane.b32.xlu0 %v6064_v2, %s22296_s17  ;;  %v6958_v47 = vcombine.high %v6944_v0, %v6944_v0 }
 0x132   : > { %20784 = vmatprep.subr.msk.mxu0 %vm468_vm1, %v3905_v10  ;;  %4072 = vmatprep.mubr.f32.mxu1 %v27172_v4 }
 0x133   : > { %20785 = vmatpush1.msk.msra.mxu0 %vm468_vm1, %v3904_v48  ;;  %v3890_v51 = vpop.permute.xlu1 %3889  ;;  %v3888_v52 = vpop.permute.xlu0 %3887  ;;  %v6945_v48 = vld [vmem:[%s22428_s19 + $0x18] sm:$0x77] }
 0x134   : > { %v3906_v53 = vsel %vm3903_vm9, %v3886_v7, %v3888_v52  ;;  %v3907_v54 = vsel %vm3903_vm9, %v3888_v52, %v3890_v51  ;;  %20786 = vmatmul.mubr.msk.f32.vlgmr.msra.gmra.mxu0 %vm464_vm2, %v20783_v9  ;;  %v23061_v52 = vld [vmem:[%s27194_s1 + $0x50] sm:$0x3f] }
 0x135   : > { %6095 = vrot.lane.b32.xlu1 %v6079_v49, %s22296_s17  ;;  %6093 = vrot.lane.b32.xlu0 %v6065_v8, %s22296_s17 }
 0x136   : > { %20787 = vmatprep.subr.msk.mxu1 %vm468_vm1, %v3907_v54  ;;  %4143 = vmatprep.mubr.f32.mxu0 %v27172_v4 }
 0x137   : > { %20788 = vmatpush1.msk.msra.mxu1 %vm468_vm1, %v3906_v53  ;;  %v3894_v57 = vpop.permute.xlu1 %3893  ;;  %v3892_v58 = vpop.permute.xlu0 %3891  ;;  %v6946_v53 = vld [vmem:[%s22428_s19 + $0x20] sm:$0x77] }
 0x138   : > { %v3908_v59 = vsel %vm3903_vm9, %v3890_v51, %v3892_v58  ;;  %v3909_v60 = vsel %vm3903_vm9, %v3892_v58, %v3894_v57  ;;  %20789 = vmatmul.mubr.msk.f32.vlgmr.msra.gmra.mxu1 %vm464_vm2, %v20783_v9  ;;  %v6959_v51 = vcombine.high %v6945_v48, %v6945_v48  ;;  %v6960_v58 = vcombine.high %v6946_v53, %v6946_v53 }
 0x139   : > { %6099 = vrot.lane.b32.xlu1 %v6080_v55, %s22296_s17  ;;  %6097 = vrot.lane.b32.xlu0 %v6066_v50, %s22296_s17 }
 0x13a   : > { %20790 = vmatprep.subr.msk.mxu0 %vm468_vm1, %v3909_v60  ;;  %4214 = vmatprep.mubr.f32.mxu1 %v27172_v4 }
 0x13b   : > { %20791 = vmatpush1.msk.msra.mxu0 %vm468_vm1, %v3908_v59  ;;  %v3898_v63 = vpop.permute.xlu1 %3897  ;;  %v3896_v11 = vpop.permute.xlu0 %3895  ;;  %v7382_v59 = vld [vmem:[%s22428_s19] sm:$0x77] }
 0x13c   : > { %v3910_v12 = vsel %vm3903_vm9, %v3894_v57, %v3896_v11  ;;  %v3911_v13 = vsel %vm3903_vm9, %v3896_v11, %v3898_v63  ;;  %20792 = vmatmul.mubr.msk.f32.vlgmr.msra.gmra.mxu0 %vm464_vm2, %v20783_v9 }
 0x13d   : > { %6523 = vrot.lane.b32.xlu1 %v6516_v61, %s27170_s16  ;;  %6101 = vrot.lane.b32.xlu0 %v6067_v62, %s22296_s17  ;;  %s22298_s17 = smov 32  }
 0x13e   : > { %20793 = vmatprep.subr.msk.mxu1 %vm468_vm1, %v3911_v13  ;;  %4285 = vmatprep.mubr.f32.mxu0 %v27172_v4 }
 0x13f   : > { %20794 = vmatpush1.msk.msra.mxu1 %vm468_vm1, %v3910_v12  ;;  %v3902_v15 = vpop.permute.xlu1 %3901  ;;  %v3900_v16 = vpop.permute.xlu0 %3899  ;;  %v7396_v12 = vcombine.high %v7382_v59, %v7382_v59 }
 0x140   : > { %v3912_v17 = vsel %vm3903_vm9, %v3898_v63, %v3900_v16  ;;  %v3913_v18 = vsel %vm3903_vm9, %v3900_v16, %v3902_v15  ;;  %20795 = vmatmul.mubr.msk.f32.vlgmr.msra.gmra.mxu1 %vm464_vm2, %v20783_v9  ;;  %vm7863_vm9 = vcmask 244736  }
 0x141   : > { %6521 = vrot.lane.b32.xlu1 %v6502_v56, %s27170_s16  ;;  %6525 = vrot.lane.b32.xlu0 %v6503_v14, %s27170_s16  ;;  %v6947_v14 = vld [vmem:[%s22428_s19 + $0x28] sm:$0x7] }
 0x142   : > { %20796 = vmatprep.subr.msk.mxu0 %vm468_vm1, %v3913_v18  ;;  %4441 = vmatprep.mubr.f32.mxu1 %v27172_v4 }
 0x143   : > { %20797 = vmatpush1.msk.msra.mxu0 %vm468_vm1, %v3912_v17  ;;  %v4326_v21 = vpop.permute.xlu1 %4325  ;;  %v4324_v22 = vpop.permute.xlu0 %4323 }
 0x144   : > { %v4345_v23 = vsel %vm4343_vm10, %v4324_v22, %v4326_v21  ;;  %20798 = vmatmul.mubr.msk.f32.vlgmr.msra.gmra.mxu0 %vm464_vm2, %v20783_v9 }
 0x145   : > { %6529 = vrot.lane.b32.xlu1 %v6504_v20, %s27170_s16  ;;  %6527 = vrot.lane.b32.xlu0 %v6517_v19, %s27170_s16 }
 0x146   : > { %20800 = vmatprep.subr.msk.mxu1 %vm468_vm1, %v4345_v23  ;;  %4512 = vmatprep.mubr.f32.mxu0 %v27172_v4 }
 0x147   : > { %v4328_v26 = vpop.permute.xlu1 %4327  ;;  %v4322_v27 = vpop.permute.xlu0 %4321 }
 0x148   : > { %v4344_v28 = vsel %vm4343_vm10, %v4322_v27, %v4324_v22  ;;  %v4346_v36 = vsel %vm4343_vm10, %v4326_v21, %v4328_v26  ;;  %v7383_v21 = vld [vmem:[%s22428_s19 + $0x8] sm:$0x77] }
 0x149   : > { %6533 = vrot.lane.b32.xlu1 %v6505_v25, %s27170_s16  ;;  %6531 = vrot.lane.b32.xlu0 %v6518_v24, %s27170_s16 }
 0x14a   : > { %20801 = vmatpush1.msk.msra.mxu1 %vm468_vm1, %v4344_v28 }
 0x14b   : > { %v4332_v32 = vpop.permute.xlu1 %4331  ;;  %v4330_v33 = vpop.permute.xlu0 %4329  ;;  %20802 = vmatmul.mubr.msk.f32.vlgmr.msra.gmra.mxu1 %vm464_vm2, %v20799_v29 }
 0x14c   : > { %v4347_v34 = vsel %vm4343_vm10, %v4328_v26, %v4330_v33  ;;  %4583 = vmatprep.mubr.f32.mxu1 %v27172_v4  ;;  %v4348_v43 = vsel %vm4343_vm10, %v4330_v33, %v4332_v32 }
 0x14d   : > { %6537 = vrot.lane.b32.xlu1 %v6506_v31, %s27170_s16  ;;  %6535 = vrot.lane.b32.xlu0 %v6519_v30, %s27170_s16  ;;  %v7397_v30 = vcombine.high %v7383_v21, %v7383_v21  ;;  %v7384_v31 = vld [vmem:[%s22428_s19 + $0x10] sm:$0x77] }
 0x14e   : > { %20803 = vmatprep.subr.msk.mxu0 %vm468_vm1, %v4347_v34 }
 0x14f   : > { %20804 = vmatpush1.msk.msra.mxu0 %vm468_vm1, %v4346_v36  ;;  %v4336_v39 = vpop.permute.xlu1 %4335  ;;  %v4334_v40 = vpop.permute.xlu0 %4333 }
 0x150   : > { %v4349_v41 = vsel %vm4343_vm10, %v4332_v32, %v4334_v40  ;;  %20805 = vmatmul.mubr.msk.f32.vlgmr.msra.gmra.mxu0 %vm464_vm2, %v20799_v29  ;;  %v4350_v5 = vsel %vm4343_vm10, %v4334_v40, %v4336_v39  ;;  %v7398_v40 = vcombine.high %v7384_v31, %v7384_v31 }
 0x151   : > { %6541 = vrot.lane.b32.xlu1 %v6507_v37, %s27170_s16  ;;  %6539 = vrot.lane.b32.xlu0 %v6520_v35, %s27170_s16  ;;  %s22299_s16 = smov 31  }
 0x152   : > { %20806 = vmatprep.subr.msk.mxu1 %vm468_vm1, %v4349_v41  ;;  %4654 = vmatprep.mubr.f32.mxu0 %v27172_v4  ;;  %v7385_v41 = vld [vmem:[%s22428_s19 + $0x18] sm:$0x77] }
 0x153   : > { %20807 = vmatpush1.msk.msra.mxu1 %vm468_vm1, %v4348_v43  ;;  %v4340_v1 = vpop.permute.xlu1 %4339  ;;  %v4338_v44 = vpop.permute.xlu0 %4337 }
 0x154   : > { %v4351_v2 = vsel %vm4343_vm10, %v4336_v39, %v4338_v44  ;;  %20808 = vmatmul.mubr.msk.f32.vlgmr.msra.gmra.mxu1 %vm464_vm2, %v20799_v29  ;;  %v4352_v7 = vsel %vm4343_vm10, %v4338_v44, %v4340_v1 }
 0x155   : > { %6965 = vrot.lane.b32.xlu1 %v6943_v6, %s22298_s17  ;;  %6963 = vrot.lane.b32.xlu0 %v6956_v42, %s22298_s17 }
 0x156   : > { %20809 = vmatprep.subr.msk.mxu0 %vm468_vm1, %v4351_v2  ;;  %4725 = vmatprep.mubr.f32.mxu1 %v27172_v4 }
 0x157   : > { %20810 = vmatpush1.msk.msra.mxu0 %vm468_vm1, %v4350_v5  ;;  %v4764_v3 = vpop.permute.xlu1 %4763  ;;  %v4342_v46 = vpop.permute.xlu0 %4341  ;;  %v23131_v5 = vld [vmem:[%s27194_s1 + $0x58] sm:$0x3f] }
 0x158   : > { %v4353_v8 = vsel %vm4343_vm10, %v4340_v1, %v4342_v46  ;;  %20811 = vmatmul.mubr.msk.f32.vlgmr.msra.gmra.mxu0 %vm464_vm2, %v20799_v29  ;;  %v626_v11 = vpop.f32.mrf.mxu1  ;;  %v7399_v46 = vcombine.high %v7385_v41, %v7385_v41  ;;  %vm8303_vm10 = vcmask 236544  }
 0x159   : > { %6967 = vrot.lane.b32.xlu1 %v6957_v45, %s22298_s17  ;;  %6961 = vrot.lane.b32.xlu0 %v6942_v38, %s22298_s17 }
 0x15a   : > { %20812 = vmatprep.subr.msk.mxu1 %vm468_vm1, %v4353_v8  ;;  %4881 = vmatprep.mubr.f32.mxu0 %v27172_v4  ;;  %v23091_v19 = vpop.f32.mrf.mxu1  ;;  %v7386_v8 = vld [vmem:[%s22428_s19 + $0x20] sm:$0x77] }
 0x15b   : > { %20813 = vmatpush1.msk.msra.mxu1 %vm468_vm1, %v4352_v7  ;;  %v4762_v10 = vpop.permute.xlu1 %4761  ;;  %v4766_v49 = vpop.permute.xlu0 %4765 }
 0x15c   : > { %v4784_v9 = vsel %vm4783_vm11, %v4762_v10, %v4764_v3  ;;  %v4785_v50 = vsel %vm4783_vm11, %v4764_v3, %v4766_v49  ;;  %20814 = vmatmul.mubr.msk.f32.vlgmr.msra.gmra.mxu1 %vm464_vm2, %v20799_v29  ;;  %v555_v13 = vpop.f32.mrf.mxu0 }
 0x15d   : > { %6971 = vrot.lane.b32.xlu1 %v6958_v47, %s22298_s17  ;;  %6969 = vrot.lane.b32.xlu0 %v6944_v0, %s22298_s17 }
 0x15e   : > { %20816 = vmatprep.subr.msk.mxu0 %vm468_vm1, %v4785_v50  ;;  %4952 = vmatprep.mubr.f32.mxu1 %v27172_v4  ;;  %v23093_v20 = vpop.f32.mrf.mxu0 }
 0x15f   : > { %20817 = vmatpush1.msk.msra.mxu0 %vm468_vm1, %v4784_v9  ;;  %v4770_v54 = vpop.permute.xlu1 %4769  ;;  %v4768_v55 = vpop.permute.xlu0 %4767 }
 0x160   : > { %v4786_v56 = vsel %vm4783_vm11, %v4766_v49, %v4768_v55  ;;  %v4787_v57 = vsel %vm4783_vm11, %v4768_v55, %v4770_v54  ;;  %20818 = vmatmul.mubr.msk.f32.vlgmr.msra.gmra.mxu0 %vm464_vm2, %v23061_v52  ;;  %v697_v22 = vpop.f32.mrf.mxu0  ;;  %v7387_v55 = vld [vmem:[%s22428_s19 + $0x28] sm:$0x7] }
 0x161   : > { %6975 = vrot.lane.b32.xlu1 %v6959_v51, %s22298_s17  ;;  %6973 = vrot.lane.b32.xlu0 %v6945_v48, %s22298_s17 }
 0x162   : > { %20819 = vmatprep.subr.msk.mxu1 %vm468_vm1, %v4787_v57  ;;  %5023 = vmatprep.mubr.f32.mxu0 %v27172_v4  ;;  %v23105_v28 = vpop.f32.mrf.mxu0 }
 0x163   : > { %20820 = vmatpush1.msk.msra.mxu1 %vm468_vm1, %v4786_v56  ;;  %v4774_v60 = vpop.permute.xlu1 %4773  ;;  %v4772_v61 = vpop.permute.xlu0 %4771  ;;  %v7822_v56 = vld [vmem:[%s22428_s19] sm:$0x77] }
 0x164   : > { %v4788_v62 = vsel %vm4783_vm11, %v4770_v54, %v4772_v61  ;;  %v4789_v63 = vsel %vm4783_vm11, %v4772_v61, %v4774_v60  ;;  %20821 = vmatmul.mubr.msk.f32.vlgmr.msra.gmra.mxu1 %vm464_vm2, %v23061_v52  ;;  %v768_v23 = vpop.f32.mrf.mxu1 }
 0x165   : > { %6979 = vrot.lane.b32.xlu1 %v6960_v58, %s22298_s17  ;;  %6977 = vrot.lane.b32.xlu0 %v6946_v53, %s22298_s17  ;;  %v7400_v53 = vcombine.high %v7386_v8, %v7386_v8 }
 0x166   : > { %20822 = vmatprep.subr.msk.mxu0 %vm468_vm1, %v4789_v63  ;;  %5094 = vmatprep.mubr.f32.mxu1 %v27172_v4  ;;  %v23107_v29 = vpop.f32.mrf.mxu1 }
 0x167   : > { %20823 = vmatpush1.msk.msra.mxu0 %vm468_vm1, %v4788_v62  ;;  %v4778_v15 = vpop.permute.xlu1 %4777  ;;  %v4776_v16 = vpop.permute.xlu0 %4775 }
 0x168   : > { %v4790_v17 = vsel %vm4783_vm11, %v4774_v60, %v4776_v16  ;;  %v4791_v18 = vsel %vm4783_vm11, %v4776_v16, %v4778_v15  ;;  %20824 = vmatmul.mubr.msk.f32.vlgmr.msra.gmra.mxu0 %vm464_vm2, %v23061_v52  ;;  %v839_v32 = vpop.f32.mrf.mxu0  ;;  %v933_v33 = vpop.f32.mrf.mxu1 }
 0x169   : > { %7403 = vrot.lane.b32.xlu1 %v7396_v12, %s22299_s16  ;;  %6981 = vrot.lane.b32.xlu0 %v6947_v14, %s22298_s17  ;;  %v934_v36 = vadd.f32 %v933_v33, %v555_v13  ;;  %v7836_v13 = vcombine.high %v7822_v56, %v7822_v56  ;;  %s22301_s17 = smov 29  }
 0x16a   : > { %20825 = vmatprep.subr.msk.mxu1 %vm468_vm1, %v4791_v18  ;;  %5165 = vmatprep.mubr.f32.mxu0 %v27172_v4  ;;  %v23118_v38 = vpop.f32.mrf.mxu0  ;;  %v23120_v39 = vpop.f32.mrf.mxu1 }
 0x16b   : > { %20826 = vmatpush1.msk.msra.mxu1 %vm468_vm1, %v4790_v17  ;;  %v4782_v24 = vpop.permute.xlu1 %4781  ;;  %v4780_v25 = vpop.permute.xlu0 %4779 }
 0x16c   : > { %v4792_v26 = vsel %vm4783_vm11, %v4778_v15, %v4780_v25  ;;  %v4793_v27 = vsel %vm4783_vm11, %v4780_v25, %v4782_v24  ;;  %20827 = vmatmul.mubr.msk.f32.vlgmr.msra.gmra.mxu1 %vm464_vm2, %v23061_v52  ;;  %v7823_v15 = vld [vmem:[%s22428_s19 + $0x8] sm:$0x77] }
 0x16d   : > { %7401 = vrot.lane.b32.xlu1 %v7382_v59, %s22299_s16  ;;  %7405 = vrot.lane.b32.xlu0 %v7383_v21, %s22299_s16  ;;  %v1004_v42 = vpop.f32.mrf.mxu0  ;;  %v7837_v25 = vcombine.high %v7823_v15, %v7823_v15 }
 0x16e   : > { %20828 = vmatprep.subr.msk.mxu0 %vm468_vm1, %v4793_v27  ;;  %5321 = vmatprep.mubr.f32.mxu1 %v27172_v4  ;;  %v1075_v43 = vpop.f32.mrf.mxu1  ;;  %v1005_v44 = vadd.f32 %v1004_v42, %v626_v11 }
 0x16f   : > { %20829 = vmatpush1.msk.msra.mxu0 %vm468_vm1, %v4792_v26  ;;  %v5206_v34 = vpop.permute.xlu1 %5205  ;;  %v5204_v35 = vpop.permute.xlu0 %5203  ;;  %v1076_v2 = vadd.f32 %v1075_v43, %v697_v22 }
 0x170   : > { %v5225_v37 = vsel %vm5223_vm12, %v5204_v35, %v5206_v34  ;;  %20830 = vmatmul.mubr.msk.f32.vlgmr.msra.gmra.mxu0 %vm464_vm2, %v23061_v52  ;;  %v23133_v0 = vpop.f32.mrf.mxu0  ;;  %v23135_v3 = vpop.f32.mrf.mxu1 }
 0x171   : > { %7409 = vrot.lane.b32.xlu1 %v7384_v31, %s22299_s16  ;;  %7407 = vrot.lane.b32.xlu0 %v7397_v30, %s22299_s16  ;;  %v7824_v30 = vld [vmem:[%s22428_s19 + $0x10] sm:$0x77] }
 0x172   : > { %20832 = vmatprep.subr.msk.mxu1 %vm468_vm1, %v5225_v37  ;;  %5392 = vmatprep.mubr.f32.mxu0 %v27172_v4 }
 0x173   : > { %v5208_v6 = vpop.permute.xlu1 %5207  ;;  %v5202_v1 = vpop.permute.xlu0 %5201 }
 0x174   : > { %v5224_v45 = vsel %vm5223_vm12, %v5202_v1, %v5204_v35  ;;  %v1146_v47 = vpop.f32.mrf.mxu0  ;;  %v1217_v7 = vpop.f32.mrf.mxu1  ;;  %v5226_v54 = vsel %vm5223_vm12, %v5206_v34, %v5208_v6 }
 0x175   : > { %7413 = vrot.lane.b32.xlu1 %v7385_v41, %s22299_s16  ;;  %7411 = vrot.lane.b32.xlu0 %v7398_v40, %s22299_s16  ;;  %v1147_v49 = vadd.f32 %v1146_v47, %v768_v23  ;;  %v1218_v9 = vadd.f32 %v1217_v7, %v839_v32  ;;  %v7838_v41 = vcombine.high %v7824_v30, %v7824_v30  ;;  %v23213_v7 = vld [vmem:[%s27194_s1 + $0x60] sm:$0x3f] }
 0x176   : > { %20833 = vmatpush1.msk.msra.mxu1 %vm468_vm1, %v5224_v45  ;;  %v23145_v51 = vpop.f32.mrf.mxu0  ;;  %v23147_v52 = vpop.f32.mrf.mxu1 }
 0x177   : > { %v5212_v48 = vpop.permute.xlu1 %5211  ;;  %v5210_v10 = vpop.permute.xlu0 %5209  ;;  %20834 = vmatmul.mubr.msk.f32.vlgmr.msra.gmra.mxu1 %vm464_vm2, %v23131_v5 }
 0x178   : > { %v5227_v50 = vsel %vm5223_vm12, %v5208_v6, %v5210_v10  ;;  %5463 = vmatprep.mubr.f32.mxu1 %v27172_v4  ;;  %v1363_v57 = vpop.f32.mrf.mxu0  ;;  %v5228_v14 = vsel %vm5223_vm12, %v5210_v10, %v5212_v48  ;;  %v7825_v6 = vld [vmem:[%s22428_s19 + $0x18] sm:$0x77]  ;;  %v7826_v10 = vld [vmem:[%s22428_s19 + $0x20] sm:$0x77] }
 0x179   : > { %7417 = vrot.lane.b32.xlu1 %v7386_v8, %s22299_s16  ;;  %7415 = vrot.lane.b32.xlu0 %v7399_v46, %s22299_s16  ;;  %v1652_v61 = vadd.f32 %v1363_v57, %v934_v36  ;;  %v7839_v47 = vcombine.high %v7825_v6, %v7825_v6  ;;  %v8262_v57 = vld [vmem:[%s22428_s19] sm:$0x77] }
 0x17a   : > { %20835 = vmatprep.subr.msk.mxu0 %vm468_vm1, %v5227_v50  ;;  %v1434_v58 = vpop.f32.mrf.mxu1  ;;  %v23159_v11 = vpop.f32.mrf.mxu0 }
 0x17b   : > { %20836 = vmatpush1.msk.msra.mxu0 %vm468_vm1, %v5226_v54  ;;  %v5216_v59 = vpop.permute.xlu1 %5215  ;;  %v5214_v60 = vpop.permute.xlu0 %5213  ;;  %v1654_v62 = vadd.f32 %v1434_v58, %v1005_v44 }
 0x17c   : > { %v5229_v63 = vsel %vm5223_vm12, %v5212_v48, %v5214_v60  ;;  %20837 = vmatmul.mubr.msk.f32.vlgmr.msra.gmra.mxu0 %vm464_vm2, %v23131_v5  ;;  %v23161_v12 = vpop.f32.mrf.mxu1  ;;  %v1505_v16 = vpop.f32.mrf.mxu0  ;;  %v5230_v27 = vsel %vm5223_vm12, %v5214_v60, %v5216_v59 }
 0x17d   : > { %7421 = vrot.lane.b32.xlu1 %v7387_v55, %s22299_s16  ;;  %7419 = vrot.lane.b32.xlu0 %v7400_v53, %s22299_s16  ;;  %v1656_v21 = vadd.f32 %v1505_v16, %v1076_v2  ;;  %s22300_s16 = smov 30   ;;  %v7840_v55 = vcombine.high %v7826_v10, %v7826_v10 }
 0x17e   : > { %20838 = vmatprep.subr.msk.mxu1 %vm468_vm1, %v5229_v63  ;;  %5534 = vmatprep.mubr.f32.mxu0 %v27172_v4  ;;  %v23173_v24 = vpop.f32.mrf.mxu0 }
 0x17f   : > { %20839 = vmatpush1.msk.msra.mxu1 %vm468_vm1, %v5228_v14  ;;  %v5220_v17 = vpop.permute.xlu1 %5219  ;;  %v5218_v18 = vpop.permute.xlu0 %5217 }
 0x180   : > { %v5231_v22 = vsel %vm5223_vm12, %v5216_v59, %v5218_v18  ;;  %20840 = vmatmul.mubr.msk.f32.vlgmr.msra.gmra.mxu1 %vm464_vm2, %v23131_v5  ;;  %v1576_v23 = vpop.f32.mrf.mxu1  ;;  %v1647_v32 = vpop.f32.mrf.mxu0  ;;  %v5232_v43 = vsel %vm5223_vm12, %v5218_v18, %v5220_v17 }
 0x181   : > { %7845 = vrot.lane.b32.xlu1 %v7823_v15, %s22300_s16  ;;  %7843 = vrot.lane.b32.xlu0 %v7836_v13, %s22300_s16  ;;  %v23177_v26 = vadd.f32 %v1576_v23, %v1147_v49  ;;  %v23186_v35 = vadd.f32 %v1647_v32, %v1218_v9  ;;  %v8276_v13 = vcombine.high %v8262_v57, %v8262_v57  ;;  %v7827_v15 = vld [vmem:[%s22428_s19 + $0x28] sm:$0x7] }
 0x182   : > { %20841 = vmatprep.subr.msk.mxu0 %vm468_vm1, %v5231_v22  ;;  %5605 = vmatprep.mubr.f32.mxu1 %v27172_v4  ;;  %v23183_v31 = vpop.f32.mrf.mxu1  ;;  %v23191_v40 = vpop.f32.mrf.mxu0 }
 0x183   : > { %20842 = vmatpush1.msk.msra.mxu0 %vm468_vm1, %v5230_v27  ;;  %v5644_v33 = vpop.permute.xlu1 %5643  ;;  %v5222_v34 = vpop.permute.xlu0 %5221 }
 0x184   : > { %v5233_v36 = vsel %vm5223_vm12, %v5220_v17, %v5222_v34  ;;  %20843 = vmatmul.mubr.msk.f32.vlgmr.msra.gmra.mxu0 %vm464_vm2, %v23131_v5  ;;  %v1803_v37 = vpop.f32.mrf.mxu1  ;;  %vm8743_vm12 = vcmask 228352  }
 0x185   : > { %7847 = vrot.lane.b32.xlu1 %v7837_v25, %s22300_s16  ;;  %7841 = vrot.lane.b32.xlu0 %v7822_v56, %s22300_s16  ;;  %v23195_v42 = vadd.f32 %v1803_v37, %v1652_v61 }
 0x186   : > { %20844 = vmatprep.subr.msk.mxu1 %vm468_vm1, %v5233_v36  ;;  %5761 = vmatprep.mubr.f32.mxu0 %v27172_v4  ;;  %v23206_v46 = vpop.f32.mrf.mxu1 }
 0x187   : > { %20845 = vmatpush1.msk.msra.mxu1 %vm468_vm1, %v5232_v43  ;;  %v5642_v1 = vpop.permute.xlu1 %5641  ;;  %v5646_v44 = vpop.permute.xlu0 %5645 }
 0x188   : > { %v5664_v2 = vsel %vm5663_vm13, %v5642_v1, %v5644_v33  ;;  %v5665_v45 = vsel %vm5663_vm13, %v5644_v33, %v5646_v44  ;;  %20846 = vmatmul.mubr.msk.f32.vlgmr.msra.gmra.mxu1 %vm464_vm2, %v23131_v5  ;;  %v1874_v8 = vpop.f32.mrf.mxu0 }
 0x189   : > { %7851 = vrot.lane.b32.xlu1 %v7838_v41, %s22300_s16  ;;  %7849 = vrot.lane.b32.xlu0 %v7824_v30, %s22300_s16  ;;  %v23215_v48 = vadd.f32 %v1874_v8, %v1654_v62  ;;  %v8264_v41 = vld [vmem:[%s22428_s19 + $0x10] sm:$0x77]  ;;  %v8265_v8 = vld [vmem:[%s22428_s19 + $0x18] sm:$0x77] }
 0x18a   : > { %20848 = vmatprep.subr.msk.mxu0 %vm468_vm1, %v5665_v45  ;;  %5832 = vmatprep.mubr.f32.mxu1 %v27172_v4  ;;  %v23225_v54 = vpop.f32.mrf.mxu0 }
 0x18b   : > { %20849 = vmatpush1.msk.msra.mxu0 %vm468_vm1, %v5664_v2  ;;  %v5650_v5 = vpop.permute.xlu1 %5649  ;;  %v5648_v49 = vpop.permute.xlu0 %5647 }
 0x18c   : > { %v5666_v9 = vsel %vm5663_vm13, %v5646_v44, %v5648_v49  ;;  %v5667_v50 = vsel %vm5663_vm13, %v5648_v49, %v5650_v5  ;;  %20850 = vmatmul.mubr.msk.f32.vlgmr.msra.gmra.mxu0 %vm464_vm2, %v23213_v7  ;;  %v1945_v53 = vpop.f32.mrf.mxu1 }
 0x18d   : > { %7855 = vrot.lane.b32.xlu1 %v7839_v47, %s22300_s16  ;;  %7853 = vrot.lane.b32.xlu0 %v7825_v6, %s22300_s16  ;;  %v23229_v56 = vadd.f32 %v1945_v53, %v1656_v21  ;;  %v8266_v53 = vld [vmem:[%s22428_s19 + $0x20] sm:$0x77] }
 0x18e   : > { %20851 = vmatprep.subr.msk.mxu1 %vm468_vm1, %v5667_v50  ;;  %5903 = vmatprep.mubr.f32.mxu0 %v27172_v4  ;;  %v23239_v62 = vpop.f32.mrf.mxu1  ;;  %v8279_v50 = vcombine.high %v8265_v8, %v8265_v8 }
 0x18f   : > { %20852 = vmatpush1.msk.msra.mxu1 %vm468_vm1, %v5666_v9  ;;  %v5654_v58 = vpop.permute.xlu1 %5653  ;;  %v5652_v59 = vpop.permute.xlu0 %5651 }
 0x190   : > { %v5668_v60 = vsel %vm5663_vm13, %v5650_v5, %v5652_v59  ;;  %v5669_v61 = vsel %vm5663_vm13, %v5652_v59, %v5654_v58  ;;  %20853 = vmatmul.mubr.msk.f32.vlgmr.msra.gmra.mxu1 %vm464_vm2, %v23213_v7  ;;  %v2016_v63 = vpop.f32.mrf.mxu0  ;;  %v23297_v5 = vld [vmem:[%s27194_s1 + $0x68] sm:$0x3f] }
 0x191   : > { %7859 = vrot.lane.b32.xlu1 %v7840_v55, %s22300_s16  ;;  %7857 = vrot.lane.b32.xlu0 %v7826_v10, %s22300_s16  ;;  %v23244_v14 = vadd.f32 %v2016_v63, %v23177_v26  ;;  %v8263_v26 = vld [vmem:[%s22428_s19 + $0x8] sm:$0x77] }
 0x192   : > { %20854 = vmatprep.subr.msk.mxu0 %vm468_vm1, %v5669_v61  ;;  %5974 = vmatprep.mubr.f32.mxu1 %v27172_v4  ;;  %v23254_v23 = vpop.f32.mrf.mxu0  ;;  %v8277_v36 = vcombine.high %v8263_v26, %v8263_v26  ;;  %v8280_v61 = vcombine.high %v8266_v53, %v8266_v53 }
 0x193   : > { %20855 = vmatpush1.msk.msra.mxu0 %vm468_vm1, %v5668_v60  ;;  %v5658_v16 = vpop.permute.xlu1 %5657  ;;  %v5656_v17 = vpop.permute.xlu0 %5655 }
 0x194   : > { %v5670_v18 = vsel %vm5663_vm13, %v5654_v58, %v5656_v17  ;;  %v5671_v21 = vsel %vm5663_vm13, %v5656_v17, %v5658_v16  ;;  %20856 = vmatmul.mubr.msk.f32.vlgmr.msra.gmra.mxu0 %vm464_vm2, %v23213_v7  ;;  %v2087_v22 = vpop.f32.mrf.mxu1 }
 0x195   : > { %8283 = vrot.lane.b32.xlu1 %v8276_v13, %s22301_s17  ;;  %7861 = vrot.lane.b32.xlu0 %v7827_v15, %s22300_s16  ;;  %v23259_v25 = vadd.f32 %v2087_v22, %v23186_v35  ;;  %v8267_v13 = vld [vmem:[%s22428_s19 + $0x28] sm:$0x7]  ;;  %v8702_v15 = vld [vmem:[%s22428_s19] sm:$0x77]  ;;  %s27328_s16 = smov 64  }
 0x196   : > { %20857 = vmatprep.subr.msk.mxu1 %vm468_vm1, %v5671_v21  ;;  %6045 = vmatprep.mubr.f32.mxu0 %v27172_v4  ;;  %v23269_v34 = vpop.f32.mrf.mxu1 }
 0x197   : > { %20858 = vmatpush1.msk.msra.mxu1 %vm468_vm1, %v5670_v18  ;;  %v5662_v27 = vpop.permute.xlu1 %5661  ;;  %v5660_v30 = vpop.permute.xlu0 %5659 }
 0x198   : > { %v5672_v32 = vsel %vm5663_vm13, %v5658_v16, %v5660_v30  ;;  %v5673_v33 = vsel %vm5663_vm13, %v5660_v30, %v5662_v27  ;;  %20859 = vmatmul.mubr.msk.f32.vlgmr.msra.gmra.mxu1 %vm464_vm2, %v23213_v7  ;;  %v2243_v35 = vpop.f32.mrf.mxu0  ;;  %v8703_v27 = vld [vmem:[%s22428_s19 + $0x8] sm:$0x77] }
 0x199   : > { %8281 = vrot.lane.b32.xlu1 %v8262_v57, %s22301_s17  ;;  %8285 = vrot.lane.b32.xlu0 %v8263_v26, %s22301_s17  ;;  %v23274_v37 = vadd.f32 %v2243_v35, %v23195_v42  ;;  %v8278_v42 = vcombine.high %v8264_v41, %v8264_v41 }
 0x19a   : > { %20860 = vmatprep.subr.msk.mxu0 %vm468_vm1, %v5673_v33  ;;  %6201 = vmatprep.mubr.f32.mxu1 %v27172_v4  ;;  %v23283_v2 = vpop.f32.mrf.mxu0 }
 0x19b   : > { %20861 = vmatpush1.msk.msra.mxu0 %vm468_vm1, %v5672_v32  ;;  %v6086_v43 = vpop.permute.xlu1 %6085  ;;  %v6084_v6 = vpop.permute.xlu0 %6083 }
 0x19c   : > { %v6105_v1 = vsel %vm6103_vm14, %v6084_v6, %v6086_v43  ;;  %20862 = vmatmul.mubr.msk.f32.vlgmr.msra.gmra.mxu0 %vm464_vm2, %v23213_v7  ;;  %v2314_v44 = vpop.f32.mrf.mxu1 }
 0x19d   : > { %8289 = vrot.lane.b32.xlu1 %v8264_v41, %s22301_s17  ;;  %8287 = vrot.lane.b32.xlu0 %v8277_v36, %s22301_s17  ;;  %v23288_v45 = vadd.f32 %v2314_v44, %v23215_v48  ;;  %v8704_v41 = vld [vmem:[%s22428_s19 + $0x10] sm:$0x77] }
 0x19e   : > { %20864 = vmatprep.subr.msk.mxu1 %vm468_vm1, %v6105_v1  ;;  %6272 = vmatprep.mubr.f32.mxu0 %v27172_v4  ;;  %v23299_v49 = vpop.f32.mrf.mxu1 }
 0x19f   : > { %v6088_v47 = vpop.permute.xlu1 %6087  ;;  %v6082_v10 = vpop.permute.xlu0 %6081 }
 0x1a0   : > { %v6104_v7 = vsel %vm6103_vm14, %v6082_v10, %v6084_v6  ;;  %v2385_v9 = vpop.f32.mrf.mxu0  ;;  %v6106_v63 = vsel %vm6103_vm14, %v6086_v43, %v6088_v47 }
 0x1a1   : > { %8293 = vrot.lane.b32.xlu1 %v8265_v8, %s22301_s17  ;;  %8291 = vrot.lane.b32.xlu0 %v8278_v42, %s22301_s17  ;;  %v23304_v48 = vadd.f32 %v2385_v9, %v23229_v56  ;;  %v8718_v8 = vcombine.high %v8704_v41, %v8704_v41 }
 0x1a2   : > { %20865 = vmatpush1.msk.msra.mxu1 %vm468_vm1, %v6104_v7  ;;  %v23312_v60 = vpop.f32.mrf.mxu0  ;;  %v8705_v7 = vld [vmem:[%s22428_s19 + $0x18] sm:$0x77] }
 0x1a3   : > { %v6092_v55 = vpop.permute.xlu1 %6091  ;;  %v6090_v57 = vpop.permute.xlu0 %6089  ;;  %20866 = vmatmul.mubr.msk.f32.vlgmr.msra.gmra.mxu1 %vm464_vm2, %v23297_v5 }
 0x1a4   : > { %v6107_v58 = vsel %vm6103_vm14, %v6088_v47, %v6090_v57  ;;  %6343 = vmatprep.mubr.f32.mxu1 %v27172_v4  ;;  %v2456_v59 = vpop.f32.mrf.mxu1  ;;  %v6108_v26 = vsel %vm6103_vm14, %v6090_v57, %v6092_v55 }
 0x1a5   : > { %8297 = vrot.lane.b32.xlu1 %v8266_v53, %s22301_s17  ;;  %8295 = vrot.lane.b32.xlu0 %v8279_v50, %s22301_s17  ;;  %v23317_v56 = vadd.f32 %v2456_v59, %v23244_v14  ;;  %v8716_v14 = vcombine.high %v8702_v15, %v8702_v15  ;;  %v8719_v59 = vcombine.high %v8705_v7, %v8705_v7 }
 0x1a6   : > { %20867 = vmatprep.subr.msk.mxu0 %vm468_vm1, %v6107_v58  ;;  %v23340_v35 = vpop.f32.mrf.mxu1  ;;  %v23375_v58 = vld [vmem:[%s27194_s1 + $0x70] sm:$0x3f] }
 0x1a7   : > { %20868 = vmatpush1.msk.msra.mxu0 %vm468_vm1, %v6106_v63  ;;  %v6096_v16 = vpop.permute.xlu1 %6095  ;;  %v6094_v17 = vpop.permute.xlu0 %6093 }
 0x1a8   : > { %20869 = vmatmul.mubr.msk.f32.vlgmr.msra.gmra.mxu0 %vm464_vm2, %v23297_v5  ;;  %v6109_v18 = vsel %vm6103_vm14, %v6092_v55, %v6094_v17  ;;  %v2527_v21 = vpop.f32.mrf.mxu0  ;;  %v6110_v36 = vsel %vm6103_vm14, %v6094_v17, %v6096_v16 }
 0x1a9   : > { %8301 = vrot.lane.b32.xlu1 %v8267_v13, %s22301_s17  ;;  %8299 = vrot.lane.b32.xlu0 %v8280_v61, %s22301_s17  ;;  %v23330_v22 = vadd.f32 %v2527_v21, %v23259_v25  ;;  %v8717_v25 = vcombine.high %v8703_v27, %v8703_v27  ;;  %s22302_s17 = smov 28  }
 0x1aa   : > { %20870 = vmatprep.subr.msk.mxu1 %vm468_vm1, %v6109_v18  ;;  %6414 = vmatprep.mubr.f32.mxu0 %v27172_v4  ;;  %v23352_v42 = vpop.f32.mrf.mxu0 }
 0x1ab   : > { %20871 = vmatpush1.msk.msra.mxu1 %vm468_vm1, %v6108_v26  ;;  %v6100_v30 = vpop.permute.xlu1 %6099  ;;  %v6098_v32 = vpop.permute.xlu0 %6097 }
 0x1ac   : > { %20872 = vmatmul.mubr.msk.f32.vlgmr.msra.gmra.mxu1 %vm464_vm2, %v23297_v5  ;;  %v6111_v33 = vsel %vm6103_vm14, %v6096_v16, %v6098_v32  ;;  %v6112_v10 = vsel %vm6103_vm14, %v6098_v32, %v6100_v30 }
 0x1ad   : > { %8725 = vrot.lane.b32.xlu1 %v8703_v27, %s22302_s17  ;;  %8723 = vrot.lane.b32.xlu0 %v8716_v14, %s22302_s17  ;;  %v9547_v14 = vld [vmem:[%s22428_s19 + $0x4] sm:$0x77] }
 0x1ae   : > { %20873 = vmatprep.subr.msk.mxu0 %vm468_vm1, %v6111_v33  ;;  %6485 = vmatprep.mubr.f32.mxu1 %v27172_v4 }
 0x1af   : > { %20874 = vmatpush1.msk.msra.mxu0 %vm468_vm1, %v6110_v36  ;;  %v6524_v43 = vpop.permute.xlu1 %6523  ;;  %v6102_v6 = vpop.permute.xlu0 %6101 }
 0x1b0   : > { %20875 = vmatmul.mubr.msk.f32.vlgmr.msra.gmra.mxu0 %vm464_vm2, %v23297_v5  ;;  %v6113_v1 = vsel %vm6103_vm14, %v6100_v30, %v6102_v6  ;;  %v2683_v44 = vpop.f32.mrf.mxu1  ;;  %vm13736_vm14 = vcmask 474112  }
 0x1b1   : > { %8727 = vrot.lane.b32.xlu1 %v8717_v25, %s22302_s17  ;;  %8721 = vrot.lane.b32.xlu0 %v8702_v15, %s22302_s17  ;;  %v23357_v47 = vadd.f32 %v2683_v44, %v23274_v37  ;;  %v9561_v25 = vcombine.high %v9547_v14, %v9547_v14 }
 0x1b2   : > { %20876 = vmatprep.subr.msk.mxu1 %vm468_vm1, %v6113_v1  ;;  %6641 = vmatprep.mubr.f32.mxu0 %v27172_v4  ;;  %v23368_v55 = vpop.f32.mrf.mxu1 }
 0x1b3   : > { %20877 = vmatpush1.msk.msra.mxu1 %vm468_vm1, %v6112_v10  ;;  %v6522_v9 = vpop.permute.xlu1 %6521  ;;  %v6526_v50 = vpop.permute.xlu0 %6525 }
 0x1b4   : > { %v6544_v53 = vsel %vm6543_vm15, %v6522_v9, %v6524_v43  ;;  %20878 = vmatmul.mubr.msk.f32.vlgmr.msra.gmra.mxu1 %vm464_vm2, %v23297_v5  ;;  %v6545_v37 = vsel %vm6543_vm15, %v6524_v43, %v6526_v50  ;;  %v2754_v57 = vpop.f32.mrf.mxu0  ;;  %v8706_v5 = vld [vmem:[%s22428_s19 + $0x20] sm:$0x77] }
 0x1b5   : > { %8731 = vrot.lane.b32.xlu1 %v8718_v8, %s22302_s17  ;;  %8729 = vrot.lane.b32.xlu0 %v8704_v41, %s22302_s17  ;;  %v23378_v61 = vadd.f32 %v2754_v57, %v23288_v45  ;;  %v8720_v18 = vcombine.high %v8706_v5, %v8706_v5  ;;  %v8707_v41 = vld [vmem:[%s22428_s19 + $0x28] sm:$0x7] }
 0x1b6   : > { %20880 = vmatprep.subr.msk.mxu0 %vm468_vm1, %v6545_v37  ;;  %6712 = vmatprep.mubr.f32.mxu1 %v27172_v4  ;;  %v23388_v45 = vpop.f32.mrf.mxu0 }
 0x1b7   : > { %20881 = vmatpush1.msk.msra.mxu0 %vm468_vm1, %v6544_v53  ;;  %v6530_v63 = vpop.permute.xlu1 %6529  ;;  %v6528_v13 = vpop.permute.xlu0 %6527 }
 0x1b8   : > { %20882 = vmatmul.mubr.msk.f32.vlgmr.msra.gmra.mxu0 %vm464_vm2, %v23375_v58  ;;  %v6546_v15 = vsel %vm6543_vm15, %v6526_v50, %v6528_v13  ;;  %v6547_v16 = vsel %vm6543_vm15, %v6528_v13, %v6530_v63  ;;  %v2825_v17 = vpop.f32.mrf.mxu1 }
 0x1b9   : > { %8735 = vrot.lane.b32.xlu1 %v8719_v59, %s22302_s17  ;;  %8733 = vrot.lane.b32.xlu0 %v8705_v7, %s22302_s17  ;;  %v23393_v21 = vadd.f32 %v2825_v17, %v23304_v48  ;;  %v9548_v7 = vld [vmem:[%s22428_s19 + $0xc] sm:$0x77] }
 0x1ba   : > { %20883 = vmatprep.subr.msk.mxu1 %vm468_vm1, %v6547_v16  ;;  %6783 = vmatprep.mubr.f32.mxu0 %v27172_v4  ;;  %v23403_v33 = vpop.f32.mrf.mxu1  ;;  %v9562_v59 = vcombine.high %v9548_v7, %v9548_v7 }
 0x1bb   : > { %20884 = vmatpush1.msk.msra.mxu1 %vm468_vm1, %v6546_v15  ;;  %v6534_v26 = vpop.permute.xlu1 %6533  ;;  %v6532_v27 = vpop.permute.xlu0 %6531 }
 0x1bc   : > { %20885 = vmatmul.mubr.msk.f32.vlgmr.msra.gmra.mxu1 %vm464_vm2, %v23375_v58  ;;  %v6548_v30 = vsel %vm6543_vm15, %v6530_v63, %v6532_v27  ;;  %v6549_v32 = vsel %vm6543_vm15, %v6532_v27, %v6534_v26  ;;  %v2896_v48 = vpop.f32.mrf.mxu0  ;;  %v9549_v63 = vld [vmem:[%s22428_s19 + $0x14] sm:$0x77] }
 0x1bd   : > { %8739 = vrot.lane.b32.xlu1 %v8720_v18, %s22302_s17  ;;  %8737 = vrot.lane.b32.xlu0 %v8706_v5, %s22302_s17  ;;  %v23408_v36 = vadd.f32 %v2896_v48, %v23317_v56  ;;  %v9563_v18 = vcombine.high %v9549_v63, %v9549_v63 }
 0x1be   : > { %20886 = vmatprep.subr.msk.mxu0 %vm468_vm1, %v6549_v32  ;;  %6854 = vmatprep.mubr.f32.mxu1 %v27172_v4  ;;  %v23418_v56 = vpop.f32.mrf.mxu0  ;;  %v23461_v32 = vld [vmem:[%s27194_s1 + $0x78] sm:$0x3f] }
 0x1bf   : > { %20887 = vmatpush1.msk.msra.mxu0 %vm468_vm1, %v6548_v30  ;;  %v6538_v43 = vpop.permute.xlu1 %6537  ;;  %v6536_v6 = vpop.permute.xlu0 %6535 }
 0x1c0   : > { %20888 = vmatmul.mubr.msk.f32.vlgmr.msra.gmra.mxu0 %vm464_vm2, %v23375_v58  ;;  %v6550_v1 = vsel %vm6543_vm15, %v6534_v26, %v6536_v6  ;;  %v6551_v44 = vsel %vm6543_vm15, %v6536_v6, %v6538_v43  ;;  %v2967_v8 = vpop.f32.mrf.mxu1 }
 0x1c1   : > { %9568 = vrot.lane.b32.xlu1 %v9561_v25, %s22283_s20  ;;  %8741 = vrot.lane.b32.xlu0 %v8707_v41, %s22302_s17  ;;  %v23423_v10 = vadd.f32 %v2967_v8, %v23330_v22  ;;  %s27182_s17 = smov 58  }
 0x1c2   : > { %20889 = vmatprep.subr.msk.mxu1 %vm468_vm1, %v6551_v44  ;;  %6925 = vmatprep.mubr.f32.mxu0 %v27172_v4  ;;  %v23433_v57 = vpop.f32.mrf.mxu1 }
 0x1c3   : > { %20890 = vmatpush1.msk.msra.mxu1 %vm468_vm1, %v6550_v1  ;;  %v6542_v9 = vpop.permute.xlu1 %6541  ;;  %v6540_v50 = vpop.permute.xlu0 %6539 }
 0x1c4   : > { %20891 = vmatmul.mubr.msk.f32.vlgmr.msra.gmra.mxu1 %vm464_vm2, %v23375_v58  ;;  %v6552_v53 = vsel %vm6543_vm15, %v6538_v43, %v6540_v50  ;;  %v6553_v37 = vsel %vm6543_vm15, %v6540_v50, %v6542_v9  ;;  %v3123_v22 = vpop.f32.mrf.mxu0  ;;  %v9552_v9 = vld [vmem:[%s22428_s19 + $0x2c] sm:$0x7]  ;;  %v9986_v50 = vld [vmem:[%s22428_s19 + $0x4] sm:$0x77] }
 0x1c5   : > { %9566 = vrot.lane.b32.xlu1 %v9547_v14, %s22283_s20  ;;  %9570 = vrot.lane.b32.xlu0 %v9548_v7, %s22283_s20  ;;  %v23438_v5 = vadd.f32 %v3123_v22, %v23357_v47  ;;  %v9550_v14 = vld [vmem:[%s22428_s19 + $0x1c] sm:$0x77] }
 0x1c6   : > { %20892 = vmatprep.subr.msk.mxu0 %vm468_vm1, %v6553_v37  ;;  %7081 = vmatprep.mubr.f32.mxu1 %v27172_v4  ;;  %v23455_v26 = vpop.f32.mrf.mxu0  ;;  %v9564_v48 = vcombine.high %v9550_v14, %v9550_v14 }
 0x1c7   : > { %20893 = vmatpush1.msk.msra.mxu0 %vm468_vm1, %v6552_v53  ;;  %v6966_v13 = vpop.permute.xlu1 %6965  ;;  %v6964_v15 = vpop.permute.xlu0 %6963 }
 0x1c8   : > { %20894 = vmatmul.mubr.msk.f32.vlgmr.msra.gmra.mxu0 %vm464_vm2, %v23375_v58  ;;  %v6985_v16 = vsel %vm6983_vm7, %v6964_v15, %v6966_v13  ;;  %v3194_v17 = vpop.f32.mrf.mxu1 }
 0x1c9   : > { %9574 = vrot.lane.b32.xlu1 %v9549_v63, %s22283_s20  ;;  %9572 = vrot.lane.b32.xlu0 %v9562_v59, %s22283_s20  ;;  %v23450_v47 = vadd.f32 %v3194_v17, %v23378_v61  ;;  %v9551_v61 = vld [vmem:[%s22428_s19 + $0x24] sm:$0x77] }
 0x1ca   : > { %20896 = vmatprep.subr.msk.mxu1 %vm468_vm1, %v6985_v16  ;;  %7152 = vmatprep.mubr.f32.mxu0 %v27172_v4  ;;  %v23467_v25 = vpop.f32.mrf.mxu1  ;;  %v9565_v8 = vcombine.high %v9551_v61, %v9551_v61  ;;  %v9987_v16 = vld [vmem:[%s22428_s19 + $0xc] sm:$0x77] }
 0x1cb   : > { %v6968_v58 = vpop.permute.xlu1 %6967  ;;  %v6962_v27 = vpop.permute.xlu0 %6961 }
 0x1cc   : > { %v6984_v30 = vsel %vm6983_vm7, %v6962_v27, %v6964_v15  ;;  %v6986_v7 = vsel %vm6983_vm7, %v6966_v13, %v6968_v58  ;;  %v10000_v13 = vcombine.high %v9986_v50, %v9986_v50 }
 0x1cd   : > { %9578 = vrot.lane.b32.xlu1 %v9550_v14, %s22283_s20  ;;  %9576 = vrot.lane.b32.xlu0 %v9563_v18, %s22283_s20 }
 0x1ce   : > { %20897 = vmatpush1.msk.msra.mxu1 %vm468_vm1, %v6984_v30  ;;  %v3265_v41 = vpop.f32.mrf.mxu0  ;;  %v10001_v30 = vcombine.high %v9987_v16, %v9987_v16 }
 0x1cf   : > { %20898 = vmatmul.mubr.msk.f32.vlgmr.msra.gmra.mxu1 %vm464_vm2, %v23461_v32  ;;  %v6972_v43 = vpop.permute.xlu1 %6971  ;;  %v6970_v6 = vpop.permute.xlu0 %6969  ;;  %v23472_v1 = vadd.f32 %v3265_v41, %v23393_v21 }
 0x1d0   : > { %v6987_v44 = vsel %vm6983_vm7, %v6968_v58, %v6970_v6  ;;  %7223 = vmatprep.mubr.f32.mxu1 %v27172_v4  ;;  %v23482_v37 = vpop.f32.mrf.mxu0  ;;  %v6988_v15 = vsel %vm6983_vm7, %v6970_v6, %v6972_v43 }
 0x1d1   : > { %9582 = vrot.lane.b32.xlu1 %v9551_v61, %s22283_s20  ;;  %9580 = vrot.lane.b32.xlu0 %v9564_v48, %s22283_s20 }
 0x1d2   : > { %20899 = vmatprep.subr.msk.mxu0 %vm468_vm1, %v6987_v44  ;;  %v3336_v53 = vpop.f32.mrf.mxu1 }
 0x1d3   : > { %20900 = vmatpush1.msk.msra.mxu0 %vm468_vm1, %v6986_v7  ;;  %v6976_v21 = vpop.permute.xlu1 %6975  ;;  %v6974_v22 = vpop.permute.xlu0 %6973  ;;  %v23486_v59 = vadd.f32 %v3336_v53, %v23408_v36 }
 0x1d4   : > { %20901 = vmatmul.mubr.msk.f32.vlgmr.msra.gmra.mxu0 %vm464_vm2, %v23461_v32  ;;  %v6989_v63 = vsel %vm6983_vm7, %v6972_v43, %v6974_v22  ;;  %v23504_v27 = vpop.f32.mrf.mxu1  ;;  %v6990_v48 = vsel %vm6983_vm7, %v6974_v22, %v6976_v21 }
 0x1d5   : > { %9586 = vrot.lane.b32.xlu1 %v9552_v9, %s22283_s20  ;;  %9584 = vrot.lane.b32.xlu0 %v9565_v8, %s22283_s20  ;;  %v9989_v9 = vld [vmem:[%s22428_s19 + $0x1c] sm:$0x77] }
 0x1d6   : > { %20902 = vmatprep.subr.msk.mxu1 %vm468_vm1, %v6989_v63  ;;  %7294 = vmatprep.mubr.f32.mxu0 %v27172_v4  ;;  %v3407_v36 = vpop.f32.mrf.mxu0  ;;  %v23537_v63 = vld [vmem:[%s27194_s1 + $0x80] sm:$0x3f] }
 0x1d7   : > { %20903 = vmatpush1.msk.msra.mxu1 %vm468_vm1, %v6988_v15  ;;  %v6980_v17 = vpop.permute.xlu1 %6979  ;;  %v6978_v18 = vpop.permute.xlu0 %6977  ;;  %v23499_v14 = vadd.f32 %v3407_v36, %v23423_v10  ;;  %v9988_v10 = vld [vmem:[%s22428_s19 + $0x14] sm:$0x77]  ;;  %v9990_v15 = vld [vmem:[%s22428_s19 + $0x24] sm:$0x77] }
 0x1d8   : > { %20904 = vmatmul.mubr.msk.f32.vlgmr.msra.gmra.mxu1 %vm464_vm2, %v23461_v32  ;;  %v6991_v58 = vsel %vm6983_vm7, %v6976_v21, %v6978_v18  ;;  %v10002_v44 = vcombine.high %v9988_v10, %v9988_v10  ;;  %v6992_v7 = vsel %vm6983_vm7, %v6978_v18, %v6980_v17  ;;  %v23525_v53 = vpop.f32.mrf.mxu0 }
 0x1d9   : > { %10009 = vrot.lane.b32.xlu1 %v9987_v16, %s27184_s26  ;;  %10007 = vrot.lane.b32.xlu0 %v10000_v13, %s27184_s26  ;;  %v10003_v13 = vcombine.high %v9989_v9, %v9989_v9 }
 0x1da   : > { %20905 = vmatprep.subr.msk.mxu0 %vm468_vm1, %v6991_v58  ;;  %7365 = vmatprep.mubr.f32.mxu1 %v27172_v4 }
 0x1db   : > { %20906 = vmatpush1.msk.msra.mxu0 %vm468_vm1, %v6990_v48  ;;  %v7404_v61 = vpop.permute.xlu1 %7403  ;;  %v6982_v41 = vpop.permute.xlu0 %6981  ;;  %v10004_v48 = vcombine.high %v9990_v15, %v9990_v15 }
 0x1dc   : > { %20907 = vmatmul.mubr.msk.f32.vlgmr.msra.gmra.mxu0 %vm464_vm2, %v23461_v32  ;;  %v6993_v43 = vsel %vm6983_vm7, %v6980_v17, %v6982_v41  ;;  %v3563_v6 = vpop.f32.mrf.mxu1  ;;  %vm14021_vm7 = vcmask 457728  }
 0x1dd   : > { %10011 = vrot.lane.b32.xlu1 %v10001_v30, %s27184_s26  ;;  %10005 = vrot.lane.b32.xlu0 %v9986_v50, %s27184_s26  ;;  %v23519_v8 = vadd.f32 %v3563_v6, %v23438_v5 }
 0x1de   : > { %20908 = vmatprep.subr.msk.mxu1 %vm468_vm1, %v6993_v43  ;;  %7521 = vmatprep.mubr.f32.mxu0 %v27172_v4  ;;  %v23550_v30 = vpop.f32.mrf.mxu1 }
 0x1df   : > { %20909 = vmatpush1.msk.msra.mxu1 %vm468_vm1, %v6992_v7  ;;  %v7402_v21 = vpop.permute.xlu1 %7401  ;;  %v7406_v22 = vpop.permute.xlu0 %7405 }
 0x1e0   : > { %v7424_v50 = vsel %vm7423_vm8, %v7402_v21, %v7404_v61  ;;  %20910 = vmatmul.mubr.msk.f32.vlgmr.msra.gmra.mxu1 %vm464_vm2, %v23461_v32  ;;  %v7425_v5 = vsel %vm7423_vm8, %v7404_v61, %v7406_v22  ;;  %v9991_v21 = vld [vmem:[%s22428_s19 + $0x2c] sm:$0x7] }
 0x1e1   : > { %10015 = vrot.lane.b32.xlu1 %v10002_v44, %s27184_s26  ;;  %10013 = vrot.lane.b32.xlu0 %v9988_v10, %s27184_s26 }
 0x1e2   : > { %20912 = vmatprep.subr.msk.mxu0 %vm468_vm1, %v7425_v5  ;;  %7592 = vmatprep.mubr.f32.mxu1 %v27172_v4  ;;  %v3634_v16 = vpop.f32.mrf.mxu0 }
 0x1e3   : > { %20913 = vmatpush1.msk.msra.mxu0 %vm468_vm1, %v7424_v50  ;;  %v7410_v32 = vpop.permute.xlu1 %7409  ;;  %v7408_v36 = vpop.permute.xlu0 %7407  ;;  %v23544_v17 = vadd.f32 %v3634_v16, %v23450_v47  ;;  %v10425_v47 = vld [vmem:[%s22428_s19 + $0x4] sm:$0x77] }
 0x1e4   : > { %20914 = vmatmul.mubr.msk.f32.vlgmr.msra.gmra.mxu0 %vm464_vm2, %v23537_v63  ;;  %v7426_v18 = vsel %vm7423_vm8, %v7406_v22, %v7408_v36  ;;  %v7427_v58 = vsel %vm7423_vm8, %v7408_v36, %v7410_v32  ;;  %v23562_v44 = vpop.f32.mrf.mxu0  ;;  %v10439_v7 = vcombine.high %v10425_v47, %v10425_v47 }
 0x1e5   : > { %10019 = vrot.lane.b32.xlu1 %v10003_v13, %s27184_s26  ;;  %10017 = vrot.lane.b32.xlu0 %v9989_v9, %s27184_s26 }
 0x1e6   : > { %20915 = vmatprep.subr.msk.mxu1 %vm468_vm1, %v7427_v58  ;;  %7663 = vmatprep.mubr.f32.mxu0 %v27172_v4 }
 0x1e7   : > { %20916 = vmatpush1.msk.msra.mxu1 %vm468_vm1, %v7426_v18  ;;  %v7414_v10 = vpop.permute.xlu1 %7413  ;;  %v7412_v61 = vpop.permute.xlu0 %7411 }
 0x1e8   : > { %20917 = vmatmul.mubr.msk.f32.vlgmr.msra.gmra.mxu1 %vm464_vm2, %v23537_v63  ;;  %v7428_v41 = vsel %vm7423_vm8, %v7410_v32, %v7412_v61  ;;  %v7429_v43 = vsel %vm7423_vm8, %v7412_v61, %v7414_v10  ;;  %v3705_v6 = vpop.f32.mrf.mxu1  ;;  %v10426_v32 = vld [vmem:[%s22428_s19 + $0xc] sm:$0x77] }
 0x1e9   : > { %10023 = vrot.lane.b32.xlu1 %v10004_v48, %s27184_s26  ;;  %10021 = vrot.lane.b32.xlu0 %v9990_v15, %s27184_s26  ;;  %v23567_v9 = vadd.f32 %v3705_v6, %v23472_v1  ;;  %v10440_v61 = vcombine.high %v10426_v32, %v10426_v32 }
 0x1ea   : > { %20918 = vmatprep.subr.msk.mxu0 %vm468_vm1, %v7429_v43  ;;  %7734 = vmatprep.mubr.f32.mxu1 %v27172_v4  ;;  %v23577_v15 = vpop.f32.mrf.mxu1  ;;  %v10427_v43 = vld [vmem:[%s22428_s19 + $0x14] sm:$0x77] }
 0x1eb   : > { %20919 = vmatpush1.msk.msra.mxu0 %vm468_vm1, %v7428_v41  ;;  %v7418_v22 = vpop.permute.xlu1 %7417  ;;  %v7416_v50 = vpop.permute.xlu0 %7415 }
 0x1ec   : > { %20920 = vmatmul.mubr.msk.f32.vlgmr.msra.gmra.mxu0 %vm464_vm2, %v23537_v63  ;;  %v7430_v5 = vsel %vm7423_vm8, %v7414_v10, %v7416_v50  ;;  %v7431_v13 = vsel %vm7423_vm8, %v7416_v50, %v7418_v22  ;;  %v3776_v1 = vpop.f32.mrf.mxu0 }
 0x1ed   : > { %10446 = vrot.lane.b32.xlu1 %v10439_v7, %s22286_s28  ;;  %10025 = vrot.lane.b32.xlu0 %v9991_v21, %s27184_s26  ;;  %v23582_v16 = vadd.f32 %v3776_v1, %v23486_v59 }
 0x1ee   : > { %20921 = vmatprep.subr.msk.mxu1 %vm468_vm1, %v7431_v13  ;;  %7805 = vmatprep.mubr.f32.mxu0 %v27172_v4  ;;  %v23592_v59 = vpop.f32.mrf.mxu0 }
 0x1ef   : > { %20922 = vmatpush1.msk.msra.mxu1 %vm468_vm1, %v7430_v5  ;;  %v7422_v36 = vpop.permute.xlu1 %7421  ;;  %v7420_v18 = vpop.permute.xlu0 %7419  ;;  %27195 = vst [vmem:[#allocation10_spill] sm:$0xff] %v23592_v59  ;;  %v10428_v5 = vld [vmem:[%s22428_s19 + $0x1c] sm:$0x77] }
 0x1f0   : > { %20923 = vmatmul.mubr.msk.f32.vlgmr.msra.gmra.mxu1 %vm464_vm2, %v23537_v63  ;;  %v7432_v58 = vsel %vm7423_vm8, %v7418_v22, %v7420_v18  ;;  %v7433_v48 = vsel %vm7423_vm8, %v7420_v18, %v7422_v36  ;;  %v3847_v10 = vpop.f32.mrf.mxu1  ;;  %v9145_v59 = vld [vmem:[%s22428_s19 + $0x1c] sm:$0x77] }
 0x1f1   : > { %10444 = vrot.lane.b32.xlu1 %v10425_v47, %s22286_s28  ;;  %10448 = vrot.lane.b32.xlu0 %v10426_v32, %s22286_s28  ;;  %v23597_v41 = vadd.f32 %v3847_v10, %v23499_v14  ;;  %v10441_v14 = vcombine.high %v10427_v43, %v10427_v43  ;;  %v23620_v32 = vld [vmem:[%s27194_s1 + $0x88] sm:$0x3f] }
 0x1f2   : > { %20924 = vmatprep.subr.msk.mxu0 %vm468_vm1, %v7433_v48  ;;  %7961 = vmatprep.mubr.f32.mxu1 %v27172_v4  ;;  %v23606_v21 = vpop.f32.mrf.mxu1  ;;  %v10429_v48 = vld [vmem:[%s22428_s19 + $0x24] sm:$0x77] }
 0x1f3   : > { %20925 = vmatpush1.msk.msra.mxu0 %vm468_vm1, %v7432_v58  ;;  %v7846_v6 = vpop.permute.xlu1 %7845  ;;  %v7844_v7 = vpop.permute.xlu0 %7843  ;;  %27196 = vst [vmem:[#allocation11_spill] sm:$0xff] %v23606_v21  ;;  %v10442_v58 = vcombine.high %v10428_v5, %v10428_v5 }
 0x1f4   : > { %20926 = vmatmul.mubr.msk.f32.vlgmr.msra.gmra.mxu0 %vm464_vm2, %v23537_v63  ;;  %v7865_v47 = vsel %vm7863_vm9, %v7844_v7, %v7846_v6  ;;  %v4003_v22 = vpop.f32.mrf.mxu0 }
 0x1f5   : > { %10452 = vrot.lane.b32.xlu1 %v10427_v43, %s22286_s28  ;;  %10450 = vrot.lane.b32.xlu0 %v10440_v61, %s22286_s28  ;;  %v23611_v50 = vadd.f32 %v4003_v22, %v23519_v8  ;;  %v10443_v22 = vcombine.high %v10429_v48, %v10429_v48 }
 0x1f6   : > { %20928 = vmatprep.subr.msk.mxu1 %vm468_vm1, %v7865_v47  ;;  %8032 = vmatprep.mubr.f32.mxu0 %v27172_v4  ;;  %v23622_v18 = vpop.f32.mrf.mxu0 }
 0x1f7   : > { %v7848_v63 = vpop.permute.xlu1 %7847  ;;  %v7842_v13 = vpop.permute.xlu0 %7841 }
 0x1f8   : > { %v7864_v1 = vsel %vm7863_vm9, %v7842_v13, %v7844_v7  ;;  %v4074_v36 = vpop.f32.mrf.mxu1  ;;  %v10864_v13 = vld [vmem:[%s22428_s19 + $0x4] sm:$0x77] }
 0x1f9   : > { %10456 = vrot.lane.b32.xlu1 %v10428_v5, %s22286_s28  ;;  %10454 = vrot.lane.b32.xlu0 %v10441_v14, %s22286_s28  ;;  %v23627_v8 = vadd.f32 %v4074_v36, %v23544_v17  ;;  %v7866_v14 = vsel %vm7863_vm9, %v7846_v6, %v7848_v63  ;;  %v10430_v5 = vld [vmem:[%s22428_s19 + $0x2c] sm:$0x7] }
 0x1fa   : > { %20929 = vmatpush1.msk.msra.mxu1 %vm468_vm1, %v7864_v1  ;;  %v23635_v7 = vpop.f32.mrf.mxu1 }
 0x1fb   : > { %20930 = vmatmul.mubr.msk.f32.vlgmr.msra.gmra.mxu1 %vm464_vm2, %v23620_v32  ;;  %v7852_v10 = vpop.permute.xlu1 %7851  ;;  %v7850_v61 = vpop.permute.xlu0 %7849  ;;  %27197 = vst [vmem:[#allocation12_spill] sm:$0xff] %v23635_v7 }
 0x1fc   : > { %v7867_v43 = vsel %vm7863_vm9, %v7848_v63, %v7850_v61  ;;  %8103 = vmatprep.mubr.f32.mxu1 %v27172_v4  ;;  %v4145_v47 = vpop.f32.mrf.mxu0  ;;  %v7868_v63 = vsel %vm7863_vm9, %v7850_v61, %v7852_v10 }
 0x1fd   : > { %10460 = vrot.lane.b32.xlu1 %v10429_v48, %s22286_s28  ;;  %10458 = vrot.lane.b32.xlu0 %v10442_v58, %s22286_s28  ;;  %v23640_v17 = vadd.f32 %v4145_v47, %v23567_v9  ;;  %v10878_v9 = vcombine.high %v10864_v13, %v10864_v13  ;;  %v27199_v47 = vmov 0.0  }
 0x1fe   : > { %20931 = vmatprep.subr.msk.mxu0 %vm468_vm1, %v7867_v43  ;;  %v23650_v4 = vpop.f32.mrf.mxu0  ;;  %v10865_v43 = vld [vmem:[%s22428_s19 + $0xc] sm:$0x77] }
 0x1ff   : > { %20932 = vmatpush1.msk.msra.mxu0 %vm468_vm1, %v7866_v14  ;;  %v7856_v1 = vpop.permute.xlu1 %7855  ;;  %v7854_v36 = vpop.permute.xlu0 %7853  ;;  %27198 = vst [vmem:[#allocation13_spill] sm:$0xff] %v23650_v4 }
 0x200   : > { %20933 = vmatmul.mubr.msk.f32.vlgmr.msra.gmra.mxu0 %vm464_vm2, %v23620_v32  ;;  %v7869_v48 = vsel %vm7863_vm9, %v7852_v10, %v7854_v36  ;;  %v4216_v58 = vpop.f32.mrf.mxu1  ;;  %v7870_v61 = vsel %vm7863_vm9, %v7854_v36, %v7856_v1  ;;  %v10867_v36 = vld [vmem:[%s22428_s19 + $0x1c] sm:$0x77] }
 0x201   : > { %10464 = vrot.lane.b32.xlu1 %v10430_v5, %s22286_s28  ;;  %10462 = vrot.lane.b32.xlu0 %v10443_v22, %s22286_s28  ;;  %v23655_v6 = vadd.f32 %v4216_v58, %v23582_v16  ;;  %v10879_v16 = vcombine.high %v10865_v43, %v10865_v43  ;;  %s27330_s28 = smov 60  }
 0x202   : > { %20934 = vmatprep.subr.msk.mxu1 %vm468_vm1, %v7869_v48  ;;  %8174 = vmatprep.mubr.f32.mxu0 %v27199_v47  ;;  %v10866_v48 = vld [vmem:[%s22428_s19 + $0x14] sm:$0x77] }
 0x203   : > { %20935 = vmatpush1.msk.msra.mxu1 %vm468_vm1, %v7868_v63  ;;  %v7860_v14 = vpop.permute.xlu1 %7859  ;;  %v7858_v4 = vpop.permute.xlu0 %7857 }
 0x204   : > { %20936 = vmatmul.mubr.msk.f32.vlgmr.msra.gmra.mxu1 %vm464_vm2, %v23620_v32  ;;  %v7871_v22 = vsel %vm7863_vm9, %v7856_v1, %v7858_v4  ;;  %v4287_v5 = vpop.f32.mrf.mxu0  ;;  %v7872_v1 = vsel %vm7863_vm9, %v7858_v4, %v7860_v14  ;;  %v20943_v4 = vld [vmem:[%s27194_s1 + $0x90] sm:$0x3f] }
 0x205   : > { %10887 = vrot.lane.b32.xlu1 %v10865_v43, %s27186_s29  ;;  %10885 = vrot.lane.b32.xlu0 %v10878_v9, %s27186_s29  ;;  %v23668_v10 = vadd.f32 %v4287_v5, %v23597_v41  ;;  %v23678_v43 = vpop.f32.mrf.mxu1  ;;  %v10880_v41 = vcombine.high %v10866_v48, %v10866_v48 }
 0x206   : > { %20937 = vmatprep.subr.msk.mxu0 %vm468_vm1, %v7871_v22  ;;  %8245 = vmatprep.mubr.f32.mxu1 %v27199_v47  ;;  %27200 = vst [vmem:[#allocation14_spill] sm:$0xff] %v23678_v43 }
 0x207   : > { %20938 = vmatpush1.msk.msra.mxu0 %vm468_vm1, %v7870_v61  ;;  %v8284_v58 = vpop.permute.xlu1 %8283  ;;  %v7862_v63 = vpop.permute.xlu0 %7861 }
 0x208   : > { %20939 = vmatmul.mubr.msk.f32.vlgmr.msra.gmra.mxu0 %vm464_vm2, %v23620_v32  ;;  %v7873_v9 = vsel %vm7863_vm9, %v7860_v14, %v7862_v63  ;;  %v23691_v63 = vpop.f32.mrf.mxu0  ;;  %v10881_v14 = vcombine.high %v10867_v36, %v10867_v36 }
 0x209   : > { %10889 = vrot.lane.b32.xlu1 %v10879_v16, %s27186_s29  ;;  %10883 = vrot.lane.b32.xlu0 %v10864_v13, %s27186_s29  ;;  %27201 = vst [vmem:[#allocation15_spill] sm:$0xff] %v23691_v63 }
 0x20a   : > { %20940 = vmatprep.subr.msk.mxu1 %vm468_vm1, %v7873_v9  ;;  %8401 = vmatprep.mubr.f32.mxu0 %v27199_v47 }
 0x20b   : > { %20941 = vmatpush1.msk.msra.mxu1 %vm468_vm1, %v7872_v1  ;;  %v8282_v22 = vpop.permute.xlu1 %8281  ;;  %v8286_v5 = vpop.permute.xlu0 %8285 }
 0x20c   : > { %v8304_v61 = vsel %vm8303_vm10, %v8282_v22, %v8284_v58  ;;  %20942 = vmatmul.mubr.msk.f32.vlgmr.msra.gmra.mxu1 %vm464_vm2, %v23620_v32  ;;  %v8305_v13 = vsel %vm8303_vm10, %v8284_v58, %v8286_v5  ;;  %v4443_v16 = vpop.f32.mrf.mxu1 }
 0x20d   : > { %10893 = vrot.lane.b32.xlu1 %v10880_v41, %s27186_s29  ;;  %10891 = vrot.lane.b32.xlu0 %v10866_v48, %s27186_s29  ;;  %v23699_v9 = vadd.f32 %v4443_v16, %v23611_v50  ;;  %v10868_v50 = vld [vmem:[%s22428_s19 + $0x24] sm:$0x77] }
 0x20e   : > { %20944 = vmatprep.subr.msk.mxu0 %vm468_vm1, %v8305_v13  ;;  %8472 = vmatprep.mubr.f32.mxu1 %v27199_v47  ;;  %v23707_v1 = vpop.f32.mrf.mxu1 }
 0x20f   : > { %20945 = vmatpush1.msk.msra.mxu0 %vm468_vm1, %v8304_v61  ;;  %v8290_v32 = vpop.permute.xlu1 %8289  ;;  %v8288_v58 = vpop.permute.xlu0 %8287  ;;  %v10882_v61 = vcombine.high %v10868_v50, %v10868_v50 }
 0x210   : > { %20946 = vmatmul.mubr.msk.f32.vlgmr.msra.gmra.mxu0 %vm464_vm2, %v20943_v4  ;;  %v8306_v48 = vsel %vm8303_vm10, %v8286_v5, %v8288_v58  ;;  %v8307_v41 = vsel %vm8303_vm10, %v8288_v58, %v8290_v32  ;;  %v4514_v22 = vpop.f32.mrf.mxu0 }
 0x211   : > { %10897 = vrot.lane.b32.xlu1 %v10881_v14, %s27186_s29  ;;  %10895 = vrot.lane.b32.xlu0 %v10867_v36, %s27186_s29  ;;  %v4734_v13 = vadd.f32 %v4514_v22, %v23627_v8 }
 0x212   : > { %20947 = vmatprep.subr.msk.mxu1 %vm468_vm1, %v8307_v41  ;;  %8543 = vmatprep.mubr.f32.mxu0 %v27199_v47  ;;  %v23719_v63 = vpop.f32.mrf.mxu0 }
 0x213   : > { %20948 = vmatpush1.msk.msra.mxu1 %vm468_vm1, %v8306_v48  ;;  %v8294_v5 = vpop.permute.xlu1 %8293  ;;  %v8292_v16 = vpop.permute.xlu0 %8291  ;;  %27202 = vst [vmem:[#allocation16_spill] sm:$0xff] %v23719_v63  ;;  %v10869_v48 = vld [vmem:[%s22428_s19 + $0x2c] sm:$0x7]  ;;  %v9142_v63 = vld [vmem:[%s22428_s19 + $0x4] sm:$0x77] }
 0x214   : > { %20949 = vmatmul.mubr.msk.f32.vlgmr.msra.gmra.mxu1 %vm464_vm2, %v20943_v4  ;;  %v8308_v58 = vsel %vm8303_vm10, %v8290_v32, %v8292_v16  ;;  %v8309_v14 = vsel %vm8303_vm10, %v8292_v16, %v8294_v5  ;;  %v4585_v36 = vpop.f32.mrf.mxu1 }
 0x215   : > { %10899 = vrot.lane.b32.xlu0 %v10868_v50, %s27186_s29  ;;  %20950 = vmatprep.subr.msk.mxu0 %vm468_vm1, %v8309_v14  ;;  %v4736_v8 = vadd.f32 %v4585_v36, %v23640_v17 }
 0x216   : > { %20951 = vmatpush1.msk.msra.mxu0 %vm468_vm1, %v8308_v58  ;;  %10901 = vrot.lane.b32.xlu1 %v10882_v61, %s27186_s29  ;;  %v23732_v50 = vpop.f32.mrf.mxu1 }
 0x217   : > { %v8298_v41 = vpop.permute.xlu1 %8297  ;;  %20952 = vmatmul.mubr.msk.f32.vlgmr.msra.gmra.mxu0 %vm464_vm2, %v20943_v4  ;;  %v8296_v32 = vpop.permute.xlu0 %8295  ;;  %8614 = vmatprep.mubr.f32.mxu1 %v27199_v47  ;;  %27203 = vst [vmem:[#allocation17_spill] sm:$0xff] %v23732_v50 }
 0x218   : > { %v8310_v22 = vsel %vm8303_vm10, %v8294_v5, %v8296_v32  ;;  %v8311_v16 = vsel %vm8303_vm10, %v8296_v32, %v8298_v41  ;;  %8685 = vmatprep.mubr.f32.mxu0 %v27199_v47  ;;  %v4656_v17 = vpop.f32.mrf.mxu0 }
 0x219   : > { %10903 = vrot.lane.b32.xlu0 %v10869_v48, %s27186_s29  ;;  %20953 = vmatprep.subr.msk.mxu1 %vm468_vm1, %v8311_v16  ;;  %v4738_v61 = vadd.f32 %v4656_v17, %v23655_v6 }
 0x21a   : > { %20954 = vmatpush1.msk.msra.mxu1 %vm468_vm1, %v8310_v22  ;;  %v23742_v50 = vpop.f32.mrf.mxu0 }
 0x21b   : > { %v8302_v58 = vpop.permute.xlu1 %8301  ;;  %20955 = vmatmul.mubr.msk.f32.vlgmr.msra.gmra.mxu1 %vm464_vm2, %v20943_v4  ;;  %v8300_v14 = vpop.permute.xlu0 %8299  ;;  %27204 = vst [vmem:[#allocation18_spill] sm:$0xff] %v23742_v50 }
 0x21c   : > { %v8312_v5 = vsel %vm8303_vm10, %v8298_v41, %v8300_v14  ;;  %v8313_v36 = vsel %vm8303_vm10, %v8300_v14, %v8302_v58  ;;  %8841 = vmatprep.mubr.f32.mxu1 %v27199_v47  ;;  %v4727_v32 = vpop.f32.mrf.mxu1 }
 0x21d   : > { %20956 = vmatprep.subr.msk.mxu0 %vm468_vm1, %v8313_v36  ;;  %v4740_v6 = vadd.f32 %v4727_v32, %v23668_v10 }
 0x21e   : > { %20957 = vmatpush1.msk.msra.mxu0 %vm468_vm1, %v8312_v5  ;;  %v23750_v16 = vpop.f32.mrf.mxu1  ;;  %v20959_v5 = vld [vmem:[%s27194_s1 + $0x98] sm:$0x3f] }
 0x21f   : > { %v8726_v48 = vpop.permute.xlu1 %8725  ;;  %20958 = vmatmul.mubr.msk.f32.vlgmr.msra.gmra.mxu0 %vm464_vm2, %v20943_v4  ;;  %v8724_v22 = vpop.permute.xlu0 %8723  ;;  %27205 = vst [vmem:[#allocation19_spill] sm:$0xff] %v23750_v16 }
 0x220   : > { %v8745_v41 = vsel %vm8743_vm12, %v8724_v22, %v8726_v48  ;;  %8912 = vmatprep.mubr.f32.mxu0 %v27199_v47  ;;  %v4883_v17 = vpop.f32.mrf.mxu0 }
 0x221   : > { %20960 = vmatprep.subr.msk.mxu1 %vm468_vm1, %v8745_v41  ;;  %v23754_v58 = vadd.f32 %v4883_v17, %v23699_v9 }
 0x222   : > { %v23760_v32 = vpop.f32.mrf.mxu0 }
 0x223   : > { %v8728_v14 = vpop.permute.xlu1 %8727  ;;  %v8722_v10 = vpop.permute.xlu0 %8721  ;;  %27206 = vst [vmem:[#allocation20_spill] sm:$0xff] %v23760_v32 }
 0x224   : > { %v8744_v4 = vsel %vm8743_vm12, %v8722_v10, %v8724_v22  ;;  %v4954_v36 = vpop.f32.mrf.mxu1  ;;  %v8746_v22 = vsel %vm8743_vm12, %v8726_v48, %v8728_v14 }
 0x225   : > { %20961 = vmatpush1.msk.msra.mxu1 %vm468_vm1, %v8744_v4  ;;  %v23763_v16 = vadd.f32 %v4954_v36, %v4734_v13 }
 0x226   : > { %20962 = vmatmul.mubr.msk.f32.vlgmr.msra.gmra.mxu1 %vm464_vm2, %v20959_v5  ;;  %v23768_v50 = vpop.f32.mrf.mxu1 }
 0x227   : > { %v8732_v9 = vpop.permute.xlu1 %8731  ;;  %v8730_v41 = vpop.permute.xlu0 %8729  ;;  %8983 = vmatprep.mubr.f32.mxu1 %v27199_v47  ;;  %27207 = vst [vmem:[#allocation21_spill] sm:$0xff] %v23768_v50 }
 0x228   : > { %v8747_v17 = vsel %vm8743_vm12, %v8728_v14, %v8730_v41  ;;  %v5025_v43 = vpop.f32.mrf.mxu0  ;;  %v8748_v48 = vsel %vm8743_vm12, %v8730_v41, %v8732_v9 }
 0x229   : > { %20963 = vmatprep.subr.msk.mxu0 %vm468_vm1, %v8747_v17  ;;  %v23772_v10 = vadd.f32 %v5025_v43, %v4736_v8  ;;  %v9144_v8 = vld [vmem:[%s22428_s19 + $0x14] sm:$0x77] }
 0x22a   : > { %20964 = vmatpush1.msk.msra.mxu0 %vm468_vm1, %v8746_v22  ;;  %v23779_v32 = vpop.f32.mrf.mxu0  ;;  %v9154_v22 = vcombine.high %v9142_v63, %v9142_v63 }
 0x22b   : > { %v8736_v13 = vpop.permute.xlu1 %8735  ;;  %20965 = vmatmul.mubr.msk.f32.vlgmr.msra.gmra.mxu0 %vm464_vm2, %v20959_v5  ;;  %v8734_v4 = vpop.permute.xlu0 %8733  ;;  %27208 = vst [vmem:[#allocation22_spill] sm:$0xff] %v23779_v32 }
 0x22c   : > { %v8749_v36 = vsel %vm8743_vm12, %v8732_v9, %v8734_v4  ;;  %9054 = vmatprep.mubr.f32.mxu0 %v27199_v47  ;;  %v5096_v50 = vpop.f32.mrf.mxu1  ;;  %v8750_v9 = vsel %vm8743_vm12, %v8734_v4, %v8736_v13  ;;  %v9146_v4 = vld [vmem:[%s22428_s19 + $0x24] sm:$0x77] }
 0x22d   : > { %20966 = vmatprep.subr.msk.mxu1 %vm468_vm1, %v8749_v36  ;;  %v23783_v43 = vadd.f32 %v5096_v50, %v4738_v61  ;;  %v9143_v50 = vld [vmem:[%s22428_s19 + $0xc] sm:$0x77]  ;;  %v9156_v61 = vcombine.high %v9144_v8, %v9144_v8  ;;  %s27176_s19 = smov 120  }
 0x22e   : > { %20967 = vmatpush1.msk.msra.mxu1 %vm468_vm1, %v8748_v48 }
 0x22f   : > { %v8740_v14 = vpop.permute.xlu1 %8739  ;;  %20968 = vmatmul.mubr.msk.f32.vlgmr.msra.gmra.mxu1 %vm464_vm2, %v20959_v5  ;;  %v8738_v17 = vpop.permute.xlu0 %8737 }
 0x230   : > { %v8751_v21 = vsel %vm8743_vm12, %v8736_v13, %v8738_v17  ;;  %9125 = vmatprep.mubr.f32.mxu1 %v27199_v47  ;;  %v5167_v32 = vpop.f32.mrf.mxu0  ;;  %v8752_v13 = vsel %vm8743_vm12, %v8738_v17, %v8740_v14 }
 0x231   : > { %20969 = vmatprep.subr.msk.mxu0 %vm468_vm1, %v8751_v21  ;;  %v23793_v41 = vadd.f32 %v5167_v32, %v4740_v6  ;;  %v20975_v21 = vld [vmem:[%s27194_s1 + $0xa0] sm:$0x3f]  ;;  %v9155_v6 = vcombine.high %v9143_v50, %v9143_v50  ;;  %v23805_v32 = vpop.f32.mrf.mxu1 }
 0x232   : > { %20970 = vmatpush1.msk.msra.mxu0 %vm468_vm1, %v8750_v9  ;;  %27209 = vst [vmem:[#allocation23_spill] sm:$0xff] %v23805_v32  ;;  %v23816_v17 = vpop.f32.mrf.mxu0 }
 0x233   : > { %v9569_v36 = vpop.permute.xlu1 %9568  ;;  %20971 = vmatmul.mubr.msk.f32.vlgmr.msra.gmra.mxu0 %vm464_vm2, %v20959_v5  ;;  %v8742_v48 = vpop.permute.xlu0 %8741  ;;  %20976 = vmatprep.subr.msk.mxu0 %vm468_vm1, %v9154_v22  ;;  %v9157_v22 = vcombine.high %v9145_v59, %v9145_v59  ;;  %27210 = vst [vmem:[#allocation24_spill] sm:$0xff] %v23816_v17 }
 0x234   : > { %v8753_v7 = vsel %vm8743_vm12, %v8740_v14, %v8742_v48  ;;  %20977 = vmatpush1.msk.msra.mxu0 %vm468_vm1, %v9142_v63  ;;  %9246 = vmatprep.mubr.f32.mxu0 %v27199_v47  ;;  %v9158_v48 = vcombine.high %v9146_v4, %v9146_v4 }
 0x235   : > { %20972 = vmatprep.subr.msk.mxu1 %vm468_vm1, %v8753_v7  ;;  %20982 = vmatprep.subr.msk.mxu0 %vm468_vm1, %v9156_v61 }
 0x236   : > { %20973 = vmatpush1.msk.msra.mxu1 %vm468_vm1, %v8752_v13 }
 0x237   : > { %v9567_v63 = vpop.permute.xlu1 %9566  ;;  %20974 = vmatmul.mubr.msk.f32.vlgmr.msra.gmra.mxu1 %vm464_vm2, %v20959_v5  ;;  %20978 = vmatmul.mubr.msk.f32.vlgmr.msra.gmra.mxu0 %vm464_vm2, %v20975_v21  ;;  %v9571_v9 = vpop.permute.xlu0 %9570 }
 0x238   : > { %20979 = vmatprep.subr.msk.mxu1 %vm468_vm1, %v9155_v6  ;;  %9317 = vmatprep.mubr.f32.mxu1 %v27199_v47  ;;  %v5323_v14 = vpop.f32.mrf.mxu1 }
 0x239   : > { %20980 = vmatpush1.msk.msra.mxu1 %vm468_vm1, %v9143_v50  ;;  %20983 = vmatpush1.msk.msra.mxu0 %vm468_vm1, %v9144_v8  ;;  %v23821_v7 = vadd.f32 %v5323_v14, %v23754_v58  ;;  %v9589_v50 = vsel %vm453_vm0, %v9569_v36, %v9571_v9 }
 0x23a   : > { %9388 = vmatprep.mubr.f32.mxu0 %v27199_v47  ;;  %20985 = vmatprep.subr.msk.mxu1 %vm468_vm1, %v9157_v22  ;;  %v23831_v58 = vpop.f32.mrf.mxu1 }
 0x23b   : > { %v9575_v5 = vpop.permute.xlu1 %9574  ;;  %20981 = vmatmul.mubr.msk.f32.vlgmr.msra.gmra.mxu1 %vm464_vm2, %v20975_v21  ;;  %20984 = vmatmul.mubr.msk.f32.vlgmr.msra.gmra.mxu0 %vm464_vm2, %v20975_v21  ;;  %v9573_v61 = vpop.permute.xlu0 %9572 }
 0x23c   : > { %20986 = vmatpush1.msk.msra.mxu1 %vm468_vm1, %v9145_v59  ;;  %20988 = vmatprep.subr.msk.mxu0 %vm468_vm1, %v9158_v48  ;;  %v9591_v8 = vsel %vm453_vm0, %v9573_v61, %v9575_v5  ;;  %v5394_v6 = vpop.f32.mrf.mxu0  ;;  %v9588_v59 = vsel %vm453_vm0, %v9567_v63, %v9569_v36  ;;  %v9590_v14 = vsel %vm453_vm0, %v9571_v9, %v9573_v61 }
 0x23d   : > { %20989 = vmatpush1.msk.msra.mxu0 %vm468_vm1, %v9146_v4  ;;  %20992 = vmatprep.subr.msk.mxu1 %vm468_vm1, %v9589_v50  ;;  %v23836_v13 = vadd.f32 %v5394_v6, %v23763_v16  ;;  %v20991_v4 = vld [vmem:[%s27194_s1 + $0xa8] sm:$0x3f] }
 0x23e   : > { %20995 = vmatprep.subr.msk.mxu0 %vm468_vm1, %v9591_v8  ;;  %9459 = vmatprep.mubr.f32.mxu1 %v27199_v47  ;;  %v23850_v36 = vpop.f32.mrf.mxu0 }
 0x23f   : > { %9530 = vmatprep.mubr.f32.mxu0 %v27199_v47  ;;  %v9579_v22 = vpop.permute.xlu1 %9578  ;;  %20987 = vmatmul.mubr.msk.f32.vlgmr.msra.gmra.mxu1 %vm464_vm2, %v20975_v21  ;;  %v9577_v48 = vpop.permute.xlu0 %9576  ;;  %27211 = vst [vmem:[#allocation25_spill] sm:$0xff] %v23850_v36 }
 0x240   : > { %20990 = vmatmul.mubr.msk.f32.vlgmr.msra.gmra.mxu0 %vm464_vm2, %v20975_v21  ;;  %20993 = vmatpush1.msk.msra.mxu1 %vm468_vm1, %v9588_v59  ;;  %v9593_v16 = vsel %vm453_vm0, %v9577_v48, %v9579_v22  ;;  %v5465_v50 = vpop.f32.mrf.mxu1  ;;  %v9592_v21 = vsel %vm453_vm0, %v9575_v5, %v9577_v48 }
 0x241   : > { %20996 = vmatpush1.msk.msra.mxu0 %vm468_vm1, %v9590_v14  ;;  %20998 = vmatprep.subr.msk.mxu1 %vm468_vm1, %v9593_v16  ;;  %v5616_v63 = vadd.f32 %v5465_v50, %v23772_v10  ;;  %v11303_v16 = vld [vmem:[%s27155_s2] sm:$0x3f] }
 0x242   : > { %9685 = vmatprep.mubr.f32.mxu1 %v27199_v47  ;;  %9756 = vmatprep.mubr.f32.mxu0 %v27199_v47  ;;  %v23863_v59 = vpop.f32.mrf.mxu1 }
 0x243   : > { %v9583_v9 = vpop.permute.xlu1 %9582  ;;  %20994 = vmatmul.mubr.msk.f32.vlgmr.msra.gmra.mxu1 %vm464_vm2, %v20991_v4  ;;  %v9581_v61 = vpop.permute.xlu0 %9580  ;;  %27212 = vst [vmem:[#allocation26_spill] sm:$0xff] %v23863_v59 }
 0x244   : > { %20997 = vmatmul.mubr.msk.f32.vlgmr.msra.gmra.mxu0 %vm464_vm2, %v20991_v4  ;;  %20999 = vmatpush1.msk.msra.mxu1 %vm468_vm1, %v9592_v21  ;;  %v9594_v8 = vsel %vm453_vm0, %v9579_v22, %v9581_v61  ;;  %v9595_v6 = vsel %vm453_vm0, %v9581_v61, %v9583_v9  ;;  %v5536_v10 = vpop.f32.mrf.mxu0  ;;  %v22303_v22 = vmov 0  }
 0x245   : > { %21001 = vmatprep.subr.msk.mxu0 %vm468_vm1, %v9595_v6  ;;  %9827 = vmatprep.mubr.f32.mxu1 %v27199_v47  ;;  %v5618_v5 = vadd.f32 %v5536_v10, %v23783_v43 }
 0x246   : > { %21002 = vmatpush1.msk.msra.mxu0 %vm468_vm1, %v9594_v8  ;;  %9898 = vmatprep.mubr.f32.mxu0 %v27199_v47  ;;  %v23878_v61 = vpop.f32.mrf.mxu0 }
 0x247   : > { %v9587_v48 = vpop.permute.xlu1 %9586  ;;  %21000 = vmatmul.mubr.msk.f32.vlgmr.msra.gmra.mxu1 %vm464_vm2, %v20991_v4  ;;  %v9585_v14 = vpop.permute.xlu0 %9584  ;;  %22038 = vset.pattern.permute.xlu1 %v22303_v22  ;;  %27213 = vst [vmem:[#allocation27_spill] sm:$0xff] %v23878_v61 }
 0x248   : > { %21003 = vmatmul.mubr.msk.f32.vlgmr.msra.gmra.mxu0 %vm464_vm2, %v20991_v4  ;;  %v9596_v50 = vsel %vm453_vm0, %v9583_v9, %v9585_v14  ;;  %v9597_v43 = vsel %vm453_vm0, %v9585_v14, %v9587_v48  ;;  %9969 = vmatprep.mubr.f32.mxu1 %v27199_v47  ;;  %v5607_v21 = vpop.f32.mrf.mxu1 }
 0x249   : > { %21004 = vmatprep.subr.msk.mxu1 %vm468_vm1, %v9597_v43  ;;  %10124 = vmatprep.mubr.f32.mxu0 %v27199_v47  ;;  %v5620_v8 = vadd.f32 %v5607_v21, %v23793_v41 }
 0x24a   : > { %21005 = vmatpush1.msk.msra.mxu1 %vm468_vm1, %v9596_v50  ;;  %11306 = vperm.xlu1 %22038, %v11303_v16   ;;  %v23887_v48 = vpop.f32.mrf.mxu1  ;;  %v21007_v16 = vld [vmem:[%s27194_s1 + $0xb0] sm:$0x3f] }
 0x24b   : > { %v10010_v6 = vpop.permute.xlu1 %10009  ;;  %21006 = vmatmul.mubr.msk.f32.vlgmr.msra.gmra.mxu1 %vm464_vm2, %v20991_v4  ;;  %v10008_v9 = vpop.permute.xlu0 %10007  ;;  %22039 = vset.pattern.permute.xlu0 %v22303_v22  ;;  %27214 = vst [vmem:[#allocation28_spill] sm:$0xff] %v23887_v48 }
 0x24c   : > { %v10028_v10 = vsel %vm1263_vm3, %v10008_v9, %v10010_v6  ;;  %10195 = vmatprep.mubr.f32.mxu1 %v27199_v47  ;;  %v5763_v14 = vpop.f32.mrf.mxu0 }
 0x24d   : > { %21008 = vmatprep.subr.msk.mxu0 %vm468_vm1, %v10028_v10  ;;  %v6052_v43 = vadd.f32 %v5763_v14, %v23821_v7 }
 0x24e   : > { %v23895_v50 = vpop.f32.mrf.mxu0 }
 0x24f   : > { %v10012_v41 = vpop.permute.xlu1 %10011  ;;  %v10006_v21 = vpop.permute.xlu0 %10005 }
 0x250   : > { %v10027_v4 = vsel %vm1263_vm3, %v10006_v21, %v10008_v9  ;;  %v5834_v22 = vpop.f32.mrf.mxu1  ;;  %v10029_v9 = vsel %vm1263_vm3, %v10010_v6, %v10012_v41 }
 0x251   : > { %21009 = vmatpush1.msk.msra.mxu0 %vm468_vm1, %v10027_v4  ;;  %v6054_v48 = vadd.f32 %v5834_v22, %v23836_v13 }
 0x252   : > { %21010 = vmatmul.mubr.msk.f32.vlgmr.msra.gmra.mxu0 %vm464_vm2, %v21007_v16  ;;  %v23902_v14 = vpop.f32.mrf.mxu1 }
 0x253   : > { %v10016_v10 = vpop.permute.xlu1 %10015  ;;  %v10014_v61 = vpop.permute.xlu0 %10013  ;;  %10266 = vmatprep.mubr.f32.mxu0 %v27199_v47  ;;  %27215 = vst [vmem:[#allocation29_spill] sm:$0xff] %v23902_v14 }
 0x254   : > { %v10030_v7 = vsel %vm1263_vm3, %v10012_v41, %v10014_v61  ;;  %v5905_v59 = vpop.f32.mrf.mxu0  ;;  %v10031_v14 = vsel %vm1263_vm3, %v10014_v61, %v10016_v10 }
 0x255   : > { %21011 = vmatprep.subr.msk.mxu1 %vm468_vm1, %v10030_v7  ;;  %v6056_v21 = vadd.f32 %v5905_v59, %v5616_v63 }
 0x256   : > { %21012 = vmatpush1.msk.msra.mxu1 %vm468_vm1, %v10029_v9  ;;  %v23910_v32 = vpop.f32.mrf.mxu0 }
 0x257   : > { %v10020_v4 = vpop.permute.xlu1 %10019  ;;  %21013 = vmatmul.mubr.msk.f32.vlgmr.msra.gmra.mxu1 %vm464_vm2, %v21007_v16  ;;  %v10018_v13 = vpop.permute.xlu0 %10017  ;;  %27216 = vst [vmem:[#allocation30_spill] sm:$0xff] %v23910_v32 }
 0x258   : > { %v10032_v22 = vsel %vm1263_vm3, %v10016_v10, %v10018_v13  ;;  %10337 = vmatprep.mubr.f32.mxu1 %v27199_v47  ;;  %v5976_v17 = vpop.f32.mrf.mxu1  ;;  %v10033_v9 = vsel %vm1263_vm3, %v10018_v13, %v10020_v4 }
 0x259   : > { %21014 = vmatprep.subr.msk.mxu0 %vm468_vm1, %v10032_v22  ;;  %v6058_v6 = vadd.f32 %v5976_v17, %v5618_v5 }
 0x25a   : > { %21015 = vmatpush1.msk.msra.mxu0 %vm468_vm1, %v10031_v14  ;;  %v23925_v10 = vpop.f32.mrf.mxu1 }
 0x25b   : > { %v10024_v63 = vpop.permute.xlu1 %10023  ;;  %21016 = vmatmul.mubr.msk.f32.vlgmr.msra.gmra.mxu0 %vm464_vm2, %v21007_v16  ;;  %v10022_v59 = vpop.permute.xlu0 %10021  ;;  %27217 = vst [vmem:[#allocation31_spill] sm:$0xff] %v23925_v10 }
 0x25c   : > { %v10034_v41 = vsel %vm1263_vm3, %v10020_v4, %v10022_v59  ;;  %10408 = vmatprep.mubr.f32.mxu0 %v27199_v47  ;;  %v6047_v7 = vpop.f32.mrf.mxu0  ;;  %v10035_v14 = vsel %vm1263_vm3, %v10022_v59, %v10024_v63 }
 0x25d   : > { %21017 = vmatprep.subr.msk.mxu1 %vm468_vm1, %v10034_v41  ;;  %v23920_v32 = vadd.f32 %v6047_v7, %v5620_v8 }
 0x25e   : > { %21018 = vmatpush1.msk.msra.mxu1 %vm468_vm1, %v10033_v9  ;;  %v23934_v7 = vpop.f32.mrf.mxu0  ;;  %v21023_v9 = vld [vmem:[%s27194_s1 + $0xb8] sm:$0x3f] }
 0x25f   : > { %v10447_v17 = vpop.permute.xlu1 %10446  ;;  %21019 = vmatmul.mubr.msk.f32.vlgmr.msra.gmra.mxu1 %vm464_vm2, %v21007_v16  ;;  %v10026_v5 = vpop.permute.xlu0 %10025  ;;  %27218 = vst [vmem:[#allocation32_spill] sm:$0xff] %v23934_v7 }
 0x260   : > { %v10036_v61 = vsel %vm1263_vm3, %v10024_v63, %v10026_v5  ;;  %10563 = vmatprep.mubr.f32.mxu1 %v27199_v47 }
 0x261   : > { %21020 = vmatprep.subr.msk.mxu0 %vm468_vm1, %v10036_v61 }
 0x262   : > { %21021 = vmatpush1.msk.msra.mxu0 %vm468_vm1, %v10035_v14 }
 0x263   : > { %v10445_v8 = vpop.permute.xlu1 %10444  ;;  %21022 = vmatmul.mubr.msk.f32.vlgmr.msra.gmra.mxu0 %vm464_vm2, %v21007_v16  ;;  %v10449_v4 = vpop.permute.xlu0 %10448 }
 0x264   : > { %v10466_v13 = vsel %vm1703_vm4, %v10445_v8, %v10447_v17  ;;  %v6203_v22 = vpop.f32.mrf.mxu1  ;;  %v10467_v41 = vsel %vm1703_vm4, %v10447_v17, %v10449_v4  ;;  %10634 = vmatprep.mubr.f32.mxu0 %v27199_v47 }
 0x265   : > { %v6492_v63 = vadd.f32 %v6203_v22, %v6052_v43  ;;  %21024 = vmatprep.subr.msk.mxu1 %vm468_vm1, %v10467_v41 }
 0x266   : > { %21025 = vmatpush1.msk.msra.mxu1 %vm468_vm1, %v10466_v13  ;;  %v23947_v8 = vpop.f32.mrf.mxu1 }
 0x267   : > { %v10453_v16 = vpop.permute.xlu1 %10452  ;;  %21026 = vmatmul.mubr.msk.f32.vlgmr.msra.gmra.mxu1 %vm464_vm2, %v21023_v9  ;;  %v10451_v59 = vpop.permute.xlu0 %10450  ;;  %27219 = vst [vmem:[#allocation33_spill] sm:$0xff] %v23947_v8 }
 0x268   : > { %v10468_v5 = vsel %vm1703_vm4, %v10449_v4, %v10451_v59  ;;  %v6274_v17 = vpop.f32.mrf.mxu0  ;;  %v10469_v61 = vsel %vm1703_vm4, %v10451_v59, %v10453_v16  ;;  %10705 = vmatprep.mubr.f32.mxu1 %v27199_v47 }
 0x269   : > { %v6494_v14 = vadd.f32 %v6274_v17, %v6054_v48  ;;  %21027 = vmatprep.subr.msk.mxu0 %vm468_vm1, %v10469_v61 }
 0x26a   : > { %21028 = vmatpush1.msk.msra.mxu0 %vm468_vm1, %v10468_v5  ;;  %v23955_v48 = vpop.f32.mrf.mxu0 }
 0x26b   : > { %v10457_v43 = vpop.permute.xlu1 %10456  ;;  %21029 = vmatmul.mubr.msk.f32.vlgmr.msra.gmra.mxu0 %vm464_vm2, %v21023_v9  ;;  %v10455_v13 = vpop.permute.xlu0 %10454  ;;  %27220 = vst [vmem:[#allocation34_spill] sm:$0xff] %v23955_v48 }
 0x26c   : > { %v6345_v22 = vpop.f32.mrf.mxu1  ;;  %v10470_v41 = vsel %vm1703_vm4, %v10453_v16, %v10455_v13  ;;  %v10471_v4 = vsel %vm1703_vm4, %v10455_v13, %v10457_v43  ;;  %10776 = vmatprep.mubr.f32.mxu0 %v27199_v47 }
 0x26d   : > { %v6496_v59 = vadd.f32 %v6345_v22, %v6056_v21  ;;  %21030 = vmatprep.subr.msk.mxu1 %vm468_vm1, %v10471_v4 }
 0x26e   : > { %21031 = vmatpush1.msk.msra.mxu1 %vm468_vm1, %v10470_v41  ;;  %v23963_v21 = vpop.f32.mrf.mxu1 }
 0x26f   : > { %v10461_v17 = vpop.permute.xlu1 %10460  ;;  %21032 = vmatmul.mubr.msk.f32.vlgmr.msra.gmra.mxu1 %vm464_vm2, %v21023_v9  ;;  %v10459_v5 = vpop.permute.xlu0 %10458  ;;  %27221 = vst [vmem:[#allocation35_spill] sm:$0xff] %v23963_v21 }
 0x270   : > { %v6416_v61 = vpop.f32.mrf.mxu0  ;;  %v10472_v7 = vsel %vm1703_vm4, %v10457_v43, %v10459_v5  ;;  %v10473_v16 = vsel %vm1703_vm4, %v10459_v5, %v10461_v17  ;;  %10847 = vmatprep.mubr.f32.mxu1 %v27199_v47 }
 0x271   : > { %v6498_v13 = vadd.f32 %v6416_v61, %v6058_v6  ;;  %21033 = vmatprep.subr.msk.mxu0 %vm468_vm1, %v10473_v16 }
 0x272   : > { %21034 = vmatpush1.msk.msra.mxu0 %vm468_vm1, %v10472_v7  ;;  %v23972_v6 = vpop.f32.mrf.mxu0 }
 0x273   : > { %v10465_v22 = vpop.permute.xlu1 %10464  ;;  %21035 = vmatmul.mubr.msk.f32.vlgmr.msra.gmra.mxu0 %vm464_vm2, %v21023_v9  ;;  %v10463_v41 = vpop.permute.xlu0 %10462  ;;  %27222 = vst [vmem:[#allocation36_spill] sm:$0xff] %v23972_v6 }
 0x274   : > { %v6487_v4 = vpop.f32.mrf.mxu1  ;;  %v10474_v10 = vsel %vm1703_vm4, %v10461_v17, %v10463_v41  ;;  %v10475_v43 = vsel %vm1703_vm4, %v10463_v41, %v10465_v22  ;;  %11002 = vmatprep.mubr.f32.mxu0 %v27199_v47  ;;  %vm12599_vm4 = vcmask 982016  }
 0x275   : > { %v6500_v5 = vadd.f32 %v6487_v4, %v23920_v32  ;;  %21036 = vmatprep.subr.msk.mxu1 %vm468_vm1, %v10475_v43 }
 0x276   : > { %21037 = vmatpush1.msk.msra.mxu1 %vm468_vm1, %v10474_v10  ;;  %v23979_v22 = vpop.f32.mrf.mxu1  ;;  %v21039_v10 = vld [vmem:[%s27194_s1 + $0xc0] sm:$0x3f] }
 0x277   : > { %v10888_v7 = vpop.permute.xlu1 %10887  ;;  %21038 = vmatmul.mubr.msk.f32.vlgmr.msra.gmra.mxu1 %vm464_vm2, %v21023_v9  ;;  %v10886_v61 = vpop.permute.xlu0 %10885  ;;  %27223 = vst [vmem:[#allocation37_spill] sm:$0xff] %v23979_v22 }
 0x278   : > { %v6643_v16 = vpop.f32.mrf.mxu0  ;;  %v10906_v21 = vsel %vm2143_vm5, %v10886_v61, %v10888_v7  ;;  %11073 = vmatprep.mubr.f32.mxu1 %v27199_v47 }
 0x279   : > { %v6932_v17 = vadd.f32 %v6643_v16, %v6492_v63  ;;  %21040 = vmatprep.subr.msk.mxu0 %vm468_vm1, %v10906_v21 }
 0x27a   : > { %v23986_v6 = vpop.f32.mrf.mxu0 }
 0x27b   : > { %v10890_v32 = vpop.permute.xlu1 %10889  ;;  %v10884_v41 = vpop.permute.xlu0 %10883  ;;  %27224 = vst [vmem:[#allocation38_spill] sm:$0xff] %v23986_v6 }
 0x27c   : > { %v6714_v4 = vpop.f32.mrf.mxu1  ;;  %v10905_v9 = vsel %vm2143_vm5, %v10884_v41, %v10886_v61  ;;  %v10907_v48 = vsel %vm2143_vm5, %v10888_v7, %v10890_v32 }
 0x27d   : > { %v6934_v43 = vadd.f32 %v6714_v4, %v6494_v14  ;;  %21041 = vmatpush1.msk.msra.mxu0 %vm468_vm1, %v10905_v9 }
 0x27e   : > { %21042 = vmatmul.mubr.msk.f32.vlgmr.msra.gmra.mxu0 %vm464_vm2, %v21039_v10  ;;  %v23993_v61 = vpop.f32.mrf.mxu1 }
 0x27f   : > { %v10894_v63 = vpop.permute.xlu1 %10893  ;;  %v10892_v21 = vpop.permute.xlu0 %10891  ;;  %11144 = vmatprep.mubr.f32.mxu0 %v27199_v47  ;;  %27225 = vst [vmem:[#allocation39_spill] sm:$0xff] %v23993_v61 }
 0x280   : > { %v6785_v16 = vpop.f32.mrf.mxu0  ;;  %v10908_v22 = vsel %vm2143_vm5, %v10890_v32, %v10892_v21  ;;  %v10909_v6 = vsel %vm2143_vm5, %v10892_v21, %v10894_v63 }
 0x281   : > { %v6936_v8 = vadd.f32 %v6785_v16, %v6496_v59  ;;  %21043 = vmatprep.subr.msk.mxu1 %vm468_vm1, %v10908_v22 }
 0x282   : > { %21044 = vmatpush1.msk.msra.mxu1 %vm468_vm1, %v10907_v48  ;;  %v24001_v59 = vpop.f32.mrf.mxu0 }
 0x283   : > { %21045 = vmatmul.mubr.msk.f32.vlgmr.msra.gmra.mxu1 %vm464_vm2, %v21039_v10  ;;  %v10896_v14 = vpop.permute.xlu0 %10895  ;;  %v10898_v41 = vpop.permute.xlu1 %10897 }
 0x284   : > { %v6856_v4 = vpop.f32.mrf.mxu1  ;;  %v10910_v9 = vsel %vm2143_vm5, %v10894_v63, %v10896_v14  ;;  %11215 = vmatprep.mubr.f32.mxu1 %v27199_v47  ;;  %v10911_v16 = vsel %vm2143_vm5, %v10896_v14, %v10898_v41 }
 0x285   : > { %v6938_v36 = vadd.f32 %v6856_v4, %v6498_v13  ;;  %21046 = vmatprep.subr.msk.mxu0 %vm468_vm1, %v10910_v9 }
 0x286   : > { %21047 = vmatpush1.msk.msra.mxu0 %vm468_vm1, %v10909_v6  ;;  %v24014_v21 = vpop.f32.mrf.mxu1 }
 0x287   : > { %21048 = vmatmul.mubr.msk.f32.vlgmr.msra.gmra.mxu0 %vm464_vm2, %v21039_v10  ;;  %v10900_v48 = vpop.permute.xlu0 %10899  ;;  %27226 = vst [vmem:[#allocation40_spill] sm:$0xff] %v24014_v21 }
 0x288   : > { %v6927_v7 = vpop.f32.mrf.mxu0  ;;  %v10912_v22 = vsel %vm2143_vm5, %v10898_v41, %v10900_v48  ;;  %v10902_v32 = vpop.permute.xlu1 %10901  ;;  %11286 = vmatprep.mubr.f32.mxu0 %v27199_v47 }
 0x289   : > { %v6940_v61 = vadd.f32 %v6927_v7, %v6500_v5  ;;  %21049 = vmatprep.subr.msk.mxu1 %vm468_vm1, %v10912_v22  ;;  %v10913_v13 = vsel %vm2143_vm5, %v10900_v48, %v10902_v32 }
 0x28a   : > { %21050 = vmatpush1.msk.msra.mxu1 %vm468_vm1, %v10911_v16  ;;  %v24020_v41 = vpop.f32.mrf.mxu0 }
 0x28b   : > { %21051 = vmatmul.mubr.msk.f32.vlgmr.msra.gmra.mxu1 %vm464_vm2, %v21039_v10  ;;  %v10904_v6 = vpop.permute.xlu0 %10903  ;;  %27227 = vst [vmem:[#allocation41_spill] sm:$0xff] %v24020_v41 }
 0x28c   : > { %v10914_v63 = vsel %vm2143_vm5, %v10902_v32, %v10904_v6  ;;  %11597 = vmatprep.mubr.f32.mxu1 %v27199_v47 }
 0x28d   : > { %21052 = vmatprep.subr.msk.mxu0 %vm468_vm1, %v10914_v63 }
 0x28e   : > { %21053 = vmatpush1.msk.msra.mxu0 %vm468_vm1, %v10913_v13  ;;  %vm11513_vm1 = vcmask 48128  }
 0x28f   : > { %v7083_v5 = vpop.f32.mrf.mxu1  ;;  %21054 = vmatmul.mubr.msk.f32.vlgmr.msra.gmra.mxu0 %vm464_vm2, %v21039_v10  ;;  %vm12314_vm2 = vcmask 998400  }
 0x290   : > { %v7372_v14 = vadd.f32 %v7083_v5, %v6932_v17  ;;  %11674 = vmatprep.mubr.f32.mxu0 %v27199_v47 }
 0x291   : > { %v24022_v48 = vpop.f32.mrf.mxu1 }
 0x294   : > { %v7154_v4 = vpop.f32.mrf.mxu0 }
 0x295   : > { %v7374_v9 = vadd.f32 %v7154_v4, %v6934_v43 }
 0x296   : > { %v24024_v32 = vpop.f32.mrf.mxu0 }
 0x298   : > { %v7225_v7 = vpop.f32.mrf.mxu1 }
 0x299   : > { %v7376_v22 = vadd.f32 %v7225_v7, %v6936_v8 }
 0x29a   : > { %v24026_v63 = vpop.f32.mrf.mxu1 }
 0x29b   : > { %27228 = vst [vmem:[#allocation42_spill] sm:$0xff] %v24026_v63 }
 0x29c   : > { %v7296_v16 = vpop.f32.mrf.mxu0 }
 0x29d   : > { %v7378_v6 = vadd.f32 %v7296_v16, %v6938_v36 }
 0x29e   : > { %v24028_v10 = vpop.f32.mrf.mxu0 }
 0x29f   : > { %27229 = vst [vmem:[#allocation43_spill] sm:$0xff] %v24028_v10 }
 0x2a0   : > { %v7367_v13 = vpop.f32.mrf.mxu1 }
 0x2a1   : > { %v7380_v21 = vadd.f32 %v7367_v13, %v6940_v61 }
 0x2a2   : > { %v24032_v47 = vpop.f32.mrf.mxu1 }
 0x2a3   : > { %27230 = vst [vmem:[#allocation44_spill] sm:$0xff] %v24032_v47 }
 0x2a4   : > { %v7523_v17 = vpop.f32.mrf.mxu0 }
 0x2a5   : > { %v24030_v5 = vadd.f32 %v7523_v17, %v7372_v14 }
 0x2a6   : > { %v24036_v41 = vpop.f32.mrf.mxu0 }
 0x2a8   : > { %v7594_v43 = vpop.f32.mrf.mxu1 }
 0x2a9   : > { %v24034_v4 = vadd.f32 %v7594_v43, %v7374_v9 }
 0x2aa   : > { %v24040_v36 = vpop.f32.mrf.mxu1 }
 0x2ac   : > { %v7665_v8 = vpop.f32.mrf.mxu0 }
 0x2ad   : > { %v24038_v7 = vadd.f32 %v7665_v8, %v7376_v22 }
 0x2ae   : > { %v24044_v61 = vpop.f32.mrf.mxu0 }
 0x2af   : > { %27231 = vst [vmem:[#allocation45_spill] sm:$0xff] %v24038_v7  ;;  %27233 = vst [vmem:[#allocation47_spill] sm:$0xff] %v24044_v61 }
 0x2b0   : > { %v7736_v16 = vpop.f32.mrf.mxu1 }
 0x2b1   : > { %v24042_v63 = vadd.f32 %v7736_v16, %v7378_v6 }
 0x2b2   : > { %v24048_v17 = vpop.f32.mrf.mxu1 }
 0x2b3   : > { %27232 = vst [vmem:[#allocation46_spill] sm:$0xff] %v24042_v63  ;;  %27235 = vst [vmem:[#allocation49_spill] sm:$0xff] %v24048_v17 }
 0x2b4   : > { %v7807_v13 = vpop.f32.mrf.mxu0 }
 0x2b5   : > { %v24046_v14 = vadd.f32 %v7807_v13, %v7380_v21 }
 0x2b6   : > { %v24050_v47 = vpop.f32.mrf.mxu0 }
 0x2b7   : > { %27234 = vst [vmem:[#allocation48_spill] sm:$0xff] %v24046_v14  ;;  %27236 = vst [vmem:[#allocation50_spill] sm:$0xff] %v24050_v47 }
 0x2bb   : > { %v24052_v9 = vpop.f32.mrf.mxu1 }
 0x2bd   : > { %v24056_v22 = vpop.f32.mrf.mxu1 }
 0x2c0   : > { %v24054_v43 = vpop.f32.mrf.mxu0 }
 0x2c1   : > { %27237 = vst [vmem:[#allocation51_spill] sm:$0xff] %v24054_v43 }
 0x2c2   : > { %v24058_v8 = vpop.f32.mrf.mxu0 }
 0x2c3   : > { %27238 = vst [vmem:[#allocation52_spill] sm:$0xff] %v24058_v8 }
 0x2c4   : > { %v24060_v7 = vpop.f32.mrf.mxu1 }
 0x2c5   : > { %27239 = vst [vmem:[#allocation53_spill] sm:$0xff] %v24060_v7 }
 0x2c6   : > { %v24064_v16 = vpop.f32.mrf.mxu1 }
 0x2c7   : > { %27241 = vst [vmem:[#allocation55_spill] sm:$0xff] %v24064_v16 }
 0x2c8   : > { %v24062_v6 = vpop.f32.mrf.mxu0 }
 0x2c9   : > { %27240 = vst [vmem:[#allocation54_spill] sm:$0xff] %v24062_v6 }
 0x2ca   : > { %v24066_v21 = vpop.f32.mrf.mxu0 }
 0x2cb   : > { %27242 = vst [vmem:[#allocation56_spill] sm:$0xff] %v24066_v21 }
 0x2cc   : > { %v24068_v13 = vpop.f32.mrf.mxu1 }
 0x2cd   : > { %27243 = vst [vmem:[#allocation57_spill] sm:$0xff] %v24068_v13 }
 0x2ce   : > { %v24072_v63 = vpop.f32.mrf.mxu1 }
 0x2cf   : > { %27244 = vst [vmem:[#allocation58_spill] sm:$0xff] %v24072_v63 }
 0x2d0   : > { %v24070_v14 = vpop.f32.mrf.mxu0 }
 0x2d2   : > { %v24074_v47 = vpop.f32.mrf.mxu0 }
 0x2d4   : > { %v24076_v17 = vpop.f32.mrf.mxu1 }
 0x2d5   : > { %27245 = vst [vmem:[#allocation59_spill] sm:$0xff] %v24076_v17 }
 0x2d6   : > { %v24080_v8 = vpop.f32.mrf.mxu1 }
 0x2d7   : > { %v24078_v61 = vpop.f32.mrf.mxu0  ;;  %27247 = vst [vmem:[#allocation61_spill] sm:$0xff] %v24080_v8 }
 0x2d8   : > { %27246 = vst [vmem:[#allocation60_spill] sm:$0xff] %v24078_v61 }
 0x2d9   : > { %v24082_v7 = vpop.f32.mrf.mxu0 }
 0x2da   : > { %27248 = vst [vmem:[#allocation62_spill] sm:$0xff] %v24082_v7 }
 0x2db   : > { %v24084_v6 = vpop.f32.mrf.mxu1 }
 0x2dc   : > { %27249 = vst [vmem:[#allocation63_spill] sm:$0xff] %v24084_v6 }
 0x2dd   : > { %v24088_v21 = vpop.f32.mrf.mxu1 }
 0x2de   : > { %27251 = vst [vmem:[#allocation65_spill] sm:$0xff] %v24088_v21 }
 0x2df   : > { %v24086_v16 = vpop.f32.mrf.mxu0 }
 0x2e0   : > { %27250 = vst [vmem:[#allocation64_spill] sm:$0xff] %v24086_v16 }
 0x2e1   : > { %v24090_v13 = vpop.f32.mrf.mxu0 }
 0x2e2   : > { %27252 = vst [vmem:[#allocation66_spill] sm:$0xff] %v24090_v13  ;;  %v936_v13 = vadd.f32 %v23120_v39, %v23093_v20  ;;  %v1078_v20 = vadd.f32 %v23135_v3, %v23105_v28 }
 0x2e6   : > { %v24092_v10 = vpop.f32.mrf.mxu1 }
 0x2e8   : > { %v24096_v43 = vpop.f32.mrf.mxu1 }
 0x2e9   : > { %27254 = vst [vmem:[#allocation68_spill] sm:$0xff] %v24096_v43 }
 0x2eb   : > { %v24094_v63 = vpop.f32.mrf.mxu0 }
 0x2ec   : > { %27253 = vst [vmem:[#allocation67_spill] sm:$0xff] %v24094_v63 }
 0x2ed   : > { %v24098_v17 = vpop.f32.mrf.mxu0 }
 0x2ee   : > { %27255 = vst [vmem:[#allocation69_spill] sm:$0xff] %v24098_v17  ;;  %v1653_v17 = vadd.f32 %v23159_v11, %v936_v13  ;;  %v1220_v11 = vadd.f32 %v23147_v52, %v23118_v38 }
 0x2ef   : > { %v24100_v61 = vpop.f32.mrf.mxu1 }
 0x2f0   : > { %27256 = vst [vmem:[#allocation70_spill] sm:$0xff] %v24100_v61  ;;  %v1661_v3 = vadd.f32 %v23191_v40, %v1220_v11 }
 0x2f1   : > { %v24104_v7 = vpop.f32.mrf.mxu1 }
 0x2f2   : > { %27258 = vst [vmem:[#allocation72_spill] sm:$0xff] %v24104_v7 }
 0x2f3   : > { %v24102_v8 = vpop.f32.mrf.mxu0 }
 0x2f4   : > { %27257 = vst [vmem:[#allocation71_spill] sm:$0xff] %v24102_v8  ;;  %v1007_v8 = vadd.f32 %v23133_v0, %v23091_v19 }
 0x2f5   : > { %v24106_v6 = vpop.f32.mrf.mxu0 }
 0x2f6   : > { %27259 = vst [vmem:[#allocation73_spill] sm:$0xff] %v24106_v6  ;;  %v1655_v39 = vadd.f32 %v23161_v12, %v1007_v8 }
 0x2f7   : > { %v24108_v16 = vpop.f32.mrf.mxu1  ;;  %v24110_v21 = vpop.f32.mrf.mxu0 }
 0x2f8   : > { %27260 = vst [vmem:[#allocation74_spill] sm:$0xff] %v24108_v16  ;;  %v2093_v16 = vadd.f32 %v23206_v46, %v1653_v17  ;;  %v1657_v46 = vadd.f32 %v23173_v24, %v1078_v20  ;;  %v2095_v17 = vadd.f32 %v23225_v54, %v1655_v39  ;;  %v2101_v24 = vadd.f32 %v23269_v34, %v1661_v3  ;;  %v27264_v3 = vld [vmem:[#allocation11_spill] sm:$0xff] }
 0x2f9   : > { %v24114_v63 = vpop.f32.mrf.mxu1  ;;  %v24116_v43 = vpop.f32.mrf.mxu0 }
 0x2fa   : > { %27261 = vst [vmem:[#allocation75_spill] sm:$0xff] %v24114_v63  ;;  %v1149_v63 = vadd.f32 %v23145_v51, %v23107_v29  ;;  %v2533_v19 = vadd.f32 %v23283_v2, %v2093_v16  ;;  %v2097_v38 = vadd.f32 %v23239_v62, %v1657_v46  ;;  %v2535_v52 = vadd.f32 %v23299_v49, %v2095_v17  ;;  %v27262_v46 = vld [vmem:[#allocation12_spill] sm:$0xff]  ;;  %v27263_v17 = vld [vmem:[#allocation10_spill] sm:$0xff] }
 0x2fb   : > { %v24119_v61 = vpop.f32.mrf.mxu1  ;;  %v24123_v7 = vpop.f32.mrf.mxu0  ;;  %v2541_v62 = vadd.f32 %v23352_v42, %v2101_v24 }
 0x2fc   : > { %v1659_v28 = vadd.f32 %v23183_v31, %v1149_v63  ;;  %v2973_v29 = vadd.f32 %v23368_v55, %v2533_v19  ;;  %v2537_v40 = vadd.f32 %v23312_v60, %v2097_v38  ;;  %v2975_v55 = vadd.f32 %v23388_v45, %v2535_v52 }
 0x2fd   : > { %v24126_v6 = vpop.f32.mrf.mxu1  ;;  %v24135_v13 = vpop.f32.mrf.mxu0  ;;  %v2981_v60 = vadd.f32 %v23433_v57, %v2541_v62 }
 0x2fe   : > { %v2099_v2 = vadd.f32 %v23254_v23, %v1659_v28  ;;  %v3413_v31 = vadd.f32 %v23455_v26, %v2973_v29  ;;  %v2977_v34 = vadd.f32 %v23403_v33, %v2537_v40  ;;  %v3415_v26 = vadd.f32 %v23467_v25, %v2975_v55  ;;  %v27269_v40 = vld [vmem:[#allocation15_spill] sm:$0xff] }
 0x2ff   : > { %v24138_v0 = vpop.f32.mrf.mxu1  ;;  %v3421_v33 = vadd.f32 %v23525_v53, %v2981_v60  ;;  %v27266_v53 = vld [vmem:[#allocation13_spill] sm:$0xff] }
 0x300   : > { %v24144_v12 = vpop.f32.mrf.mxu0  ;;  %v2539_v63 = vadd.f32 %v23340_v35, %v2099_v2  ;;  %v3853_v23 = vadd.f32 %v23550_v30, %v3413_v31  ;;  %v3417_v42 = vadd.f32 %v23482_v37, %v2977_v34  ;;  %v3855_v30 = vadd.f32 %v23562_v44, %v3415_v26  ;;  %v27265_v44 = vld [vmem:[#allocation20_spill] sm:$0xff]  ;;  %v27268_v31 = vld [vmem:[#allocation14_spill] sm:$0xff]  ;;  %v27271_v26 = vld [vmem:[#allocation21_spill] sm:$0xff] }
 0x301   : > { %v24147_v51 = vpop.f32.mrf.mxu1  ;;  %v3861_v37 = vadd.f32 %v27264_v3, %v3421_v33  ;;  %v27267_v2 = vld [vmem:[#allocation16_spill] sm:$0xff] }
 0x302   : > { %v24153_v8 = vpop.f32.mrf.mxu0  ;;  %v2979_v20 = vadd.f32 %v23418_v56, %v2539_v63  ;;  %v4293_v35 = vadd.f32 %v23622_v18, %v3853_v23  ;;  %v3857_v57 = vadd.f32 %v23577_v15, %v3417_v42  ;;  %v4295_v18 = vadd.f32 %v27262_v46, %v3855_v30  ;;  %v27270_v23 = vld [vmem:[#allocation17_spill] sm:$0xff]  ;;  %v27273_v30 = vld [vmem:[#allocation19_spill] sm:$0xff]  ;;  %v27274_v46 = vld [vmem:[#allocation22_spill] sm:$0xff] }
 0x303   : > { %v24156_v54 = vpop.f32.mrf.mxu1  ;;  %v4301_v55 = vadd.f32 %v27269_v40, %v3861_v37  ;;  %v27277_v37 = vld [vmem:[#allocation24_spill] sm:$0xff]  ;;  %v27280_v40 = vld [vmem:[#allocation29_spill] sm:$0xff] }
 0x304   : > { %v24162_v16 = vpop.f32.mrf.mxu0  ;;  %v3419_v11 = vadd.f32 %v23504_v27, %v2979_v20  ;;  %v4733_v56 = vadd.f32 %v23707_v1, %v4293_v35  ;;  %v4297_v52 = vadd.f32 %v27266_v53, %v3857_v57  ;;  %v4735_v1 = vadd.f32 %v27267_v2, %v4295_v18  ;;  %v27272_v35 = vld [vmem:[#allocation18_spill] sm:$0xff]  ;;  %v27275_v18 = vld [vmem:[#allocation25_spill] sm:$0xff] }
 0x305   : > { %v24165_v49 = vpop.f32.mrf.mxu1 }
 0x306   : > { %v24171_v39 = vpop.f32.mrf.mxu0  ;;  %v3859_v28 = vadd.f32 %v27263_v17, %v3419_v11  ;;  %v5173_v27 = vadd.f32 %v27265_v44, %v4733_v56  ;;  %v4737_v34 = vadd.f32 %v27270_v23, %v4297_v52  ;;  %v5175_v20 = vadd.f32 %v27271_v26, %v4735_v1  ;;  %v27278_v52 = vld [vmem:[#allocation33_spill] sm:$0xff] }
 0x307   : > { %v24174_v45 = vpop.f32.mrf.mxu1  ;;  %v4741_v11 = vadd.f32 %v27273_v30, %v4301_v55 }
 0x308   : > { %v24180_v19 = vpop.f32.mrf.mxu0  ;;  %v4299_v15 = vadd.f32 %v27268_v31, %v3859_v28  ;;  %v5613_v63 = vadd.f32 %v23831_v58, %v5173_v27  ;;  %v5177_v58 = vadd.f32 %v27274_v46, %v4737_v34  ;;  %v5615_v17 = vadd.f32 %v27275_v18, %v5175_v20  ;;  %v27276_v28 = vld [vmem:[#allocation23_spill] sm:$0xff]  ;;  %v27279_v31 = vld [vmem:[#allocation26_spill] sm:$0xff]  ;;  %v27282_v34 = vld [vmem:[#allocation28_spill] sm:$0xff] }
 0x309   : > { %v24183_v25 = vpop.f32.mrf.mxu1  ;;  %v5181_v44 = vadd.f32 %v27277_v37, %v4741_v11  ;;  %v27283_v20 = vld [vmem:[#allocation38_spill] sm:$0xff]  ;;  %v27287_v37 = vld [vmem:[#allocation32_spill] sm:$0xff] }
 0x30a   : > { %v24189_v29 = vpop.f32.mrf.mxu0  ;;  %v4739_v42 = vadd.f32 %v27272_v35, %v4299_v15  ;;  %v6053_v57 = vadd.f32 %v23895_v50, %v5613_v63  ;;  %v5617_v15 = vadd.f32 %v27279_v31, %v5177_v58  ;;  %v6055_v50 = vadd.f32 %v27280_v40, %v5615_v17  ;;  %v27281_v63 = vld [vmem:[#allocation27_spill] sm:$0xff]  ;;  %v27284_v11 = vld [vmem:[#allocation30_spill] sm:$0xff] }
 0x30b   : > { %v24192_v38 = vpop.f32.mrf.mxu1  ;;  %v5621_v26 = vadd.f32 %v27282_v34, %v5181_v44  ;;  %v27285_v46 = vld [vmem:[#allocation34_spill] sm:$0xff]  ;;  %v27286_v58 = vld [vmem:[#allocation31_spill] sm:$0xff]  ;;  %v8252_v44 = vadd.f32 %v24052_v9, %v24030_v5  ;;  %v27292_v5 = vld [vmem:[#allocation40_spill] sm:$0xff] }
 0x30c   : > { %v5179_v3 = vadd.f32 %v27276_v28, %v4739_v42  ;;  %v6493_v2 = vadd.f32 %v27278_v52, %v6053_v57  ;;  %v6057_v57 = vadd.f32 %v27284_v11, %v5617_v15  ;;  %v6495_v18 = vadd.f32 %v27285_v46, %v6055_v50  ;;  %v27288_v31 = vld [vmem:[#allocation35_spill] sm:$0xff]  ;;  %v27290_v15 = vld [vmem:[#allocation36_spill] sm:$0xff]  ;;  %v27293_v11 = vld [vmem:[#allocation41_spill] sm:$0xff] }
 0x30d   : > { %v24201_v62 = vpop.f32.mrf.mxu1  ;;  %v6061_v52 = vadd.f32 %v27287_v37, %v5621_v26  ;;  %v27289_v40 = vld [vmem:[#allocation39_spill] sm:$0xff]  ;;  %v8692_v26 = vadd.f32 %v24070_v14, %v8252_v44  ;;  %v27297_v44 = vld [vmem:[#allocation44_spill] sm:$0xff] }
 0x30e   : > { %v5619_v23 = vadd.f32 %v27281_v63, %v5179_v3  ;;  %v6933_v35 = vadd.f32 %v27283_v20, %v6493_v2  ;;  %v6935_v63 = vadd.f32 %v27289_v40, %v6495_v18  ;;  %v27291_v20 = vld [vmem:[#allocation37_spill] sm:$0xff] }
 0x30f   : > { %v9132_v18 = vadd.f32 %v24092_v10, %v8692_v26  ;;  %v27299_v10 = vld [vmem:[#allocation47_spill] sm:$0xff] }
 0x310   : > { %v7373_v42 = vadd.f32 %v24022_v48, %v6933_v35  ;;  %v6059_v17 = vadd.f32 %v27286_v58, %v5619_v23  ;;  %v6497_v48 = vadd.f32 %v27288_v31, %v6057_v57  ;;  %v6501_v35 = vadd.f32 %v27291_v20, %v6061_v52 }
 0x312   : > { %v24196_v24 = vpop.f32.mrf.mxu0  ;;  %v7813_v3 = vadd.f32 %v24036_v41, %v7373_v42  ;;  %v6499_v50 = vadd.f32 %v27290_v15, %v6059_v17  ;;  %v6937_v41 = vadd.f32 %v24001_v59, %v6497_v48  ;;  %v7375_v42 = vadd.f32 %v24024_v32, %v6935_v63  ;;  %v27294_v17 = vld [vmem:[#allocation42_spill] sm:$0xff]  ;;  %v27296_v59 = vld [vmem:[#allocation43_spill] sm:$0xff]  ;;  %v27298_v48 = vld [vmem:[#allocation68_spill] sm:$0xff] }
 0x313   : > { %v6941_v57 = vadd.f32 %v27293_v11, %v6501_v35  ;;  %v27304_v11 = vld [vmem:[#allocation45_spill] sm:$0xff] }
 0x314   : > { %v24205_v60 = vpop.f32.mrf.mxu0  ;;  %v8253_v23 = vadd.f32 %v24056_v22, %v7813_v3  ;;  %v6939_v9 = vadd.f32 %v27292_v5, %v6499_v50  ;;  %v7377_v37 = vadd.f32 %v27294_v17, %v6937_v41  ;;  %v7815_v52 = vadd.f32 %v24040_v36, %v7375_v42  ;;  %v27295_v22 = vld [vmem:[#allocation51_spill] sm:$0xff]  ;;  %v27300_v50 = vld [vmem:[#allocation52_spill] sm:$0xff]  ;;  %v27303_v41 = vld [vmem:[#allocation50_spill] sm:$0xff] }
 0x315   : > { %v8254_v14 = vadd.f32 %v27295_v22, %v24034_v4  ;;  %v7381_v31 = vadd.f32 %v27297_v44, %v6941_v57  ;;  %v27301_v36 = vld [vmem:[#allocation59_spill] sm:$0xff]  ;;  %v27302_v4 = vld [vmem:[#allocation49_spill] sm:$0xff] }
 0x316   : > { %v8693_v46 = vadd.f32 %v24074_v47, %v8253_v23  ;;  %v7379_v32 = vadd.f32 %v27296_v59, %v6939_v9  ;;  %v9537_v47 = vadd.f32 %v24110_v21, %v9132_v18  ;;  %v7817_v15 = vadd.f32 %v27299_v10, %v7377_v37  ;;  %v27305_v21 = vld [vmem:[#allocation53_spill] sm:$0xff]  ;;  %v27310_v59 = vld [vmem:[#allocation54_spill] sm:$0xff] }
 0x317   : > { %v24209_v33 = vpop.f32.mrf.mxu1  ;;  %v8255_v20 = vadd.f32 %v27300_v50, %v7815_v52  ;;  %v8694_v35 = vadd.f32 %v27301_v36, %v8254_v14  ;;  %v7821_v42 = vadd.f32 %v27303_v41, %v7381_v31  ;;  %v8256_v57 = vadd.f32 %v27305_v21, %v27304_v11  ;;  %v27307_v17 = vld [vmem:[#allocation61_spill] sm:$0xff]  ;;  %v27308_v52 = vld [vmem:[#allocation67_spill] sm:$0xff]  ;;  %v27309_v14 = vld [vmem:[#allocation46_spill] sm:$0xff] }
 0x318   : > { %v9133_v40 = vadd.f32 %v27298_v48, %v8693_v46  ;;  %v7819_v26 = vadd.f32 %v27302_v4, %v7379_v32  ;;  %v9976_v9 = vadd.f32 %v24156_v54, %v9537_v47  ;;  %v27306_v46 = vld [vmem:[#allocation55_spill] sm:$0xff]  ;;  %v8258_v44 = vadd.f32 %v27310_v59, %v27309_v14  ;;  %v27311_v48 = vld [vmem:[#allocation56_spill] sm:$0xff]  ;;  %v27313_v47 = vld [vmem:[#allocation57_spill] sm:$0xff] }
 0x319   : > { %v24218_v27 = vpop.f32.mrf.mxu1  ;;  %v8257_v18 = vadd.f32 %v27306_v46, %v7817_v15  ;;  %v8695_v37 = vadd.f32 %v27307_v17, %v8255_v20  ;;  %v9134_v22 = vadd.f32 %v27308_v52, %v8694_v35  ;;  %v27312_v54 = vld [vmem:[#allocation48_spill] sm:$0xff]  ;;  %v27315_v15 = vld [vmem:[#allocation69_spill] sm:$0xff]  ;;  %v27316_v41 = vld [vmem:[#allocation58_spill] sm:$0xff] }
 0x31a   : > { %v9538_v5 = vadd.f32 %v24116_v43, %v9133_v40  ;;  %v8259_v32 = vadd.f32 %v27311_v48, %v7819_v26  ;;  %v10415_v43 = vadd.f32 %v24196_v24, %v9976_v9  ;;  %v8260_v10 = vadd.f32 %v27313_v47, %v27312_v54  ;;  %v27314_v50 = vld [vmem:[#allocation60_spill] sm:$0xff]  ;;  %v27317_v21 = vld [vmem:[#allocation62_spill] sm:$0xff]  ;;  %v27318_v9 = vld [vmem:[#allocation63_spill] sm:$0xff] }
 0x31b   : > { %v24211_v56 = vpop.f32.mrf.mxu0  ;;  %v8696_v36 = vadd.f32 %v27314_v50, %v8256_v57  ;;  %v9135_v4 = vadd.f32 %v27315_v15, %v8695_v37  ;;  %v9539_v20 = vadd.f32 %v24119_v61, %v9134_v22  ;;  %v8261_v11 = vadd.f32 %v27316_v41, %v7821_v42  ;;  %v27319_v17 = vld [vmem:[#allocation70_spill] sm:$0xff]  ;;  %v24305_v22 = vpop.permute.xlu1 %11306  ;;  %v27320_v14 = vld [vmem:[#allocation65_spill] sm:$0xff]  ;;  %v27321_v59 = vld [vmem:[#allocation64_spill] sm:$0xff] }
 0x31c   : > { %v9977_v31 = vadd.f32 %v24165_v49, %v9538_v5  ;;  %v8697_v26 = vadd.f32 %v27317_v21, %v8257_v18  ;;  %v8698_v46 = vadd.f32 %v27318_v9, %v8258_v44  ;;  %v8699_v42 = vadd.f32 %v27320_v14, %v8259_v32  ;;  %v27323_v47 = vld [vmem:[#allocation66_spill] sm:$0xff]  ;;  %v27324_v50 = vld [vmem:[#allocation71_spill] sm:$0xff] }
 0x31d   : > { %v24220_v53 = vpop.f32.mrf.mxu0  ;;  %v9136_v52 = vadd.f32 %v27319_v17, %v8696_v36  ;;  %v9540_v57 = vadd.f32 %v24126_v6, %v9135_v4  ;;  %v9978_v37 = vadd.f32 %v24162_v16, %v9539_v20  ;;  %v8700_v18 = vadd.f32 %v27321_v59, %v8260_v10  ;;  %v27325_v20 = vld [vmem:[#allocation73_spill] sm:$0xff] }
 0x31e   : > { %v10416_v49 = vadd.f32 %v24205_v60, %v9977_v31  ;;  %v8701_v16 = vadd.f32 %v27323_v47, %v8261_v11  ;;  %v9138_v36 = vadd.f32 %v27324_v50, %v8698_v46 }
 0x31f   : > { %v24223_v1 = vpop.f32.mrf.mxu1  ;;  %v9979_v44 = vadd.f32 %v24171_v39, %v9540_v57  ;;  %v10417_v54 = vadd.f32 %v24209_v33, %v9978_v37  ;;  %v9139_v33 = vadd.f32 %v27325_v20, %v8699_v42 }
 0x320   : > { %v9543_v41 = vadd.f32 %v24138_v0, %v9138_v36 }
 0x321   : > { %v24233_v30 = vpop.f32.mrf.mxu1 }
 0x323   : > { %v24227_v55 = vpop.f32.mrf.mxu0 }
 0x325   : > { %v24237_v28 = vpop.f32.mrf.mxu0 }
 0x327   : > { %v10565_v2 = vpop.f32.mrf.mxu1 }
 0x328   : > { %v10854_v5 = vadd.f32 %v10565_v2, %v10415_v43  ;;  %v27322_v2 = vld [vmem:[#allocation72_spill] sm:$0xff]  ;;  %v9541_v43 = vadd.f32 %v24123_v7, %v9136_v52  ;;  %v10418_v7 = vadd.f32 %v24218_v27, %v9979_v44  ;;  %v9544_v27 = vadd.f32 %v24147_v51, %v9139_v33 }
 0x329   : > { %v10567_v58 = vpop.f32.mrf.mxu1  ;;  %v9137_v31 = vadd.f32 %v27322_v2, %v8697_v26 }
 0x32a   : > { %v10855_v48 = vadd.f32 %v10567_v58, %v10416_v49  ;;  %v9980_v4 = vadd.f32 %v24174_v45, %v9541_v43  ;;  %v27326_v45 = vld [vmem:[#allocation74_spill] sm:$0xff]  ;;  %v9983_v14 = vadd.f32 %v24189_v29, %v9544_v27 }
 0x32b   : > { %v24246_v34 = vpop.f32.mrf.mxu0  ;;  %v9542_v58 = vadd.f32 %v24135_v13, %v9137_v31  ;;  %v9140_v46 = vadd.f32 %v27326_v45, %v8700_v18 }
 0x32c   : > { %v10856_v39 = vadd.f32 %v24246_v34, %v10417_v54  ;;  %v9982_v34 = vadd.f32 %v24180_v19, %v9543_v41 }
 0x32d   : > { %v24262_v3 = vpop.f32.mrf.mxu0  ;;  %v9981_v49 = vadd.f32 %v24183_v25, %v9542_v58 }
 0x32e   : > { %v10857_v13 = vadd.f32 %v24262_v3, %v10418_v7  ;;  %v9545_v3 = vadd.f32 %v24144_v12, %v9140_v46  ;;  %v10421_v51 = vadd.f32 %v24223_v1, %v9982_v34 }
 0x32f   : > { %v24268_v63 = vpop.f32.mrf.mxu1  ;;  %v10420_v0 = vadd.f32 %v24220_v53, %v9981_v49 }
 0x331   : > { %v10709_v40 = vpop.f32.mrf.mxu1 }
 0x332   : > { %v10859_v42 = vadd.f32 %v10709_v40, %v10420_v0 }
 0x333   : > { %v24273_v23 = vpop.f32.mrf.mxu0 }
 0x334   : > { %v10860_v12 = vadd.f32 %v24273_v23, %v10421_v51 }
 0x335   : > { %v24294_v35 = vpop.f32.mrf.mxu0 }
 0x337   : > { %v24299_v24 = vpop.f32.mrf.mxu1 }
 0x339   : > { %v24315_v15 = vpop.f32.mrf.mxu1 }
 0x33e   : > { %v11004_v61 = vpop.f32.mrf.mxu0 }
 0x33f   : > { %v11293_v60 = vadd.f32 %v11004_v61, %v10854_v5  ;;  %v10419_v5 = vadd.f32 %v24211_v56, %v9980_v4  ;;  %v27327_v56 = vld [vmem:[#allocation75_spill] sm:$0xff] }
 0x340   : > { %v11006_v6 = vpop.f32.mrf.mxu0  ;;  %v9141_v61 = vadd.f32 %v27327_v56, %v8701_v16 }
 0x341   : > { %v11309_v32 = vadd.f32 %v24305_v22, %v11293_v60  ;;  %v11294_v10 = vadd.f32 %v11006_v6, %v10855_v48  ;;  %v10858_v57 = vadd.f32 %v24268_v63, %v10419_v5  ;;  %v9984_v48 = vadd.f32 %v24192_v38, %v9545_v3 }
 0x342   : > { %v9546_v63 = vadd.f32 %v24153_v8, %v9141_v61  ;;  %v10422_v60 = vadd.f32 %v24233_v30, %v9983_v14 }
 0x343   : > { %v11310_v11 = vadd.f32 %v24305_v22, %v11294_v10  ;;  %v11075_v21 = vpop.f32.mrf.mxu1  ;;  %v11319_v26 = vmax.f32 %v11309_v32, 0.0  ;;  %v10423_v43 = vadd.f32 %v24227_v55, %v9984_v48 }
 0x344   : > { %v11295_v9 = vadd.f32 %v11075_v21, %v10856_v39  ;;  %v9985_v40 = vadd.f32 %v24201_v62, %v9546_v63  ;;  %v10861_v54 = vadd.f32 %v24294_v35, %v10422_v60 }
 0x345   : > { %v11320_v17 = vmax.f32 %v11310_v11, 0.0  ;;  %v11077_v52 = vpop.f32.mrf.mxu1  ;;  %11329 = vst [vmem:[#allocation2 + $0x30] sm:$0x3f] %v11319_v26  ;;  %v10862_v47 = vadd.f32 %v24299_v24, %v10423_v43 }
 0x346   : > { %v11311_v25 = vadd.f32 %v24305_v22, %v11295_v9  ;;  %v11296_v37 = vadd.f32 %v11077_v52, %v10857_v13  ;;  %v10424_v6 = vadd.f32 %v24237_v28, %v9985_v40 }
 0x347   : > { %11330 = vst [vmem:[#allocation2] sm:$0x3f] %v11320_v17  ;;  %v11146_v19 = vpop.f32.mrf.mxu0 }
 0x348   : > { %v11321_v59 = vmax.f32 %v11311_v25, 0.0  ;;  %v11312_v18 = vadd.f32 %v24305_v22, %v11296_v37  ;;  %v11297_v53 = vadd.f32 %v11146_v19, %v10858_v57  ;;  %v10863_v35 = vadd.f32 %v24315_v15, %v10424_v6 }
 0x349   : > { %v11148_v2 = vpop.f32.mrf.mxu0 }
 0x34a   : > { %11331 = vst [vmem:[#allocation2 + $0x18] sm:$0x3f] %v11321_v59  ;;  %v11322_v29 = vmax.f32 %v11312_v18, 0.0  ;;  %v11313_v1 = vadd.f32 %v24305_v22, %v11297_v53  ;;  %v11298_v31 = vadd.f32 %v11148_v2, %v10859_v42 }
 0x34b   : > { %v11217_v44 = vpop.f32.mrf.mxu1 }
 0x34c   : > { %11332 = vst [vmem:[#allocation2 + $0x10] sm:$0x3f] %v11322_v29  ;;  %v11323_v8 = vmax.f32 %v11313_v1, 0.0  ;;  %v11314_v38 = vadd.f32 %v24305_v22, %v11298_v31  ;;  %v11299_v30 = vadd.f32 %v11217_v44, %v10860_v12  ;;  %v11339_v49 = vld [vmem:[#allocation2 + $0x30] sm:$0x3f] }
 0x34d   : > { %v11219_v23 = vpop.f32.mrf.mxu1 }
 0x34e   : > { %11333 = vst [vmem:[#allocation2 + $0x48] sm:$0x3f] %v11323_v8  ;;  %v11324_v16 = vmax.f32 %v11314_v38, 0.0  ;;  %v11315_v50 = vadd.f32 %v24305_v22, %v11299_v30  ;;  %v11300_v62 = vadd.f32 %v11219_v23, %v10861_v54  ;;  %v11340_v36 = vld [vmem:[#allocation2] sm:$0x3f] }
 0x34f   : > { %11361 = vrot.lane.b32.xlu0 %v11340_v36, %s22283_s20  ;;  %v11288_v55 = vpop.f32.mrf.mxu0 }
 0x350   : > { %11334 = vst [vmem:[#allocation2 + $0x28] sm:$0x3f] %v11324_v16  ;;  %v11325_v32 = vmax.f32 %v11315_v50, 0.0  ;;  %v11316_v10 = vadd.f32 %v24305_v22, %v11300_v62  ;;  %v11301_v58 = vadd.f32 %v11288_v55, %v10862_v47 }
 0x351   : > { %v11290_v28 = vpop.f32.mrf.mxu0  ;;  %v11341_v4 = vld [vmem:[#allocation2 + $0x18] sm:$0x3f] }
 0x352   : > { %11335 = vst [vmem:[#allocation2 + $0x8] sm:$0x3f] %v11325_v32  ;;  %v11326_v24 = vmax.f32 %v11316_v10, 0.0  ;;  %v11317_v7 = vadd.f32 %v24305_v22, %v11301_v58  ;;  %v11302_v39 = vadd.f32 %v11290_v28, %v10863_v35  ;;  %11363 = vrot.lane.b32.xlu1 %v11341_v4, %s22283_s20 }
 0x353   : > { %v11342_v20 = vld [vmem:[#allocation2 + $0x10] sm:$0x3f] }
 0x354   : > { %11336 = vst [vmem:[#allocation2 + $0x20] sm:$0x3f] %v11326_v24  ;;  %v11327_v33 = vmax.f32 %v11317_v7, 0.0  ;;  %v11318_v41 = vadd.f32 %v24305_v22, %v11302_v39  ;;  %11365 = vrot.lane.b32.xlu0 %v11342_v20, %s22283_s20 }
 0x355   : > { %v11343_v15 = vld [vmem:[#allocation2 + $0x48] sm:$0x3f] }
 0x356   : > { %11337 = vst [vmem:[#allocation2 + $0x40] sm:$0x3f] %v11327_v33  ;;  %v11328_v11 = vmax.f32 %v11318_v41, 0.0  ;;  %11367 = vrot.lane.b32.xlu1 %v11343_v15, %s22283_s20 }
 0x357   : > { %v11344_v21 = vld [vmem:[#allocation2 + $0x28] sm:$0x3f] }
 0x358   : > { %11338 = vst [vmem:[#allocation2 + $0x38] sm:$0x3f] %v11328_v11  ;;  %11369 = vrot.lane.b32.xlu0 %v11344_v21, %s22283_s20 }
 0x359   : > { %v11345_v26 = vld [vmem:[#allocation2 + $0x8] sm:$0x3f] }
 0x35a   : > { %11371 = vrot.lane.b32.xlu1 %v11345_v26, %s22283_s20 }
 0x35b   : > { %v11346_v5 = vld [vmem:[#allocation2 + $0x20] sm:$0x3f] }
 0x35c   : > { %11359 = vrot.lane.b32.xlu0 %v11339_v49, %s22283_s20 }
 0x35d   : > { %v24363_v22 = vld [vmem:[#allocation2 + $0x40] sm:$0x3f] }
 0x35e   : > { %11373 = vrot.lane.b32.xlu1 %v11346_v5, %s22283_s20 }
 0x35f   : > { %v24389_v2 = vld [vmem:[#allocation2 + $0x38] sm:$0x3f] }
 0x360   : > { %11375 = vrot.lane.b32.xlu0 %v24363_v22, %s22283_s20 }
 0x3c1   : > { %v11362_v13 = vpop.permute.xlu0 %11361 }
 0x3c4   : > { %v11364_v9 = vpop.permute.xlu1 %11363 }
 0x3c5   : > { %v11380_v45 = vsel %vm453_vm0, %v11362_v13, %v11364_v9 }
 0x3c6   : > { %v11398_v46 = vmax.f32 %v11340_v36, %v11380_v45  ;;  %v11366_v27 = vpop.permute.xlu0 %11365  ;;  %v21055_v45 = vld [vmem:[%s27156_s3 + $0x10] sm:$0xff] }
 0x3c7   : > { %v11381_v34 = vsel %vm453_vm0, %v11364_v9, %v11366_v27 }
 0x3c8   : > { %v11399_v17 = vmax.f32 %v11341_v4, %v11381_v34  ;;  %v11368_v52 = vpop.permute.xlu1 %11367  ;;  %11420 = vrot.lane.b32.xlu1 %v11398_v46, %s27175_s15 }
 0x3c9   : > { %v11382_v0 = vsel %vm453_vm0, %v11366_v27, %v11368_v52 }
 0x3ca   : > { %v11400_v57 = vmax.f32 %v11342_v20, %v11382_v0  ;;  %11422 = vrot.lane.b32.xlu0 %v11399_v17, %s27175_s15  ;;  %v11370_v25 = vpop.permute.xlu0 %11369 }
 0x3cb   : > { %v11383_v37 = vsel %vm453_vm0, %v11368_v52, %v11370_v25  ;;  %v21056_v52 = vld [vmem:[%s27156_s3 + $0x18] sm:$0xff] }
 0x3cc   : > { %v11401_v56 = vmax.f32 %v11343_v15, %v11383_v37  ;;  %v11372_v61 = vpop.permute.xlu1 %11371  ;;  %11424 = vrot.lane.b32.xlu1 %v11400_v57, %s27175_s15 }
 0x3cd   : > { %v11384_v3 = vsel %vm453_vm0, %v11370_v25, %v11372_v61 }
 0x3ce   : > { %v11402_v14 = vmax.f32 %v11344_v21, %v11384_v3  ;;  %11426 = vrot.lane.b32.xlu0 %v11401_v56, %s27175_s15  ;;  %v11360_v51 = vpop.permute.xlu0 %11359 }
 0x3cf   : > { %v11379_v19 = vsel %vm453_vm0, %v11360_v51, %v11362_v13 }
 0x3d0   : > { %v11397_v42 = vmax.f32 %v11339_v49, %v11379_v19  ;;  %v11374_v59 = vpop.permute.xlu1 %11373  ;;  %11428 = vrot.lane.b32.xlu1 %v11402_v14, %s27175_s15 }
 0x3d1   : > { %v11385_v18 = vsel %vm453_vm0, %v11372_v61, %v11374_v59 }
 0x3d2   : > { %v11403_v53 = vmax.f32 %v11345_v26, %v11385_v18  ;;  %11418 = vrot.lane.b32.xlu0 %v11397_v42, %s27175_s15  ;;  %v24380_v63 = vpop.permute.xlu0 %11375 }
 0x3d3   : > { %v11386_v48 = vsel %vm453_vm0, %v11374_v59, %v24380_v63 }
 0x3d4   : > { %v24384_v60 = vmax.f32 %v11346_v5, %v11386_v48  ;;  %11430 = vrot.lane.b32.xlu1 %v11403_v53, %s27175_s15 }
 0x3d6   : > { %11432 = vrot.lane.b32.xlu0 %v24384_v60, %s27175_s15 }
 0x3da   : > { %11377 = vrot.lane.b32.xlu0 %v24389_v2, %s22283_s20  ;;  %s27178_s20 = smov 122  }
 0x43a   : > { %v11421_v12 = vpop.permute.xlu1 %11420 }
 0x43c   : > { %v11423_v29 = vpop.permute.xlu0 %11422 }
 0x43d   : > { %v11439_v1 = vsel %vm2583_vm6, %v11421_v12, %v11423_v29 }
 0x43e   : > { %v11457_v31 = vmax.f32 %v11398_v46, %v11439_v1  ;;  %v11425_v40 = vpop.permute.xlu1 %11424 }
 0x43f   : > { %v11440_v43 = vsel %vm2583_vm6, %v11423_v29, %v11425_v40 }
 0x440   : > { %11466 = vst [vmem:[#allocation3 + $0x8] sm:$0x3f] %v11457_v31  ;;  %v11458_v44 = vmax.f32 %v11399_v17, %v11440_v43  ;;  %v11427_v54 = vpop.permute.xlu0 %11426  ;;  %v27331_v17 = vmov 0.0   ;;  %v11480_v31 = vld [vmem:[%s27156_s3] sm:$0xff] }
 0x441   : > { %v11441_v8 = vsel %vm2583_vm6, %v11425_v40, %v11427_v54 }
 0x442   : > { %11467 = vst [vmem:[#allocation3 + $0x38] sm:$0x3f] %v11458_v44  ;;  %v11459_v38 = vmax.f32 %v11400_v57, %v11441_v8  ;;  %v11429_v30 = vpop.permute.xlu1 %11428 }
 0x443   : > { %v11442_v6 = vsel %vm2583_vm6, %v11427_v54, %v11429_v30  ;;  %v11481_v54 = vld [vmem:[%s27156_s3 + $0x8] sm:$0xff] }
 0x444   : > { %11468 = vst [vmem:[#allocation3 + $0x30] sm:$0x3f] %v11459_v38  ;;  %v11460_v23 = vmax.f32 %v11401_v56, %v11442_v6  ;;  %v11419_v47 = vpop.permute.xlu0 %11418 }
 0x445   : > { %v11438_v16 = vsel %vm2583_vm6, %v11419_v47, %v11421_v12 }
 0x446   : > { %11469 = vst [vmem:[#allocation3] sm:$0x3f] %v11460_v23  ;;  %v11456_v50 = vmax.f32 %v11397_v42, %v11438_v16  ;;  %v11431_v62 = vpop.permute.xlu1 %11430 }
 0x447   : > { %v11443_v36 = vsel %vm2583_vm6, %v11429_v30, %v11431_v62  ;;  %v24399_v55 = vld [vmem:[#allocation3 + $0x8] sm:$0x3f] }
 0x448   : > { %11465 = vst [vmem:[#allocation3 + $0x40] sm:$0x3f] %v11456_v50  ;;  %v11461_v35 = vmax.f32 %v11402_v14, %v11443_v36  ;;  %12302 = vrot.lane.b32.xlu0 %v24399_v55, %s27178_s20  ;;  %11495 = vrot.lane.b32.xlu1 %v24399_v55, %s27184_s26  ;;  %v24405_v32 = vpop.permute.xlu0 %11432  ;;  %v24567_v34 = vld [vmem:[#allocation3 + $0x8] sm:$0x3f]  ;;  %v21081_v36 = vld [vmem:[%s27156_s3 + $0x20] sm:$0xff] }
 0x449   : > { %v11444_v10 = vsel %vm2583_vm6, %v11431_v62, %v24405_v32  ;;  %v24409_v28 = vld [vmem:[#allocation3 + $0x38] sm:$0x3f] }
 0x44a   : > { %11470 = vst [vmem:[#allocation3 + $0x28] sm:$0x3f] %v11461_v35  ;;  %v11462_v58 = vmax.f32 %v11403_v53, %v11444_v10  ;;  %v24554_v9 = vld [vmem:[#allocation3 + $0x38] sm:$0x3f] }
 0x44b   : > { %v24435_v39 = vld [vmem:[#allocation3 + $0x30] sm:$0x3f] }
 0x44c   : > { %11471 = vst [vmem:[#allocation3 + $0x10] sm:$0x3f] %v11462_v58  ;;  %11497 = vrot.lane.b32.xlu0 %v24409_v28, %s27184_s26  ;;  %v24479_v33 = vpop.permute.xlu0 %11377  ;;  %v24582_v37 = vld [vmem:[#allocation3 + $0x30] sm:$0x3f]  ;;  %v21082_v58 = vld [vmem:[%s27156_s3 + $0x28] sm:$0xff] }
 0x44d   : > { %v24419_v24 = vld [vmem:[#allocation3] sm:$0x3f]  ;;  %v11387_v41 = vsel %vm453_vm0, %v24380_v63, %v24479_v33  ;;  %vm11520_vm0 = vcmask 1045504  }
 0x44e   : > { %v24493_v15 = vmax.f32 %v24363_v22, %v11387_v41  ;;  %v24593_v3 = vld [vmem:[#allocation3] sm:$0x3f] }
 0x44f   : > { %v24413_v4 = vld [vmem:[#allocation3 + $0x40] sm:$0x3f] }
 0x450   : > { %12020 = vrot.lane.b32.xlu0 %v24409_v28, %s27186_s29  ;;  %11493 = vrot.lane.b32.xlu1 %v24413_v4, %s27184_s26 }
 0x451   : > { %v24429_v7 = vld [vmem:[#allocation3 + $0x28] sm:$0x3f] }
 0x452   : > { %v24580_v25 = vld [vmem:[#allocation3 + $0x28] sm:$0x3f] }
 0x453   : > { %v24437_v20 = vld [vmem:[#allocation3 + $0x10] sm:$0x3f] }
 0x454   : > { %11501 = vrot.lane.b32.xlu0 %v24419_v24, %s27184_s26  ;;  %12018 = vrot.lane.b32.xlu1 %v24399_v55, %s27186_s29  ;;  %v24631_v29 = vld [vmem:[#allocation3 + $0x10] sm:$0x3f] }
 0x458   : > { %12024 = vrot.lane.b32.xlu0 %v24419_v24, %s27186_s29  ;;  %12016 = vrot.lane.b32.xlu1 %v24413_v4, %s27186_s29 }
 0x45c   : > { %12026 = vrot.lane.b32.xlu0 %v24429_v7, %s27186_s29  ;;  %12304 = vrot.lane.b32.xlu1 %v24409_v28, %s27178_s20 }
 0x460   : > { %11499 = vrot.lane.b32.xlu1 %v24435_v39, %s27184_s26  ;;  %11505 = vrot.lane.b32.xlu0 %v24437_v20, %s27184_s26 }
 0x464   : > { %11503 = vrot.lane.b32.xlu1 %v24429_v7, %s27184_s26  ;;  %12300 = vrot.lane.b32.xlu0 %v24413_v4, %s27178_s20 }
 0x468   : > { %12022 = vrot.lane.b32.xlu1 %v24435_v39, %s27186_s29  ;;  %12308 = vrot.lane.b32.xlu0 %v24419_v24, %s27178_s20 }
 0x46c   : > { %12306 = vrot.lane.b32.xlu1 %v24435_v39, %s27178_s20  ;;  %12589 = vrot.lane.b32.xlu0 %v24409_v28, %s27176_s19 }
 0x470   : > { %12310 = vrot.lane.b32.xlu1 %v24429_v7, %s27178_s20  ;;  %12593 = vrot.lane.b32.xlu0 %v24419_v24, %s27176_s19 }
 0x474   : > { %12587 = vrot.lane.b32.xlu1 %v24399_v55, %s27176_s19  ;;  %12595 = vrot.lane.b32.xlu0 %v24429_v7, %s27176_s19 }
 0x478   : > { %12591 = vrot.lane.b32.xlu1 %v24435_v39, %s27176_s19  ;;  %12872 = vrot.lane.b32.xlu0 %v24399_v55, %s27328_s16 }
 0x47c   : > { %12585 = vrot.lane.b32.xlu1 %v24413_v4, %s27176_s19  ;;  %12870 = vrot.lane.b32.xlu0 %v24413_v4, %s27328_s16 }
 0x480   : > { %12874 = vrot.lane.b32.xlu1 %v24409_v28, %s27328_s16  ;;  %12312 = vrot.lane.b32.xlu0 %v24437_v20, %s27178_s20  ;;  %s27332_s20 = smov 122  }
 0x484   : > { %12028 = vrot.lane.b32.xlu1 %v24437_v20, %s27186_s29  ;;  %12878 = vrot.lane.b32.xlu0 %v24419_v24, %s27328_s16 }
 0x488   : > { %12876 = vrot.lane.b32.xlu1 %v24435_v39, %s27328_s16  ;;  %13156 = vrot.lane.b32.xlu0 %v24399_v55, %s27329_s18 }
 0x48c   : > { %12880 = vrot.lane.b32.xlu1 %v24429_v7, %s27328_s16  ;;  %13160 = vrot.lane.b32.xlu0 %v24435_v39, %s27329_s18 }
 0x490   : > { %13154 = vrot.lane.b32.xlu0 %v24413_v4, %s27329_s18  ;;  %11434 = vrot.lane.b32.xlu1 %v24493_v15, %s27175_s15  ;;  %s27180_s15 = smov 56  }
 0x494   : > { %13442 = vrot.lane.b32.xlu0 %v24409_v28, %s27330_s28  ;;  %13158 = vrot.lane.b32.xlu1 %v24409_v28, %s27329_s18 }
 0x498   : > { %12882 = vrot.lane.b32.xlu0 %v24437_v20, %s27328_s16  ;;  %13162 = vrot.lane.b32.xlu1 %v24419_v24, %s27329_s18 }
 0x49c   : > { %13444 = vrot.lane.b32.xlu0 %v24435_v39, %s27330_s28  ;;  %12597 = vrot.lane.b32.xlu1 %v24437_v20, %s27176_s19  ;;  %s27336_s19 = smov 58  }
 0x4a0   : > { %13448 = vrot.lane.b32.xlu0 %v24429_v7, %s27330_s28  ;;  %13164 = vrot.lane.b32.xlu1 %v24429_v7, %s27329_s18 }
 0x4a4   : > { %13724 = vrot.lane.b32.xlu0 %v24399_v55, %s27182_s17  ;;  %13440 = vrot.lane.b32.xlu1 %v24399_v55, %s27330_s28 }
 0x4a8   : > { %13166 = vrot.lane.b32.xlu0 %v24437_v20, %s27329_s18  ;;  %13438 = vrot.lane.b32.xlu1 %v24413_v4, %s27330_s28 }
 0x4ac   : > { %13728 = vrot.lane.b32.xlu0 %v24435_v39, %s27182_s17  ;;  %13446 = vrot.lane.b32.xlu1 %v24419_v24, %s27330_s28 }
 0x4b0   : > { %13722 = vrot.lane.b32.xlu0 %v24413_v4, %s27182_s17  ;;  %13726 = vrot.lane.b32.xlu1 %v24409_v28, %s27182_s17 }
 0x4b4   : > { %14011 = vrot.lane.b32.xlu0 %v24409_v28, %s27180_s15  ;;  %13730 = vrot.lane.b32.xlu1 %v24419_v24, %s27182_s17 }
 0x4b8   : > { %14013 = vrot.lane.b32.xlu0 %v24435_v39, %s27180_s15  ;;  %13732 = vrot.lane.b32.xlu1 %v24429_v7, %s27182_s17 }
 0x4ba   : > { %v24539_v11 = vpop.permute.xlu0 %12302  ;;  %v11496_v21 = vpop.permute.xlu1 %11495 }
 0x4bc   : > { %14017 = vrot.lane.b32.xlu0 %v24429_v7, %s27180_s15  ;;  %13450 = vrot.lane.b32.xlu1 %v24437_v20, %s27330_s28 }
 0x4be   : > { %v11498_v26 = vpop.permute.xlu0 %11497 }
 0x4bf   : > { %v11508_v49 = vsel %vm1263_vm3, %v11496_v21, %v11498_v26 }
 0x4c0   : > { %13734 = vrot.lane.b32.xlu0 %v24437_v20, %s27182_s17  ;;  %14009 = vrot.lane.b32.xlu1 %v24399_v55, %s27180_s15  ;;  %s27334_s17 = smov 126  }
 0x4c1   : > { %21057 = vmatprep.subr.msk.mxu1 %vm11520_vm0, %v11508_v49 }
 0x4c2   : > { %v11494_v5 = vpop.permute.xlu1 %11493  ;;  %v24551_v22 = vpop.permute.xlu0 %12020 }
 0x4c3   : > { %v11507_v13 = vsel %vm1263_vm3, %v11494_v5, %v11496_v21 }
 0x4c4   : > { %14562 = vrot.lane.b32.xlu0 %v24554_v9, %s27184_s26  ;;  %14007 = vrot.lane.b32.xlu1 %v24413_v4, %s27180_s15 }
 0x4c5   : > { %21058 = vmatpush1.msk.msra.mxu1 %vm11520_vm0, %v11507_v13 }
 0x4c6   : > { %v24564_v46 = vpop.permute.xlu1 %12018  ;;  %v11502_v27 = vpop.permute.xlu0 %11501  ;;  %21059 = vmatmul.mubr.msk.f32.vlgmr.msra.gmra.mxu1 %vm11513_vm1, %v21055_v45 }
 0x4c7   : > { %11603 = vmatprep.mubr.f32.mxu1 %v27331_v17  ;;  %v12031_v1 = vsel %vm2143_vm5, %v24564_v46, %v24551_v22 }
 0x4c8   : > { %14560 = vrot.lane.b32.xlu0 %v24567_v34, %s27184_s26  ;;  %14015 = vrot.lane.b32.xlu1 %v24419_v24, %s27180_s15 }
 0x4ca   : > { %v12017_v0 = vpop.permute.xlu1 %12016  ;;  %v24577_v57 = vpop.permute.xlu0 %12024  ;;  %21060 = vmatmul.mubr.msk.f32.gmra.mxu1 %vm11513_vm1, %v21056_v52 }
 0x4cb   : > { %11751 = vmatprep.mubr.f32.mxu1 %v27331_v17  ;;  %v12030_v30 = vsel %vm2143_vm5, %v12017_v0, %v24564_v46 }
 0x4cc   : > { %14568 = vrot.lane.b32.xlu0 %v24580_v25, %s27184_s26  ;;  %14564 = vrot.lane.b32.xlu1 %v24582_v37, %s27184_s26 }
 0x4ce   : > { %v24589_v56 = vpop.permute.xlu1 %12304  ;;  %v24591_v61 = vpop.permute.xlu0 %12026 }
 0x4cf   : > { %v12316_v16 = vsel %vm12314_vm2, %v24539_v11, %v24589_v56  ;;  %v12034_v13 = vsel %vm2143_vm5, %v24577_v57, %v24591_v61 }
 0x4d0   : > { %14848 = vrot.lane.b32.xlu0 %v24582_v37, %s27186_s29  ;;  %14566 = vrot.lane.b32.xlu1 %v24593_v3, %s27184_s26 }
 0x4d2   : > { %v11500_v14 = vpop.permute.xlu1 %11499  ;;  %v11506_v51 = vpop.permute.xlu0 %11505 }
 0x4d3   : > { %v11509_v19 = vsel %vm1263_vm3, %v11498_v26, %v11500_v14  ;;  %v11510_v42 = vsel %vm1263_vm3, %v11500_v14, %v11502_v27 }
 0x4d4   : > { %14852 = vrot.lane.b32.xlu0 %v24580_v25, %s27186_s29  ;;  %14019 = vrot.lane.b32.xlu1 %v24437_v20, %s27180_s15  ;;  %s27333_s15 = smov 120  }
 0x4d5   : > { %21061 = vmatprep.subr.msk.mxu0 %vm11520_vm0, %v11510_v42 }
 0x4d6   : > { %21062 = vmatpush1.msk.msra.mxu0 %vm11520_vm0, %v11509_v19  ;;  %v11504_v59 = vpop.permute.xlu1 %11503  ;;  %v24607_v18 = vpop.permute.xlu0 %12300 }
 0x4d7   : > { %21063 = vmatmul.mubr.msk.f32.vlgmr.msra.gmra.mxu0 %vm11513_vm1, %v21055_v45  ;;  %21069 = vmatprep.subr.msk.mxu0 %vm11520_vm0, %v24399_v55  ;;  %v11512_v53 = vsel %vm1263_vm3, %v11504_v59, %v11506_v51  ;;  %v11511_v63 = vsel %vm1263_vm3, %v11502_v27, %v11504_v59  ;;  %v21096_v27 = vld [vmem:[%s27156_s3 + $0x38] sm:$0xff] }
 0x4d8   : > { %21070 = vmatpush1.msk.msra.mxu0 %vm11520_vm0, %v24413_v4  ;;  %15130 = vrot.lane.b32.xlu0 %v24554_v9, %s27332_s20  ;;  %v12315_v4 = vsel %vm12314_vm2, %v24607_v18, %v24539_v11  ;;  %v21095_v11 = vld [vmem:[%s27156_s3 + $0x30] sm:$0xff] }
 0x4d9   : > { %14846 = vrot.lane.b32.xlu1 %v24554_v9, %s27186_s29  ;;  %21065 = vmatprep.subr.msk.mxu1 %vm11520_vm0, %v11512_v53 }
 0x4da   : > { %21077 = vmatprep.subr.msk.mxu0 %vm11520_vm0, %v24429_v7  ;;  %11680 = vmatprep.mubr.f32.mxu0 %v27331_v17  ;;  %v12023_v48 = vpop.permute.xlu1 %12022  ;;  %v24624_v12 = vpop.permute.xlu0 %12308 }
 0x4db   : > { %21066 = vmatpush1.msk.msra.mxu1 %vm11520_vm0, %v11511_v63  ;;  %21064 = vmatmul.mubr.msk.f32.gmra.mxu0 %vm11513_vm1, %v21056_v52  ;;  %v12033_v44 = vsel %vm2143_vm5, %v12023_v48, %v24577_v57  ;;  %v12032_v47 = vsel %vm2143_vm5, %v24551_v22, %v12023_v48 }
 0x4dc   : > { %21067 = vmatmul.mubr.msk.f32.vlgmr.msra.gmra.mxu1 %vm11513_vm1, %v21055_v45  ;;  %21073 = vmatprep.subr.msk.mxu1 %vm11520_vm0, %v24435_v39 }
 0x4dd   : > { %21074 = vmatpush1.msk.msra.mxu1 %vm11520_vm0, %v24409_v28  ;;  %14854 = vrot.lane.b32.xlu0 %v24631_v29, %s27186_s29 }
 0x4de   : > { %14850 = vrot.lane.b32.xlu1 %v24593_v3, %s27186_s29  ;;  %21083 = vmatprep.subr.msk.mxu1 %vm11520_vm0, %v12031_v1  ;;  %v24646_v40 = vpop.permute.xlu1 %12306  ;;  %v24648_v43 = vpop.permute.xlu0 %12589 }
 0x4df   : > { %11757 = vmatprep.mubr.f32.mxu1 %v27331_v17  ;;  %11846 = vmatprep.mubr.f32.mxu0 %v27331_v17  ;;  %v12318_v57 = vsel %vm12314_vm2, %v24646_v40, %v24624_v12 }
 0x4e0   : > { %21068 = vmatmul.mubr.msk.f32.gmra.mxu1 %vm11513_vm1, %v21056_v52  ;;  %21071 = vmatmul.mubr.msk.f32.vlgmr.msra.gmra.mxu0 %vm11513_vm1, %v11480_v31 }
 0x4e1   : > { %21078 = vmatpush1.msk.msra.mxu0 %vm11520_vm0, %v24419_v24  ;;  %11852 = vmatprep.mubr.f32.mxu0 %v27331_v17 }
 0x4e2   : > { %21087 = vmatprep.subr.msk.mxu0 %vm11520_vm0, %v12033_v44  ;;  %14844 = vrot.lane.b32.xlu1 %v24567_v34, %s27186_s29  ;;  %v12311_v8 = vpop.permute.xlu1 %12310  ;;  %v24665_v38 = vpop.permute.xlu0 %12593 }
 0x4e3   : > { %11923 = vmatprep.mubr.f32.mxu1 %v27331_v17  ;;  %v12319_v45 = vsel %vm12314_vm2, %v24624_v12, %v12311_v8  ;;  %v21109_v12 = vld [vmem:[%s27156_s3 + $0x40] sm:$0xff] }
 0x4e4   : > { %21072 = vmatmul.mubr.msk.f32.gmra.mxu0 %vm11513_vm1, %v11481_v54  ;;  %21075 = vmatmul.mubr.msk.f32.vlgmr.msra.gmra.mxu1 %vm11513_vm1, %v11480_v31 }
 0x4e5   : > { %21084 = vmatpush1.msk.msra.mxu1 %vm11520_vm0, %v12030_v30  ;;  %12000 = vmatprep.mubr.f32.mxu0 %v27331_v17 }
 0x4e6   : > { %15132 = vrot.lane.b32.xlu1 %v24582_v37, %s27332_s20  ;;  %v24676_v6 = vpop.permute.xlu1 %12587  ;;  %v24678_v23 = vpop.permute.xlu0 %12595  ;;  %11929 = vmatprep.mubr.f32.mxu1 %v27331_v17 }
 0x4e7   : > { %v12601_v14 = vsel %vm12599_vm4, %v24676_v6, %v24648_v43 }
 0x4e8   : > { %21079 = vmatmul.mubr.msk.f32.vlgmr.msra.gmra.mxu0 %vm11513_vm1, %v11480_v31  ;;  %21076 = vmatmul.mubr.msk.f32.gmra.mxu1 %vm11513_vm1, %v11481_v54 }
 0x4e9   : > { %21088 = vmatpush1.msk.msra.mxu0 %vm11520_vm0, %v12032_v47  ;;  %12006 = vmatprep.mubr.f32.mxu0 %v27331_v17 }
 0x4ea   : > { %21097 = vmatprep.subr.msk.mxu0 %vm11520_vm0, %v12316_v16  ;;  %14570 = vrot.lane.b32.xlu1 %v24631_v29, %s27184_s26  ;;  %v12592_v50 = vpop.permute.xlu1 %12591  ;;  %v24693_v62 = vpop.permute.xlu0 %12872  ;;  %v12604_v16 = vsel %vm12599_vm4, %v24665_v38, %v24678_v23  ;;  %s404_s26 = sand.u32 1, %s22273_s22  }
 0x4eb   : > { %12118 = vmatprep.mubr.f32.mxu1 %v27331_v17  ;;  %v12603_v46 = vsel %vm12599_vm4, %v12592_v50, %v24665_v38  ;;  %s405_s1 = scalar_lea.vmem [#allocation7], %s404_s26 }
 0x4ec   : > { %21080 = vmatmul.mubr.msk.f32.gmra.mxu0 %vm11513_vm1, %v11481_v54  ;;  %21085 = vmatmul.mubr.msk.f32.vlgmr.msra.gmra.mxu1 %vm11513_vm1, %v21081_v36 }
 0x4ed   : > { %12195 = vmatprep.mubr.f32.mxu0 %v27331_v17  ;;  %12124 = vmatprep.mubr.f32.mxu1 %v27331_v17 }
 0x4ee   : > { %15134 = vrot.lane.b32.xlu1 %v24593_v3, %s27332_s20  ;;  %v12586_v35 = vpop.permute.xlu1 %12585  ;;  %v24705_v10 = vpop.permute.xlu0 %12870 }
 0x4ef   : > { %v12600_v53 = vsel %vm12599_vm4, %v12586_v35, %v24676_v6 }
 0x4f0   : > { %21089 = vmatmul.mubr.msk.f32.vlgmr.msra.gmra.mxu0 %vm11513_vm1, %v21081_v36  ;;  %21086 = vmatmul.mubr.msk.f32.gmra.mxu1 %vm11513_vm1, %v21082_v58 }
 0x4f1   : > { %21098 = vmatpush1.msk.msra.mxu0 %vm11520_vm0, %v12315_v4  ;;  %12201 = vmatprep.mubr.f32.mxu0 %v27331_v17 }
 0x4f2   : > { %15138 = vrot.lane.b32.xlu1 %v24631_v29, %s27332_s20  ;;  %v24719_v41 = vpop.permute.xlu1 %12874  ;;  %v12313_v21 = vpop.permute.xlu0 %12312  ;;  %12272 = vmatprep.mubr.f32.mxu1 %v27331_v17 }
 0x4f3   : > { %v12320_v26 = vsel %vm12314_vm2, %v12311_v8, %v12313_v21  ;;  %v12885_v42 = vsel %vm4783_vm11, %v24693_v62, %v24719_v41  ;;  %v21123_v8 = vld [vmem:[%s27156_s3 + $0x50] sm:$0xff] }
 0x4f4   : > { %21090 = vmatmul.mubr.msk.f32.gmra.mxu0 %vm11513_vm1, %v21082_v58  ;;  %21105 = vmatprep.subr.msk.mxu0 %vm11520_vm0, %v12320_v26 }
 0x4f5   : > { %12403 = vmatprep.mubr.f32.mxu0 %v27331_v17 }
 0x4f6   : > { %15414 = vrot.lane.b32.xlu1 %v24554_v9, %s27333_s15  ;;  %v12029_v49 = vpop.permute.xlu1 %12028  ;;  %v24731_v5 = vpop.permute.xlu0 %12878 }
 0x4f7   : > { %v12035_v22 = vsel %vm2143_vm5, %v24591_v61, %v12029_v49  ;;  %v12317_v61 = vsel %vm12314_vm2, %v24589_v56, %v24646_v40  ;;  %v12602_v56 = vsel %vm12599_vm4, %v24648_v43, %v12592_v50 }
 0x4f8   : > { %21099 = vmatmul.mubr.msk.f32.vlgmr.msra.gmra.mxu0 %vm11513_vm1, %v21095_v11  ;;  %21091 = vmatprep.subr.msk.mxu1 %vm11520_vm0, %v12035_v22 }
 0x4f9   : > { %21106 = vmatpush1.msk.msra.mxu0 %vm11520_vm0, %v12319_v45  ;;  %21092 = vmatpush1.msk.msra.mxu1 %vm11520_vm0, %v12034_v13  ;;  %v21137_v45 = vld [vmem:[%s27156_s3 + $0x60] sm:$0xff] }
 0x4fa   : > { %21115 = vmatprep.subr.msk.mxu0 %vm11520_vm0, %v12603_v46  ;;  %15418 = vrot.lane.b32.xlu1 %v24593_v3, %s27333_s15  ;;  %v24752_v52 = vpop.permute.xlu1 %12876  ;;  %v24754_v0 = vpop.permute.xlu0 %13156 }
 0x4fb   : > { %12409 = vmatprep.mubr.f32.mxu0 %v27331_v17  ;;  %21093 = vmatmul.mubr.msk.f32.vlgmr.msra.gmra.mxu1 %vm11513_vm1, %v21081_v36  ;;  %v12887_v35 = vsel %vm4783_vm11, %v24752_v52, %v24731_v5 }
 0x4fc   : > { %21100 = vmatmul.mubr.msk.f32.gmra.mxu0 %vm11513_vm1, %v21096_v27  ;;  %21101 = vmatprep.subr.msk.mxu1 %vm11520_vm0, %v12318_v57 }
 0x4fd   : > { %21102 = vmatpush1.msk.msra.mxu1 %vm11520_vm0, %v12317_v61  ;;  %12278 = vmatprep.mubr.f32.mxu1 %v27331_v17  ;;  %v21138_v61 = vld [vmem:[%s27156_s3 + $0x68] sm:$0xff] }
 0x4fe   : > { %21111 = vmatprep.subr.msk.mxu1 %vm11520_vm0, %v12601_v14  ;;  %12557 = vmatprep.mubr.f32.mxu0 %v27331_v17  ;;  %v12881_v51 = vpop.permute.xlu1 %12880  ;;  %v24773_v19 = vpop.permute.xlu0 %13160 }
 0x4ff   : > { %21094 = vmatmul.mubr.msk.f32.gmra.mxu1 %vm11513_vm1, %v21082_v58  ;;  %v12888_v50 = vsel %vm4783_vm11, %v24731_v5, %v12881_v51 }
 0x500   : > { %21107 = vmatmul.mubr.msk.f32.vlgmr.msra.gmra.mxu0 %vm11513_vm1, %v21095_v11  ;;  %12480 = vmatprep.mubr.f32.mxu1 %v27331_v17 }
 0x501   : > { %21116 = vmatpush1.msk.msra.mxu0 %vm11520_vm0, %v12602_v56  ;;  %12563 = vmatprep.mubr.f32.mxu0 %v27331_v17 }
 0x502   : > { %21125 = vmatprep.subr.msk.mxu0 %vm11520_vm0, %v12885_v42  ;;  %v24786_v59 = vpop.permute.xlu1 %11434  ;;  %v24788_v18 = vpop.permute.xlu0 %13154 }
 0x503   : > { %v11445_v63 = vsel %vm2583_vm6, %v24405_v32, %v24786_v59  ;;  %21103 = vmatmul.mubr.msk.f32.vlgmr.msra.gmra.mxu1 %vm11513_vm1, %v21095_v11  ;;  %v21110_v32 = vld [vmem:[%s27156_s3 + $0x48] sm:$0xff]  ;;  %v13168_v22 = vsel %vm5663_vm13, %v24788_v18, %v24754_v0  ;;  %v21152_v18 = vld [vmem:[%s27156_s3 + $0x78] sm:$0xff] }
 0x504   : > { %v11463_v48 = vmax.f32 %v24384_v60, %v11445_v63  ;;  %21108 = vmatmul.mubr.msk.f32.gmra.mxu0 %vm11513_vm1, %v21096_v27  ;;  %21112 = vmatpush1.msk.msra.mxu1 %vm11520_vm0, %v12600_v53  ;;  %v12884_v60 = vsel %vm4783_vm11, %v24705_v10, %v24693_v62  ;;  %v12886_v10 = vsel %vm4783_vm11, %v24719_v41, %v24752_v52 }
 0x505   : > { %12486 = vmatprep.mubr.f32.mxu1 %v27331_v17  ;;  %12765 = vmatprep.mubr.f32.mxu0 %v27331_v17  ;;  %v11407_v52 = vmax.f32 %v24389_v2, %v24479_v33 }
 0x506   : > { %11472 = vst [vmem:[#allocation3 + $0x20] sm:$0x3f] %v11463_v48  ;;  %v13159_v1 = vpop.permute.xlu1 %13158  ;;  %v24804_v31 = vpop.permute.xlu0 %13442 }
 0x507   : > { %21104 = vmatmul.mubr.msk.f32.gmra.mxu1 %vm11513_vm1, %v21096_v27  ;;  %v13169_v58 = vsel %vm5663_vm13, %v24754_v0, %v13159_v1  ;;  %v13170_v26 = vsel %vm5663_vm13, %v13159_v1, %v24773_v19 }
 0x508   : > { %21117 = vmatmul.mubr.msk.f32.vlgmr.msra.gmra.mxu0 %vm11513_vm1, %v21109_v12  ;;  %12688 = vmatprep.mubr.f32.mxu1 %v27331_v17 }
 0x509   : > { %21126 = vmatpush1.msk.msra.mxu0 %vm11520_vm0, %v12884_v60  ;;  %12771 = vmatprep.mubr.f32.mxu0 %v27331_v17 }
 0x50a   : > { %v24817_v40 = vpop.permute.xlu1 %13162  ;;  %v12883_v43 = vpop.permute.xlu0 %12882 }
 0x50b   : > { %21113 = vmatmul.mubr.msk.f32.vlgmr.msra.gmra.mxu1 %vm11513_vm1, %v21109_v12  ;;  %v12889_v44 = vsel %vm4783_vm11, %v12881_v51, %v12883_v43  ;;  %v13171_v62 = vsel %vm5663_vm13, %v24773_v19, %v24817_v40  ;;  %v21151_v19 = vld [vmem:[%s27156_s3 + $0x70] sm:$0xff] }
 0x50c   : > { %21118 = vmatmul.mubr.msk.f32.gmra.mxu0 %vm11513_vm1, %v21110_v32  ;;  %21133 = vmatprep.subr.msk.mxu0 %vm11520_vm0, %v12889_v44 }
 0x50d   : > { %12694 = vmatprep.mubr.f32.mxu1 %v27331_v17  ;;  %12972 = vmatprep.mubr.f32.mxu0 %v27331_v17  ;;  %v24825_v54 = vld [vmem:[#allocation3 + $0x20] sm:$0x3f] }
 0x50e   : > { %14856 = vrot.lane.b32.xlu1 %v24825_v54, %s27186_s29  ;;  %14572 = vrot.lane.b32.xlu0 %v24825_v54, %s27334_s17  ;;  %v12598_v30 = vpop.permute.xlu1 %12597  ;;  %v24834_v6 = vpop.permute.xlu0 %13444  ;;  %s27335_s29 = smov 96  }
 0x50f   : > { %v12605_v47 = vsel %vm12599_vm4, %v24678_v23, %v12598_v30  ;;  %21114 = vmatmul.mubr.msk.f32.gmra.mxu1 %vm11513_vm1, %v21110_v32  ;;  %v21124_v23 = vld [vmem:[%s27156_s3 + $0x58] sm:$0xff]  ;;  %v13454_v53 = vsel %vm6543_vm15, %v24804_v31, %v24834_v6 }
 0x510   : > { %21127 = vmatmul.mubr.msk.f32.vlgmr.msra.gmra.mxu0 %vm11513_vm1, %v21123_v8  ;;  %21119 = vmatprep.subr.msk.mxu1 %vm11520_vm0, %v12605_v47 }
 0x511   : > { %21134 = vmatpush1.msk.msra.mxu0 %vm11520_vm0, %v12888_v50  ;;  %21120 = vmatpush1.msk.msra.mxu1 %vm11520_vm0, %v12604_v16  ;;  %v21165_v16 = vld [vmem:[%s27156_s3 + $0x80] sm:$0xff] }
 0x512   : > { %21143 = vmatprep.subr.msk.mxu0 %vm11520_vm0, %v13171_v62  ;;  %12842 = vmatprep.mubr.f32.mxu1 %v27331_v17  ;;  %v13165_v38 = vpop.permute.xlu1 %13164  ;;  %v24856_v36 = vpop.permute.xlu0 %13448 }
 0x513   : > { %12978 = vmatprep.mubr.f32.mxu0 %v27331_v17  ;;  %15412 = vrot.lane.b32.xlu1 %v24567_v34, %s27333_s15  ;;  %v13172_v2 = vsel %vm5663_vm13, %v24817_v40, %v13165_v38 }
 0x514   : > { %15128 = vrot.lane.b32.xlu0 %v24567_v34, %s27332_s20  ;;  %21121 = vmatmul.mubr.msk.f32.vlgmr.msra.gmra.mxu1 %vm11513_vm1, %v21109_v12 }
 0x515   : > { %21128 = vmatmul.mubr.msk.f32.gmra.mxu0 %vm11513_vm1, %v21124_v23  ;;  %21129 = vmatprep.subr.msk.mxu1 %vm11520_vm0, %v12887_v35 }
 0x516   : > { %21130 = vmatpush1.msk.msra.mxu1 %vm11520_vm0, %v12886_v10  ;;  %12848 = vmatprep.mubr.f32.mxu1 %v27331_v17  ;;  %v13441_v4 = vpop.permute.xlu1 %13440  ;;  %v24876_v21 = vpop.permute.xlu0 %13724  ;;  %v21179_v10 = vld [vmem:[%s27156_s3 + $0x90] sm:$0xff] }
 0x517   : > { %21139 = vmatprep.subr.msk.mxu1 %vm11520_vm0, %v13169_v58  ;;  %13126 = vmatprep.mubr.f32.mxu0 %v27331_v17  ;;  %v13453_v41 = vsel %vm6543_vm15, %v13441_v4, %v24804_v31 }
 0x518   : > { %15700 = vrot.lane.b32.xlu1 %v24582_v37, %s27328_s16  ;;  %15136 = vrot.lane.b32.xlu0 %v24580_v25, %s27332_s20 }
 0x519   : > { %21122 = vmatmul.mubr.msk.f32.gmra.mxu1 %vm11513_vm1, %v21110_v32  ;;  %21135 = vmatmul.mubr.msk.f32.vlgmr.msra.gmra.mxu0 %vm11513_vm1, %v21123_v8 }
 0x51a   : > { %21144 = vmatpush1.msk.msra.mxu0 %vm11520_vm0, %v13170_v26  ;;  %13049 = vmatprep.mubr.f32.mxu1 %v27331_v17  ;;  %v13439_v11 = vpop.permute.xlu1 %13438  ;;  %v13167_v49 = vpop.permute.xlu0 %13166 }
 0x51b   : > { %21153 = vmatprep.subr.msk.mxu0 %vm11520_vm0, %v13453_v41  ;;  %13132 = vmatprep.mubr.f32.mxu0 %v27331_v17  ;;  %v13173_v5 = vsel %vm5663_vm13, %v13165_v38, %v13167_v49  ;;  %v13452_v27 = vsel %vm6543_vm15, %v13439_v11, %v13441_v4 }
 0x51c   : > { %15702 = vrot.lane.b32.xlu1 %v24593_v3, %s27328_s16  ;;  %15416 = vrot.lane.b32.xlu0 %v24582_v37, %s27333_s15 }
 0x51d   : > { %21131 = vmatmul.mubr.msk.f32.vlgmr.msra.gmra.mxu1 %vm11513_vm1, %v21123_v8  ;;  %21136 = vmatmul.mubr.msk.f32.gmra.mxu0 %vm11513_vm1, %v21124_v23 }
 0x51e   : > { %21140 = vmatpush1.msk.msra.mxu1 %vm11520_vm0, %v13168_v22  ;;  %13055 = vmatprep.mubr.f32.mxu1 %v27331_v17  ;;  %v13447_v13 = vpop.permute.xlu1 %13446  ;;  %v24909_v46 = vpop.permute.xlu0 %13728 }
 0x51f   : > { %21147 = vmatprep.subr.msk.mxu1 %vm11520_vm0, %v13173_v5  ;;  %13333 = vmatprep.mubr.f32.mxu0 %v27331_v17  ;;  %v13455_v33 = vsel %vm6543_vm15, %v24834_v6, %v13447_v13  ;;  %v13456_v31 = vsel %vm6543_vm15, %v13447_v13, %v24856_v36 }
 0x520   : > { %15706 = vrot.lane.b32.xlu1 %v24631_v29, %s27328_s16  ;;  %15420 = vrot.lane.b32.xlu0 %v24580_v25, %s27333_s15 }
 0x521   : > { %21132 = vmatmul.mubr.msk.f32.gmra.mxu1 %vm11513_vm1, %v21124_v23  ;;  %21145 = vmatmul.mubr.msk.f32.vlgmr.msra.gmra.mxu0 %vm11513_vm1, %v21137_v45 }
 0x522   : > { %21154 = vmatpush1.msk.msra.mxu0 %vm11520_vm0, %v13452_v27  ;;  %13256 = vmatprep.mubr.f32.mxu1 %v27331_v17  ;;  %v13727_v0 = vpop.permute.xlu1 %13726  ;;  %v13723_v57 = vpop.permute.xlu0 %13722 }
 0x523   : > { %13339 = vmatprep.mubr.f32.mxu0 %v27331_v17  ;;  %v13738_v63 = vsel %vm13736_vm14, %v24876_v21, %v13727_v0  ;;  %v13739_v44 = vsel %vm13736_vm14, %v13727_v0, %v24909_v46  ;;  %v13737_v30 = vsel %vm13736_vm14, %v13723_v57, %v24876_v21  ;;  %v21180_v21 = vld [vmem:[%s27156_s3 + $0x98] sm:$0xff]  ;;  %v25192_v57 = vld [vmem:[#allocation3] sm:$0x3f] }
 0x524   : > { %11436 = vrot.lane.b32.xlu1 %v11407_v52, %s27335_s29  ;;  %15422 = vrot.lane.b32.xlu0 %v24631_v29, %s27333_s15  ;;  %v25179_v52 = vld [vmem:[%s27156_s3 + $0xb8] sm:$0xff] }
 0x525   : > { %21141 = vmatmul.mubr.msk.f32.vlgmr.msra.gmra.mxu1 %vm11513_vm1, %v21137_v45  ;;  %21146 = vmatmul.mubr.msk.f32.gmra.mxu0 %vm11513_vm1, %v21138_v61 }
 0x526   : > { %21148 = vmatpush1.msk.msra.mxu1 %vm11520_vm0, %v13172_v2  ;;  %13262 = vmatprep.mubr.f32.mxu1 %v27331_v17  ;;  %v24939_v14 = vpop.permute.xlu1 %13730  ;;  %v24941_v51 = vpop.permute.xlu0 %14011  ;;  %v25206_v2 = vld [vmem:[#allocation3 + $0x28] sm:$0x3f] }
 0x527   : > { %21157 = vmatprep.subr.msk.mxu1 %vm11520_vm0, %v13455_v33  ;;  %13540 = vmatprep.mubr.f32.mxu0 %v27331_v17  ;;  %v13740_v32 = vsel %vm13736_vm14, %v24909_v46, %v24939_v14  ;;  %v25218_v33 = vld [vmem:[#allocation3 + $0x30] sm:$0x3f] }
 0x528   : > { %15424 = vrot.lane.b32.xlu1 %v24825_v54, %s27333_s15  ;;  %15140 = vrot.lane.b32.xlu0 %v24825_v54, %s27332_s20 }
 0x529   : > { %21142 = vmatmul.mubr.msk.f32.gmra.mxu1 %vm11513_vm1, %v21138_v61  ;;  %21155 = vmatmul.mubr.msk.f32.vlgmr.msra.gmra.mxu0 %vm11513_vm1, %v21151_v19 }
 0x52a   : > { %13410 = vmatprep.mubr.f32.mxu1 %v27331_v17  ;;  %v13733_v56 = vpop.permute.xlu1 %13732  ;;  %13546 = vmatprep.mubr.f32.mxu0 %v27331_v17  ;;  %v24956_v42 = vpop.permute.xlu0 %14013 }
 0x52b   : > { %v13741_v62 = vsel %vm13736_vm14, %v24939_v14, %v13733_v56  ;;  %v14024_v58 = vsel %vm14021_vm7, %v24941_v51, %v24956_v42 }
 0x52c   : > { %15984 = vrot.lane.b32.xlu1 %v24582_v37, %s27329_s18  ;;  %15698 = vrot.lane.b32.xlu0 %v24554_v9, %s27328_s16 }
 0x52d   : > { %21149 = vmatmul.mubr.msk.f32.vlgmr.msra.gmra.mxu1 %vm11513_vm1, %v21137_v45  ;;  %21156 = vmatmul.mubr.msk.f32.gmra.mxu0 %vm11513_vm1, %v21152_v18  ;;  %v21194_v45 = vld [vmem:[%s27156_s3 + $0xa8] sm:$0xff] }
 0x52e   : > { %21158 = vmatpush1.msk.msra.mxu1 %vm11520_vm0, %v13454_v53  ;;  %13416 = vmatprep.mubr.f32.mxu1 %v27331_v17  ;;  %v13451_v48 = vpop.permute.xlu1 %13450  ;;  %v24974_v12 = vpop.permute.xlu0 %14017  ;;  %v25254_v53 = vld [vmem:[#allocation3 + $0x10] sm:$0x3f] }
 0x52f   : > { %21167 = vmatprep.subr.msk.mxu1 %vm11520_vm0, %v13738_v63  ;;  %v13457_v1 = vsel %vm6543_vm15, %v24856_v36, %v13451_v48  ;;  %13694 = vmatprep.mubr.f32.mxu0 %v27331_v17  ;;  %v21166_v36 = vld [vmem:[%s27156_s3 + $0x88] sm:$0xff] }
 0x530   : > { %15988 = vrot.lane.b32.xlu1 %v24580_v25, %s27329_s18  ;;  %15696 = vrot.lane.b32.xlu0 %v24567_v34, %s27328_s16 }
 0x531   : > { %21150 = vmatmul.mubr.msk.f32.gmra.mxu1 %vm11513_vm1, %v21138_v61  ;;  %21161 = vmatprep.subr.msk.mxu0 %vm11520_vm0, %v13457_v1 }
 0x532   : > { %13617 = vmatprep.mubr.f32.mxu1 %v27331_v17  ;;  %21162 = vmatpush1.msk.msra.mxu0 %vm11520_vm0, %v13456_v31  ;;  %v14010_v60 = vpop.permute.xlu1 %14009  ;;  %v13735_v40 = vpop.permute.xlu0 %13734 }
 0x533   : > { %21163 = vmatmul.mubr.msk.f32.vlgmr.msra.gmra.mxu0 %vm11513_vm1, %v21151_v19  ;;  %21171 = vmatprep.subr.msk.mxu0 %vm11520_vm0, %v13740_v32  ;;  %v14023_v43 = vsel %vm14021_vm7, %v14010_v60, %v24941_v51  ;;  %v13742_v8 = vsel %vm13736_vm14, %v13733_v56, %v13735_v40 }
 0x534   : > { %15990 = vrot.lane.b32.xlu1 %v24631_v29, %s27329_s18  ;;  %15704 = vrot.lane.b32.xlu0 %v24580_v25, %s27328_s16 }
 0x535   : > { %21159 = vmatmul.mubr.msk.f32.vlgmr.msra.gmra.mxu1 %vm11513_vm1, %v21151_v19  ;;  %21172 = vmatpush1.msk.msra.mxu0 %vm11520_vm0, %v13739_v44  ;;  %v25233_v19 = vld [vmem:[#allocation3 + $0x20] sm:$0x3f] }
 0x536   : > { %21168 = vmatpush1.msk.msra.mxu1 %vm11520_vm0, %v13737_v30  ;;  %21181 = vmatprep.subr.msk.mxu0 %vm11520_vm0, %v14023_v43  ;;  %v14008_v6 = vpop.permute.xlu1 %14007  ;;  %v14563_v26 = vpop.permute.xlu0 %14562 }
 0x537   : > { %21175 = vmatprep.subr.msk.mxu1 %vm11520_vm0, %v13742_v8  ;;  %13623 = vmatprep.mubr.f32.mxu1 %v27331_v17  ;;  %v14022_v38 = vsel %vm14021_vm7, %v14008_v6, %v14010_v60 }
 0x538   : > { %13700 = vmatprep.mubr.f32.mxu0 %v27331_v17  ;;  %16266 = vrot.lane.b32.xlu1 %v24554_v9, %s27330_s28 }
 0x539   : > { %15982 = vrot.lane.b32.xlu0 %v24554_v9, %s27329_s18  ;;  %21160 = vmatmul.mubr.msk.f32.gmra.mxu1 %vm11513_vm1, %v21152_v18 }
 0x53a   : > { %21164 = vmatmul.mubr.msk.f32.gmra.mxu0 %vm11513_vm1, %v21152_v18  ;;  %13825 = vmatprep.mubr.f32.mxu1 %v27331_v17  ;;  %v14016_v47 = vpop.permute.xlu1 %14015  ;;  %v14561_v5 = vpop.permute.xlu0 %14560 }
 0x53b   : > { %13902 = vmatprep.mubr.f32.mxu0 %v27331_v17  ;;  %v14025_v50 = vsel %vm14021_vm7, %v24956_v42, %v14016_v47  ;;  %v14026_v11 = vsel %vm14021_vm7, %v14016_v47, %v24974_v12  ;;  %v25246_v42 = vld [vmem:[#allocation3 + $0x38] sm:$0x3f] }
 0x53c   : > { %16264 = vrot.lane.b32.xlu1 %v24567_v34, %s27330_s28 }
 0x53d   : > { %15986 = vrot.lane.b32.xlu0 %v24593_v3, %s27329_s18  ;;  %21169 = vmatmul.mubr.msk.f32.vlgmr.msra.gmra.mxu1 %vm11513_vm1, %v21165_v16 }
 0x53e   : > { %21173 = vmatmul.mubr.msk.f32.vlgmr.msra.gmra.mxu0 %vm11513_vm1, %v21165_v16  ;;  %21176 = vmatpush1.msk.msra.mxu1 %vm11520_vm0, %v13741_v62  ;;  %v25036_v23 = vpop.permute.xlu1 %14564 }
 0x53f   : > { %21182 = vmatpush1.msk.msra.mxu0 %vm11520_vm0, %v14022_v38  ;;  %21185 = vmatprep.subr.msk.mxu1 %vm11520_vm0, %v14025_v50  ;;  %v14575_v49 = vsel %vm1263_vm3, %v14563_v26, %v25036_v23 }
 0x540   : > { %13831 = vmatprep.mubr.f32.mxu1 %v27331_v17  ;;  %13908 = vmatprep.mubr.f32.mxu0 %v27331_v17 }
 0x541   : > { %16272 = vrot.lane.b32.xlu1 %v24580_v25, %s27330_s28  ;;  %15708 = vrot.lane.b32.xlu0 %v24825_v54, %s27328_s16 }
 0x542   : > { %21170 = vmatmul.mubr.msk.f32.gmra.mxu1 %vm11513_vm1, %v21166_v36  ;;  %21174 = vmatmul.mubr.msk.f32.gmra.mxu0 %vm11513_vm1, %v21166_v36  ;;  %v25051_v35 = vpop.permute.xlu1 %14566 }
 0x543   : > { %13979 = vmatprep.mubr.f32.mxu1 %v27331_v17  ;;  %14110 = vmatprep.mubr.f32.mxu0 %v27331_v17 }
 0x545   : > { %16552 = vrot.lane.b32.xlu1 %v24582_v37, %s27336_s19  ;;  %15980 = vrot.lane.b32.xlu0 %v24567_v34, %s27329_s18 }
 0x546   : > { %21177 = vmatmul.mubr.msk.f32.vlgmr.msra.gmra.mxu1 %vm11513_vm1, %v21165_v16  ;;  %21183 = vmatmul.mubr.msk.f32.vlgmr.msra.gmra.mxu0 %vm11513_vm1, %v21179_v10  ;;  %v14020_v4 = vpop.permute.xlu1 %14019  ;;  %v21235_v16 = vld [vmem:[%s27156_s3 + $0xd0] sm:$0xff] }
 0x547   : > { %21186 = vmatpush1.msk.msra.mxu1 %vm11520_vm0, %v14024_v58  ;;  %13985 = vmatprep.mubr.f32.mxu1 %v27331_v17  ;;  %v14027_v41 = vsel %vm14021_vm7, %v24974_v12, %v14020_v4 }
 0x548   : > { %21195 = vmatprep.subr.msk.mxu1 %vm11520_vm0, %v24409_v28  ;;  %14116 = vmatprep.mubr.f32.mxu0 %v27331_v17 }
 0x549   : > { %16276 = vrot.lane.b32.xlu1 %v24825_v54, %s27330_s28  ;;  %16268 = vrot.lane.b32.xlu0 %v24582_v37, %s27330_s28 }
 0x54a   : > { %21178 = vmatmul.mubr.msk.f32.gmra.mxu1 %vm11513_vm1, %v21166_v36  ;;  %21184 = vmatmul.mubr.msk.f32.gmra.mxu0 %vm11513_vm1, %v21180_v21 }
 0x54b   : > { %21189 = vmatprep.subr.msk.mxu0 %vm11520_vm0, %v14027_v41  ;;  %14187 = vmatprep.mubr.f32.mxu1 %v27331_v17  ;;  %v25089_v28 = vpop.permute.xlu1 %14846 }
 0x54c   : > { %21190 = vmatpush1.msk.msra.mxu0 %vm11520_vm0, %v14026_v11  ;;  %14264 = vmatprep.mubr.f32.mxu0 %v27331_v17 }
 0x54d   : > { %16556 = vrot.lane.b32.xlu1 %v24580_v25, %s27336_s19  ;;  %16270 = vrot.lane.b32.xlu0 %v24593_v3, %s27330_s28 }
 0x54e   : > { %21187 = vmatmul.mubr.msk.f32.vlgmr.msra.gmra.mxu1 %vm11513_vm1, %v21179_v10  ;;  %21191 = vmatmul.mubr.msk.f32.vlgmr.msra.gmra.mxu0 %vm11513_vm1, %v21179_v10  ;;  %v25318_v10 = vld [vmem:[%s27156_s3 + $0xd8] sm:$0xff] }
 0x54f   : > { %21196 = vmatpush1.msk.msra.mxu1 %vm11520_vm0, %v24399_v55  ;;  %21199 = vmatprep.subr.msk.mxu0 %vm11520_vm0, %v24419_v24  ;;  %v21193_v24 = vld [vmem:[%s27156_s3 + $0xa0] sm:$0xff] }
 0x550   : > { %21200 = vmatpush1.msk.msra.mxu0 %vm11520_vm0, %v24435_v39  ;;  %21203 = vmatprep.subr.msk.mxu1 %vm11520_vm0, %v24437_v20  ;;  %v25112_v55 = vpop.permute.xlu1 %14850  ;;  %v25125_v39 = vpop.permute.xlu0 %14568  ;;  %v14574_v20 = vsel %vm1263_vm3, %v14561_v5, %v14563_v26  ;;  %v25336_v26 = vld [vmem:[%s27156_s3 + $0xe0] sm:$0xff] }
 0x551   : > { %21209 = vmatprep.subr.msk.mxu0 %vm11520_vm0, %v14575_v49  ;;  %14193 = vmatprep.mubr.f32.mxu1 %v27331_v17  ;;  %v14577_v13 = vsel %vm1263_vm3, %v25051_v35, %v25125_v39 }
 0x552   : > { %14270 = vmatprep.mubr.f32.mxu0 %v27331_v17  ;;  %16558 = vrot.lane.b32.xlu1 %v24631_v29, %s27336_s19 }
 0x553   : > { %15992 = vrot.lane.b32.xlu0 %v24825_v54, %s27329_s18  ;;  %21188 = vmatmul.mubr.msk.f32.gmra.mxu1 %vm11513_vm1, %v21180_v21  ;;  %s27338_s18 = smov 124  }
 0x554   : > { %21192 = vmatmul.mubr.msk.f32.gmra.mxu0 %vm11513_vm1, %v21180_v21  ;;  %14364 = vmatprep.mubr.f32.mxu1 %v27331_v17  ;;  %v14845_v22 = vpop.permute.xlu1 %14844  ;;  %v25166_v27 = vpop.permute.xlu0 %14848 }
 0x555   : > { %14441 = vmatprep.mubr.f32.mxu0 %v27331_v17  ;;  %v14860_v40 = vsel %vm2143_vm5, %v25166_v27, %v25112_v55 }
 0x556   : > { %16834 = vrot.lane.b32.xlu1 %v24554_v9, %s27337_s0 }
 0x557   : > { %16274 = vrot.lane.b32.xlu0 %v24631_v29, %s27330_s28  ;;  %21197 = vmatmul.mubr.msk.f32.vlgmr.msra.gmra.mxu1 %vm11513_vm1, %v21193_v24  ;;  %s20584_s28 = scalar_lea.sflag [#allocation8], %s404_s26 }
 0x558   : > { %21201 = vmatmul.mubr.msk.f32.vlgmr.msra.gmra.mxu0 %vm11513_vm1, %v21193_v24  ;;  %21204 = vmatpush1.msk.msra.mxu1 %vm11520_vm0, %v24429_v7  ;;  %v25155_v7 = vld [vmem:[%s27156_s3 + $0xb0] sm:$0xff]  ;;  %v25157_v46 = vpop.permute.xlu1 %15132  ;;  %v14853_v14 = vpop.permute.xlu0 %14852 }
 0x559   : > { %21210 = vmatpush1.msk.msra.mxu0 %vm11520_vm0, %v14574_v20  ;;  %21213 = vmatprep.subr.msk.mxu1 %vm11520_vm0, %v14577_v13  ;;  %v14861_v32 = vsel %vm2143_vm5, %v25112_v55, %v14853_v14 }
 0x55a   : > { %14370 = vmatprep.mubr.f32.mxu1 %v27331_v17  ;;  %14447 = vmatprep.mubr.f32.mxu0 %v27331_v17 }
 0x55b   : > { %16832 = vrot.lane.b32.xlu1 %v24567_v34, %s27337_s0  ;;  %16550 = vrot.lane.b32.xlu0 %v24554_v9, %s27336_s19  ;;  %v14576_v9 = vsel %vm1263_vm3, %v25036_v23, %v25051_v35 }
 0x55c   : > { %21198 = vmatmul.mubr.msk.f32.gmra.mxu1 %vm11513_vm1, %v21194_v45  ;;  %21202 = vmatmul.mubr.msk.f32.gmra.mxu0 %vm11513_vm1, %v21194_v45  ;;  %v14571_v0 = vpop.permute.xlu1 %14570 }
 0x55d   : > { %14518 = vmatprep.mubr.f32.mxu1 %v27331_v17  ;;  %14662 = vmatprep.mubr.f32.mxu0 %v27331_v17  ;;  %v14578_v31 = vsel %vm1263_vm3, %v25125_v39, %v14571_v0 }
 0x55f   : > { %16840 = vrot.lane.b32.xlu1 %v24580_v25, %s27337_s0  ;;  %16554 = vrot.lane.b32.xlu0 %v24593_v3, %s27336_s19  ;;  %v14859_v25 = vsel %vm2143_vm5, %v25089_v28, %v25166_v27 }
 0x560   : > { %21205 = vmatmul.mubr.msk.f32.vlgmr.msra.gmra.mxu1 %vm11513_vm1, %v21193_v24  ;;  %21211 = vmatmul.mubr.msk.f32.vlgmr.msra.gmra.mxu0 %vm11513_vm1, %v25155_v7  ;;  %v25204_v61 = vpop.permute.xlu1 %15134  ;;  %v25348_v24 = vld [vmem:[%s27156_s3 + $0xe8] sm:$0xff] }
 0x561   : > { %21214 = vmatpush1.msk.msra.mxu1 %vm11520_vm0, %v14576_v9  ;;  %14524 = vmatprep.mubr.f32.mxu1 %v27331_v17  ;;  %v15144_v50 = vsel %vm12314_vm2, %v25157_v46, %v25204_v61 }
 0x562   : > { %21223 = vmatprep.subr.msk.mxu1 %vm11520_vm0, %v14859_v25  ;;  %14668 = vmatprep.mubr.f32.mxu0 %v27331_v17 }
 0x563   : > { %16844 = vrot.lane.b32.xlu1 %v24825_v54, %s27337_s0  ;;  %16548 = vrot.lane.b32.xlu0 %v24567_v34, %s27336_s19  ;;  %v14858_v34 = vsel %vm2143_vm5, %v14845_v22, %v25089_v28 }
 0x564   : > { %21206 = vmatmul.mubr.msk.f32.gmra.mxu1 %vm11513_vm1, %v21194_v45  ;;  %21212 = vmatmul.mubr.msk.f32.gmra.mxu0 %vm11513_vm1, %v25179_v52  ;;  %v25224_v51 = vpop.permute.xlu1 %15138 }
 0x565   : > { %14739 = vmatprep.mubr.f32.mxu1 %v27331_v17  ;;  %14816 = vmatprep.mubr.f32.mxu0 %v27331_v17 }
 0x567   : > { %17398 = vrot.lane.b32.xlu1 %v25192_v57, %s27334_s17  ;;  %16836 = vrot.lane.b32.xlu0 %v24582_v37, %s27337_s0  ;;  %v21221_v37 = vld [vmem:[%s27156_s3 + $0xc0] sm:$0xff] }
 0x568   : > { %21215 = vmatmul.mubr.msk.f32.vlgmr.msra.gmra.mxu1 %vm11513_vm1, %v25155_v7  ;;  %v15415_v56 = vpop.permute.xlu1 %15414 }
 0x569   : > { %21224 = vmatpush1.msk.msra.mxu1 %vm11520_vm0, %v14858_v34  ;;  %14745 = vmatprep.mubr.f32.mxu1 %v27331_v17 }
 0x56b   : > { %17400 = vrot.lane.b32.xlu1 %v25206_v2, %s27334_s17  ;;  %16560 = vrot.lane.b32.xlu0 %v24825_v54, %s27336_s19  ;;  %v25231_v54 = vld [vmem:[%s27156_s3 + $0xc8] sm:$0xff] }
 0x56c   : > { %21216 = vmatmul.mubr.msk.f32.gmra.mxu1 %vm11513_vm1, %v25179_v52  ;;  %v25252_v18 = vpop.permute.xlu1 %15418 }
 0x56d   : > { %14946 = vmatprep.mubr.f32.mxu1 %v27331_v17 }
 0x56f   : > { %17680 = vrot.lane.b32.xlu1 %v25218_v33, %s27338_s18  ;;  %16838 = vrot.lane.b32.xlu0 %v24593_v3, %s27337_s0  ;;  %v15131_v3 = vpop.permute.xlu0 %15130 }
 0x570   : > { %21225 = vmatmul.mubr.msk.f32.vlgmr.msra.gmra.mxu1 %vm11513_vm1, %v21221_v37  ;;  %v15143_v44 = vsel %vm12314_vm2, %v15131_v3, %v25157_v46 }
 0x571   : > { %14952 = vmatprep.mubr.f32.mxu1 %v27331_v17 }
 0x573   : > { %17404 = vrot.lane.b32.xlu1 %v25233_v19, %s27334_s17  ;;  %16842 = vrot.lane.b32.xlu0 %v24631_v29, %s27337_s0  ;;  %v14855_v29 = vpop.permute.xlu0 %14854 }
 0x574   : > { %21226 = vmatmul.mubr.msk.f32.gmra.mxu1 %vm11513_vm1, %v25231_v54  ;;  %v14862_v60 = vsel %vm2143_vm5, %v14853_v14, %v14855_v29 }
 0x575   : > { %15100 = vmatprep.mubr.f32.mxu1 %v27331_v17 }
 0x577   : > { %17684 = vrot.lane.b32.xlu1 %v25206_v2, %s27338_s18  ;;  %17396 = vrot.lane.b32.xlu0 %v25218_v33, %s27334_s17 }
 0x57b   : > { %17678 = vrot.lane.b32.xlu1 %v25246_v42, %s27338_s18  ;;  %17394 = vrot.lane.b32.xlu0 %v25246_v42, %s27334_s17 }
 0x57f   : > { %17966 = vrot.lane.b32.xlu1 %v25192_v57, %s27332_s20  ;;  %17402 = vrot.lane.b32.xlu0 %v25254_v53, %s27334_s17 }
 0x580   : > { %v14857_v63 = vpop.permute.xlu1 %14856  ;;  %v14573_v48 = vpop.permute.xlu0 %14572 }
 0x581   : > { %v14863_v12 = vsel %vm2143_vm5, %v14855_v29, %v14857_v63  ;;  %v14579_v1 = vsel %vm1263_vm3, %v14571_v0, %v14573_v48 }
 0x582   : > { %21217 = vmatprep.subr.msk.mxu0 %vm11520_vm0, %v14579_v1  ;;  %21231 = vmatprep.subr.msk.mxu1 %vm11520_vm0, %v14863_v12 }
 0x583   : > { %17682 = vrot.lane.b32.xlu0 %v25192_v57, %s27338_s18  ;;  %21218 = vmatpush1.msk.msra.mxu0 %vm11520_vm0, %v14578_v31 }
 0x584   : > { %21232 = vmatpush1.msk.msra.mxu1 %vm11520_vm0, %v14862_v60  ;;  %21219 = vmatmul.mubr.msk.f32.vlgmr.msra.gmra.mxu0 %vm11513_vm1, %v25155_v7 }
 0x585   : > { %v15413_v43 = vpop.permute.xlu1 %15412  ;;  %21227 = vmatprep.subr.msk.mxu0 %vm11520_vm0, %v14861_v32  ;;  %21233 = vmatmul.mubr.msk.f32.vlgmr.msra.gmra.mxu1 %vm11513_vm1, %v21221_v37 }
 0x586   : > { %v15129_v8 = vpop.permute.xlu0 %15128  ;;  %21228 = vmatpush1.msk.msra.mxu0 %vm11520_vm0, %v14860_v40  ;;  %14822 = vmatprep.mubr.f32.mxu0 %v27331_v17  ;;  %v25305_v38 = vpop.f32.mrf.mxu1  ;;  %v15426_v58 = vsel %vm12599_vm4, %v15413_v43, %v15415_v56 }
 0x587   : > { %21237 = vmatprep.subr.msk.mxu0 %vm11520_vm0, %v15143_v44  ;;  %15106 = vmatprep.mubr.f32.mxu1 %v27331_v17  ;;  %v15142_v62 = vsel %vm12314_vm2, %v15129_v8, %v15131_v3 }
 0x588   : > { %21220 = vmatmul.mubr.msk.f32.gmra.mxu0 %vm11513_vm1, %v25179_v52  ;;  %v25324_v4 = vpop.f32.mrf.mxu1 }
 0x589   : > { %21234 = vmatmul.mubr.msk.f32.gmra.mxu1 %vm11513_vm1, %v25231_v54  ;;  %15023 = vmatprep.mubr.f32.mxu0 %v27331_v17 }
 0x58a   : > { %v25291_v30 = vpop.permute.xlu1 %15700  ;;  %v15137_v6 = vpop.permute.xlu0 %15136  ;;  %15307 = vmatprep.mubr.f32.mxu1 %v27331_v17 }
 0x58b   : > { %v15145_v47 = vsel %vm12314_vm2, %v25204_v61, %v15137_v6  ;;  %v11605_v11 = vpop.f32.mrf.mxu1  ;;  %v15146_v46 = vsel %vm12314_vm2, %v15137_v6, %v25224_v51 }
 0x58c   : > { %21241 = vmatprep.subr.msk.mxu1 %vm11520_vm0, %v15145_v47  ;;  %21229 = vmatmul.mubr.msk.f32.vlgmr.msra.gmra.mxu0 %vm11513_vm1, %v21221_v37 }
 0x58d   : > { %21242 = vmatpush1.msk.msra.mxu1 %vm11520_vm0, %v15144_v50  ;;  %21238 = vmatpush1.msk.msra.mxu0 %vm11520_vm0, %v15142_v62  ;;  %v25353_v20 = vpop.f32.mrf.mxu1 }
 0x58e   : > { %v25309_v23 = vpop.permute.xlu1 %15702  ;;  %v15417_v36 = vpop.permute.xlu0 %15416  ;;  %21243 = vmatmul.mubr.msk.f32.vlgmr.msra.gmra.mxu1 %vm11513_vm1, %v21235_v16  ;;  %15029 = vmatprep.mubr.f32.mxu0 %v27331_v17 }
 0x58f   : > { %v15427_v35 = vsel %vm12599_vm4, %v15415_v56, %v15417_v36  ;;  %15313 = vmatprep.mubr.f32.mxu1 %v27331_v17  ;;  %v15428_v0 = vsel %vm12599_vm4, %v15417_v36, %v25252_v18  ;;  %v15712_v47 = vsel %vm4783_vm11, %v25291_v30, %v25309_v23 }
 0x590   : > { %21251 = vmatprep.subr.msk.mxu1 %vm11520_vm0, %v15427_v35  ;;  %21230 = vmatmul.mubr.msk.f32.gmra.mxu0 %vm11513_vm1, %v25231_v54 }
 0x591   : > { %21252 = vmatpush1.msk.msra.mxu1 %vm11520_vm0, %v15426_v58  ;;  %15230 = vmatprep.mubr.f32.mxu0 %v27331_v17  ;;  %v21264_v58 = vld [vmem:[%s27156_s3 + $0xf8] sm:$0xff] }
 0x592   : > { %v25328_v21 = vpop.permute.xlu1 %15706  ;;  %v15421_v41 = vpop.permute.xlu0 %15420  ;;  %21244 = vmatmul.mubr.msk.f32.gmra.mxu1 %vm11513_vm1, %v25318_v10 }
 0x593   : > { %15514 = vmatprep.mubr.f32.mxu1 %v27331_v17  ;;  %v15429_v25 = vsel %vm12599_vm4, %v25252_v18, %v15421_v41 }
 0x594   : > { %21239 = vmatmul.mubr.msk.f32.vlgmr.msra.gmra.mxu0 %vm11513_vm1, %v21235_v16 }
 0x595   : > { %15236 = vmatprep.mubr.f32.mxu0 %v27331_v17 }
 0x596   : > { %v11437_v28 = vpop.permute.xlu1 %11436  ;;  %v15423_v49 = vpop.permute.xlu0 %15422  ;;  %21253 = vmatmul.mubr.msk.f32.vlgmr.msra.gmra.mxu1 %vm11513_vm1, %v25336_v26 }
 0x597   : > { %v11446_v5 = vsel %vm2583_vm6, %v24786_v59, %v11437_v28  ;;  %v11676_v55 = vpop.f32.mrf.mxu0  ;;  %15520 = vmatprep.mubr.f32.mxu1 %v27331_v17  ;;  %v15430_v9 = vsel %vm12599_vm4, %v15421_v41, %v15423_v49  ;;  %vm19068_vm6 = vcmask 203776  }
 0x598   : > { %v11464_v39 = vmax.f32 %v24493_v15, %v11446_v5  ;;  %21240 = vmatmul.mubr.msk.f32.gmra.mxu0 %vm11513_vm1, %v25318_v10 }
 0x599   : > { %v25355_v22 = vpop.f32.mrf.mxu0  ;;  %15384 = vmatprep.mubr.f32.mxu0 %v27331_v17 }
 0x59a   : > { %11473 = vst [vmem:[#allocation3 + $0x18] sm:$0x3f] %v11464_v39  ;;  %v15425_v59 = vpop.permute.xlu1 %15424  ;;  %v15141_v13 = vpop.permute.xlu0 %15140  ;;  %21254 = vmatmul.mubr.msk.f32.gmra.mxu1 %vm11513_vm1, %v25348_v24 }
 0x59b   : > { %v15431_v45 = vsel %vm12599_vm4, %v15423_v49, %v15425_v59  ;;  %v15147_v15 = vsel %vm12314_vm2, %v25224_v51, %v15141_v13  ;;  %v11682_v7 = vpop.f32.mrf.mxu0  ;;  %15668 = vmatprep.mubr.f32.mxu1 %v27331_v17 }
 0x59c   : > { %21245 = vmatprep.subr.msk.mxu0 %vm11520_vm0, %v15147_v15  ;;  %21259 = vmatprep.subr.msk.mxu1 %vm11520_vm0, %v15431_v45  ;;  %v11753_v27 = vpop.f32.mrf.mxu1 }
 0x59d   : > { %21246 = vmatpush1.msk.msra.mxu0 %vm11520_vm0, %v15146_v46  ;;  %21260 = vmatpush1.msk.msra.mxu1 %vm11520_vm0, %v15430_v9  ;;  %v25373_v52 = vpop.f32.mrf.mxu0 }
 0x59e   : > { %v25377_v34 = vpop.permute.xlu1 %15984  ;;  %21247 = vmatmul.mubr.msk.f32.vlgmr.msra.gmra.mxu0 %vm11513_vm1, %v21235_v16  ;;  %21255 = vmatprep.subr.msk.mxu0 %vm11520_vm0, %v15429_v25  ;;  %v15699_v61 = vpop.permute.xlu0 %15698  ;;  %v21263_v16 = vld [vmem:[%s27156_s3 + $0xf0] sm:$0xff] }
 0x59f   : > { %v15711_v37 = vsel %vm4783_vm11, %v15699_v61, %v25291_v30  ;;  %21256 = vmatpush1.msk.msra.mxu0 %vm11520_vm0, %v15428_v0  ;;  %21261 = vmatmul.mubr.msk.f32.vlgmr.msra.gmra.mxu1 %vm11513_vm1, %v25336_v26  ;;  %v25386_v14 = vpop.f32.mrf.mxu1 }
 0x5a0   : > { %27339 = vst [vmem:[#allocation12_spill] sm:$0xff] %v25386_v14  ;;  %21265 = vmatprep.subr.msk.mxu0 %vm11520_vm0, %v15711_v37  ;;  %v11848_v51 = vpop.f32.mrf.mxu0  ;;  %15390 = vmatprep.mubr.f32.mxu0 %v27331_v17  ;;  %v25506_v37 = vld [vmem:[%s27156_s3 + $0x100] sm:$0xff] }
 0x5a1   : > { %v11849_v54 = vadd.f32 %v11848_v51, %v25305_v38  ;;  %v25391_v3 = vld [vmem:[#allocation3 + $0x18] sm:$0x3f]  ;;  %15674 = vmatprep.mubr.f32.mxu1 %v27331_v17  ;;  %v11759_v56 = vpop.f32.mrf.mxu1 }
 0x5a2   : > { %17690 = vrot.lane.b32.xlu1 %v25391_v3, %s27338_s18  ;;  %v25396_v29 = vpop.permute.xlu1 %15988  ;;  %17406 = vrot.lane.b32.xlu0 %v25391_v3, %s27334_s17  ;;  %v15697_v18 = vpop.permute.xlu0 %15696 }
 0x5a3   : > { %21248 = vmatmul.mubr.msk.f32.gmra.mxu0 %vm11513_vm1, %v25318_v10  ;;  %v25402_v63 = vpop.f32.mrf.mxu0  ;;  %21262 = vmatmul.mubr.msk.f32.gmra.mxu1 %vm11513_vm1, %v25348_v24  ;;  %v25406_v48 = vpop.f32.mrf.mxu1  ;;  %v15710_v43 = vsel %vm4783_vm11, %v15697_v18, %v15699_v61 }
 0x5a4   : > { %15591 = vmatprep.mubr.f32.mxu0 %v27331_v17  ;;  %15875 = vmatprep.mubr.f32.mxu1 %v27331_v17 }
 0x5a5   : > { %v11854_v12 = vpop.f32.mrf.mxu0  ;;  %v11925_v1 = vpop.f32.mrf.mxu1 }
 0x5a6   : > { %v11855_v31 = vadd.f32 %v11854_v12, %v11605_v11  ;;  %17968 = vrot.lane.b32.xlu1 %v25206_v2, %s27332_s20  ;;  %v25412_v60 = vpop.permute.xlu1 %15990  ;;  %17686 = vrot.lane.b32.xlu0 %v25254_v53, %s27338_s18  ;;  %v15705_v32 = vpop.permute.xlu0 %15704  ;;  %v11926_v40 = vadd.f32 %v11925_v1, %v11676_v55 }
 0x5a7   : > { %21257 = vmatmul.mubr.msk.f32.vlgmr.msra.gmra.mxu0 %vm11513_vm1, %v25336_v26  ;;  %v15713_v44 = vsel %vm4783_vm11, %v25309_v23, %v15705_v32  ;;  %v25421_v8 = vpop.f32.mrf.mxu0  ;;  %v25423_v6 = vpop.f32.mrf.mxu1 }
 0x5a8   : > { %21266 = vmatpush1.msk.msra.mxu0 %vm11520_vm0, %v15710_v43  ;;  %21269 = vmatprep.subr.msk.mxu1 %vm11520_vm0, %v15713_v44 }
 0x5a9   : > { %v12002_v50 = vpop.f32.mrf.mxu0  ;;  %15597 = vmatprep.mubr.f32.mxu0 %v27331_v17  ;;  %21270 = vmatpush1.msk.msra.mxu1 %vm11520_vm0, %v15712_v47  ;;  %v11931_v62 = vpop.f32.mrf.mxu1 }
 0x5aa   : > { %v25435_v38 = vadd.f32 %v12002_v50, %v11753_v27  ;;  %17972 = vrot.lane.b32.xlu1 %v25233_v19, %s27332_s20  ;;  %v25439_v30 = vpop.permute.xlu1 %16266  ;;  %17964 = vrot.lane.b32.xlu0 %v25218_v33, %s27332_s20  ;;  %v11932_v23 = vadd.f32 %v11931_v62, %v11682_v7 }
 0x5ab   : > { %21258 = vmatmul.mubr.msk.f32.gmra.mxu0 %vm11513_vm1, %v25348_v24  ;;  %21271 = vmatmul.mubr.msk.f32.vlgmr.msra.gmra.mxu1 %vm11513_vm1, %v21263_v16  ;;  %v15983_v36 = vpop.permute.xlu0 %15982  ;;  %v25446_v35 = vpop.f32.mrf.mxu0 }
 0x5ac   : > { %27340 = vst [vmem:[#allocation10_spill] sm:$0xff] %v25446_v35  ;;  %v15995_v10 = vsel %vm5663_vm13, %v15983_v36, %v25377_v34  ;;  %15798 = vmatprep.mubr.f32.mxu0 %v27331_v17  ;;  %15881 = vmatprep.mubr.f32.mxu1 %v27331_v17  ;;  %v25455_v41 = vpop.f32.mrf.mxu1 }
 0x5ad   : > { %21279 = vmatprep.subr.msk.mxu1 %vm11520_vm0, %v15995_v10  ;;  %v12008_v26 = vpop.f32.mrf.mxu0 }
 0x5ae   : > { %v25458_v11 = vadd.f32 %v12008_v26, %v11759_v56  ;;  %18248 = vrot.lane.b32.xlu1 %v25218_v33, %s27333_s15  ;;  %v25462_v28 = vpop.permute.xlu1 %16264  ;;  %17688 = vrot.lane.b32.xlu0 %v25233_v19, %s27338_s18  ;;  %v12120_v49 = vpop.f32.mrf.mxu1  ;;  %s21498_s18 = sshll.u32 %s22396_s25, 4  ;;  %s22309_s25 = smov [#allocation7]  }
 0x5af   : > { %21267 = vmatmul.mubr.msk.f32.vlgmr.msra.gmra.mxu0 %vm11513_vm1, %v21263_v16  ;;  %21272 = vmatmul.mubr.msk.f32.gmra.mxu1 %vm11513_vm1, %v21264_v58  ;;  %v15987_v5 = vpop.permute.xlu0 %15986  ;;  %v25468_v55 = vpop.f32.mrf.mxu0  ;;  %v12285_v24 = vadd.f32 %v12120_v49, %v11849_v54  ;;  %v16278_v50 = vsel %vm6543_vm15, %v25462_v28, %v25439_v30 }
 0x5b0   : > { %15804 = vmatprep.mubr.f32.mxu0 %v27331_v17  ;;  %v25471_v39 = vpop.f32.mrf.mxu1  ;;  %16082 = vmatprep.mubr.f32.mxu1 %v27331_v17  ;;  %v15997_v25 = vsel %vm5663_vm13, %v15987_v5, %v25396_v29 }
 0x5b1   : > { %v12197_v33 = vpop.f32.mrf.mxu0 }
 0x5b2   : > { %v25474_v59 = vadd.f32 %v12197_v33, %v11926_v40  ;;  %18252 = vrot.lane.b32.xlu1 %v25206_v2, %s27333_s15  ;;  %17962 = vrot.lane.b32.xlu0 %v25246_v42, %s27332_s20  ;;  %v12126_v13 = vpop.f32.mrf.mxu1  ;;  %v15714_v2 = vsel %vm4783_vm11, %v15705_v32, %v25328_v21  ;;  %v18528_v32 = vld [vmem:[%s27157_s4 + $0x8] sm:$0xff] }
 0x5b3   : > { %v25480_v45 = vpop.permute.xlu1 %16272  ;;  %21268 = vmatmul.mubr.msk.f32.gmra.mxu0 %vm11513_vm1, %v21264_v58  ;;  %v15709_v15 = vpop.permute.xlu0 %15708  ;;  %v12291_v7 = vadd.f32 %v12126_v13, %v11855_v31  ;;  %v25531_v31 = vld [vmem:[%s27156_s3 + $0x108] sm:$0xff] }
 0x5b4   : > { %v15715_v46 = vsel %vm4783_vm11, %v25328_v21, %v15709_v15  ;;  %v25485_v9 = vpop.f32.mrf.mxu0  ;;  %15952 = vmatprep.mubr.f32.mxu0 %v27331_v17  ;;  %v25515_v56 = vpop.f32.mrf.mxu1  ;;  %v15998_v15 = vsel %vm5663_vm13, %v25396_v29, %v25412_v60 }
 0x5b5   : > { %21273 = vmatprep.subr.msk.mxu0 %vm11520_vm0, %v15715_v46 }
 0x5b6   : > { %v12203_v27 = vpop.f32.mrf.mxu0  ;;  %21274 = vmatpush1.msk.msra.mxu0 %vm11520_vm0, %v15714_v2  ;;  %18246 = vrot.lane.b32.xlu1 %v25246_v42, %s27333_s15  ;;  %v15996_v42 = vsel %vm5663_vm13, %v25377_v34, %v15987_v5 }
 0x5b7   : > { %v25496_v0 = vadd.f32 %v12203_v27, %v11932_v23  ;;  %v25498_v61 = vpop.permute.xlu1 %16552  ;;  %17970 = vrot.lane.b32.xlu0 %v25254_v53, %s27332_s20  ;;  %21275 = vmatmul.mubr.msk.f32.vlgmr.msra.gmra.mxu0 %vm11513_vm1, %v21263_v16  ;;  %v15981_v21 = vpop.permute.xlu0 %15980 }
 0x5b8   : > { %21283 = vmatprep.subr.msk.mxu0 %vm11520_vm0, %v15997_v25  ;;  %v15994_v51 = vsel %vm5663_vm13, %v15981_v21, %v15983_v36  ;;  %v25512_v54 = vpop.f32.mrf.mxu0  ;;  %15958 = vmatprep.mubr.f32.mxu0 %v27331_v17 }
 0x5b9   : > { %21284 = vmatpush1.msk.msra.mxu0 %vm11520_vm0, %v15996_v42  ;;  %21280 = vmatpush1.msk.msra.mxu1 %vm11520_vm0, %v15994_v51 }
 0x5ba   : > { %v12405_v18 = vpop.f32.mrf.mxu0  ;;  %21281 = vmatmul.mubr.msk.f32.vlgmr.msra.gmra.mxu1 %vm11513_vm1, %v25506_v37  ;;  %18258 = vrot.lane.b32.xlu1 %v25391_v3, %s27333_s15 }
 0x5bb   : > { %v25523_v34 = vadd.f32 %v12405_v18, %v12285_v24  ;;  %v16277_v12 = vpop.permute.xlu1 %16276  ;;  %17974 = vrot.lane.b32.xlu0 %v25391_v3, %s27332_s20  ;;  %21276 = vmatmul.mubr.msk.f32.gmra.mxu0 %vm11513_vm1, %v21264_v58  ;;  %v16269_v1 = vpop.permute.xlu0 %16268  ;;  %v21291_v24 = vld [vmem:[%s27156_s3 + $0x110] sm:$0xff] }
 0x5bc   : > { %v16279_v40 = vsel %vm6543_vm15, %v25439_v30, %v16269_v1  ;;  %v25538_v43 = vpop.f32.mrf.mxu0  ;;  %v12274_v44 = vpop.f32.mrf.mxu1  ;;  %16088 = vmatprep.mubr.f32.mxu1 %v27331_v17  ;;  %16159 = vmatprep.mubr.f32.mxu0 %v27331_v17 }
 0x5bd   : > { %v12289_v3 = vadd.f32 %v12274_v44, %v25435_v38  ;;  %21293 = vmatprep.subr.msk.mxu0 %vm11520_vm0, %v16279_v40 }
 0x5be   : > { %v12411_v47 = vpop.f32.mrf.mxu0  ;;  %21282 = vmatmul.mubr.msk.f32.gmra.mxu1 %vm11513_vm1, %v25531_v31  ;;  %18536 = vperm.xlu1 %22038, %v18528_v32   ;;  %v25546_v16 = vpop.f32.mrf.mxu1 }
 0x5bf   : > { %27341 = vst [vmem:[#allocation11_spill] sm:$0xff] %v25546_v16  ;;  %v25551_v62 = vadd.f32 %v12411_v47, %v12291_v7  ;;  %v25553_v23 = vpop.permute.xlu1 %16556  ;;  %18250 = vrot.lane.b32.xlu0 %v25192_v57, %s27333_s15  ;;  %21285 = vmatmul.mubr.msk.f32.vlgmr.msra.gmra.mxu0 %vm11513_vm1, %v25506_v37  ;;  %v16271_v38 = vpop.permute.xlu0 %16270 }
 0x5c0   : > { %21294 = vmatpush1.msk.msra.mxu0 %vm11520_vm0, %v16278_v50  ;;  %v25560_v36 = vpop.f32.mrf.mxu0  ;;  %v12280_v10 = vpop.f32.mrf.mxu1  ;;  %16165 = vmatprep.mubr.f32.mxu0 %v27331_v17  ;;  %v16281_v2 = vsel %vm6543_vm15, %v16271_v38, %v25480_v45  ;;  %v16280_v29 = vsel %vm6543_vm15, %v16269_v1, %v16271_v38 }
 0x5c1   : > { %v12295_v30 = vadd.f32 %v12280_v10, %v25458_v11  ;;  %16236 = vmatprep.mubr.f32.mxu1 %v27331_v17 }
 0x5c2   : > { %v12559_v58 = vpop.f32.mrf.mxu0  ;;  %v25565_v26 = vpop.f32.mrf.mxu1 }
 0x5c3   : > { %v25567_v28 = vadd.f32 %v12559_v58, %v12289_v3  ;;  %18254 = vrot.lane.b32.xlu0 %v25254_v53, %s27333_s15  ;;  %21286 = vmatmul.mubr.msk.f32.gmra.mxu0 %vm11513_vm1, %v25531_v31 }
 0x5c4   : > { %v25573_v57 = vpop.permute.xlu1 %16558  ;;  %v25575_v49 = vpop.f32.mrf.mxu0  ;;  %16366 = vmatprep.mubr.f32.mxu0 %v27331_v17 }
 0x5c5   : > { %27342 = vst [vmem:[#allocation20_spill] sm:$0xff] %v25575_v49  ;;  %v15993_v11 = vpop.permute.xlu0 %15992  ;;  %v12482_v5 = vpop.f32.mrf.mxu1 }
 0x5c6   : > { %v15999_v33 = vsel %vm5663_vm13, %v25412_v60, %v15993_v11  ;;  %v12572_v53 = vadd.f32 %v12482_v5, %v25474_v59  ;;  %v12565_v13 = vpop.f32.mrf.mxu0  ;;  %vm20503_vm13 = vcmask 687104  }
 0x5c7   : > { %21287 = vmatprep.subr.msk.mxu1 %vm11520_vm0, %v15999_v33  ;;  %v25588_v7 = vadd.f32 %v12565_v13, %v12295_v30  ;;  %v25590_v46 = vpop.f32.mrf.mxu1  ;;  %18256 = vrot.lane.b32.xlu0 %v25233_v19, %s27333_s15  ;;  %s20596_s15 = sshll.u32 %s405_s1, 4  ;;  %s20597_s15 = int_to_ptr.vmem [resolvable:$true] %s20596_s15 }
 0x5c8   : > { %21288 = vmatpush1.msk.msra.mxu1 %vm11520_vm0, %v15998_v15  ;;  %v25597_v59 = vpop.permute.xlu1 %16834  ;;  %21295 = vmatmul.mubr.msk.f32.vlgmr.msra.gmra.mxu0 %vm11513_vm1, %v21291_v24  ;;  %v25600_v27 = vpop.f32.mrf.mxu0  ;;  %s22221_s0 = scalar_lea.vmem %s20597_s15, 16 }
 0x5c9   : > { %21289 = vmatmul.mubr.msk.f32.vlgmr.msra.gmra.mxu1 %vm11513_vm1, %v25506_v37  ;;  %21297 = vmatprep.subr.msk.mxu1 %vm11520_vm0, %v16281_v2  ;;  %v16275_v60 = vpop.permute.xlu0 %16274  ;;  %v12488_v19 = vpop.f32.mrf.mxu1  ;;  %v21292_v37 = vld [vmem:[%s27156_s3 + $0x118] sm:$0xff]  ;;  %p22222_p11 = scmp.ne.s32.totalorder %s20597_s15, %s22221_s0 }
 0x5ca   : > { %v16282_v25 = vsel %vm6543_vm15, %v25480_v45, %v16275_v60  ;;  %v16283_v21 = vsel %vm6543_vm15, %v16275_v60, %v16277_v12  ;;  %21298 = vmatpush1.msk.msra.mxu1 %vm11520_vm0, %v16280_v29  ;;  %v12578_v42 = vadd.f32 %v12488_v19, %v25496_v0  ;;  %v12767_v51 = vpop.f32.mrf.mxu0  ;;  %16242 = vmatprep.mubr.f32.mxu1 %v27331_v17  ;;  %vm20581_vm15 = vcmask 73728  }
 0x5cb   : > { %21301 = vmatprep.subr.msk.mxu0 %vm11520_vm0, %v16283_v21  ;;  %v25616_v18 = vadd.f32 %v12767_v51, %v12572_v53  ;;  %16372 = vmatprep.mubr.f32.mxu0 %v27331_v17  ;;  %v25619_v45 = vpop.f32.mrf.mxu1  ;;  %p22223_p12 = pnand %p22222_p11, %p22413_p5 }
 0x5cc   : > { %21302 = vmatpush1.msk.msra.mxu0 %vm11520_vm0, %v16282_v25  ;;  %v25622_v12 = vpop.f32.mrf.mxu0 }
 0x5cd   : > { %v16833_v0 = vpop.permute.xlu1 %16832  ;;  %21290 = vmatmul.mubr.msk.f32.gmra.mxu1 %vm11513_vm1, %v25531_v31  ;;  %21296 = vmatmul.mubr.msk.f32.gmra.mxu0 %vm11513_vm1, %v21292_v37  ;;  %v16551_v1 = vpop.permute.xlu0 %16550  ;;  %p22224_p13 = pneg %p22223_p12 }
 0x5ce   : > { %v16563_v32 = vsel %vm13736_vm14, %v16551_v1, %v25498_v61  ;;  %v12690_v40 = vpop.f32.mrf.mxu1  ;;  %v12773_v44 = vpop.f32.mrf.mxu0  ;;  %16443 = vmatprep.mubr.f32.mxu1 %v27331_v17  ;;  %16520 = vmatprep.mubr.f32.mxu0 %v27331_v17 }
 0x5cf   : > { %v12855_v3 = vadd.f32 %v12690_v40, %v25523_v34  ;;  %21307 = vmatprep.subr.msk.mxu1 %vm11520_vm0, %v16563_v32  ;;  %v25633_v47 = vadd.f32 %v12773_v44, %v12578_v42  ;;  %v16846_v32 = vsel %vm14021_vm7, %v16833_v0, %v25597_v59 }
 0x5d0   : > { %v25635_v50 = vpop.f32.mrf.mxu1  ;;  %v25637_v31 = vpop.f32.mrf.mxu0 }
 0x5d1   : > { %v25639_v38 = vpop.permute.xlu1 %16840  ;;  %21299 = vmatmul.mubr.msk.f32.vlgmr.msra.gmra.mxu1 %vm11513_vm1, %v21291_v24  ;;  %21303 = vmatmul.mubr.msk.f32.vlgmr.msra.gmra.mxu0 %vm11513_vm1, %v21291_v24  ;;  %v16555_v10 = vpop.permute.xlu0 %16554 }
 0x5d2   : > { %v16564_v30 = vsel %vm13736_vm14, %v25498_v61, %v16555_v10  ;;  %v16565_v34 = vsel %vm13736_vm14, %v16555_v10, %v25553_v23  ;;  %v12696_v58 = vpop.f32.mrf.mxu1  ;;  %v12974_v11 = vpop.f32.mrf.mxu0  ;;  %16449 = vmatprep.mubr.f32.mxu1 %v27331_v17  ;;  %16526 = vmatprep.mubr.f32.mxu0 %v27331_v17 }
 0x5d3   : > { %v12861_v5 = vadd.f32 %v12696_v58, %v25551_v62  ;;  %21311 = vmatprep.subr.msk.mxu0 %vm11520_vm0, %v16565_v34  ;;  %v25651_v33 = vadd.f32 %v12974_v11, %v12855_v3  ;;  %v21305_v62 = vld [vmem:[%s27156_s3 + $0x120] sm:$0xff]  ;;  %v21319_v58 = vld [vmem:[%s27156_s3 + $0x130] sm:$0xff]  ;;  %v16566_v11 = vsel %vm13736_vm14, %v25553_v23, %v25573_v57 }
 0x5d4   : > { %21312 = vmatpush1.msk.msra.mxu0 %vm11520_vm0, %v16564_v30  ;;  %v25654_v24 = vpop.f32.mrf.mxu1  ;;  %v25656_v61 = vpop.f32.mrf.mxu0 }
 0x5d5   : > { %21300 = vmatmul.mubr.msk.f32.gmra.mxu1 %vm11513_vm1, %v21292_v37  ;;  %21304 = vmatmul.mubr.msk.f32.gmra.mxu0 %vm11513_vm1, %v21292_v37  ;;  %v16549_v53 = vpop.permute.xlu0 %16548  ;;  %v25666_v29 = vpop.permute.xlu1 %16844 }
 0x5d6   : > { %v16562_v13 = vsel %vm13736_vm14, %v16549_v53, %v16551_v1  ;;  %v12844_v15 = vpop.f32.mrf.mxu1  ;;  %v12980_v2 = vpop.f32.mrf.mxu0  ;;  %16650 = vmatprep.mubr.f32.mxu1 %v27331_v17  ;;  %16727 = vmatprep.mubr.f32.mxu0 %v27331_v17 }
 0x5d7   : > { %v12859_v60 = vadd.f32 %v12844_v15, %v25567_v28  ;;  %21308 = vmatpush1.msk.msra.mxu1 %vm11520_vm0, %v16562_v13  ;;  %v25670_v19 = vadd.f32 %v12980_v2, %v12861_v5  ;;  %v21306_v28 = vld [vmem:[%s27156_s3 + $0x128] sm:$0xff] }
 0x5d8   : > { %v25672_v25 = vpop.f32.mrf.mxu1  ;;  %v25674_v21 = vpop.f32.mrf.mxu0 }
 0x5d9   : > { %27343 = vst [vmem:[#allocation13_spill] sm:$0xff] %v25672_v25  ;;  %27344 = vst [vmem:[#allocation16_spill] sm:$0xff] %v25674_v21  ;;  %21309 = vmatmul.mubr.msk.f32.vlgmr.msra.gmra.mxu1 %vm11513_vm1, %v21305_v62  ;;  %21313 = vmatmul.mubr.msk.f32.vlgmr.msra.gmra.mxu0 %vm11513_vm1, %v21305_v62  ;;  %v16837_v42 = vpop.permute.xlu0 %16836  ;;  %v25696_v30 = vpop.permute.xlu1 %17398 }
 0x5da   : > { %v16847_v51 = vsel %vm14021_vm7, %v25597_v59, %v16837_v42  ;;  %v12850_v37 = vpop.f32.mrf.mxu1  ;;  %v13128_v1 = vpop.f32.mrf.mxu0  ;;  %16656 = vmatprep.mubr.f32.mxu1 %v27331_v17  ;;  %16733 = vmatprep.mubr.f32.mxu0 %v27331_v17 }
 0x5db   : > { %v12865_v40 = vadd.f32 %v12850_v37, %v25588_v7  ;;  %21321 = vmatprep.subr.msk.mxu0 %vm11520_vm0, %v16847_v51  ;;  %v25689_v44 = vadd.f32 %v13128_v1, %v12859_v60  ;;  %v21320_v51 = vld [vmem:[%s27156_s3 + $0x138] sm:$0xff] }
 0x5dc   : > { %21322 = vmatpush1.msk.msra.mxu0 %vm11520_vm0, %v16846_v32  ;;  %v25692_v3 = vpop.f32.mrf.mxu1  ;;  %v25694_v10 = vpop.f32.mrf.mxu0 }
 0x5dd   : > { %27345 = vst [vmem:[#allocation14_spill] sm:$0xff] %v25694_v10  ;;  %21310 = vmatmul.mubr.msk.f32.gmra.mxu1 %vm11513_vm1, %v21306_v28  ;;  %21314 = vmatmul.mubr.msk.f32.gmra.mxu0 %vm11513_vm1, %v21306_v28  ;;  %v16561_v34 = vpop.permute.xlu0 %16560  ;;  %v25729_v37 = vpop.permute.xlu1 %17400 }
 0x5de   : > { %v16567_v7 = vsel %vm13736_vm14, %v25573_v57, %v16561_v34  ;;  %v13051_v59 = vpop.f32.mrf.mxu1  ;;  %v13134_v0 = vpop.f32.mrf.mxu0  ;;  %16804 = vmatprep.mubr.f32.mxu1 %v27331_v17  ;;  %16934 = vmatprep.mubr.f32.mxu0 %v27331_v17  ;;  %v22215_v34 = vld [vmem:[#allocation3 + $0x30] sm:$0x3f]  ;;  %v17410_v10 = vsel %vm1263_vm3, %v25696_v30, %v25729_v37 }
 0x5df   : > { %v13141_v5 = vadd.f32 %v13051_v59, %v25616_v18  ;;  %21315 = vmatprep.subr.msk.mxu1 %vm11520_vm0, %v16567_v7  ;;  %v25712_v53 = vadd.f32 %v13134_v0, %v12865_v40 }
 0x5e0   : > { %21316 = vmatpush1.msk.msra.mxu1 %vm11520_vm0, %v16566_v11  ;;  %v25715_v13 = vpop.f32.mrf.mxu1  ;;  %v25717_v15 = vpop.f32.mrf.mxu0 }
 0x5e1   : > { %21317 = vmatmul.mubr.msk.f32.vlgmr.msra.gmra.mxu1 %vm11513_vm1, %v21305_v62  ;;  %21323 = vmatmul.mubr.msk.f32.vlgmr.msra.gmra.mxu0 %vm11513_vm1, %v21319_v58  ;;  %v16839_v2 = vpop.permute.xlu0 %16838 }
 0x5e2   : > { %v16848_v60 = vsel %vm14021_vm7, %v16837_v42, %v16839_v2  ;;  %v16849_v23 = vsel %vm14021_vm7, %v16839_v2, %v25639_v38  ;;  %v13057_v57 = vpop.f32.mrf.mxu1  ;;  %v13335_v18 = vpop.f32.mrf.mxu0  ;;  %16810 = vmatprep.mubr.f32.mxu1 %v27331_v17  ;;  %16940 = vmatprep.mubr.f32.mxu0 %v27331_v17 }
 0x5e3   : > { %v13147_v62 = vadd.f32 %v13057_v57, %v25633_v47  ;;  %21325 = vmatprep.subr.msk.mxu1 %vm11520_vm0, %v16849_v23  ;;  %v25733_v42 = vadd.f32 %v13335_v18, %v13141_v5  ;;  %v25758_v2 = vpop.permute.xlu1 %17680 }
 0x5e4   : > { %21326 = vmatpush1.msk.msra.mxu1 %vm11520_vm0, %v16848_v60  ;;  %v25736_v1 = vpop.f32.mrf.mxu1  ;;  %v25738_v32 = vpop.f32.mrf.mxu0  ;;  %v22217_v60 = vld [vmem:[#allocation3 + $0x28] sm:$0x3f] }
 0x5e5   : > { %21318 = vmatmul.mubr.msk.f32.gmra.mxu1 %vm11513_vm1, %v21306_v28  ;;  %21324 = vmatmul.mubr.msk.f32.gmra.mxu0 %vm11513_vm1, %v21320_v51  ;;  %v16843_v40 = vpop.permute.xlu0 %16842 }
 0x5e6   : > { %21335 = vmatprep.subr.msk.mxu1 %vm11520_vm0, %v22215_v34  ;;  %v16850_v47 = vsel %vm14021_vm7, %v25639_v38, %v16843_v40  ;;  %v16851_v7 = vsel %vm14021_vm7, %v16843_v40, %v25666_v29  ;;  %v13258_v59 = vpop.f32.mrf.mxu1  ;;  %v13341_v0 = vpop.f32.mrf.mxu0  ;;  %17011 = vmatprep.mubr.f32.mxu1 %v27331_v17  ;;  %v22219_v40 = vld [vmem:[#allocation3 + $0x20] sm:$0x3f] }
 0x5e7   : > { %v13423_v11 = vadd.f32 %v13258_v59, %v25651_v33  ;;  %21329 = vmatprep.subr.msk.mxu0 %vm11520_vm0, %v16851_v7  ;;  %v25750_v28 = vadd.f32 %v13341_v0, %v13147_v62  ;;  %17088 = vmatprep.mubr.f32.mxu0 %v27331_v17  ;;  %v22216_v33 = vld [vmem:[#allocation3 + $0x38] sm:$0x3f]  ;;  %v22218_v62 = vld [vmem:[#allocation3] sm:$0x3f] }
 0x5e8   : > { %21330 = vmatpush1.msk.msra.mxu0 %vm11520_vm0, %v16850_v47  ;;  %v25754_v5 = vpop.f32.mrf.mxu1  ;;  %v25756_v38 = vpop.f32.mrf.mxu0 }
 0x5e9   : > { %21327 = vmatmul.mubr.msk.f32.vlgmr.msra.gmra.mxu1 %vm11513_vm1, %v21319_v58  ;;  %21331 = vmatmul.mubr.msk.f32.vlgmr.msra.gmra.mxu0 %vm11513_vm1, %v21319_v58  ;;  %v17397_v29 = vpop.permute.xlu0 %17396 }
 0x5ea   : > { %21336 = vmatpush1.msk.msra.mxu1 %vm11520_vm0, %v22216_v33  ;;  %21339 = vmatprep.subr.msk.mxu0 %vm11520_vm0, %v22217_v60  ;;  %v17409_v23 = vsel %vm1263_vm3, %v17397_v29, %v25696_v30  ;;  %v13264_v57 = vpop.f32.mrf.mxu1  ;;  %v13542_v18 = vpop.f32.mrf.mxu0  ;;  %v25847_v30 = vld [vmem:[%s27156_s3 + $0x158] sm:$0xff] }
 0x5eb   : > { %21340 = vmatpush1.msk.msra.mxu0 %vm11520_vm0, %v22218_v62  ;;  %21343 = vmatprep.subr.msk.mxu1 %vm11520_vm0, %v22219_v40  ;;  %v13429_v58 = vadd.f32 %v13264_v57, %v25670_v19  ;;  %v25769_v34 = vadd.f32 %v13542_v18, %v13423_v11  ;;  %v21333_v19 = vld [vmem:[%s27156_s3 + $0x140] sm:$0xff] }
 0x5ec   : > { %21349 = vmatprep.subr.msk.mxu0 %vm11520_vm0, %v17409_v23  ;;  %17017 = vmatprep.mubr.f32.mxu1 %v27331_v17  ;;  %v25773_v47 = vpop.f32.mrf.mxu1  ;;  %v25775_v7 = vpop.f32.mrf.mxu0  ;;  %v22220_v40 = vld [vmem:[#allocation3 + $0x10] sm:$0x3f] }
 0x5ed   : > { %27346 = vst [vmem:[#allocation15_spill] sm:$0xff] %v25773_v47  ;;  %27347 = vst [vmem:[#allocation17_spill] sm:$0xff] %v25775_v7  ;;  %17094 = vmatprep.mubr.f32.mxu0 %v27331_v17  ;;  %21328 = vmatmul.mubr.msk.f32.gmra.mxu1 %vm11513_vm1, %v21320_v51  ;;  %v17395_v59 = vpop.permute.xlu0 %17394  ;;  %v25788_v23 = vpop.permute.xlu1 %17404 }
 0x5ee   : > { %21332 = vmatmul.mubr.msk.f32.gmra.mxu0 %vm11513_vm1, %v21320_v51  ;;  %v13412_v0 = vpop.f32.mrf.mxu1  ;;  %v13548_v33 = vpop.f32.mrf.mxu0  ;;  %17198 = vmatprep.mubr.f32.mxu1 %v27331_v17  ;;  %v17408_v62 = vsel %vm1263_vm3, %v17395_v59, %v17397_v29 }
 0x5ef   : > { %v13427_v11 = vadd.f32 %v13412_v0, %v25689_v44  ;;  %v25785_v60 = vadd.f32 %v13548_v33, %v13429_v58  ;;  %17275 = vmatprep.mubr.f32.mxu0 %v27331_v17  ;;  %v21334_v0 = vld [vmem:[%s27156_s3 + $0x148] sm:$0xff] }
 0x5f0   : > { %v25790_v57 = vpop.f32.mrf.mxu1  ;;  %v25795_v18 = vpop.f32.mrf.mxu0 }
 0x5f1   : > { %27348 = vst [vmem:[#allocation21_spill] sm:$0xff] %v25790_v57  ;;  %21337 = vmatmul.mubr.msk.f32.vlgmr.msra.gmra.mxu1 %vm11513_vm1, %v21333_v19  ;;  %v25793_v51 = vpop.permute.xlu0 %17402  ;;  %27349 = vst [vmem:[#allocation18_spill] sm:$0xff] %v25795_v18 }
 0x5f2   : > { %21341 = vmatmul.mubr.msk.f32.vlgmr.msra.gmra.mxu0 %vm11513_vm1, %v21333_v19  ;;  %21344 = vmatpush1.msk.msra.mxu1 %vm11520_vm0, %v22220_v40  ;;  %v17411_v44 = vsel %vm1263_vm3, %v25729_v37, %v25793_v51  ;;  %v13418_v58 = vpop.f32.mrf.mxu1 }
 0x5f3   : > { %21350 = vmatpush1.msk.msra.mxu0 %vm11520_vm0, %v17408_v62  ;;  %v13433_v33 = vadd.f32 %v13418_v58, %v25712_v53  ;;  %21353 = vmatprep.subr.msk.mxu1 %vm11520_vm0, %v17411_v44  ;;  %v13696_v29 = vpop.f32.mrf.mxu0  ;;  %v25818_v53 = vpop.permute.xlu1 %17684 }
 0x5f4   : > { %17204 = vmatprep.mubr.f32.mxu1 %v27331_v17  ;;  %17281 = vmatprep.mubr.f32.mxu0 %v27331_v17  ;;  %v25811_v59 = vpop.f32.mrf.mxu1  ;;  %v13711_v40 = vadd.f32 %v13696_v29, %v13427_v11  ;;  %v25827_v11 = vld [vmem:[%s27156_s3 + $0x150] sm:$0xff] }
 0x5f5   : > { %21338 = vmatmul.mubr.msk.f32.gmra.mxu1 %vm11513_vm1, %v21334_v0  ;;  %v25816_v62 = vpop.f32.mrf.mxu0  ;;  %v25820_v44 = vpop.permute.xlu0 %17682 }
 0x5f6   : > { %21342 = vmatmul.mubr.msk.f32.gmra.mxu0 %vm11513_vm1, %v21334_v0  ;;  %v13619_v57 = vpop.f32.mrf.mxu1  ;;  %17352 = vmatprep.mubr.f32.mxu1 %v27331_v17  ;;  %27350 = vst [vmem:[#allocation19_spill] sm:$0xff] %v25816_v62  ;;  %v17693_v62 = vsel %vm2143_vm5, %v25758_v2, %v25820_v44 }
 0x5f7   : > { %v13709_v58 = vadd.f32 %v13619_v57, %v25733_v42  ;;  %17496 = vmatprep.mubr.f32.mxu0 %v27331_v17 }
 0x5f8   : > { %v25829_v29 = vpop.f32.mrf.mxu1 }
 0x5f9   : > { %21345 = vmatmul.mubr.msk.f32.vlgmr.msra.gmra.mxu1 %vm11513_vm1, %v21333_v19 }
 0x5fa   : > { %21351 = vmatmul.mubr.msk.f32.vlgmr.msra.gmra.mxu0 %vm11513_vm1, %v25827_v11  ;;  %21354 = vmatpush1.msk.msra.mxu1 %vm11520_vm0, %v17410_v10  ;;  %v13625_v42 = vpop.f32.mrf.mxu1  ;;  %v13702_v57 = vpop.f32.mrf.mxu0  ;;  %v18527_v10 = vld [vmem:[%s27157_s4] sm:$0xff] }
 0x5fb   : > { %21363 = vmatprep.subr.msk.mxu1 %vm11520_vm0, %v17693_v62  ;;  %v13715_v25 = vadd.f32 %v13625_v42, %v25750_v28  ;;  %v13717_v49 = vadd.f32 %v13702_v57, %v13433_v33  ;;  %17358 = vmatprep.mubr.f32.mxu1 %v27331_v17  ;;  %v17679_v62 = vpop.permute.xlu1 %17678 }
 0x5fc   : > { %17502 = vmatprep.mubr.f32.mxu0 %v27331_v17  ;;  %v25850_v37 = vpop.f32.mrf.mxu1  ;;  %v25852_v19 = vpop.f32.mrf.mxu0  ;;  %18531 = vperm.xlu0 %22039, %v18527_v10  }
 0x5fd   : > { %21346 = vmatmul.mubr.msk.f32.gmra.mxu1 %vm11513_vm1, %v21334_v0  ;;  %v17692_v0 = vsel %vm2143_vm5, %v17679_v62, %v25758_v2 }
 0x5fe   : > { %21352 = vmatmul.mubr.msk.f32.gmra.mxu0 %vm11513_vm1, %v25847_v30  ;;  %v13827_v28 = vpop.f32.mrf.mxu1  ;;  %v13904_v33 = vpop.f32.mrf.mxu0  ;;  %17573 = vmatprep.mubr.f32.mxu1 %v27331_v17 }
 0x5ff   : > { %v13992_v42 = vadd.f32 %v13827_v28, %v25769_v34  ;;  %v13994_v57 = vadd.f32 %v13904_v33, %v13709_v58  ;;  %17650 = vmatprep.mubr.f32.mxu0 %v27331_v17  ;;  %v25909_v7 = vpop.permute.xlu1 %17966 }
 0x600   : > { %v25863_v16 = vpop.f32.mrf.mxu1  ;;  %v25865_v18 = vpop.f32.mrf.mxu0 }
 0x601   : > { %27351 = vst [vmem:[#allocation22_spill] sm:$0xff] %v25863_v16  ;;  %21355 = vmatmul.mubr.msk.f32.vlgmr.msra.gmra.mxu1 %vm11513_vm1, %v25827_v11 }
 0x602   : > { %21364 = vmatpush1.msk.msra.mxu1 %vm11520_vm0, %v17692_v0  ;;  %v13833_v10 = vpop.f32.mrf.mxu1  ;;  %v13910_v47 = vpop.f32.mrf.mxu0  ;;  %17579 = vmatprep.mubr.f32.mxu1 %v27331_v17  ;;  %v25884_v0 = vld [vmem:[%s27156_s3 + $0x160] sm:$0xff] }
 0x603   : > { %v13998_v34 = vadd.f32 %v13833_v10, %v25785_v60  ;;  %v14000_v58 = vadd.f32 %v13910_v47, %v13715_v25 }
 0x604   : > { %v25874_v28 = vpop.f32.mrf.mxu1  ;;  %v25876_v33 = vpop.f32.mrf.mxu0 }
 0x605   : > { %27352 = vst [vmem:[#allocation25_spill] sm:$0xff] %v25874_v28  ;;  %27353 = vst [vmem:[#allocation23_spill] sm:$0xff] %v25876_v33  ;;  %21356 = vmatmul.mubr.msk.f32.gmra.mxu1 %vm11513_vm1, %v25847_v30  ;;  %v25896_v28 = vld [vmem:[%s27156_s3 + $0x168] sm:$0xff] }
 0x606   : > { %v13981_v2 = vpop.f32.mrf.mxu1  ;;  %v14112_v62 = vpop.f32.mrf.mxu0  ;;  %17780 = vmatprep.mubr.f32.mxu1 %v27331_v17 }
 0x607   : > { %v13996_v16 = vadd.f32 %v13981_v2, %v13711_v40  ;;  %v14277_v35 = vadd.f32 %v14112_v62, %v13992_v42  ;;  %v11928_v40 = vadd.f32 %v25423_v6, %v25355_v22  ;;  %v12011_v62 = vadd.f32 %v25468_v55, %v25406_v48 }
 0x608   : > { %v25886_v60 = vpop.f32.mrf.mxu1  ;;  %v25888_v25 = vpop.f32.mrf.mxu0  ;;  %v11934_v22 = vadd.f32 %v25455_v41, %v25373_v52 }
 0x609   : > { %27354 = vst [vmem:[#allocation24_spill] sm:$0xff] %v25886_v60  ;;  %27355 = vst [vmem:[#allocation33_spill] sm:$0xff] %v25888_v25  ;;  %21365 = vmatmul.mubr.msk.f32.vlgmr.msra.gmra.mxu1 %vm11513_vm1, %v25884_v0  ;;  %v12288_v6 = vadd.f32 %v25485_v9, %v11928_v40  ;;  %v12296_v55 = vadd.f32 %v25565_v26, %v12011_v62 }
 0x60a   : > { %v13987_v47 = vpop.f32.mrf.mxu1  ;;  %v14118_v10 = vpop.f32.mrf.mxu0  ;;  %17786 = vmatprep.mubr.f32.mxu1 %v27331_v17  ;;  %v12294_v21 = vadd.f32 %v25512_v54, %v11934_v22  ;;  %v17412_v54 = vsel %vm1263_vm3, %v25793_v51, %v25788_v23 }
 0x60b   : > { %v14002_v14 = vadd.f32 %v13987_v47, %v13717_v49  ;;  %v14283_v33 = vadd.f32 %v14118_v10, %v13998_v34  ;;  %v12581_v52 = vadd.f32 %v25600_v27, %v12296_v55 }
 0x60c   : > { %v25900_v42 = vpop.f32.mrf.mxu1  ;;  %v25902_v2 = vpop.f32.mrf.mxu0  ;;  %v12579_v27 = vadd.f32 %v25619_v45, %v12294_v21  ;;  %v17694_v45 = vsel %vm2143_vm5, %v25820_v44, %v25818_v53 }
 0x60d   : > { %27356 = vst [vmem:[#allocation26_spill] sm:$0xff] %v25902_v2  ;;  %21366 = vmatmul.mubr.msk.f32.gmra.mxu1 %vm11513_vm1, %v25896_v28  ;;  %v11851_v2 = vadd.f32 %v25402_v63, %v25324_v4  ;;  %v11857_v63 = vadd.f32 %v25421_v8, %v25353_v20  ;;  %v12866_v20 = vadd.f32 %v25692_v3, %v12581_v52 }
 0x60e   : > { %v14189_v60 = vpop.f32.mrf.mxu1  ;;  %v14266_v25 = vpop.f32.mrf.mxu0  ;;  %17934 = vmatprep.mubr.f32.mxu1 %v27331_v17  ;;  %v12864_v3 = vadd.f32 %v25637_v31, %v12579_v27 }
 0x60f   : > { %v14279_v49 = vadd.f32 %v14189_v60, %v13994_v57  ;;  %v25911_v34 = vadd.f32 %v14266_v25, %v13996_v16  ;;  %v12573_v16 = vadd.f32 %v25590_v46, %v12288_v6  ;;  %v13150_v55 = vadd.f32 %v25717_v15, %v12866_v20 }
 0x610   : > { %v25916_v47 = vpop.f32.mrf.mxu1  ;;  %v25918_v48 = vpop.f32.mrf.mxu0 }
 0x611   : > { %v13434_v15 = vadd.f32 %v25811_v59, %v13150_v55 }
 0x613   : > { %v14195_v10 = vpop.f32.mrf.mxu1 }
 0x614   : > { %v14285_v57 = vadd.f32 %v14195_v10, %v14000_v58  ;;  %v14272_v60 = vpop.f32.mrf.mxu0  ;;  %v25925_v25 = vpop.permute.xlu1 %17690  ;;  %v12858_v58 = vadd.f32 %v25622_v12, %v12573_v16  ;;  %v12292_v12 = vadd.f32 %v25515_v56, %v11857_v63 }
 0x615   : > { %v25928_v41 = vadd.f32 %v14272_v60, %v14002_v14  ;;  %v25930_v9 = vpop.f32.mrf.mxu1  ;;  %v17407_v40 = vpop.permute.xlu0 %17406  ;;  %v12286_v14 = vadd.f32 %v25471_v39, %v11851_v2 }
 0x616   : > { %v25932_v26 = vpop.f32.mrf.mxu0  ;;  %v17413_v4 = vsel %vm1263_vm3, %v25788_v23, %v17407_v40  ;;  %v12577_v44 = vadd.f32 %v25560_v36, %v12292_v12  ;;  %v13718_v40 = vadd.f32 %v25852_v19, %v13434_v15 }
 0x617   : > { %v14366_v46 = vpop.f32.mrf.mxu1  ;;  %21357 = vmatprep.subr.msk.mxu0 %vm11520_vm0, %v17413_v4  ;;  %v12571_v21 = vadd.f32 %v25538_v43, %v12286_v14 }
 0x618   : > { %v14531_v62 = vadd.f32 %v14366_v46, %v14277_v35  ;;  %v14443_v22 = vpop.f32.mrf.mxu0  ;;  %21358 = vmatpush1.msk.msra.mxu0 %vm11520_vm0, %v17412_v54  ;;  %v25946_v6 = vpop.permute.xlu1 %17968  ;;  %v12862_v46 = vadd.f32 %v25654_v24, %v12577_v44 }
 0x619   : > { %v25949_v8 = vadd.f32 %v14443_v22, %v14279_v49  ;;  %v25951_v23 = vpop.f32.mrf.mxu1  ;;  %21359 = vmatmul.mubr.msk.f32.vlgmr.msra.gmra.mxu0 %vm11513_vm1, %v25827_v11  ;;  %v17687_v39 = vpop.permute.xlu0 %17686  ;;  %v13142_v11 = vadd.f32 %v25715_v13, %v12858_v58 }
 0x61a   : > { %v25955_v51 = vpop.f32.mrf.mxu0  ;;  %v17695_v35 = vsel %vm2143_vm5, %v25818_v53, %v17687_v39  ;;  %17656 = vmatprep.mubr.f32.mxu0 %v27331_v17 }
 0x61b   : > { %21367 = vmatprep.subr.msk.mxu0 %vm11520_vm0, %v17695_v35  ;;  %v27358_v35 = vld [vmem:[#allocation17_spill] sm:$0xff] }
 0x61c   : > { %v14372_v2 = vpop.f32.mrf.mxu1  ;;  %v14449_v49 = vpop.f32.mrf.mxu0  ;;  %21368 = vmatpush1.msk.msra.mxu0 %vm11520_vm0, %v17694_v45 }
 0x61d   : > { %v14537_v10 = vadd.f32 %v14372_v2, %v14283_v33  ;;  %v25970_v16 = vadd.f32 %v14449_v49, %v14285_v57  ;;  %v25972_v53 = vpop.permute.xlu1 %17972  ;;  %21360 = vmatmul.mubr.msk.f32.gmra.mxu0 %vm11513_vm1, %v25847_v30  ;;  %v17965_v56 = vpop.permute.xlu0 %17964  ;;  %v12856_v33 = vadd.f32 %v25635_v50, %v12571_v21  ;;  %v13148_v30 = vadd.f32 %v25736_v1, %v12864_v3  ;;  %v27359_v21 = vld [vmem:[#allocation23_spill] sm:$0xff]  ;;  %v27361_v49 = vld [vmem:[#allocation10_spill] sm:$0xff] }
 0x61e   : > { %v25976_v43 = vpop.f32.mrf.mxu1  ;;  %v25978_v31 = vpop.f32.mrf.mxu0  ;;  %v17977_v13 = vsel %vm12314_vm2, %v17965_v56, %v25909_v7  ;;  %17857 = vmatprep.mubr.f32.mxu0 %v27331_v17  ;;  %v13426_v57 = vadd.f32 %v25738_v32, %v13142_v11 }
 0x61f   : > { %21377 = vmatprep.subr.msk.mxu0 %vm11520_vm0, %v17977_v13  ;;  %v13432_v14 = vadd.f32 %v25756_v38, %v13148_v30  ;;  %v17978_v30 = vsel %vm12314_vm2, %v25909_v7, %v25946_v6 }
 0x620   : > { %v14520_v60 = vpop.f32.mrf.mxu1  ;;  %v14664_v52 = vpop.f32.mrf.mxu0  ;;  %v13710_v36 = vadd.f32 %v25829_v29, %v13426_v57  ;;  %v13140_v29 = vadd.f32 %v25656_v61, %v12856_v33 }
 0x621   : > { %v25991_v4 = vadd.f32 %v14520_v60, %v25911_v34  ;;  %v25993_v63 = vadd.f32 %v14664_v52, %v14531_v62  ;;  %21369 = vmatmul.mubr.msk.f32.vlgmr.msra.gmra.mxu0 %vm11513_vm1, %v25884_v0  ;;  %v17689_v59 = vpop.permute.xlu0 %17688  ;;  %v14003_v34 = vadd.f32 %v25900_v42, %v13718_v40  ;;  %v26007_v54 = vpop.permute.xlu1 %18248  ;;  %v27364_v60 = vld [vmem:[#allocation18_spill] sm:$0xff] }
 0x622   : > { %v25998_v50 = vpop.f32.mrf.mxu1  ;;  %v26000_v1 = vpop.f32.mrf.mxu0  ;;  %v17696_v32 = vsel %vm2143_vm5, %v17687_v39, %v17689_v59  ;;  %v17697_v19 = vsel %vm2143_vm5, %v17689_v59, %v25925_v25  ;;  %17863 = vmatprep.mubr.f32.mxu0 %v27331_v17  ;;  %v13995_v27 = vadd.f32 %v25865_v18, %v13710_v36  ;;  %v13424_v61 = vadd.f32 %v25754_v5, %v13140_v29  ;;  %v27357_v5 = vld [vmem:[#allocation16_spill] sm:$0xff]  ;;  %v27365_v59 = vld [vmem:[#allocation33_spill] sm:$0xff] }
 0x623   : > { %21371 = vmatprep.subr.msk.mxu1 %vm11520_vm0, %v17697_v19  ;;  %v14288_v25 = vadd.f32 %v25932_v26, %v14003_v34  ;;  %v13716_v26 = vadd.f32 %v25850_v37, %v13432_v14  ;;  %v27367_v29 = vld [vmem:[#allocation25_spill] sm:$0xff]  ;;  %vm22308_vm5 = vmmov 0  }
 0x624   : > { %v14526_v58 = vpop.f32.mrf.mxu1  ;;  %v14670_v62 = vpop.f32.mrf.mxu0  ;;  %21372 = vmatpush1.msk.msra.mxu1 %vm11520_vm0, %v17696_v32  ;;  %v14280_v20 = vadd.f32 %v25916_v47, %v13995_v27  ;;  %v13708_v45 = vadd.f32 %v27358_v35, %v13424_v61  ;;  %v27360_v47 = vld [vmem:[#allocation12_spill] sm:$0xff] }
 0x625   : > { %v26017_v42 = vadd.f32 %v14526_v58, %v25928_v41  ;;  %v26019_v22 = vadd.f32 %v14670_v62, %v14537_v10  ;;  %21370 = vmatmul.mubr.msk.f32.gmra.mxu0 %vm11513_vm1, %v25896_v28  ;;  %21373 = vmatmul.mubr.msk.f32.vlgmr.msra.gmra.mxu1 %vm11513_vm1, %v25884_v0  ;;  %v17963_v24 = vpop.permute.xlu0 %17962  ;;  %v21375_v41 = vld [vmem:[%s27156_s3 + $0x170] sm:$0xff]  ;;  %v13146_v0 = vadd.f32 %v27357_v5, %v12862_v46  ;;  %v26050_v13 = vpop.permute.xlu1 %18252 }
 0x626   : > { %v14528_v38 = vpop.f32.mrf.mxu1  ;;  %v17976_v18 = vsel %vm12314_vm2, %v17963_v24, %v17965_v56  ;;  %17940 = vmatprep.mubr.f32.mxu1 %v27331_v17  ;;  %18064 = vmatprep.mubr.f32.mxu0 %v27331_v17  ;;  %v14001_v3 = vadd.f32 %v27359_v21, %v13716_v26  ;;  %v14534_v11 = vadd.f32 %v25955_v51, %v14280_v20  ;;  %v27362_v10 = vld [vmem:[#allocation15_spill] sm:$0xff] }
 0x627   : > { %v26034_v39 = vadd.f32 %v14528_v38, %v14288_v25  ;;  %21378 = vmatpush1.msk.msra.mxu0 %vm11520_vm0, %v17976_v18  ;;  %v12005_v55 = vadd.f32 %v27361_v49, %v27360_v47  ;;  %v13430_v56 = vadd.f32 %v27362_v10, %v13146_v0  ;;  %v27368_v25 = vld [vmem:[#allocation26_spill] sm:$0xff] }
 0x628   : > { %v14741_v12 = vpop.f32.mrf.mxu1  ;;  %v14286_v33 = vadd.f32 %v25930_v9, %v14001_v3  ;;  %v27366_v9 = vld [vmem:[#allocation11_spill] sm:$0xff]  ;;  %v21390_v3 = vld [vmem:[%s27156_s3 + $0x188] sm:$0xff] }
 0x629   : > { %v26042_v2 = vadd.f32 %v14741_v12, %v25949_v8  ;;  %21374 = vmatmul.mubr.msk.f32.gmra.mxu1 %vm11513_vm1, %v25896_v28  ;;  %21379 = vmatmul.mubr.msk.f32.vlgmr.msra.gmra.mxu0 %vm11513_vm1, %v21375_v41  ;;  %v17971_v37 = vpop.permute.xlu0 %17970  ;;  %v21376_v28 = vld [vmem:[%s27156_s3 + $0x178] sm:$0xff]  ;;  %v27363_v8 = vld [vmem:[#allocation22_spill] sm:$0xff]  ;;  %v13714_v52 = vadd.f32 %v27364_v60, %v13430_v56  ;;  %v18247_v58 = vpop.permute.xlu1 %18246 }
 0x62a   : > { %v14743_v15 = vpop.f32.mrf.mxu1  ;;  %v17979_v51 = vsel %vm12314_vm2, %v25946_v6, %v17971_v37  ;;  %18070 = vmatprep.mubr.f32.mxu0 %v27331_v17  ;;  %18141 = vmatprep.mubr.f32.mxu1 %v27331_v17  ;;  %v13993_v44 = vadd.f32 %v27363_v8, %v13708_v45  ;;  %v14540_v32 = vadd.f32 %v25978_v31, %v14286_v33  ;;  %v27373_v8 = vld [vmem:[#allocation19_spill] sm:$0xff]  ;;  %v27374_v33 = vld [vmem:[#allocation24_spill] sm:$0xff] }
 0x62b   : > { %v26064_v57 = vadd.f32 %v14743_v15, %v14534_v11  ;;  %21381 = vmatprep.subr.msk.mxu1 %vm11520_vm0, %v17979_v51  ;;  %v12290_v6 = vadd.f32 %v27366_v9, %v12005_v55  ;;  %v13999_v31 = vadd.f32 %v27367_v29, %v13714_v52  ;;  %v17980_v14 = vsel %vm12314_vm2, %v17971_v37, %v25972_v53  ;;  %v27370_v11 = vld [vmem:[#allocation13_spill] sm:$0xff] }
 0x62c   : > { %v14747_v40 = vpop.f32.mrf.mxu1  ;;  %21382 = vmatpush1.msk.msra.mxu1 %vm11520_vm0, %v17978_v30  ;;  %v14278_v36 = vadd.f32 %v27365_v59, %v13993_v44  ;;  %v27372_v51 = vld [vmem:[#allocation21_spill] sm:$0xff] }
 0x62d   : > { %v26072_v19 = vadd.f32 %v14747_v40, %v25970_v16  ;;  %21380 = vmatmul.mubr.msk.f32.gmra.mxu0 %vm11513_vm1, %v21376_v28  ;;  %21383 = vmatmul.mubr.msk.f32.vlgmr.msra.gmra.mxu1 %vm11513_vm1, %v21375_v41  ;;  %v17975_v7 = vpop.permute.xlu0 %17974  ;;  %v14284_v24 = vadd.f32 %v27368_v25, %v13999_v31  ;;  %v18259_v49 = vpop.permute.xlu1 %18258 }
 0x62e   : > { %v14749_v34 = vpop.f32.mrf.mxu1  ;;  %v17981_v46 = vsel %vm12314_vm2, %v25972_v53, %v17975_v7  ;;  %18147 = vmatprep.mubr.f32.mxu1 %v27331_v17  ;;  %18218 = vmatprep.mubr.f32.mxu0 %v27331_v17  ;;  %v14532_v16 = vadd.f32 %v25951_v23, %v14278_v36  ;;  %v14672_v53 = vpop.f32.mrf.mxu0 }
 0x62f   : > { %v26085_v27 = vadd.f32 %v14749_v34, %v14540_v32  ;;  %21385 = vmatprep.subr.msk.mxu0 %vm11520_vm0, %v17981_v46  ;;  %v14538_v5 = vadd.f32 %v25976_v43, %v14284_v24 }
 0x630   : > { %v14948_v62 = vpop.f32.mrf.mxu1  ;;  %21386 = vmatpush1.msk.msra.mxu0 %vm11520_vm0, %v17980_v14  ;;  %v14830_v61 = vadd.f32 %v26000_v1, %v14532_v16  ;;  %v21389_v1 = vld [vmem:[%s27156_s3 + $0x180] sm:$0xff] }
 0x631   : > { %v26092_v38 = vadd.f32 %v14948_v62, %v25993_v63  ;;  %21384 = vmatmul.mubr.msk.f32.gmra.mxu1 %vm11513_vm1, %v21376_v28  ;;  %21387 = vmatmul.mubr.msk.f32.vlgmr.msra.gmra.mxu0 %vm11513_vm1, %v21375_v41  ;;  %v18251_v23 = vpop.permute.xlu0 %18250  ;;  %v27369_v63 = vld [vmem:[#allocation20_spill] sm:$0xff]  ;;  %v18260_v41 = vsel %vm12599_vm4, %v18247_v58, %v26007_v54  ;;  %v14836_v45 = vadd.f32 %v14672_v53, %v14538_v5 }
 0x632   : > { %v14950_v18 = vpop.f32.mrf.mxu1  ;;  %v18261_v26 = vsel %vm12599_vm4, %v26007_v54, %v18251_v23  ;;  %18224 = vmatprep.mubr.f32.mxu0 %v27331_v17  ;;  %18348 = vmatprep.mubr.f32.mxu1 %v27331_v17  ;;  %v12575_v20 = vadd.f32 %v27369_v63, %v12290_v6  ;;  %v18262_v37 = vsel %vm12599_vm4, %v18251_v23, %v26050_v13 }
 0x633   : > { %v26107_v0 = vadd.f32 %v14950_v18, %v14830_v61  ;;  %21391 = vmatprep.subr.msk.mxu1 %vm11520_vm0, %v18261_v26 }
 0x634   : > { %v14954_v35 = vpop.f32.mrf.mxu1  ;;  %21392 = vmatpush1.msk.msra.mxu1 %vm11520_vm0, %v18260_v41 }
 0x635   : > { %v26112_v12 = vadd.f32 %v14954_v35, %v26019_v22  ;;  %21388 = vmatmul.mubr.msk.f32.gmra.mxu0 %vm11513_vm1, %v21376_v28  ;;  %21393 = vmatmul.mubr.msk.f32.vlgmr.msra.gmra.mxu1 %vm11513_vm1, %v21389_v1  ;;  %v18255_v21 = vpop.permute.xlu0 %18254  ;;  %v12860_v22 = vadd.f32 %v27370_v11, %v12575_v20 }
 0x636   : > { %v14956_v43 = vpop.f32.mrf.mxu1  ;;  %v18263_v54 = vsel %vm12599_vm4, %v26050_v13, %v18255_v21  ;;  %18354 = vmatprep.mubr.f32.mxu1 %v27331_v17  ;;  %18425 = vmatprep.mubr.f32.mxu0 %v27331_v17  ;;  %v27371_v13 = vld [vmem:[#allocation14_spill] sm:$0xff] }
 0x637   : > { %v26126_v47 = vadd.f32 %v14956_v43, %v14836_v45  ;;  %21395 = vmatprep.subr.msk.mxu0 %vm11520_vm0, %v18263_v54  ;;  %v13144_v15 = vadd.f32 %v27371_v13, %v12860_v22 }
 0x638   : > { %21396 = vmatpush1.msk.msra.mxu0 %vm11520_vm0, %v18262_v37 }
 0x639   : > { %21394 = vmatmul.mubr.msk.f32.gmra.mxu1 %vm11513_vm1, %v21390_v3  ;;  %21397 = vmatmul.mubr.msk.f32.vlgmr.msra.gmra.mxu0 %vm11513_vm1, %v21389_v1  ;;  %v18257_v55 = vpop.permute.xlu0 %18256  ;;  %v13428_v28 = vadd.f32 %v27372_v51, %v13144_v15 }
 0x63a   : > { %v18264_v10 = vsel %vm12599_vm4, %v18255_v21, %v18257_v55  ;;  %v18265_v56 = vsel %vm12599_vm4, %v18257_v55, %v18259_v49  ;;  %18431 = vmatprep.mubr.f32.mxu0 %v27331_v17  ;;  %18502 = vmatprep.mubr.f32.mxu1 %v27331_v17 }
 0x63b   : > { %21399 = vmatprep.subr.msk.mxu1 %vm11520_vm0, %v18265_v56  ;;  %v13712_v44 = vadd.f32 %v27373_v8, %v13428_v28 }
 0x63c   : > { %21400 = vmatpush1.msk.msra.mxu1 %vm11520_vm0, %v18264_v10 }
 0x63d   : > { %21398 = vmatmul.mubr.msk.f32.gmra.mxu0 %vm11513_vm1, %v21390_v3  ;;  %21401 = vmatmul.mubr.msk.f32.vlgmr.msra.gmra.mxu1 %vm11513_vm1, %v21389_v1  ;;  %v13997_v30 = vadd.f32 %v27374_v33, %v13712_v44 }
 0x63e   : > { %18508 = vmatprep.mubr.f32.mxu1 %v27331_v17 }
 0x63f   : > { %v14282_v60 = vadd.f32 %v25918_v48, %v13997_v30 }
 0x641   : > { %21402 = vmatmul.mubr.msk.f32.gmra.mxu1 %vm11513_vm1, %v21390_v3  ;;  %v14536_v40 = vadd.f32 %v25998_v50, %v14282_v60 }
 0x644   : > { %v14818_v52 = vpop.f32.mrf.mxu0 }
 0x645   : > { %v14833_v59 = vadd.f32 %v14818_v52, %v25991_v4  ;;  %v15102_v36 = vpop.f32.mrf.mxu1 }
 0x646   : > { %v14820_v32 = vpop.f32.mrf.mxu0 }
 0x647   : > { %v14834_v7 = vadd.f32 %v14820_v32, %v14536_v40  ;;  %v15117_v9 = vadd.f32 %v15102_v36, %v14833_v59  ;;  %v15104_v6 = vpop.f32.mrf.mxu1 }
 0x648   : > { %v14824_v34 = vpop.f32.mrf.mxu0 }
 0x649   : > { %v14839_v46 = vadd.f32 %v14824_v34, %v26017_v42  ;;  %v15118_v29 = vadd.f32 %v15104_v6, %v14834_v7  ;;  %v15108_v31 = vpop.f32.mrf.mxu1 }
 0x64a   : > { %v14826_v16 = vpop.f32.mrf.mxu0 }
 0x64b   : > { %v14840_v14 = vadd.f32 %v14826_v16, %v26034_v39  ;;  %v15123_v58 = vadd.f32 %v15108_v31, %v14839_v46  ;;  %v15110_v48 = vpop.f32.mrf.mxu1 }
 0x64c   : > { %v15025_v62 = vpop.f32.mrf.mxu0 }
 0x64d   : > { %v15115_v50 = vadd.f32 %v15025_v62, %v26042_v2  ;;  %v15124_v25 = vadd.f32 %v15110_v48, %v14840_v14 }
 0x64e   : > { %v15027_v4 = vpop.f32.mrf.mxu0  ;;  %v15309_v24 = vpop.f32.mrf.mxu1 }
 0x64f   : > { %v15116_v61 = vadd.f32 %v15027_v4, %v26064_v57  ;;  %v15399_v23 = vadd.f32 %v15309_v24, %v15115_v50 }
 0x650   : > { %v15031_v53 = vpop.f32.mrf.mxu0  ;;  %v15311_v18 = vpop.f32.mrf.mxu1 }
 0x651   : > { %v15121_v42 = vadd.f32 %v15031_v53, %v26072_v19  ;;  %v15400_v26 = vadd.f32 %v15311_v18, %v15116_v61 }
 0x652   : > { %v15033_v1 = vpop.f32.mrf.mxu0  ;;  %v15315_v63 = vpop.f32.mrf.mxu1 }
 0x653   : > { %v15122_v39 = vadd.f32 %v15033_v1, %v26085_v27  ;;  %v15405_v20 = vadd.f32 %v15315_v63, %v15121_v42 }
 0x654   : > { %v15232_v5 = vpop.f32.mrf.mxu0  ;;  %v15317_v41 = vpop.f32.mrf.mxu1 }
 0x655   : > { %v15397_v2 = vadd.f32 %v15232_v5, %v26092_v38  ;;  %v15406_v35 = vadd.f32 %v15317_v41, %v15122_v39 }
 0x656   : > { %v15234_v45 = vpop.f32.mrf.mxu0  ;;  %v15516_v21 = vpop.f32.mrf.mxu1 }
 0x657   : > { %v15398_v57 = vadd.f32 %v15234_v45, %v26107_v0  ;;  %v15681_v43 = vadd.f32 %v15516_v21, %v15397_v2 }
 0x658   : > { %v15238_v54 = vpop.f32.mrf.mxu0  ;;  %v15518_v3 = vpop.f32.mrf.mxu1 }
 0x659   : > { %v15403_v19 = vadd.f32 %v15238_v54, %v26112_v12  ;;  %v15682_v11 = vadd.f32 %v15518_v3, %v15398_v57 }
 0x65a   : > { %v15240_v22 = vpop.f32.mrf.mxu0  ;;  %v15522_v37 = vpop.f32.mrf.mxu1 }
 0x65b   : > { %v15404_v27 = vadd.f32 %v15240_v22, %v26126_v47  ;;  %v15687_v49 = vadd.f32 %v15522_v37, %v15403_v19 }
 0x65c   : > { %v15524_v55 = vpop.f32.mrf.mxu1 }
 0x65d   : > { %v15688_v10 = vadd.f32 %v15524_v55, %v15404_v27 }
 0x65e   : > { %v15386_v56 = vpop.f32.mrf.mxu0 }
 0x65f   : > { %v15401_v38 = vadd.f32 %v15386_v56, %v15117_v9  ;;  %v15670_v13 = vpop.f32.mrf.mxu1 }
 0x660   : > { %v15388_v15 = vpop.f32.mrf.mxu0 }
 0x661   : > { %v15402_v51 = vadd.f32 %v15388_v15, %v15118_v29  ;;  %v15685_v28 = vadd.f32 %v15670_v13, %v15401_v38  ;;  %v15672_v0 = vpop.f32.mrf.mxu1 }
 0x663   : > { %v15392_v8 = vpop.f32.mrf.mxu0  ;;  %v15686_v44 = vadd.f32 %v15672_v0, %v15402_v51  ;;  %v15676_v33 = vpop.f32.mrf.mxu1 }
 0x664   : > { %v15407_v30 = vadd.f32 %v15392_v8, %v15123_v58 }
 0x665   : > { %v15394_v12 = vpop.f32.mrf.mxu0  ;;  %v15678_v60 = vpop.f32.mrf.mxu1 }
 0x666   : > { %v15408_v52 = vadd.f32 %v15394_v12, %v15124_v25  ;;  %v15691_v40 = vadd.f32 %v15676_v33, %v15407_v30 }
 0x667   : > { %v15593_v59 = vpop.f32.mrf.mxu0 }
 0x668   : > { %v15683_v47 = vadd.f32 %v15593_v59, %v15399_v23  ;;  %v15692_v36 = vadd.f32 %v15678_v60, %v15408_v52 }
 0x669   : > { %v15595_v32 = vpop.f32.mrf.mxu0 }
 0x66a   : > { %v15684_v7 = vadd.f32 %v15595_v32, %v15400_v26 }
 0x66b   : > { %v15599_v6 = vpop.f32.mrf.mxu0  ;;  %v15877_v9 = vpop.f32.mrf.mxu1 }
 0x66c   : > { %v15689_v34 = vadd.f32 %v15599_v6, %v15405_v20  ;;  %v15967_v46 = vadd.f32 %v15877_v9, %v15683_v47 }
 0x66d   : > { %v15601_v29 = vpop.f32.mrf.mxu0  ;;  %v15879_v31 = vpop.f32.mrf.mxu1 }
 0x66e   : > { %v15690_v16 = vadd.f32 %v15601_v29, %v15406_v35  ;;  %v15968_v14 = vadd.f32 %v15879_v31, %v15684_v7 }
 0x66f   : > { %v15800_v48 = vpop.f32.mrf.mxu0  ;;  %v15883_v62 = vpop.f32.mrf.mxu1 }
 0x670   : > { %v15965_v58 = vadd.f32 %v15800_v48, %v15681_v43  ;;  %v15973_v50 = vadd.f32 %v15883_v62, %v15689_v34 }
 0x671   : > { %v15802_v4 = vpop.f32.mrf.mxu0  ;;  %v15885_v25 = vpop.f32.mrf.mxu1 }
 0x672   : > { %v15966_v24 = vadd.f32 %v15802_v4, %v15682_v11  ;;  %v15974_v61 = vadd.f32 %v15885_v25, %v15690_v16 }
 0x673   : > { %v15806_v23 = vpop.f32.mrf.mxu0 }
 0x674   : > { %v15971_v53 = vadd.f32 %v15806_v23, %v15687_v49 }
 0x675   : > { %v15808_v18 = vpop.f32.mrf.mxu0 }
 0x676   : > { %v15972_v42 = vadd.f32 %v15808_v18, %v15688_v10 }
 0x677   : > { %v15954_v26 = vpop.f32.mrf.mxu0 }
 0x678   : > { %v15969_v1 = vadd.f32 %v15954_v26, %v15685_v28 }
 0x679   : > { %v15956_v63 = vpop.f32.mrf.mxu0 }
 0x67a   : > { %v15970_v39 = vadd.f32 %v15956_v63, %v15686_v44  ;;  %v16084_v20 = vpop.f32.mrf.mxu1 }
 0x67b   : > { %v16249_v5 = vadd.f32 %v16084_v20, %v15965_v58  ;;  %v15960_v41 = vpop.f32.mrf.mxu0 }
 0x67c   : > { %v15975_v2 = vadd.f32 %v15960_v41, %v15691_v40  ;;  %v16086_v35 = vpop.f32.mrf.mxu1 }
 0x67d   : > { %v16250_v45 = vadd.f32 %v16086_v35, %v15966_v24  ;;  %v15962_v21 = vpop.f32.mrf.mxu0 }
 0x67e   : > { %v15976_v57 = vadd.f32 %v15962_v21, %v15692_v36  ;;  %v16090_v43 = vpop.f32.mrf.mxu1 }
 0x67f   : > { %v16255_v54 = vadd.f32 %v16090_v43, %v15971_v53  ;;  %v16161_v3 = vpop.f32.mrf.mxu0 }
 0x680   : > { %v16251_v19 = vadd.f32 %v16161_v3, %v15967_v46  ;;  %v16092_v11 = vpop.f32.mrf.mxu1 }
 0x681   : > { %v16256_v22 = vadd.f32 %v16092_v11, %v15972_v42  ;;  %v16163_v37 = vpop.f32.mrf.mxu0 }
 0x682   : > { %v16252_v27 = vadd.f32 %v16163_v37, %v15968_v14 }
 0x683   : > { %v16167_v49 = vpop.f32.mrf.mxu0 }
 0x684   : > { %v16257_v55 = vadd.f32 %v16167_v49, %v15973_v50 }
 0x685   : > { %v16169_v10 = vpop.f32.mrf.mxu0 }
 0x686   : > { %v16258_v56 = vadd.f32 %v16169_v10, %v15974_v61 }
 0x688   : > { %v16368_v38 = vpop.f32.mrf.mxu0 }
 0x689   : > { %v16238_v13 = vpop.f32.mrf.mxu1  ;;  %v16533_v15 = vadd.f32 %v16368_v38, %v16249_v5 }
 0x68a   : > { %v16253_v51 = vadd.f32 %v16238_v13, %v15969_v1  ;;  %v16370_v28 = vpop.f32.mrf.mxu0 }
 0x68b   : > { %v16240_v0 = vpop.f32.mrf.mxu1  ;;  %v26159_v8 = vadd.f32 %v16370_v28, %v16250_v45 }
 0x68c   : > { %v16254_v44 = vadd.f32 %v16240_v0, %v15970_v39 }
 0x68d   : > { %v16244_v33 = vpop.f32.mrf.mxu1  ;;  %v16374_v30 = vpop.f32.mrf.mxu0 }
 0x68e   : > { %v16259_v12 = vadd.f32 %v16244_v33, %v15975_v2  ;;  %v16539_v60 = vadd.f32 %v16374_v30, %v16255_v54 }
 0x68f   : > { %v16246_v52 = vpop.f32.mrf.mxu1  ;;  %v16376_v40 = vpop.f32.mrf.mxu0 }
 0x690   : > { %v16260_v59 = vadd.f32 %v16246_v52, %v15976_v57  ;;  %v16540_v47 = vadd.f32 %v16376_v40, %v16256_v22 }
 0x691   : > { %v16445_v36 = vpop.f32.mrf.mxu1  ;;  %v16522_v32 = vpop.f32.mrf.mxu0 }
 0x692   : > { %v26161_v7 = vadd.f32 %v16445_v36, %v16251_v19  ;;  %v26163_v6 = vadd.f32 %v16522_v32, %v16253_v51 }
 0x693   : > { %v16447_v9 = vpop.f32.mrf.mxu1  ;;  %v16524_v34 = vpop.f32.mrf.mxu0 }
 0x694   : > { %v26165_v46 = vadd.f32 %v16447_v9, %v16252_v27  ;;  %v26167_v29 = vadd.f32 %v16524_v34, %v16254_v44 }
 0x695   : > { %v16451_v31 = vpop.f32.mrf.mxu1  ;;  %v16528_v16 = vpop.f32.mrf.mxu0 }
 0x696   : > { %v26169_v14 = vadd.f32 %v16451_v31, %v16257_v55  ;;  %v26171_v48 = vadd.f32 %v16528_v16, %v16259_v12 }
 0x697   : > { %v16453_v62 = vpop.f32.mrf.mxu1  ;;  %v16530_v58 = vpop.f32.mrf.mxu0 }
 0x698   : > { %v16542_v50 = vadd.f32 %v16453_v62, %v16258_v56  ;;  %v26173_v4 = vadd.f32 %v16530_v58, %v16260_v59 }
 0x699   : > { %v16652_v25 = vpop.f32.mrf.mxu1  ;;  %v26175_v24 = vpop.f32.mrf.mxu0 }
 0x69a   : > { %v26177_v61 = vadd.f32 %v16652_v25, %v16533_v15 }
 0x69b   : > { %v16654_v23 = vpop.f32.mrf.mxu1  ;;  %v26179_v53 = vpop.f32.mrf.mxu0 }
 0x69d   : > { %v16658_v18 = vpop.f32.mrf.mxu1  ;;  %v26181_v42 = vpop.f32.mrf.mxu0 }
 0x69e   : > { %v26183_v26 = vadd.f32 %v16658_v18, %v16539_v60 }
 0x69f   : > { %v16660_v1 = vpop.f32.mrf.mxu1  ;;  %v16737_v63 = vpop.f32.mrf.mxu0 }
 0x6a0   : > { %v26185_v39 = vadd.f32 %v16660_v1, %v16540_v47  ;;  %v26187_v20 = vadd.f32 %v16737_v63, %v16542_v50 }
 0x6a1   : > { %v16806_v5 = vpop.f32.mrf.mxu1  ;;  %v16936_v41 = vpop.f32.mrf.mxu0 }
 0x6a3   : > { %v16808_v2 = vpop.f32.mrf.mxu1  ;;  %v16938_v35 = vpop.f32.mrf.mxu0 }
 0x6a5   : > { %v16812_v45 = vpop.f32.mrf.mxu1  ;;  %v16942_v21 = vpop.f32.mrf.mxu0 }
 0x6a7   : > { %v16814_v57 = vpop.f32.mrf.mxu1  ;;  %v16944_v43 = vpop.f32.mrf.mxu0 }
 0x6a9   : > { %v17013_v54 = vpop.f32.mrf.mxu1  ;;  %v17090_v3 = vpop.f32.mrf.mxu0 }
 0x6ab   : > { %v17015_v19 = vpop.f32.mrf.mxu1  ;;  %v17092_v22 = vpop.f32.mrf.mxu0 }
 0x6ad   : > { %v17019_v11 = vpop.f32.mrf.mxu1 }
 0x6ae   : > { %v17096_v49 = vpop.f32.mrf.mxu0 }
 0x6af   : > { %v26189_v37 = vpop.f32.mrf.mxu1 }
 0x6b0   : > { %v17098_v56 = vpop.f32.mrf.mxu0 }
 0x6b1   : > { %v26191_v27 = vpop.f32.mrf.mxu1 }
 0x6b2   : > { %v17277_v15 = vpop.f32.mrf.mxu0 }
 0x6b3   : > { %v17202_v55 = vpop.f32.mrf.mxu1 }
 0x6b4   : > { %v17279_v28 = vpop.f32.mrf.mxu0 }
 0x6b5   : > { %v26193_v10 = vpop.f32.mrf.mxu1 }
 0x6b6   : > { %v17283_v44 = vpop.f32.mrf.mxu0 }
 0x6b7   : > { %v26195_v38 = vpop.f32.mrf.mxu1 }
 0x6b8   : > { %v17285_v30 = vpop.f32.mrf.mxu0 }
 0x6b9   : > { %v26197_v13 = vpop.f32.mrf.mxu1 }
 0x6ba   : > { %v17498_v60 = vpop.f32.mrf.mxu0 }
 0x6bb   : > { %v26199_v51 = vpop.f32.mrf.mxu1 }
 0x6bc   : > { %v17500_v40 = vpop.f32.mrf.mxu0 }
 0x6bd   : > { %v26201_v0 = vpop.f32.mrf.mxu1 }
 0x6be   : > { %v17504_v47 = vpop.f32.mrf.mxu0 }
 0x6bf   : > { %v26203_v33 = vpop.f32.mrf.mxu1 }
 0x6c0   : > { %v26213_v32 = vpop.f32.mrf.mxu0 }
 0x6c1   : > { %v26205_v12 = vpop.f32.mrf.mxu1 }
 0x6c3   : > { %v26207_v52 = vpop.f32.mrf.mxu1 }
 0x6c5   : > { %v26209_v59 = vpop.f32.mrf.mxu1 }
 0x6c7   : > { %v26211_v36 = vpop.f32.mrf.mxu1 }
 0x6c8   : > { %27375 = vst [vmem:[#allocation29_spill] sm:$0xff] %v26211_v36 }
 0x6c9   : > { %v17782_v9 = vpop.f32.mrf.mxu1 }
 0x6cb   : > { %v17784_v31 = vpop.f32.mrf.mxu1 }
 0x6cd   : > { %v26221_v58 = vpop.f32.mrf.mxu1 }
 0x6ce   : > { %27379 = vst [vmem:[#allocation30_spill] sm:$0xff] %v26221_v58  ;;  %v16818_v58 = vadd.f32 %v16654_v23, %v26159_v8  ;;  %v16827_v8 = vadd.f32 %v16812_v45, %v26171_v48  ;;  %v17110_v48 = vadd.f32 %v26189_v37, %v26187_v20 }
 0x6cf   : > { %v26227_v18 = vpop.f32.mrf.mxu1 }
 0x6d0   : > { %27382 = vst [vmem:[#allocation32_spill] sm:$0xff] %v26227_v18  ;;  %v16819_v18 = vadd.f32 %v26175_v24, %v26161_v7  ;;  %v17107_v7 = vadd.f32 %v16942_v21, %v26183_v26  ;;  %v16828_v24 = vadd.f32 %v16814_v57, %v26173_v4 }
 0x6d2   : > { %v17112_v45 = vadd.f32 %v17098_v56, %v16828_v24  ;;  %v17371_v4 = vadd.f32 %v26193_v10, %v17107_v7  ;;  %v18532_v24 = vpop.permute.xlu0 %18531 }
 0x6d9   : > { %v26215_v34 = vpop.f32.mrf.mxu0 }
 0x6da   : > { %27376 = vst [vmem:[#allocation27_spill] sm:$0xff] %v26215_v34 }
 0x6db   : > { %v26217_v16 = vpop.f32.mrf.mxu0 }
 0x6dc   : > { %27377 = vst [vmem:[#allocation28_spill] sm:$0xff] %v26217_v16 }
 0x6dd   : > { %v26219_v62 = vpop.f32.mrf.mxu0 }
 0x6de   : > { %27378 = vst [vmem:[#allocation38_spill] sm:$0xff] %v26219_v62 }
 0x6df   : > { %v26223_v50 = vpop.f32.mrf.mxu0 }
 0x6e0   : > { %27380 = vst [vmem:[#allocation34_spill] sm:$0xff] %v26223_v50 }
 0x6e1   : > { %v26225_v25 = vpop.f32.mrf.mxu0 }
 0x6e2   : > { %27381 = vst [vmem:[#allocation31_spill] sm:$0xff] %v26225_v25 }
 0x6e3   : > { %v26229_v1 = vpop.f32.mrf.mxu0 }
 0x6e4   : > { %27383 = vst [vmem:[#allocation35_spill] sm:$0xff] %v26229_v1  ;;  %v17102_v1 = vadd.f32 %v16938_v35, %v16818_v58  ;;  %v27395_v58 = vld [vmem:[#allocation28_spill] sm:$0xff] }
 0x6e5   : > { %v26231_v63 = vpop.f32.mrf.mxu0  ;;  %v26233_v17 = vpop.f32.mrf.mxu1 }
 0x6e6   : > { %27384 = vst [vmem:[#allocation39_spill] sm:$0xff] %v26231_v63  ;;  %27385 = vst [vmem:[#allocation36_spill] sm:$0xff] %v26233_v17  ;;  %v16820_v63 = vadd.f32 %v26179_v53, %v26165_v46  ;;  %v16825_v17 = vadd.f32 %v26181_v42, %v26169_v14  ;;  %v17108_v46 = vadd.f32 %v16944_v43, %v26185_v39 }
 0x6e7   : > { %v26235_v34 = vpop.f32.mrf.mxu0  ;;  %v26237_v36 = vpop.f32.mrf.mxu1  ;;  %v17103_v53 = vadd.f32 %v17013_v54, %v16819_v18  ;;  %v17366_v35 = vadd.f32 %v17202_v55, %v17102_v1  ;;  %v27396_v1 = vld [vmem:[#allocation38_spill] sm:$0xff] }
 0x6e8   : > { %27386 = vst [vmem:[#allocation37_spill] sm:$0xff] %v26235_v34  ;;  %27387 = vst [vmem:[#allocation40_spill] sm:$0xff] %v26237_v36  ;;  %v16821_v34 = vadd.f32 %v16806_v5, %v26163_v6  ;;  %v17101_v36 = vadd.f32 %v16936_v41, %v26177_v61  ;;  %v17104_v42 = vadd.f32 %v17015_v19, %v16820_v63 }
 0x6e9   : > { %v26239_v16 = vpop.f32.mrf.mxu1  ;;  %v18066_v62 = vpop.f32.mrf.mxu0  ;;  %v17109_v5 = vadd.f32 %v17019_v11, %v16825_v17  ;;  %v17367_v26 = vadd.f32 %v17277_v15, %v17103_v53  ;;  %v17372_v54 = vadd.f32 %v26195_v38, %v17108_v46  ;;  %v17374_v19 = vadd.f32 %v17285_v30, %v17110_v48  ;;  %v27397_v46 = vld [vmem:[#allocation34_spill] sm:$0xff] }
 0x6ea   : > { %27388 = vst [vmem:[#allocation41_spill] sm:$0xff] %v26239_v16  ;;  %v16822_v16 = vadd.f32 %v16808_v2, %v26167_v29  ;;  %v17105_v14 = vadd.f32 %v17090_v3, %v16821_v34  ;;  %v17111_v29 = vadd.f32 %v17096_v49, %v16827_v8  ;;  %v17365_v2 = vadd.f32 %v26191_v27, %v17101_v36  ;;  %v27392_v34 = vld [vmem:[#allocation30_spill] sm:$0xff] }
 0x6eb   : > { %v26242_v50 = vpop.f32.mrf.mxu1  ;;  %v18068_v25 = vpop.f32.mrf.mxu0  ;;  %v17368_v21 = vadd.f32 %v17279_v28, %v17104_v42  ;;  %v17373_v43 = vadd.f32 %v17283_v44, %v17109_v5  ;;  %v17664_v3 = vadd.f32 %v17500_v40, %v17366_v35  ;;  %v17669_v49 = vadd.f32 %v17504_v47, %v17371_v4 }
 0x6ec   : > { %27389 = vst [vmem:[#allocation42_spill] sm:$0xff] %v26242_v50  ;;  %v17106_v6 = vadd.f32 %v17092_v22, %v16822_v16  ;;  %v17663_v17 = vadd.f32 %v17498_v60, %v17365_v2  ;;  %v17369_v11 = vadd.f32 %v26197_v13, %v17105_v14  ;;  %v17375_v22 = vadd.f32 %v26201_v0, %v17111_v29  ;;  %v27391_v0 = vld [vmem:[#allocation31_spill] sm:$0xff] }
 0x6ed   : > { %v26254_v23 = vpop.f32.mrf.mxu0  ;;  %v18143_v50 = vpop.f32.mrf.mxu1  ;;  %v17665_v55 = vadd.f32 %v26205_v12, %v17367_v26  ;;  %v17948_v56 = vadd.f32 %v17784_v31, %v17664_v3  ;;  %v17376_v15 = vadd.f32 %v26203_v33, %v17112_v45  ;;  %v17670_v38 = vadd.f32 %v26213_v32, %v17372_v54  ;;  %v27394_v16 = vld [vmem:[#allocation27_spill] sm:$0xff] }
 0x6ee   : > { %v17370_v20 = vadd.f32 %v26199_v51, %v17106_v6  ;;  %v17947_v10 = vadd.f32 %v17782_v9, %v17663_v17  ;;  %v17666_v28 = vadd.f32 %v26207_v52, %v17368_v21  ;;  %v17671_v44 = vadd.f32 %v26209_v59, %v17373_v43  ;;  %v27390_v51 = vld [vmem:[#allocation29_spill] sm:$0xff]  ;;  %v27393_v9 = vld [vmem:[#allocation32_spill] sm:$0xff]  ;;  %v27399_v14 = vld [vmem:[#allocation39_spill] sm:$0xff] }
 0x6ef   : > { %v18074_v61 = vpop.f32.mrf.mxu0  ;;  %v18145_v41 = vpop.f32.mrf.mxu1  ;;  %v17672_v60 = vadd.f32 %v27390_v51, %v17374_v19  ;;  %v17949_v40 = vadd.f32 %v27391_v0, %v17665_v55  ;;  %v18232_v47 = vadd.f32 %v18068_v25, %v17948_v56  ;;  %v17953_v12 = vadd.f32 %v27392_v34, %v17669_v49  ;;  %v27400_v6 = vld [vmem:[#allocation36_spill] sm:$0xff]  ;;  %v27401_v2 = vld [vmem:[#allocation37_spill] sm:$0xff] }
 0x6f0   : > { %v18231_v36 = vadd.f32 %v18066_v62, %v17947_v10  ;;  %v17954_v31 = vadd.f32 %v27393_v9, %v17670_v38  ;;  %v17667_v33 = vadd.f32 %v27394_v16, %v17369_v11  ;;  %v17668_v32 = vadd.f32 %v27395_v58, %v17370_v20  ;;  %v27398_v62 = vld [vmem:[#allocation35_spill] sm:$0xff]  ;;  %v27402_v45 = vld [vmem:[#allocation40_spill] sm:$0xff]  ;;  %v18537_v51 = vpop.permute.xlu1 %18536 }
 0x6f1   : > { %v18149_v39 = vpop.f32.mrf.mxu1  ;;  %v18220_v57 = vpop.f32.mrf.mxu0  ;;  %v17673_v59 = vadd.f32 %v27396_v1, %v17375_v22  ;;  %v18233_v63 = vadd.f32 %v18143_v50, %v17949_v40  ;;  %v17674_v53 = vadd.f32 %v27397_v46, %v17376_v15  ;;  %v17950_v25 = vadd.f32 %v27398_v62, %v17666_v28  ;;  %v27403_v50 = vld [vmem:[#allocation41_spill] sm:$0xff] }
 0x6f2   : > { %v17955_v42 = vadd.f32 %v27399_v14, %v17671_v44  ;;  %v17951_v5 = vadd.f32 %v27400_v6, %v17667_v33  ;;  %v17956_v35 = vadd.f32 %v27401_v2, %v17672_v60  ;;  %v17952_v26 = vadd.f32 %v27402_v45, %v17668_v32  ;;  %v18794_v45 = vld [vmem:[%s27158_s5 + $0xf8] sm:$0xff] }
 0x6f3   : > { %v18151_v37 = vpop.f32.mrf.mxu1  ;;  %v18222_v27 = vpop.f32.mrf.mxu0  ;;  %v17957_v43 = vadd.f32 %v27403_v50, %v17673_v59  ;;  %v27404_v54 = vld [vmem:[#allocation42_spill] sm:$0xff]  ;;  %v18238_v3 = vadd.f32 %v18074_v61, %v17954_v31  ;;  %v18234_v19 = vadd.f32 %v18145_v41, %v17950_v25  ;;  %v18237_v22 = vadd.f32 %v26254_v23, %v17953_v12  ;;  %21501 = vmatprep.subr.mxu0 %v18794_v45 }
 0x6f4   : > { %v17958_v17 = vadd.f32 %v27404_v54, %v17674_v53  ;;  %v18239_v49 = vadd.f32 %v18149_v39, %v17955_v42  ;;  %v18235_v56 = vadd.f32 %v18220_v57, %v17951_v5  ;;  %v18240_v15 = vadd.f32 %v18151_v37, %v17956_v35  ;;  %v18777_v50 = vld [vmem:[%s27158_s5 + $0x70] sm:$0xff]  ;;  %v18792_v54 = vld [vmem:[%s27158_s5 + $0xe8] sm:$0xff] }
 0x6f5   : > { %v18226_v13 = vpop.f32.mrf.mxu0  ;;  %v18350_v30 = vpop.f32.mrf.mxu1  ;;  %v18236_v60 = vadd.f32 %v18222_v27, %v17952_v26  ;;  %v18778_v26 = vld [vmem:[%s27158_s5 + $0x78] sm:$0xff]  ;;  %v18801_v45 = vld [vmem:[%s27158_s5 + $0x130] sm:$0xff] }
 0x6f6   : > { %v18515_v8 = vadd.f32 %v18350_v30, %v18231_v36  ;;  %v18241_v40 = vadd.f32 %v18226_v13, %v17957_v43  ;;  %v18826_v43 = vld [vmem:[%s27158_s5 + $0x1f8] sm:$0xff]  ;;  %21502 = vmatpush3.msra.mxu0 %v18778_v26  ;;  %v18768_v26 = vld [vmem:[%s27158_s5 + $0x28] sm:$0xff] }
 0x6f7   : > { %v18228_v18 = vpop.f32.mrf.mxu0  ;;  %v18352_v52 = vpop.f32.mrf.mxu1  ;;  %21539 = vmatprep.subr.mxu1 %v18826_v43  ;;  %v18782_v43 = vld [vmem:[%s27158_s5 + $0x98] sm:$0xff] }
 0x6f8   : > { %v18516_v7 = vadd.f32 %v18352_v52, %v18232_v47  ;;  %v26292_v10 = vadd.f32 %v18532_v24, %v18515_v8  ;;  %v18242_v58 = vadd.f32 %v18228_v18, %v17958_v17  ;;  %v18810_v17 = vld [vmem:[%s27158_s5 + $0x178] sm:$0xff] }
 0x6f9   : > { %v18356_v29 = vpop.f32.mrf.mxu1  ;;  %v18427_v48 = vpop.f32.mrf.mxu0  ;;  %21540 = vmatpush3.msra.mxu1 %v18810_v17  ;;  %v18816_v17 = vld [vmem:[%s27158_s5 + $0x1a8] sm:$0xff] }
 0x6fa   : > { %v18517_v21 = vadd.f32 %v18427_v48, %v18233_v63  ;;  %v26285_v4 = vadd.f32 %v18532_v24, %v18516_v7  ;;  %v18521_v23 = vadd.f32 %v18356_v29, %v18237_v22  ;;  %v18551_v37 = vmax.f32 %v26292_v10, 0.0  ;;  %v18824_v22 = vld [vmem:[%s27158_s5 + $0x1e8] sm:$0xff] }
 0x6fb   : > { %v18358_v11 = vpop.f32.mrf.mxu1  ;;  %v18429_v20 = vpop.f32.mrf.mxu0 }
 0x6fc   : > { %v26290_v55 = vadd.f32 %v18532_v24, %v18517_v21  ;;  %v18522_v38 = vadd.f32 %v18358_v11, %v18238_v3  ;;  %v18518_v28 = vadd.f32 %v18429_v20, %v18234_v19  ;;  %v18552_v61 = vmax.f32 %v26285_v4, 0.0  ;;  %v18793_v21 = vld [vmem:[%s27158_s5 + $0xf0] sm:$0xff]  ;;  %v18776_v19 = vld [vmem:[%s27158_s5 + $0x68] sm:$0xff]  ;;  %v18791_v20 = vld [vmem:[%s27158_s5 + $0xe0] sm:$0xff] }
 0x6fd   : > { %v18433_v44 = vpop.f32.mrf.mxu0  ;;  %v18504_v30 = vpop.f32.mrf.mxu1  ;;  %v26322_v53 = vadd.f32 %v18537_v51, %v18521_v23  ;;  %v18825_v3 = vld [vmem:[%s27158_s5 + $0x1f0] sm:$0xff]  ;;  %21503 = vmatprep.subr.mxu0 %v18793_v21  ;;  %v18788_v23 = vld [vmem:[%s27158_s5 + $0xc8] sm:$0xff]  ;;  %v18783_v21 = vld [vmem:[%s27158_s5 + $0xa0] sm:$0xff] }
 0x6fe   : > { %v18553_v41 = vmax.f32 %v26290_v55, 0.0  ;;  %v18523_v0 = vadd.f32 %v18433_v44, %v18239_v49  ;;  %v26296_v39 = vadd.f32 %v18532_v24, %v18518_v28  ;;  %v18519_v36 = vadd.f32 %v18504_v30, %v18235_v56  ;;  %v18809_v11 = vld [vmem:[%s27158_s5 + $0x170] sm:$0xff]  ;;  %21504 = vmatpush3.msra.mxu0 %v18777_v50  ;;  %21541 = vmatprep.subr.mxu1 %v18825_v3  ;;  %v18808_v49 = vld [vmem:[%s27158_s5 + $0x168] sm:$0xff]  ;;  %v18775_v56 = vld [vmem:[%s27158_s5 + $0x60] sm:$0xff] }
 0x6ff   : > { %v18435_v47 = vpop.f32.mrf.mxu0  ;;  %v18506_v34 = vpop.f32.mrf.mxu1  ;;  %v26305_v9 = vadd.f32 %v18537_v51, %v18522_v38  ;;  %v18557_v48 = vmax.f32 %v26322_v53, 0.0  ;;  %21505 = vmatprep.subr.mxu0 %v18792_v54  ;;  %21542 = vmatpush3.msra.mxu1 %v18809_v11  ;;  %v18790_v38 = vld [vmem:[%s27158_s5 + $0xd8] sm:$0xff]  ;;  %v18807_v28 = vld [vmem:[%s27158_s5 + $0x160] sm:$0xff]  ;;  %v18781_v3 = vld [vmem:[%s27158_s5 + $0x90] sm:$0xff] }
 0x700   : > { %v22040_v57 = vpack.i.bf16 %v18553_v41, %v18552_v61  ;;  %v26303_v27 = vadd.f32 %v18537_v51, %v18523_v0  ;;  %v18524_v12 = vadd.f32 %v18435_v47, %v18240_v15  ;;  %v18554_v13 = vmax.f32 %v26296_v39, 0.0  ;;  %v18823_v15 = vld [vmem:[%s27158_s5 + $0x1e0] sm:$0xff]  ;;  %21506 = vmatpush3.msra.mxu0 %v18776_v19  ;;  %21543 = vmatprep.subr.mxu1 %v18824_v22  ;;  %v18774_v44 = vld [vmem:[%s27158_s5 + $0x58] sm:$0xff]  ;;  %v18773_v0 = vld [vmem:[%s27158_s5 + $0x50] sm:$0xff] }
 0x701   : > { %v26308_v31 = vadd.f32 %v18532_v24, %v18519_v36  ;;  %v18520_v16 = vadd.f32 %v18506_v34, %v18236_v60  ;;  %v18510_v33 = vpop.f32.mrf.mxu1  ;;  %v18558_v18 = vmax.f32 %v26305_v9, 0.0  ;;  %21507 = vmatprep.subr.mxu0 %v18791_v20  ;;  %21544 = vmatpush3.msra.mxu1 %v18808_v49  ;;  %v18822_v30 = vld [vmem:[%s27158_s5 + $0x1d8] sm:$0xff]  ;;  %v18805_v36 = vld [vmem:[%s27158_s5 + $0x150] sm:$0xff]  ;;  %v18772_v47 = vld [vmem:[%s27158_s5 + $0x48] sm:$0xff] }
 0x702   : > { %v18525_v32 = vadd.f32 %v18510_v33, %v18241_v40  ;;  %22041 = vrot.lane.b32.xlu1 %v22040_v57, %s27334_s17  ;;  %v22045_v52 = vpack.i.bf16 %v18551_v37, %v18554_v13  ;;  %v18559_v1 = vmax.f32 %v26303_v27, 0.0  ;;  %v26316_v59 = vadd.f32 %v18537_v51, %v18524_v12  ;;  %21508 = vmatpush3.msra.mxu0 %v18775_v56  ;;  %v18806_v60 = vld [vmem:[%s27158_s5 + $0x158] sm:$0xff]  ;;  %v18821_v40 = vld [vmem:[%s27158_s5 + $0x1d0] sm:$0xff]  ;;  %v18820_v34 = vld [vmem:[%s27158_s5 + $0x1c8] sm:$0xff] }
 0x703   : > { %v26318_v63 = vadd.f32 %v18532_v24, %v18520_v16  ;;  %v18512_v8 = vpop.f32.mrf.mxu1  ;;  %v18555_v62 = vmax.f32 %v26308_v31, 0.0  ;;  %21545 = vmatprep.subr.mxu1 %v18823_v15  ;;  %21509 = vmatprep.subr.mxu0 %v18790_v38  ;;  %v18787_v57 = vld [vmem:[%s27158_s5 + $0xc0] sm:$0xff]  ;;  %v18804_v12 = vld [vmem:[%s27158_s5 + $0x148] sm:$0xff]  ;;  %v18766_v54 = vld [vmem:[%s27158_s5 + $0x18] sm:$0xff] }
 0x704   : > { %v26320_v7 = vadd.f32 %v18537_v51, %v18525_v32  ;;  %v18526_v46 = vadd.f32 %v18512_v8, %v18242_v58  ;;  %22046 = vrot.lane.b32.xlu0 %v22045_v52, %s27334_s17  ;;  %v22050_v24 = vpack.i.bf16 %v18559_v1, %v18558_v18  ;;  %v18560_v42 = vmax.f32 %v26316_v59, 0.0  ;;  %21546 = vmatpush3.msra.mxu1 %v18807_v28  ;;  %v18771_v16 = vld [vmem:[%s27158_s5 + $0x40] sm:$0xff]  ;;  %v18786_v58 = vld [vmem:[%s27158_s5 + $0xb8] sm:$0xff]  ;;  %v18800_v19 = vld [vmem:[%s27158_s5 + $0x128] sm:$0xff] }
 0x705   : > { %v18556_v25 = vmax.f32 %v26318_v63, 0.0  ;;  %21510 = vmatpush3.msra.mxu0 %v18774_v44  ;;  %21547 = vmatprep.subr.mxu1 %v18822_v30  ;;  %v18819_v33 = vld [vmem:[%s27158_s5 + $0x1c0] sm:$0xff]  ;;  %v18770_v52 = vld [vmem:[%s27158_s5 + $0x38] sm:$0xff]  ;;  %v18765_v20 = vld [vmem:[%s27158_s5 + $0x10] sm:$0xff] }
 0x706   : > { %v26328_v14 = vadd.f32 %v18537_v51, %v18526_v46  ;;  %v18561_v5 = vmax.f32 %v26320_v7, 0.0  ;;  %v22060_v35 = vpack.i.bf16 %v18557_v48, %v18560_v42  ;;  %v18789_v51 = vld [vmem:[%s27158_s5 + $0xd0] sm:$0xff]  ;;  %21548 = vmatpush3.msra.mxu1 %v18806_v60  ;;  %v18803_v32 = vld [vmem:[%s27158_s5 + $0x140] sm:$0xff]  ;;  %v18818_v8 = vld [vmem:[%s27158_s5 + $0x1b8] sm:$0xff] }
 0x707   : > { %v22055_v6 = vpack.i.bf16 %v18556_v25, %v18555_v62  ;;  %21511 = vmatprep.subr.mxu0 %v18789_v51  ;;  %21549 = vmatprep.subr.mxu1 %v18821_v40  ;;  %v18785_v46 = vld [vmem:[%s27158_s5 + $0xb0] sm:$0xff]  ;;  %v18767_v50 = vld [vmem:[%s27158_s5 + $0x20] sm:$0xff]  ;;  %v18780_v15 = vld [vmem:[%s27158_s5 + $0x88] sm:$0xff] }
 0x708   : > { %v18562_v29 = vmax.f32 %v26328_v14, 0.0  ;;  %22051 = vrot.lane.b32.xlu0 %v22050_v24, %s27334_s17  ;;  %21512 = vmatpush3.msra.mxu0 %v18773_v0  ;;  %v18802_v24 = vld [vmem:[%s27158_s5 + $0x138] sm:$0xff]  ;;  %v18815_v22 = vld [vmem:[%s27158_s5 + $0x1a0] sm:$0xff]  ;;  %v18764_v28 = vld [vmem:[%s27158_s5 + $0x8] sm:$0xff] }
 0x709   : > { %22056 = vrot.lane.b32.xlu1 %v22055_v6, %s27334_s17  ;;  %21513 = vmatprep.subr.mxu0 %v18788_v23  ;;  %v18769_v6 = vld [vmem:[%s27158_s5 + $0x30] sm:$0xff]  ;;  %v18799_v38 = vld [vmem:[%s27158_s5 + $0x120] sm:$0xff]  ;;  %v18814_v44 = vld [vmem:[%s27158_s5 + $0x198] sm:$0xff] }
 0x70a   : > { %v22065_v2 = vpack.i.bf16 %v18562_v29, %v18561_v5  ;;  %21550 = vmatpush3.msra.mxu1 %v18805_v36  ;;  %21514 = vmatpush3.msra.mxu0 %v18772_v47  ;;  %v18779_v30 = vld [vmem:[%s27158_s5 + $0x80] sm:$0xff]  ;;  %v18798_v51 = vld [vmem:[%s27158_s5 + $0x118] sm:$0xff]  ;;  %v18813_v47 = vld [vmem:[%s27158_s5 + $0x190] sm:$0xff] }
 0x70b   : > { %21551 = vmatprep.subr.mxu1 %v18820_v34  ;;  %21515 = vmatprep.subr.mxu0 %v18787_v57  ;;  %v18763_v36 = vld [vmem:[%s27158_s5] sm:$0xff]  ;;  %v18797_v34 = vld [vmem:[%s27158_s5 + $0x110] sm:$0xff]  ;;  %v26538_v57 = vld [vmem:[%s27158_s5 + $0x278] sm:$0xff] }
 0x70c   : > { %22066 = vrot.lane.b32.xlu0 %v22065_v2, %s27334_s17  ;;  %21552 = vmatpush3.msra.mxu1 %v18804_v12  ;;  %v18817_v2 = vld [vmem:[%s27158_s5 + $0x1b0] sm:$0xff]  ;;  %v18812_v12 = vld [vmem:[%s27158_s5 + $0x188] sm:$0xff]  ;;  %v18811_v4 = vld [vmem:[%s27158_s5 + $0x180] sm:$0xff] }
 0x70d   : > { %22061 = vrot.lane.b32.xlu1 %v22060_v35, %s27334_s17  ;;  %21516 = vmatpush3.msra.mxu0 %v18771_v16  ;;  %v18784_v35 = vld [vmem:[%s27158_s5 + $0xa8] sm:$0xff]  ;;  %v18795_v55 = vld [vmem:[%s27158_s5 + $0x100] sm:$0xff]  ;;  %v18841_v59 = vld [vmem:[%s27158_s5 + $0x270] sm:$0xff]  ;;  %s22225_s17 = sshll.u32 %s22309_s25, 4  ;;  %s22226_s17 = int_to_ptr.vmem [resolvable:$false] %s22225_s17 }
 0x70e   : > { %21553 = vmatprep.subr.mxu1 %v18819_v33  ;;  %21517 = vmatprep.subr.mxu0 %v18786_v58  ;;  %v18796_v58 = vld [vmem:[%s27158_s5 + $0x108] sm:$0xff]  ;;  %s22227_s20 = scalar_lea.vmem %s22226_s17, 32  ;;  %p22228_p0 = scmp.lt.s32.totalorder %s20597_s15, %s22226_s17 }
 0x70f   : > { %21554 = vmatpush3.msra.mxu1 %v18803_v32  ;;  %21518 = vmatpush3.msra.mxu0 %v18770_v52  ;;  %p22229_p1 = scmp.lt.s32.totalorder %s22227_s20, %s22221_s0 }
 0x710   : > { %21555 = vmatprep.subr.mxu1 %v18818_v8  ;;  %21519 = vmatprep.subr.mxu0 %v18785_v46 }
 0x711   : > { %21556 = vmatpush3.msra.mxu1 %v18802_v24  ;;  %21520 = vmatpush3.msra.mxu0 %v18769_v6  ;;  %p22230_p2 = por %p22229_p1, %p22228_p0 }
 0x712   : > { %21557 = vmatprep.subr.mxu1 %v18817_v2  ;;  %21521 = vmatprep.subr.mxu0 %v18784_v35 }
 0x713   : > { %21558 = vmatpush3.msra.mxu1 %v18801_v45  ;;  %21522 = vmatpush3.msra.mxu0 %v18768_v26  ;;  %p22231_p3 = pnand %p22230_p2, %p22224_p13 }
 0x714   : > { %21523 = vmatprep.subr.mxu0 %v18783_v21  ;;  %21559 = vmatprep.subr.mxu1 %v18816_v17 }
 0x715   : > { %21524 = vmatpush3.msra.mxu0 %v18767_v50  ;;  %21560 = vmatpush3.msra.mxu1 %v18800_v19 }
 0x716   : > { %21525 = vmatprep.subr.mxu0 %v18782_v43  ;;  %21561 = vmatprep.subr.mxu1 %v18815_v22 }
 0x717   : > { %21526 = vmatpush3.msra.mxu0 %v18766_v54  ;;  %21562 = vmatpush3.msra.mxu1 %v18799_v38  ;;  %v27405_v54 = vmov 0.0  }
 0x718   : > { %21527 = vmatprep.subr.mxu0 %v18781_v3  ;;  %21563 = vmatprep.subr.mxu1 %v18814_v44 }
 0x719   : > { %21528 = vmatpush3.msra.mxu0 %v18765_v20  ;;  %21564 = vmatpush3.msra.mxu1 %v18798_v51 }
 0x71a   : > { %21529 = vmatprep.subr.mxu0 %v18780_v15  ;;  %21565 = vmatprep.subr.mxu1 %v18813_v47  ;;  %v18840_v47 = vld [vmem:[%s27158_s5 + $0x268] sm:$0xff] }
 0x71b   : > { %21530 = vmatpush3.msra.mxu0 %v18764_v28  ;;  %21566 = vmatpush3.msra.mxu1 %v18797_v34 }
 0x71c   : > { %21531 = vmatprep.subr.mxu0 %v18779_v30  ;;  %21567 = vmatprep.subr.mxu1 %v18812_v12 }
 0x71d   : > { %21532 = vmatpush3.msra.mxu0 %v18763_v36  ;;  %21568 = vmatpush3.msra.mxu1 %v18796_v58  ;;  %v18839_v58 = vld [vmem:[%s27158_s5 + $0x260] sm:$0xff] }
 0x71e   : > { %21703 = vmatprep.subr.mxu0 %v26538_v57  ;;  %21569 = vmatprep.subr.mxu1 %v18811_v4  ;;  %v18837_v4 = vld [vmem:[%s27158_s5 + $0x250] sm:$0xff] }
 0x71f   : > { %21570 = vmatpush3.msra.mxu1 %v18795_v55 }
 0x720   : > { %21738 = vmatprep.subr.mxu1 %v27405_v54 }
 0x774   : > { %v22042_v11 = vpop.permute.xlu1 %22041 }
 0x775   : > { %v22044_v49 = vunpack.i.h.bf16 %v22042_v11  ;;  %v22043_v56 = vunpack.i.l.bf16 %v22042_v11 }
 0x776   : > { %v22047_v60 = vpop.permute.xlu0 %22046 }
 0x777   : > { %v18634_v0 = vsel %vm1263_vm3, %v22043_v56, %v22044_v49  ;;  %v22049_v40 = vunpack.i.h.bf16 %v22047_v60  ;;  %v22048_v23 = vunpack.i.l.bf16 %v22047_v60 }
 0x778   : > { %v18654_v32 = vmax.f32 %v18552_v61, %v18634_v0 }
 0x779   : > { %v18633_v16 = vsel %vm1263_vm3, %v22049_v40, %v22043_v56  ;;  %v18635_v33 = vsel %vm1263_vm3, %v22044_v49, %v22048_v23 }
 0x77a   : > { %v26553_v52 = vmax.f32 %v18551_v37, %v18633_v16  ;;  %v26557_v8 = vmax.f32 %v18553_v41, %v18635_v33  ;;  %v22052_v24 = vpop.permute.xlu0 %22051 }
 0x77b   : > { %v22057_v46 = vpop.permute.xlu1 %22056  ;;  %v22054_v35 = vunpack.i.h.bf16 %v22052_v24  ;;  %v22053_v45 = vunpack.i.l.bf16 %v22052_v24 }
 0x77c   : > { %v22059_v6 = vunpack.i.h.bf16 %v22057_v46  ;;  %v22058_v2 = vunpack.i.l.bf16 %v22057_v46  ;;  %18689 = vrot.lane.b32.xlu0 %v26553_v52, %s27328_s16  ;;  %v22070_v10 = vpack.i.bf16 %v26557_v8, %v18654_v32 }
 0x77d   : > { %v18639_v21 = vsel %vm1263_vm3, %v22053_v45, %v22054_v35 }
 0x77e   : > { %v18636_v61 = vsel %vm1263_vm3, %v22048_v23, %v22058_v2  ;;  %v18637_v41 = vsel %vm1263_vm3, %v22058_v2, %v22059_v6  ;;  %v22067_v43 = vpop.permute.xlu0 %22066  ;;  %22071 = vrot.lane.b32.xlu1 %v22070_v10, %s27328_s16  ;;  %v18659_v22 = vmax.f32 %v18558_v18, %v18639_v21  ;;  %v18838_v2 = vld [vmem:[%s27158_s5 + $0x258] sm:$0xff] }
 0x77f   : > { %v18656_v37 = vmax.f32 %v18554_v13, %v18636_v61  ;;  %v26574_v26 = vmax.f32 %v18555_v62, %v18637_v41  ;;  %v22062_v50 = vpop.permute.xlu1 %22061  ;;  %v22069_v19 = vunpack.i.h.bf16 %v22067_v43  ;;  %v22068_v11 = vunpack.i.l.bf16 %v22067_v43  ;;  %v18836_v41 = vld [vmem:[%s27158_s5 + $0x248] sm:$0xff]  ;;  %v18834_v21 = vld [vmem:[%s27158_s5 + $0x238] sm:$0xff] }
 0x780   : > { %v22064_v17 = vunpack.i.h.bf16 %v22062_v50  ;;  %v22063_v3 = vunpack.i.l.bf16 %v22062_v50  ;;  %v18670_v62 = vmax.f32 %v18556_v25, %v22059_v6  ;;  %v18833_v50 = vld [vmem:[%s27158_s5 + $0x230] sm:$0xff]  ;;  %v18832_v43 = vld [vmem:[%s27158_s5 + $0x228] sm:$0xff] }
 0x781   : > { %v22080_v20 = vpack.i.bf16 %v26574_v26, %v18656_v37  ;;  %v18642_v31 = vsel %vm1263_vm3, %v22068_v11, %v22069_v19  ;;  %v18676_v15 = vmax.f32 %v18562_v29, %v22069_v19 }
 0x782   : > { %v18638_v39 = vsel %vm1263_vm3, %v22064_v17, %v22053_v45  ;;  %v18640_v13 = vsel %vm1263_vm3, %v22054_v35, %v22063_v3  ;;  %v26600_v63 = vmax.f32 %v18561_v5, %v18642_v31  ;;  %v18641_v53 = vsel %vm1263_vm3, %v22063_v3, %v22068_v11  ;;  %v18831_v17 = vld [vmem:[%s27158_s5 + $0x220] sm:$0xff]  ;;  %v18830_v3 = vld [vmem:[%s27158_s5 + $0x218] sm:$0xff]  ;;  %v18829_v11 = vld [vmem:[%s27158_s5 + $0x210] sm:$0xff] }
 0x783   : > { %v26589_v49 = vmax.f32 %v18557_v48, %v18638_v39  ;;  %v26593_v56 = vmax.f32 %v18559_v1, %v18640_v13  ;;  %22081 = vrot.lane.b32.xlu1 %v22080_v20, %s27328_s16  ;;  %v18661_v1 = vmax.f32 %v18560_v42, %v18641_v53  ;;  %v18828_v20 = vld [vmem:[%s27158_s5 + $0x208] sm:$0xff]  ;;  %v18827_v13 = vld [vmem:[%s27158_s5 + $0x200] sm:$0xff]  ;;  %vm19080_vm3 = vcmask 1040384  }
 0x784   : > { %v22090_v27 = vpack.i.bf16 %v18676_v15, %v26600_v63  ;;  %v19074_v15 = vld [vmem:[%s27159_s6 + $0x8] sm:$0xff] }
 0x785   : > { %v22075_v9 = vpack.i.bf16 %v26593_v56, %v18659_v22  ;;  %v22085_v18 = vpack.i.bf16 %v18670_v62, %v26589_v49  ;;  %v19076_v62 = vld [vmem:[%s27159_s6 + $0x18] sm:$0x1] }
 0x787   : > { %22076 = vrot.lane.b32.xlu0 %v22075_v9, %s27328_s16  ;;  %22086 = vrot.lane.b32.xlu1 %v22085_v18, %s27328_s16  ;;  %v19073_v9 = vld [vmem:[%s27159_s6] sm:$0xff] }
 0x788   : > { %v21423_v18 = vld [vmem:[%s27159_s6 + $0x80] sm:$0xff] }
 0x78b   : > { %22091 = vrot.lane.b32.xlu0 %v22090_v27, %s27328_s16  ;;  %18707 = vrot.lane.b32.xlu1 %v18661_v1, %s27328_s16  ;;  %s27118_s16 = scalar_lea.hbm %s27165_s12, %s21498_s18 }
 0x7ee   : > { %v18690_v5 = vpop.permute.xlu0 %18689 }
 0x7f0   : > { %v22072_v7 = vpop.permute.xlu1 %22071 }
 0x7f1   : > { %v22074_v25 = vunpack.i.h.bf16 %v22072_v7  ;;  %v22073_v14 = vunpack.i.l.bf16 %v22072_v7 }
 0x7f3   : > { %v18713_v29 = vsel %vm4783_vm11, %v18690_v5, %v22073_v14  ;;  %v18714_v48 = vsel %vm4783_vm11, %v22073_v14, %v22074_v25 }
 0x7f4   : > { %v18733_v38 = vmax.f32 %v26553_v52, %v18713_v29  ;;  %v18734_v44 = vmax.f32 %v18654_v32, %v18714_v48 }
 0x7f5   : > { %v22082_v28 = vpop.permute.xlu1 %22081 }
 0x7f6   : > { %v22084_v30 = vunpack.i.h.bf16 %v22082_v28  ;;  %v22083_v51 = vunpack.i.l.bf16 %v22082_v28  ;;  %18907 = vmatprep.mubr.f32.mxu0 %v18734_v44 }
 0x7f7   : > { %18908 = vmatmul.mubr.f32.vlgmr.msra.gmra.mxu0 %v18733_v38 }
 0x7f8   : > { %v18715_v42 = vsel %vm4783_vm11, %v22074_v25, %v22083_v51  ;;  %v18716_v60 = vsel %vm4783_vm11, %v22083_v51, %v22084_v30  ;;  %21704 = vmatpush3.msra.mxu0 %v26538_v57 }
 0x7f9   : > { %v18735_v0 = vmax.f32 %v26557_v8, %v18715_v42  ;;  %v22077_v40 = vpop.permute.xlu0 %22076  ;;  %v22087_v23 = vpop.permute.xlu1 %22086  ;;  %v18736_v36 = vmax.f32 %v18656_v37, %v18716_v60  ;;  %21705 = vmatprep.subr.mxu0 %v18841_v59 }
 0x7fa   : > { %v22079_v34 = vunpack.i.h.bf16 %v22077_v40  ;;  %v22078_v12 = vunpack.i.l.bf16 %v22077_v40  ;;  %v22089_v16 = vunpack.i.h.bf16 %v22087_v23  ;;  %v22088_v33 = vunpack.i.l.bf16 %v22087_v23  ;;  %21706 = vmatpush3.msra.mxu0 %v18841_v59  ;;  %v21408_v40 = vld [vmem:[%s27159_s6 + $0x38] sm:$0x1] }
 0x7fb   : > { %18982 = vmatprep.mubr.f32.mxu1 %v18736_v36  ;;  %21707 = vmatprep.subr.mxu0 %v18840_v47  ;;  %v21438_v23 = vld [vmem:[%s27159_s6 + $0xd8] sm:$0x1] }
 0x7fc   : > { %v18718_v57 = vsel %vm4783_vm11, %v22088_v33, %v22078_v12  ;;  %18983 = vmatmul.mubr.f32.vlgmr.msra.gmra.mxu1 %v18735_v0  ;;  %v18719_v32 = vsel %vm4783_vm11, %v22078_v12, %v22079_v34  ;;  %v18717_v52 = vsel %vm4783_vm11, %v22084_v30, %v22089_v16  ;;  %21708 = vmatpush3.msra.mxu0 %v18840_v47  ;;  %v21437_v12 = vld [vmem:[%s27159_s6 + $0xd0] sm:$0xff]  ;;  %v21406_v16 = vld [vmem:[%s27159_s6 + $0x28] sm:$0xff] }
 0x7fd   : > { %v18738_v8 = vmax.f32 %v26589_v49, %v18718_v57  ;;  %v22092_v46 = vpop.permute.xlu0 %22091  ;;  %v18708_v24 = vpop.permute.xlu1 %18707  ;;  %v18739_v6 = vmax.f32 %v18659_v22, %v18719_v32  ;;  %21709 = vmatprep.subr.mxu0 %v18839_v58  ;;  %v18737_v10 = vmax.f32 %v26574_v26, %v18717_v52  ;;  %v18835_v26 = vld [vmem:[%s27158_s5 + $0x240] sm:$0xff]  ;;  %v21426_v22 = vld [vmem:[%s27159_s6 + $0x98] sm:$0x1]  ;;  %v19075_v49 = vld [vmem:[%s27159_s6 + $0x10] sm:$0xff]  ;;  %21739 = vmatpush3.msk.msra.mxu1 %vm19080_vm3, %v19076_v62 }
 0x7fe   : > { %v22093_v35 = vunpack.i.l.bf16 %v22092_v46  ;;  %v18720_v45 = vsel %vm4783_vm11, %v22079_v34, %v18708_v24  ;;  %21710 = vmatpush3.msra.mxu0 %v18839_v58  ;;  %v22094_v19 = vunpack.i.h.bf16 %v22092_v46  ;;  %21740 = vmatprep.subr.mxu1 %v27405_v54  ;;  %v21407_v34 = vld [vmem:[%s27159_s6 + $0x30] sm:$0xff]  ;;  %v21436_v33 = vld [vmem:[%s27159_s6 + $0xc8] sm:$0xff]  ;;  %v21405_v58 = vld [vmem:[%s27159_s6 + $0x20] sm:$0xff] }
 0x7ff   : > { %18912 = vmatprep.mubr.f32.mxu0 %v18739_v6  ;;  %21711 = vmatprep.subr.mxu0 %v18838_v2  ;;  %v18740_v37 = vmax.f32 %v26593_v56, %v18720_v45  ;;  %v21425_v56 = vld [vmem:[%s27159_s6 + $0x90] sm:$0xff]  ;;  %v21435_v57 = vld [vmem:[%s27159_s6 + $0xc0] sm:$0xff]  ;;  %v21414_v52 = vld [vmem:[%s27159_s6 + $0x58] sm:$0x1] }
 0x800   : > { %v18721_v55 = vsel %vm4783_vm11, %v18708_v24, %v22093_v35  ;;  %18913 = vmatmul.mubr.f32.gmra.mxu0 %v18738_v8  ;;  %v18722_v39 = vsel %vm4783_vm11, %v22093_v35, %v22094_v19  ;;  %21741 = vmatpush3.msra.mxu1 %v19075_v49  ;;  %v21450_v8 = vld [vmem:[%s27159_s6 + $0x118] sm:$0x1]  ;;  %v21413_v24 = vld [vmem:[%s27159_s6 + $0x50] sm:$0xff]  ;;  %v21448_v35 = vld [vmem:[%s27159_s6 + $0x108] sm:$0xff]  ;;  %vm20507_vm11 = vcmask 1043456  }
 0x801   : > { %v18741_v61 = vmax.f32 %v18661_v1, %v18721_v55  ;;  %21712 = vmatpush3.msra.mxu0 %v18838_v2  ;;  %21735 = vmatprep.mubr.f32.mxu0 %v18737_v10  ;;  %v18742_v31 = vmax.f32 %v26600_v63, %v18722_v39  ;;  %v21424_v63 = vld [vmem:[%s27159_s6 + $0x88] sm:$0xff]  ;;  %v21449_v6 = vld [vmem:[%s27159_s6 + $0x110] sm:$0xff]  ;;  %v21411_v45 = vld [vmem:[%s27159_s6 + $0x40] sm:$0xff] }
 0x802   : > { %21713 = vmatprep.subr.mxu0 %v18837_v4  ;;  %21742 = vmatprep.subr.mxu1 %v27405_v54  ;;  %v21412_v2 = vld [vmem:[%s27159_s6 + $0x48] sm:$0xff]  ;;  %v21420_v55 = vld [vmem:[%s27159_s6 + $0x78] sm:$0x1]  ;;  %v21431_v39 = vld [vmem:[%s27159_s6 + $0xb0] sm:$0xff] }
 0x803   : > { %21714 = vmatpush3.msra.mxu0 %v18837_v4  ;;  %18987 = vmatprep.mubr.f32.mxu1 %v18741_v61  ;;  %v21447_v4 = vld [vmem:[%s27159_s6 + $0x100] sm:$0xff]  ;;  %v21462_v61 = vld [vmem:[%s27159_s6 + $0x158] sm:$0x1]  ;;  %v21472_v62 = vld [vmem:[%s27159_s6 + $0x188] sm:$0xff] }
 0x804   : > { %21715 = vmatprep.subr.mxu0 %v18836_v41  ;;  %18988 = vmatmul.mubr.f32.gmra.mxu1 %v18740_v37  ;;  %v21419_v37 = vld [vmem:[%s27159_s6 + $0x70] sm:$0xff]  ;;  %v21432_v19 = vld [vmem:[%s27159_s6 + $0xb8] sm:$0x1]  ;;  %v21471_v49 = vld [vmem:[%s27159_s6 + $0x180] sm:$0xff] }
 0x805   : > { %21716 = vmatpush3.msra.mxu0 %v18836_v41  ;;  %21743 = vmatpush3.msra.mxu1 %v19074_v15  ;;  %v21444_v15 = vld [vmem:[%s27159_s6 + $0xf8] sm:$0x1] }
 0x806   : > { %21717 = vmatprep.subr.mxu0 %v18835_v26  ;;  %21744 = vmatprep.subr.mxu1 %v27405_v54 }
 0x807   : > { %21718 = vmatpush3.msra.mxu0 %v18835_v26  ;;  %21745 = vmatpush3.msra.mxu1 %v19073_v9  ;;  %v21461_v26 = vld [vmem:[%s27159_s6 + $0x150] sm:$0xff] }
 0x808   : > { %21719 = vmatprep.subr.mxu0 %v18834_v21  ;;  %21746 = vmatprep.mubr.msk.f32.mxu1 %vm22308_vm5, %v27405_v54 }
 0x809   : > { %21720 = vmatpush3.msra.mxu0 %v18834_v21  ;;  %21749 = vmatprep.subr.mxu1 %v27405_v54  ;;  %v21418_v21 = vld [vmem:[%s27159_s6 + $0x68] sm:$0xff] }
 0x80a   : > { %21721 = vmatprep.subr.mxu0 %v18833_v50 }
 0x80b   : > { %21722 = vmatpush3.msra.mxu0 %v18833_v50  ;;  %v21460_v50 = vld [vmem:[%s27159_s6 + $0x148] sm:$0xff] }
 0x80c   : > { %21723 = vmatprep.subr.mxu0 %v18832_v43 }
 0x80d   : > { %21724 = vmatpush3.msra.mxu0 %v18832_v43  ;;  %v21417_v43 = vld [vmem:[%s27159_s6 + $0x60] sm:$0xff] }
 0x80e   : > { %21725 = vmatprep.subr.mxu0 %v18831_v17 }
 0x80f   : > { %21726 = vmatpush3.msra.mxu0 %v18831_v17  ;;  %v21459_v17 = vld [vmem:[%s27159_s6 + $0x140] sm:$0xff] }
 0x810   : > { %21727 = vmatprep.subr.mxu0 %v18830_v3 }
 0x811   : > { %21728 = vmatpush3.msra.mxu0 %v18830_v3 }
 0x812   : > { %21729 = vmatprep.subr.mxu0 %v18829_v11 }
 0x813   : > { %21730 = vmatpush3.msra.mxu0 %v18829_v11  ;;  %v21474_v11 = vld [vmem:[%s27159_s6 + $0x198] sm:$0x1] }
 0x814   : > { %21731 = vmatprep.subr.mxu0 %v18828_v20 }
 0x815   : > { %21732 = vmatpush3.msra.mxu0 %v18828_v20 }
 0x816   : > { %21733 = vmatprep.subr.mxu0 %v18827_v13 }
 0x817   : > { %21734 = vmatpush3.msra.mxu0 %v18827_v13  ;;  %v21473_v13 = vld [vmem:[%s27159_s6 + $0x190] sm:$0xff] }
 0x818   : > { %21736 = vmatmul.mubr.f32.vlgmr.msra.gmra.mxu0 %v18742_v31  ;;  %21782 = vmatprep.subr.mxu0 %v27405_v54  ;;  %v21430_v31 = vld [vmem:[%s27159_s6 + $0xa8] sm:$0xff] }
 0x819   : > { %21783 = vmatpush3.msk.msra.mxu0 %vm19080_vm3, %v21426_v22  ;;  %21790 = vmatprep.mubr.msk.f32.mxu0 %vm22308_vm5, %v27405_v54  ;;  %v21429_v22 = vld [vmem:[%s27159_s6 + $0xa0] sm:$0xff] }
 0x81a   : > { %21784 = vmatprep.subr.mxu0 %v27405_v54 }
 0x81b   : > { %21785 = vmatpush3.msra.mxu0 %v21425_v56 }
 0x81c   : > { %21786 = vmatprep.subr.mxu0 %v27405_v54 }
 0x81d   : > { %21787 = vmatpush3.msra.mxu0 %v21424_v63  ;;  %v21486_v63 = vld [vmem:[%s27159_s6 + $0x1d8] sm:$0x1] }
 0x81e   : > { %21788 = vmatprep.subr.mxu0 %v27405_v54 }
 0x81f   : > { %21789 = vmatpush3.msra.mxu0 %v21423_v18  ;;  %v21443_v18 = vld [vmem:[%s27159_s6 + $0xf0] sm:$0xff] }
 0x820   : > { %21804 = vmatprep.subr.mxu0 %v27405_v54 }
 0x8b7   : > { %v21533_v27 = vpop.f32.mrf.mxu0 }
 0x8b9   : > { %v21534_v7 = vpop.f32.mrf.mxu0 }
 0x8ba   : > { %v21535_v44 = vadd.f32 %v21534_v7, %v21533_v27  ;;  %v21442_v27 = vld [vmem:[%s27159_s6 + $0xe8] sm:$0xff]  ;;  %v21441_v7 = vld [vmem:[%s27159_s6 + $0xe0] sm:$0xff] }
 0x8bc   : > { %v21571_v53 = vpop.f32.mrf.mxu1 }
 0x8be   : > { %v21572_v1 = vpop.f32.mrf.mxu1 }
 0x8bf   : > { %v21573_v38 = vadd.f32 %v21572_v1, %v21571_v53  ;;  %v21485_v53 = vld [vmem:[%s27159_s6 + $0x1d0] sm:$0xff]  ;;  %v21484_v1 = vld [vmem:[%s27159_s6 + $0x1c8] sm:$0xff] }
 0x8c0   : > { %v21536_v14 = vpop.f32.mrf.mxu0 }
 0x8c1   : > { %v18985_v42 = vadd.f32 %v21573_v38, %v21535_v44  ;;  %v21454_v38 = vld [vmem:[%s27159_s6 + $0x128] sm:$0xff]  ;;  %v21468_v44 = vld [vmem:[%s27159_s6 + $0x178] sm:$0x1] }
 0x8c2   : > { %v21537_v29 = vpop.f32.mrf.mxu0 }
 0x8c3   : > { %v21538_v28 = vadd.f32 %v21537_v29, %v21536_v14  ;;  %v21456_v14 = vld [vmem:[%s27159_s6 + $0x138] sm:$0x1] }
 0x8c4   : > { %v21574_v25 = vpop.f32.mrf.mxu1 }
 0x8c6   : > { %v21575_v5 = vpop.f32.mrf.mxu1 }
 0x8c7   : > { %v21576_v48 = vadd.f32 %v21575_v5, %v21574_v25  ;;  %v21483_v25 = vld [vmem:[%s27159_s6 + $0x1c0] sm:$0xff] }
 0x8c9   : > { %v18990_v30 = vadd.f32 %v21576_v48, %v21538_v28  ;;  %v21455_v48 = vld [vmem:[%s27159_s6 + $0x130] sm:$0xff]  ;;  %v21453_v28 = vld [vmem:[%s27159_s6 + $0x120] sm:$0xff] }
 0x8d8   : > { %v21737_v51 = vpop.f32.mrf.mxu0 }
 0x8d9   : > { %v19065_v59 = vadd.f32 %v21737_v51, %v18990_v30  ;;  %v21467_v51 = vld [vmem:[%s27159_s6 + $0x170] sm:$0xff] }
 0x8da   : > { %v19059_v60 = vpop.f32.mrf.mxu0 }
 0x8db   : > { %19070 = vst.msk [vmem:[#allocation6 + $0x8] sm:$0xff] %vm19068_vm6, %v19065_v59  ;;  %v19060_v0 = vadd.f32 %v19059_v60, %v18985_v42  ;;  %v21466_v59 = vld [vmem:[%s27159_s6 + $0x168] sm:$0xff]  ;;  %v21465_v42 = vld [vmem:[%s27159_s6 + $0x160] sm:$0xff]  ;;  %v21480_v60 = vld [vmem:[%s27159_s6 + $0x1b8] sm:$0x1] }
 0x8dd   : > { %19069 = vst.msk [vmem:[#allocation6] sm:$0xff] %vm19068_vm6, %v19060_v0 }
 0x8e2   : > { %v19736_v41 = vld [vmem:[#allocation6 + $0x8] sm:$0x1]  ;;  %v19902_v20 = vld [vmem:[#allocation6 + $0xa] sm:$0x1]  ;;  %v20068_v9 = vld [vmem:[#allocation6 + $0xc] sm:$0x1] }
 0x8e3   : > { %v20234_v29 = vld [vmem:[#allocation6 + $0xe] sm:$0x1]  ;;  %v19819_v30 = vld [vmem:[#allocation6 + $0x9] sm:$0x1]  ;;  %v19985_v0 = vld [vmem:[#allocation6 + $0xb] sm:$0x1] }
 0x8e4   : > { %v19072_v36 = vld [vmem:[#allocation6] sm:$0x1]  ;;  %v19404_v47 = vld [vmem:[#allocation6 + $0x4] sm:$0x1]  ;;  %v19155_v32 = vld [vmem:[#allocation6 + $0x1] sm:$0x1] }
 0x8e5   : > { %21747 = vmatmul.mubr.msk.f32.vlgmr.msra.gmra.mxu1 %vm19068_vm6, %v19072_v36  ;;  %21791 = vmatmul.mubr.msk.f32.vlgmr.msra.gmra.mxu0 %vm19068_vm6, %v19404_v47  ;;  %v19570_v46 = vld [vmem:[#allocation6 + $0x6] sm:$0x1]  ;;  %v19238_v10 = vld [vmem:[#allocation6 + $0x2] sm:$0x1]  ;;  %v19321_v3 = vld [vmem:[#allocation6 + $0x3] sm:$0x1] }
 0x8e6   : > { %21750 = vmatpush3.msk.msra.mxu1 %vm19080_vm3, %v21408_v40  ;;  %21805 = vmatpush3.msk.msra.mxu0 %vm19080_vm3, %v21438_v23  ;;  %v19487_v56 = vld [vmem:[#allocation6 + $0x5] sm:$0x1]  ;;  %v19653_v5 = vld [vmem:[#allocation6 + $0x7] sm:$0x1]  ;;  %v21479_v40 = vld [vmem:[%s27159_s6 + $0x1b0] sm:$0xff] }
 0x8e7   : > { %21751 = vmatprep.subr.mxu1 %v27405_v54  ;;  %21806 = vmatprep.subr.mxu0 %v27405_v54  ;;  %v21478_v23 = vld [vmem:[%s27159_s6 + $0x1a8] sm:$0xff]  ;;  %v21477_v36 = vld [vmem:[%s27159_s6 + $0x1a0] sm:$0xff]  ;;  %v21492_v47 = vld [vmem:[%s27159_s6 + $0x1f8] sm:$0x1] }
 0x8e8   : > { %21752 = vmatpush3.msra.mxu1 %v21407_v34  ;;  %21807 = vmatpush3.msra.mxu0 %v21437_v12  ;;  %v20151_v34 = vld [vmem:[#allocation6 + $0xd] sm:$0x1]  ;;  %v21491_v12 = vld [vmem:[%s27159_s6 + $0x1f0] sm:$0xff] }
 0x8e9   : > { %21753 = vmatprep.subr.mxu1 %v27405_v54  ;;  %21808 = vmatprep.subr.mxu0 %v27405_v54 }
 0x8ea   : > { %21754 = vmatpush3.msra.mxu1 %v21406_v16  ;;  %21809 = vmatpush3.msra.mxu0 %v21436_v33  ;;  %v21490_v16 = vld [vmem:[%s27159_s6 + $0x1e8] sm:$0xff]  ;;  %v21489_v33 = vld [vmem:[%s27159_s6 + $0x1e0] sm:$0xff] }
 0x8eb   : > { %21755 = vmatprep.subr.mxu1 %v27405_v54  ;;  %21810 = vmatprep.subr.mxu0 %v27405_v54 }
 0x8ec   : > { %21756 = vmatpush3.msra.mxu1 %v21405_v58  ;;  %21757 = vmatprep.mubr.msk.f32.mxu1 %vm22308_vm5, %v27405_v54  ;;  %v20317_v58 = vld [vmem:[#allocation6 + $0xf] sm:$0x1] }
 0x8ed   : > { %21811 = vmatpush3.msra.mxu0 %v21435_v57  ;;  %21812 = vmatprep.mubr.msk.f32.mxu0 %vm22308_vm5, %v27405_v54  ;;  %v20415_v57 = vld [vmem:[%s27161_s8 + $0x70] sm:$0xff] }
 0x8ee   : > { %21758 = vmatmul.mubr.msk.f32.vlgmr.msra.gmra.mxu1 %vm19068_vm6, %v19155_v32  ;;  %21760 = vmatprep.subr.mxu1 %v27405_v54  ;;  %v20414_v32 = vld [vmem:[%s27161_s8 + $0x68] sm:$0xff] }
 0x8ef   : > { %21813 = vmatmul.mubr.msk.f32.vlgmr.msra.gmra.mxu0 %vm19068_vm6, %v19570_v46  ;;  %21826 = vmatprep.subr.mxu0 %v27405_v54  ;;  %v20411_v46 = vld [vmem:[%s27161_s8 + $0x50] sm:$0xff] }
 0x8f0   : > { %21761 = vmatpush3.msk.msra.mxu1 %vm19080_vm3, %v21414_v52  ;;  %21827 = vmatpush3.msk.msra.mxu0 %vm19080_vm3, %v21450_v8  ;;  %v20413_v52 = vld [vmem:[%s27161_s8 + $0x60] sm:$0xff]  ;;  %v20412_v8 = vld [vmem:[%s27161_s8 + $0x58] sm:$0xff] }
 0x8f1   : > { %21762 = vmatprep.subr.mxu1 %v27405_v54  ;;  %21828 = vmatprep.subr.mxu0 %v27405_v54 }
 0x8f2   : > { %21763 = vmatpush3.msra.mxu1 %v21413_v24  ;;  %21829 = vmatpush3.msra.mxu0 %v21449_v6  ;;  %v20410_v24 = vld [vmem:[%s27161_s8 + $0x48] sm:$0xff]  ;;  %v20409_v6 = vld [vmem:[%s27161_s8 + $0x40] sm:$0xff] }
 0x8f3   : > { %21764 = vmatprep.subr.mxu1 %v27405_v54  ;;  %21830 = vmatprep.subr.mxu0 %v27405_v54 }
 0x8f4   : > { %21765 = vmatpush3.msra.mxu1 %v21412_v2  ;;  %21831 = vmatpush3.msra.mxu0 %v21448_v35  ;;  %v20408_v2 = vld [vmem:[%s27161_s8 + $0x38] sm:$0xff]  ;;  %v20407_v35 = vld [vmem:[%s27161_s8 + $0x30] sm:$0xff] }
 0x8f5   : > { %21766 = vmatprep.subr.mxu1 %v27405_v54  ;;  %21832 = vmatprep.subr.mxu0 %v27405_v54 }
 0x8f6   : > { %21767 = vmatpush3.msra.mxu1 %v21411_v45  ;;  %21768 = vmatprep.mubr.msk.f32.mxu1 %vm22308_vm5, %v27405_v54  ;;  %v20406_v45 = vld [vmem:[%s27161_s8 + $0x28] sm:$0xff] }
 0x8f7   : > { %21833 = vmatpush3.msra.mxu0 %v21447_v4  ;;  %21834 = vmatprep.mubr.msk.f32.mxu0 %vm22308_vm5, %v27405_v54  ;;  %v20405_v4 = vld [vmem:[%s27161_s8 + $0x20] sm:$0xff] }
 0x8f8   : > { %21769 = vmatmul.mubr.msk.f32.vlgmr.msra.gmra.mxu1 %vm19068_vm6, %v19238_v10  ;;  %21771 = vmatprep.subr.mxu1 %v27405_v54  ;;  %v20404_v10 = vld [vmem:[%s27161_s8 + $0x18] sm:$0xff] }
 0x8f9   : > { %21835 = vmatmul.mubr.msk.f32.vlgmr.msra.gmra.mxu0 %vm19068_vm6, %v19736_v41  ;;  %21848 = vmatprep.subr.mxu0 %v27405_v54  ;;  %v20401_v41 = vld [vmem:[%s27161_s8] sm:$0xff] }
 0x8fa   : > { %21772 = vmatpush3.msk.msra.mxu1 %vm19080_vm3, %v21420_v55  ;;  %21849 = vmatpush3.msk.msra.mxu0 %vm19080_vm3, %v21462_v61  ;;  %v20403_v55 = vld [vmem:[%s27161_s8 + $0x10] sm:$0xff]  ;;  %v20402_v61 = vld [vmem:[%s27161_s8 + $0x8] sm:$0xff] }
 0x8fb   : > { %21773 = vmatprep.subr.mxu1 %v27405_v54  ;;  %21850 = vmatprep.subr.mxu0 %v27405_v54 }
 0x8fc   : > { %21774 = vmatpush3.msra.mxu1 %v21419_v37  ;;  %21851 = vmatpush3.msra.mxu0 %v21461_v26  ;;  %v20501_v37 = vld [vmem:[%s27163_s10 + $0x50] sm:$0xf]  ;;  %v20500_v26 = vld [vmem:[%s27163_s10 + $0x48] sm:$0xff] }
 0x8fd   : > { %21775 = vmatprep.subr.mxu1 %v27405_v54  ;;  %21852 = vmatprep.subr.mxu0 %v27405_v54 }
 0x8fe   : > { %21776 = vmatpush3.msra.mxu1 %v21418_v21  ;;  %21853 = vmatpush3.msra.mxu0 %v21460_v50  ;;  %v20499_v21 = vld [vmem:[%s27163_s10 + $0x40] sm:$0xff]  ;;  %v20498_v50 = vld [vmem:[%s27163_s10 + $0x38] sm:$0xff] }
 0x8ff   : > { %21777 = vmatprep.subr.mxu1 %v27405_v54  ;;  %21854 = vmatprep.subr.mxu0 %v27405_v54 }
 0x900   : > { %21778 = vmatpush3.msra.mxu1 %v21417_v43  ;;  %21779 = vmatprep.mubr.msk.f32.mxu1 %vm22308_vm5, %v27405_v54  ;;  %v20497_v43 = vld [vmem:[%s27163_s10 + $0x30] sm:$0xff] }
 0x901   : > { %21855 = vmatpush3.msra.mxu0 %v21459_v17  ;;  %21856 = vmatprep.mubr.msk.f32.mxu0 %vm22308_vm5, %v27405_v54  ;;  %v20496_v17 = vld [vmem:[%s27163_s10 + $0x28] sm:$0xff] }
 0x902   : > { %21780 = vmatmul.mubr.msk.f32.vlgmr.msra.gmra.mxu1 %vm19068_vm6, %v19321_v3  ;;  %21793 = vmatprep.subr.mxu1 %v27405_v54  ;;  %v20495_v3 = vld [vmem:[%s27163_s10 + $0x20] sm:$0xff] }
 0x903   : > { %21857 = vmatmul.mubr.msk.f32.vlgmr.msra.gmra.mxu0 %vm19068_vm6, %v19902_v20  ;;  %21870 = vmatprep.subr.mxu0 %v27405_v54 }
 0x904   : > { %21794 = vmatpush3.msk.msra.mxu1 %vm19080_vm3, %v21432_v19  ;;  %21871 = vmatpush3.msk.msra.mxu0 %vm19080_vm3, %v21474_v11  ;;  %v20494_v19 = vld [vmem:[%s27163_s10 + $0x18] sm:$0xff] }
 0x905   : > { %21795 = vmatprep.subr.mxu1 %v27405_v54  ;;  %21872 = vmatprep.subr.mxu0 %v27405_v54 }
 0x906   : > { %21796 = vmatpush3.msra.mxu1 %v21431_v39  ;;  %21873 = vmatpush3.msra.mxu0 %v21473_v13 }
 0x907   : > { %21797 = vmatprep.subr.mxu1 %v27405_v54  ;;  %21874 = vmatprep.subr.mxu0 %v27405_v54 }
 0x908   : > { %21798 = vmatpush3.msra.mxu1 %v21430_v31  ;;  %21875 = vmatpush3.msra.mxu0 %v21472_v62 }
 0x909   : > { %21799 = vmatprep.subr.mxu1 %v27405_v54  ;;  %21876 = vmatprep.subr.mxu0 %v27405_v54 }
 0x90a   : > { %21800 = vmatpush3.msra.mxu1 %v21429_v22  ;;  %21801 = vmatprep.mubr.msk.f32.mxu1 %vm22308_vm5, %v27405_v54 }
 0x90b   : > { %21877 = vmatpush3.msra.mxu0 %v21471_v49  ;;  %21878 = vmatprep.mubr.msk.f32.mxu0 %vm22308_vm5, %v27405_v54 }
 0x90c   : > { %21802 = vmatmul.mubr.msk.f32.vlgmr.msra.gmra.mxu1 %vm19068_vm6, %v19487_v56  ;;  %21815 = vmatprep.subr.mxu1 %v27405_v54 }
 0x90d   : > { %21879 = vmatmul.mubr.msk.f32.vlgmr.msra.gmra.mxu0 %vm19068_vm6, %v20068_v9  ;;  %21892 = vmatprep.subr.mxu0 %v27405_v54 }
 0x90e   : > { %21816 = vmatpush3.msk.msra.mxu1 %vm19080_vm3, %v21444_v15  ;;  %21893 = vmatpush3.msk.msra.mxu0 %vm19080_vm3, %v21486_v63 }
 0x90f   : > { %21817 = vmatprep.subr.mxu1 %v27405_v54  ;;  %21894 = vmatprep.subr.mxu0 %v27405_v54 }
 0x910   : > { %21818 = vmatpush3.msra.mxu1 %v21443_v18  ;;  %21895 = vmatpush3.msra.mxu0 %v21485_v53 }
 0x911   : > { %21819 = vmatprep.subr.mxu1 %v27405_v54  ;;  %21896 = vmatprep.subr.mxu0 %v27405_v54 }
 0x912   : > { %21820 = vmatpush3.msra.mxu1 %v21442_v27  ;;  %21897 = vmatpush3.msra.mxu0 %v21484_v1 }
 0x913   : > { %21821 = vmatprep.subr.mxu1 %v27405_v54  ;;  %21898 = vmatprep.subr.mxu0 %v27405_v54 }
 0x914   : > { %21822 = vmatpush3.msra.mxu1 %v21441_v7  ;;  %21823 = vmatprep.mubr.msk.f32.mxu1 %vm22308_vm5, %v27405_v54  ;;  %v19071_v7 = vld [vmem:[%s27160_s7] sm:$0x1] }
 0x915   : > { %21899 = vmatpush3.msra.mxu0 %v21483_v25  ;;  %21900 = vmatprep.mubr.msk.f32.mxu0 %vm22308_vm5, %v27405_v54 }
 0x916   : > { %21824 = vmatmul.mubr.msk.f32.vlgmr.msra.gmra.mxu1 %vm19068_vm6, %v19653_v5  ;;  %21837 = vmatprep.subr.mxu1 %v27405_v54 }
 0x917   : > { %21901 = vmatmul.mubr.msk.f32.vlgmr.msra.gmra.mxu0 %vm19068_vm6, %v20234_v29  ;;  %21838 = vmatpush3.msk.msra.mxu1 %vm19080_vm3, %v21456_v14 }
 0x918   : > { %21839 = vmatprep.subr.mxu1 %v27405_v54  ;;  %21845 = vmatprep.mubr.msk.f32.mxu1 %vm22308_vm5, %v27405_v54 }
 0x919   : > { %21840 = vmatpush3.msra.mxu1 %v21455_v48  ;;  %21914 = vmatprep.subr.mxu0 %v27405_v54 }
 0x91a   : > { %21841 = vmatprep.subr.mxu1 %v27405_v54  ;;  %21944 = vmatprep.mubr.msk.f32.mxu0 %vm22308_vm5, %v27405_v54 }
 0x91b   : > { %21842 = vmatpush3.msra.mxu1 %v21454_v38  ;;  %21915 = vmatpush3.msra.mxu0 %v20415_v57 }
 0x91c   : > { %21843 = vmatprep.subr.mxu1 %v27405_v54  ;;  %21916 = vmatprep.subr.mxu0 %v27405_v54 }
 0x91d   : > { %21844 = vmatpush3.msra.mxu1 %v21453_v28  ;;  %21917 = vmatpush3.msra.mxu0 %v20414_v32 }
 0x91e   : > { %21846 = vmatmul.mubr.msk.f32.vlgmr.msra.gmra.mxu1 %vm19068_vm6, %v19819_v30  ;;  %21859 = vmatprep.subr.mxu1 %v27405_v54 }
 0x91f   : > { %21860 = vmatpush3.msk.msra.mxu1 %vm19080_vm3, %v21468_v44  ;;  %21867 = vmatprep.mubr.msk.f32.mxu1 %vm22308_vm5, %v27405_v54 }
 0x920   : > { %21861 = vmatprep.subr.mxu1 %v27405_v54  ;;  %21918 = vmatprep.subr.mxu0 %v27405_v54 }
 0x921   : > { %21862 = vmatpush3.msra.mxu1 %v21467_v51  ;;  %21919 = vmatpush3.msra.mxu0 %v20413_v52 }
 0x922   : > { %21863 = vmatprep.subr.mxu1 %v27405_v54  ;;  %21920 = vmatprep.subr.mxu0 %v27405_v54 }
 0x923   : > { %21864 = vmatpush3.msra.mxu1 %v21466_v59  ;;  %21921 = vmatpush3.msra.mxu0 %v20412_v8 }
 0x924   : > { %21865 = vmatprep.subr.mxu1 %v27405_v54  ;;  %21922 = vmatprep.subr.mxu0 %v27405_v54 }
 0x925   : > { %21866 = vmatpush3.msra.mxu1 %v21465_v42  ;;  %21923 = vmatpush3.msra.mxu0 %v20411_v46 }
 0x926   : > { %21868 = vmatmul.mubr.msk.f32.vlgmr.msra.gmra.mxu1 %vm19068_vm6, %v19985_v0  ;;  %21881 = vmatprep.subr.mxu1 %v27405_v54 }
 0x927   : > { %21882 = vmatpush3.msk.msra.mxu1 %vm19080_vm3, %v21480_v60  ;;  %21889 = vmatprep.mubr.msk.f32.mxu1 %vm22308_vm5, %v27405_v54 }
 0x928   : > { %21883 = vmatprep.subr.mxu1 %v27405_v54  ;;  %21924 = vmatprep.subr.mxu0 %v27405_v54 }
 0x929   : > { %21884 = vmatpush3.msra.mxu1 %v21479_v40  ;;  %21925 = vmatpush3.msra.mxu0 %v20410_v24 }
 0x92a   : > { %21885 = vmatprep.subr.mxu1 %v27405_v54  ;;  %21926 = vmatprep.subr.mxu0 %v27405_v54 }
 0x92b   : > { %21886 = vmatpush3.msra.mxu1 %v21478_v23  ;;  %21927 = vmatpush3.msra.mxu0 %v20409_v6 }
 0x92c   : > { %21887 = vmatprep.subr.mxu1 %v27405_v54  ;;  %21928 = vmatprep.subr.mxu0 %v27405_v54 }
 0x92d   : > { %21888 = vmatpush3.msra.mxu1 %v21477_v36  ;;  %21929 = vmatpush3.msra.mxu0 %v20408_v2 }
 0x92e   : > { %21890 = vmatmul.mubr.msk.f32.vlgmr.msra.gmra.mxu1 %vm19068_vm6, %v20151_v34  ;;  %21903 = vmatprep.subr.mxu1 %v27405_v54 }
 0x92f   : > { %21904 = vmatpush3.msk.msra.mxu1 %vm19080_vm3, %v21492_v47  ;;  %21911 = vmatprep.mubr.msk.f32.mxu1 %vm22308_vm5, %v27405_v54 }
 0x930   : > { %21905 = vmatprep.subr.mxu1 %v27405_v54  ;;  %21930 = vmatprep.subr.mxu0 %v27405_v54 }
 0x931   : > { %21906 = vmatpush3.msra.mxu1 %v21491_v12  ;;  %21931 = vmatpush3.msra.mxu0 %v20407_v35 }
 0x932   : > { %21907 = vmatprep.subr.mxu1 %v27405_v54  ;;  %21932 = vmatprep.subr.mxu0 %v27405_v54 }
 0x933   : > { %21908 = vmatpush3.msra.mxu1 %v21490_v16  ;;  %21933 = vmatpush3.msra.mxu0 %v20406_v45 }
 0x934   : > { %21909 = vmatprep.subr.mxu1 %v27405_v54  ;;  %21934 = vmatprep.subr.mxu0 %v27405_v54 }
 0x935   : > { %21910 = vmatpush3.msra.mxu1 %v21489_v33  ;;  %21935 = vmatpush3.msra.mxu0 %v20405_v4  ;;  %v20493_v4 = vld [vmem:[%s27163_s10 + $0x10] sm:$0xff] }
 0x936   : > { %21912 = vmatmul.mubr.msk.f32.vlgmr.msra.gmra.mxu1 %vm19068_vm6, %v20317_v58  ;;  %21947 = vmatprep.subr.mxu1 %v27405_v54 }
 0x937   : > { %21969 = vmatprep.mubr.msk.f32.mxu1 %vm22308_vm5, %v27405_v54  ;;  %21936 = vmatprep.subr.mxu0 %v27405_v54 }
 0x938   : > { %21937 = vmatpush3.msra.mxu0 %v20404_v10  ;;  %21948 = vmatpush3.msk.msra.mxu1 %vm20507_vm11, %v20501_v37  ;;  %v20492_v10 = vld [vmem:[%s27163_s10 + $0x8] sm:$0xff] }
 0x939   : > { %21938 = vmatprep.subr.mxu0 %v27405_v54  ;;  %21949 = vmatprep.subr.mxu1 %v27405_v54 }
 0x93a   : > { %21939 = vmatpush3.msra.mxu0 %v20403_v55  ;;  %21950 = vmatpush3.msra.mxu1 %v20500_v26  ;;  %v20491_v55 = vld [vmem:[%s27163_s10] sm:$0xff] }
 0x93b   : > { %21940 = vmatprep.subr.mxu0 %v27405_v54  ;;  %21951 = vmatprep.subr.mxu1 %v27405_v54 }
 0x93c   : > { %21941 = vmatpush3.msra.mxu0 %v20402_v61  ;;  %21952 = vmatpush3.msra.mxu1 %v20499_v21  ;;  %v20416_v61 = vld [vmem:[%s27162_s9] sm:$0x1] }
 0x93d   : > { %21942 = vmatprep.subr.mxu0 %v27405_v54  ;;  %21953 = vmatprep.subr.mxu1 %v27405_v54 }
 0x93e   : > { %21943 = vmatpush3.msra.mxu0 %v20401_v41  ;;  %21954 = vmatpush3.msra.mxu1 %v20498_v50  ;;  %v20502_v50 = vld [vmem:[%s27164_s11] sm:$0x1] }
 0x93f   : > { %21955 = vmatprep.subr.mxu1 %v27405_v54 }
 0x940   : > { %21956 = vmatpush3.msra.mxu1 %v20497_v43 }
 0x941   : > { %21957 = vmatprep.subr.mxu1 %v27405_v54 }
 0x942   : > { %21958 = vmatpush3.msra.mxu1 %v20496_v17 }
 0x943   : > { %21959 = vmatprep.subr.mxu1 %v27405_v54 }
 0x944   : > { %21960 = vmatpush3.msra.mxu1 %v20495_v3 }
 0x945   : > { %21961 = vmatprep.subr.mxu1 %v27405_v54 }
 0x946   : > { %21962 = vmatpush3.msra.mxu1 %v20494_v19 }
 0x947   : > { %21963 = vmatprep.subr.mxu1 %v27405_v54 }
 0x948   : > { %21964 = vmatpush3.msra.mxu1 %v20493_v4 }
 0x949   : > { %21965 = vmatprep.subr.mxu1 %v27405_v54 }
 0x94a   : > { %21966 = vmatpush3.msra.mxu1 %v20492_v10 }
 0x94b   : > { %21967 = vmatprep.subr.mxu1 %v27405_v54 }
 0x94c   : > { %21968 = vmatpush3.msra.mxu1 %v20491_v55 }
 0x9a5   : > { %v19150_v11 = vpop.f32.mrf.mxu1  ;;  %v19482_v20 = vpop.f32.mrf.mxu0 }
 0x9a6   : > { %v19154_v14 = vadd.f32 %v19150_v11, %v19071_v7 }
 0x9a7   : > { %v21748_v39 = vpop.f32.mrf.mxu1  ;;  %v21792_v13 = vpop.f32.mrf.mxu0 }
 0x9ae   : > { %v19233_v31 = vpop.f32.mrf.mxu1 }
 0x9af   : > { %v19648_v62 = vpop.f32.mrf.mxu0  ;;  %v19237_v48 = vadd.f32 %v19233_v31, %v19154_v14 }
 0x9b0   : > { %v21759_v22 = vpop.f32.mrf.mxu1 }
 0x9b1   : > { %v21814_v49 = vpop.f32.mrf.mxu0 }
 0x9b8   : > { %v19316_v56 = vpop.f32.mrf.mxu1 }
 0x9b9   : > { %v19814_v15 = vpop.f32.mrf.mxu0  ;;  %v19320_v28 = vadd.f32 %v19316_v56, %v19237_v48 }
 0x9ba   : > { %v21770_v63 = vpop.f32.mrf.mxu1 }
 0x9bb   : > { %v21836_v9 = vpop.f32.mrf.mxu0 }
 0x9c2   : > { %v19399_v18 = vpop.f32.mrf.mxu1 }
 0x9c3   : > { %v19980_v53 = vpop.f32.mrf.mxu0  ;;  %v19403_v44 = vadd.f32 %v19399_v18, %v19320_v28 }
 0x9c4   : > { %v21781_v27 = vpop.f32.mrf.mxu1 }
 0x9c5   : > { %v21858_v1 = vpop.f32.mrf.mxu0  ;;  %v19486_v51 = vadd.f32 %v19482_v20, %v19403_v44 }
 0x9cc   : > { %v19565_v25 = vpop.f32.mrf.mxu1 }
 0x9cd   : > { %v20146_v5 = vpop.f32.mrf.mxu0  ;;  %v19569_v60 = vadd.f32 %v19565_v25, %v19486_v51 }
 0x9ce   : > { %v21803_v29 = vpop.f32.mrf.mxu1 }
 0x9cf   : > { %v21880_v38 = vpop.f32.mrf.mxu0  ;;  %v19652_v40 = vadd.f32 %v19648_v62, %v19569_v60 }
 0x9d6   : > { %v19731_v30 = vpop.f32.mrf.mxu1 }
 0x9d7   : > { %v20312_v59 = vpop.f32.mrf.mxu0  ;;  %v19735_v36 = vadd.f32 %v19731_v30, %v19652_v40 }
 0x9d8   : > { %v21825_v42 = vpop.f32.mrf.mxu1 }
 0x9d9   : > { %v21902_v0 = vpop.f32.mrf.mxu0  ;;  %v19818_v34 = vadd.f32 %v19814_v15, %v19735_v36 }
 0x9de   : > { %v19897_v23 = vpop.f32.mrf.mxu1 }
 0x9df   : > { %v19901_v12 = vadd.f32 %v19897_v23, %v19818_v34 }
 0x9e0   : > { %v21847_v47 = vpop.f32.mrf.mxu1 }
 0x9e1   : > { %v19984_v58 = vadd.f32 %v19980_v53, %v19901_v12 }
 0x9e6   : > { %v20063_v16 = vpop.f32.mrf.mxu1 }
 0x9e7   : > { %v20067_v57 = vadd.f32 %v20063_v16, %v19984_v58 }
 0x9e8   : > { %v21869_v33 = vpop.f32.mrf.mxu1 }
 0x9e9   : > { %v20150_v52 = vadd.f32 %v20146_v5, %v20067_v57 }
 0x9ee   : > { %v20229_v32 = vpop.f32.mrf.mxu1 }
 0x9ef   : > { %v20233_v46 = vadd.f32 %v20229_v32, %v20150_v52 }
 0x9f0   : > { %v21891_v8 = vpop.f32.mrf.mxu1 }
 0x9f1   : > { %v20316_v24 = vadd.f32 %v20312_v59, %v20233_v46 }
 0x9f6   : > { %v20395_v6 = vpop.f32.mrf.mxu1 }
 0x9f7   : > { %v20399_v2 = vadd.f32 %v20395_v6, %v20316_v24 }
 0x9f8   : > { %v21913_v35 = vpop.f32.mrf.mxu1 }
 0x9f9   : > { %v20400_v45 = vmax.f32 %v20399_v2, 0.0 }
 0x9fb   : > { %21945 = vmatmul.mubr.msk.f32.vlgmr.msra.gmra.mxu0 %vm12599_vm4, %v20400_v45 }
 0xabb   : > { %v20486_v41 = vpop.f32.mrf.mxu0 }
 0xabc   : > { %v20487_v37 = vadd.f32 %v20486_v41, %v20416_v61 }
 0xabd   : > { %v21946_v26 = vpop.f32.mrf.mxu0 }
 0xabe   : > { %v20490_v21 = vmax.f32 %v20487_v37, 0.0 }
 0xac0   : > { %21970 = vmatmul.mubr.msk.f32.vlgmr.msra.gmra.mxu1 %vm20503_vm13, %v20490_v21 }
 0xb80   : > { %v20577_v54 = vpop.f32.mrf.mxu1 }
 0xb81   : > { %v20578_v43 = vadd.f32 %v20577_v54, %v20502_v50 }
 0xb82   : > { %v21971_v17 = vpop.f32.mrf.mxu1 }
 0xb83   : > { %20582 = vst.msk [vmem:[%s405_s1] sm:$0x1] %vm20581_vm15, %v20578_v43 }
 0xb84   : > { %22234 = shalt.err (!%p22231_p3)
}
 0xb85   : > { %s22235_s18 = scalar_lea.hbm %s27118_s16, 16  ;;  %s22239_s29 = scalar_lea.hbm %s27165_s12, 32 }
 0xb86   : > { %p22236_p4 = scmp.ne.s32.totalorder %s27118_s16, %s22235_s18  ;;  %p22240_p9 = scmp.lt.s32.totalorder %s27118_s16, %s27165_s12 }
 0xb87   : > { %p22241_p10 = scmp.lt.s32.totalorder %s22239_s29, %s22235_s18 }
 0xb88   : > { %p22237_p7 = pnand %p22236_p4, %p22413_p5 }
 0xb89   : > { %p22242_p11 = por %p22241_p10, %p22240_p9 }
 0xb8a   : > { %p22238_p8 = pneg %p22237_p7 }
 0xb8c   : > { %p22243_p12 = pnand %p22242_p11, %p22238_p8 }
 0xb8e   : > { %22246 = shalt.err (!%p22243_p12)
}
 0xb8f   : > { %21973 = dma.vmem_to_hbm [thread:$0]  (%p22413_p5), %s20597_s15, 16, %s27118_s16, %s20584_s28  }
 0xb90 PF: > { %p21979_p13 = scmp.ge.s32.totalorder %s22281_s24, 2  ;;  %s20608_s0 = sand.u32 1, %s22269_s21  }
 0xb91   : > { %s20609_s17 = scalar_lea.sflag [#allocation8], %s20608_s0 }
 0xb92   : > { %p21976_p0 = pnand %p21979_p13, %p22417_p6 }
 0xb94   : > { %p21977_p1 = pneg %p21976_p0 }
 0xb96   : > { %22264 = dma.done.wait (%p21977_p1), %s20609_s17, 16  }
 0xb97   : > { %22266 = vsyncadd (%p21977_p1), %s20609_s17, 4294967280  ;;  %p22_p2 = scmp.ge.s32.totalorder %s22400_s27, 4   ;;  %s27406_s21 = smov %s22273_s22 }
 0xb98   : > { %s27407_s22 = smov %s22277_s23  ;;  %s27408_s23 = smov %s22411_s30 }
 0xb99   : > { %s27409_s24 = smov %s22400_s27  ;;  %24 = sbr.rel (!%p22_p2) target bundleno = 6 (0x6), region = 166 }
 0xb9e   :  { %20613 = vsyncpa [#allocation8], 1 }
 0xb9f   :  { %20615 = vsyncpa [#allocation8 + $0x1], 1 }

</bundles_post_ra>
